<compile_context>
chip_gen: v7x
topology: tpu7x:2x2x1
jax: 0.10.0
libtpu: 0.0.40
codegen_flags: <defaults>
</compile_context>

<pallas_src>
import numpy as np
import jax
import jax.numpy as jnp
from jax import lax
from jax.experimental import pallas as pl
from jax.experimental.pallas import tpu as pltpu


# ----------------------------- parameter prep (glue) -----------------------------

def _conv_matrices(w, win):
    """w: (Cout, Cin, 3, 3) -> (3, Win*Cin, Wout*Cout) f32 block-Toeplitz matrices
    with M[dy, (j+dx)*Cin+ci, j*Cout+co] = w[co, ci, dy, dx]."""
    w = np.asarray(w, np.float32)
    cout, cin, kh, kw = w.shape
    wout = win - kw + 1
    m = np.zeros((kh, win * cin, wout * cout), np.float32)
    for dy in range(kh):
        for j in range(wout):
            for dx in range(kw):
                m[dy, (j + dx) * cin:(j + dx + 1) * cin,
                  j * cout:(j + 1) * cout] = w[:, :, dy, dx].T
    return m


def _bias_row(b, wout):
    """(1, Wout*Cout) f32 row with bias tiled channel-fastest."""
    b = np.asarray(b, np.float32)
    return jnp.asarray(np.tile(b, wout).reshape(1, -1))


def _pool_col_select(win, c):
    """(Win*C - C, Wout*C) 0/1 selector.  After the lane pre-max
    m[:, l] = max(y[:, l], y[:, l+C]), pooled col (j, cc) = m[:, 2j*C+cc]."""
    wout = win // 2
    s = np.zeros((win * c - c, wout * c), np.float32)
    for j in range(wout):
        for cc in range(c):
            s[2 * j * c + cc, j * c + cc] = 1.0
    return s


def _fc1_permuted(w1):
    """w1: (128, 96) with torch flatten order c*16+i*4+j.
    Returns (4, 24, 128) f32 with W[i, j*6+c, k] = w1[k, c*16+i*4+j]."""
    w1 = np.asarray(w1, np.float32)
    out = np.zeros((4, 24, 128), np.float32)
    for i in range(4):
        for j in range(4):
            for c in range(6):
                out[i, j * 6 + c, :] = w1[:, c * 16 + i * 4 + j]
    return out


def init_params(key):
    ks = jax.random.split(key, 12)

    def w(k, shape, fan_in):
        return jax.random.normal(k, shape, jnp.float32) / np.sqrt(fan_in)

    return dict(
        w_c1=w(ks[0], (6, 1, 3, 3), 9),     b_c1=w(ks[1], (6,), 9),
        w_c2=w(ks[2], (16, 6, 3, 3), 54),   b_c2=w(ks[3], (16,), 54),
        w_c3=w(ks[4], (6, 16, 3, 3), 144),  b_c3=w(ks[5], (6,), 144),
        w_f1=w(ks[6], (128, 96), 96),       b_f1=w(ks[7], (128,), 96),
        w_f2=w(ks[8], (48, 128), 128),      b_f2=w(ks[9], (48,), 128),
        w_f3=w(ks[10], (7, 48), 48),        b_f3=w(ks[11], (7,), 48),
    )


def build_kernel_weights(p):
    bf = jnp.bfloat16

    m1 = _conv_matrices(p['w_c1'], 48)          # (3, 48, 276)
    s1 = _pool_col_select(46, 6)                # (270, 138)
    m2 = _conv_matrices(p['w_c2'], 23)          # (3, 138, 336)
    m3 = _conv_matrices(p['w_c3'], 10)          # (3, 160, 48)
    s2 = _pool_col_select(21, 16)               # (320, 160)
    w1 = _fc1_permuted(p['w_f1'])               # (4, 24, 128)
    s3 = _pool_col_select(8, 6)                 # (42, 24)

    # Fold the (linear) pool-column selections of pool2 / pool3 into the next layer's
    # weights; the selection is a row scatter, so the bf16 cast stays exact per entry.
    m3f = np.einsum('kl,dln->dkn', s2, m3)      # (3, 320, 48)
    w1f = np.einsum('kl,iln->ikn', s3, w1)      # (4, 42, 128)

    # Final FC padded to a lane-dense 128-wide output; pad columns get -1e30 bias so
    # they are inert under log_softmax.
    w3p = np.zeros((48, 128), np.float32)
    w3p[:, :7] = np.asarray(p['w_f3'], np.float32).T
    b3p = np.full((1, 128), -1e30, np.float32)
    b3p[0, :7] = np.asarray(p['b_f3'], np.float32)

    return [
        jnp.asarray(m1, bf), _bias_row(p['b_c1'], 46), jnp.asarray(s1, bf),
        jnp.asarray(m2, bf), _bias_row(p['b_c2'], 21),
        jnp.asarray(m3f, bf), _bias_row(p['b_c3'], 8),
        jnp.asarray(w1f, bf), jnp.asarray(np.asarray(p['b_f1'], np.float32).reshape(1, 128)),
        jnp.asarray(np.asarray(p['w_f2'], np.float32).T, dtype=bf),
        jnp.asarray(np.asarray(p['b_f2'], np.float32).reshape(1, 48)),
        jnp.asarray(w3p, bf), jnp.asarray(b3p),
    ]


# --------------------------------- Pallas kernel ---------------------------------

def _fer_kernel(x_ref,
                m1_ref, b1_ref, s1_ref,
                m2_ref, b2_ref,
                m3_ref, b3_ref,
                w1_ref, bf1_ref, w2_ref, bf2_ref, w3_ref, bf3_ref,
                o_ref):
    B = o_ref.shape[0]          # images per block (multiple of 8)
    bf16 = jnp.bfloat16

    def dot(a, b):
        # bf16 operands, f32 accumulation on the MXU.
        return jnp.dot(a.astype(bf16), b.astype(bf16),
                       preferred_element_type=jnp.float32)

    def conv_relu(inp, m_ref, b_ref):
        # inp: (Hin, B, Win*Cin) f32 -> (Hout*B, Wout*Cout) f32
        hin, _, wc = inp.shape
        hout = hin - 2
        acc = dot(inp[0:hout].reshape(hout * B, wc), m_ref[0])
        acc = acc + dot(inp[1:hout + 1].reshape(hout * B, wc), m_ref[1])
        acc = acc + dot(inp[2:hout + 2].reshape(hout * B, wc), m_ref[2])
        return jnp.maximum(acc + b_ref[...], 0.0)

    def pool_rows(y, hin):
        # Row half of the 2x2 max-pool: leading-dim pair max (floor), no MXU work,
        # no sublane relayout.  (Hin*B, WC) -> (Hout, B, WC).
        wc = y.shape[1]
        hout = hin // 2
        z = y.reshape(hin, B, wc)[:2 * hout].reshape(hout, 2, B, wc)
        return jnp.maximum(z[:, 0], z[:, 1])

    def pool_cols_pre(z, c):
        # Lane pre-max of W-adjacent channel groups; the column selection is done
        # either by one 0/1 matmul (pool1) or folded into the next layer's weights.
        return jnp.maximum(z[:, :, :-c], z[:, :, c:])

    x = x_ref[...]                                        # (48, B, 48) f32
    y = conv_relu(x, m1_ref, b1_ref)                      # (46*B, 276)
    p = pool_cols_pre(pool_rows(y, 46), 6)                # (23, B, 270)
    y = dot(p.reshape(23 * B, 270), s1_ref[...])          # (23*B, 138)  column select
    y = conv_relu(y.reshape(23, B, 138), m2_ref, b2_ref)  # (21*B, 336)
    p = pool_cols_pre(pool_rows(y, 21), 16)               # (10, B, 320) select folded into m3
    y = conv_relu(p, m3_ref, b3_ref)                      # (8*B, 48)
    p = pool_cols_pre(pool_rows(y, 8), 6)                 # (4, B, 42)   select folded into w1

    # flatten + fc1 (+relu) as four batched (B,42)@(42,128) partial dots
    h = bf1_ref[...]
    for i in range(4):
        h = h + dot(p[i], w1_ref[i])
    h = jnp.maximum(h, 0.0)                                        # (B, 128)
    h = jnp.maximum(dot(h, w2_ref[...]) + bf2_ref[...], 0.0)       # (B, 48)
    logits = dot(h, w3_ref[...]) + bf3_ref[...]                    # (B, 128)

    # log_softmax over the class dim (pad columns carry -1e30 bias -> exp underflows to 0)
    mx = jnp.max(logits, axis=-1, keepdims=True)
    lse = jnp.log(jnp.sum(jnp.exp(logits - mx), axis=-1, keepdims=True)) + mx
    o_ref[...] = logits - lse


def facial_emo_recognition(image_nchw, params, *, block_b=16):
    """image_nchw: (N, 1, 48, 48) float32 -> (N, 7) log-probs."""
    n = image_nchw.shape[0]
    assert block_b % 8 == 0
    n_pad = ((n + block_b - 1) // block_b) * block_b

    # (N,1,48,48) -> (H=48, N_pad, W=48): batch on sublanes, W (C=1) on lanes.
    x = image_nchw.astype(jnp.float32).reshape(n, 48, 48)
    if n_pad != n:
        x = jnp.concatenate([x, jnp.zeros((n_pad - n, 48, 48), jnp.float32)], axis=0)
    x = jnp.transpose(x, (1, 0, 2))

    weights = build_kernel_weights(params)

    def full_spec(a):
        nd = a.ndim
        return pl.BlockSpec(tuple(int(d) for d in a.shape),
                            lambda i, _nd=nd: (0,) * _nd)

    in_specs = [pl.BlockSpec((48, block_b, 48), lambda i: (0, i, 0))] + \
               [full_spec(a) for a in weights]
    out_specs = pl.BlockSpec((block_b, 128), lambda i: (i, 0))

    # advisory cost estimate for XLA's scheduler
    macs = (3 * 46 * 48 * 276 + 23 * 270 * 138 +
            3 * 21 * 138 * 336 +
            3 * 8 * 320 * 48 +
            4 * 42 * 128 + 128 * 48 + 48 * 128)
    weight_bytes = int(sum(int(np.prod(a.shape)) * a.dtype.itemsize for a in weights))
    cost = pl.CostEstimate(flops=2 * macs * n_pad,
                           transcendentals=128 * n_pad,
                           bytes_accessed=weight_bytes + n_pad * (48 * 48 * 4 + 128 * 4))

    out = pl.pallas_call(
        _fer_kernel,
        out_shape=jax.ShapeDtypeStruct((n_pad, 128), jnp.float32),
        grid=(n_pad // block_b,),
        in_specs=in_specs,
        out_specs=out_specs,
        compiler_params=pltpu.CompilerParams(dimension_semantics=("parallel",)),
        cost_estimate=cost,
    )(x, *weights)
    return out[:n, :7]


# ------------------------------- pure-JAX reference -------------------------------

def reference(x, p):
    hp = lax.Precision.HIGHEST

    def conv(x, w, b):
        y = lax.conv_general_dilated(x, w, (1, 1), 'VALID',
                                     dimension_numbers=('NCHW', 'OIHW', 'NCHW'),
                                     precision=hp)
        return jnp.maximum(y + b[None, :, None, None], 0.0)

    def pool(y):
        return lax.reduce_window(y, -jnp.inf, lax.max,
                                 (1, 1, 2, 2), (1, 1, 2, 2), 'VALID')

    y = pool(conv(x, p['w_c1'], p['b_c1']))
    y = pool(conv(y, p['w_c2'], p['b_c2']))
    y = pool(conv(y, p['w_c3'], p['b_c3']))
    y = y.reshape(y.shape[0], 96)
    y = jnp.maximum(jnp.dot(y, p['w_f1'].T, precision=hp) + p['b_f1'], 0.0)
    y = jnp.maximum(jnp.dot(y, p['w_f2'].T, precision=hp) + p['b_f2'], 0.0)
    logits = jnp.dot(y, p['w_f3'].T, precision=hp) + p['b_f3']
    return jax.nn.log_softmax(logits, axis=-1)


if __name__ == "__main__":
    # The module's hard-coded flatten (6*4*4) implies 48x48 single-channel input;
    # batch kept small (N=2); it is padded to one B=16 block internally.
    x = jax.random.normal(jax.random.PRNGKey(0), (2, 1, 48, 48), jnp.float32)
    params = init_params(jax.random.PRNGKey(1))

    out = facial_emo_recognition(x, params)
    out = jax.block_until_ready(out)
    assert out.shape == (2, 7)

    ref = reference(x, params)
    err = float(jnp.max(jnp.abs(out - ref)))
    # bf16 matmul operands (f32 accumulation) vs f32 reference -> allow ~1e-1 slack.
    if not jnp.allclose(out, ref, atol=1e-1, rtol=1e-1):
        raise SystemExit(f"mismatch vs reference, max abs err = {err:.3e}")

    print("KERNEL_OK")
</pallas_src>

<mosaic_0001>
module attributes {stable_mosaic.version = 11 : i64} {
  func.func @_fer_kernel(%arg0: i32, %arg1: memref<48x16x48xf32, #tpu.memory_space<vmem>>, %arg2: memref<3x48x276xbf16, #tpu.memory_space<vmem>>, %arg3: memref<1x276xf32, #tpu.memory_space<vmem>>, %arg4: memref<270x138xbf16, #tpu.memory_space<vmem>>, %arg5: memref<3x138x336xbf16, #tpu.memory_space<vmem>>, %arg6: memref<1x336xf32, #tpu.memory_space<vmem>>, %arg7: memref<3x320x48xbf16, #tpu.memory_space<vmem>>, %arg8: memref<1x48xf32, #tpu.memory_space<vmem>>, %arg9: memref<4x42x128xbf16, #tpu.memory_space<vmem>>, %arg10: memref<1x128xf32, #tpu.memory_space<vmem>>, %arg11: memref<128x48xbf16, #tpu.memory_space<vmem>>, %arg12: memref<1x48xf32, #tpu.memory_space<vmem>>, %arg13: memref<48x128xbf16, #tpu.memory_space<vmem>>, %arg14: memref<1x128xf32, #tpu.memory_space<vmem>>, %arg15: memref<16x128xf32, #tpu.memory_space<vmem>>) attributes {dimension_semantics = [#tpu.dimension_semantics<parallel>], iteration_bounds = array<i64: 1>, scalar_prefetch = 0 : i64, scratch_operands = 0 : i64, tpu.core_type = #tpu.core_type<tc>, window_params = [{transform_indices = @transform_0, window_bounds = array<i64: 48, 16, 48>}, {pipeline_mode = #tpu.pipeline_mode<synchronous>, transform_indices = @transform_1, window_bounds = array<i64: 3, 48, 276>}, {pipeline_mode = #tpu.pipeline_mode<synchronous>, transform_indices = @transform_2, window_bounds = array<i64: 1, 276>}, {pipeline_mode = #tpu.pipeline_mode<synchronous>, transform_indices = @transform_3, window_bounds = array<i64: 270, 138>}, {pipeline_mode = #tpu.pipeline_mode<synchronous>, transform_indices = @transform_4, window_bounds = array<i64: 3, 138, 336>}, {pipeline_mode = #tpu.pipeline_mode<synchronous>, transform_indices = @transform_5, window_bounds = array<i64: 1, 336>}, {pipeline_mode = #tpu.pipeline_mode<synchronous>, transform_indices = @transform_6, window_bounds = array<i64: 3, 320, 48>}, {pipeline_mode = #tpu.pipeline_mode<synchronous>, transform_indices = @transform_7, window_bounds = array<i64: 1, 48>}, {pipeline_mode = #tpu.pipeline_mode<synchronous>, transform_indices = @transform_8, window_bounds = array<i64: 4, 42, 128>}, {pipeline_mode = #tpu.pipeline_mode<synchronous>, transform_indices = @transform_9, window_bounds = array<i64: 1, 128>}, {pipeline_mode = #tpu.pipeline_mode<synchronous>, transform_indices = @transform_10, window_bounds = array<i64: 128, 48>}, {pipeline_mode = #tpu.pipeline_mode<synchronous>, transform_indices = @transform_11, window_bounds = array<i64: 1, 48>}, {pipeline_mode = #tpu.pipeline_mode<synchronous>, transform_indices = @transform_12, window_bounds = array<i64: 48, 128>}, {pipeline_mode = #tpu.pipeline_mode<synchronous>, transform_indices = @transform_13, window_bounds = array<i64: 1, 128>}, {transform_indices = @transform_14, window_bounds = array<i64: 16, 128>}]} {
    %c0 = arith.constant 0 : index
    %c0_0 = arith.constant 0 : index
    %c0_1 = arith.constant 0 : index
    %0 = vector.load %arg1[%c0, %c0_0, %c0_1] : memref<48x16x48xf32, #tpu.memory_space<vmem>>, vector<48x16x48xf32>
    %1 = vector.extract_strided_slice %0 {offsets = [0, 0, 0], sizes = [46, 16, 48], strides = [1, 1, 1]} : vector<48x16x48xf32> to vector<46x16x48xf32>
    %2 = vector.shape_cast %1 : vector<46x16x48xf32> to vector<736x48xf32>
    %c0_2 = arith.constant 0 : index
    %c0_3 = arith.constant 0 : index
    %c0_4 = arith.constant 0 : index
    %3 = vector.load %arg2[%c0_2, %c0_3, %c0_4] : memref<3x48x276xbf16, #tpu.memory_space<vmem>>, vector<1x48x276xbf16>
    %4 = vector.shape_cast %3 : vector<1x48x276xbf16> to vector<48x276xbf16>
    %5 = arith.truncf %2 : vector<736x48xf32> to vector<736x48xbf16>
    %cst = arith.constant dense<0.000000e+00> : vector<736x276xf32>
    %6 = tpu.matmul %5, %4, %cst {dimension_numbers = #tpu.dot_dimension_numbers<[1], [0], [0], [1], [0, 0, 1, 1], [], []>} : vector<736x48xbf16>, vector<48x276xbf16>, vector<736x276xf32> -> vector<736x276xf32>
    %7 = vector.extract_strided_slice %0 {offsets = [1, 0, 0], sizes = [46, 16, 48], strides = [1, 1, 1]} : vector<48x16x48xf32> to vector<46x16x48xf32>
    %8 = vector.shape_cast %7 : vector<46x16x48xf32> to vector<736x48xf32>
    %c1 = arith.constant 1 : index
    %c0_5 = arith.constant 0 : index
    %c0_6 = arith.constant 0 : index
    %9 = vector.load %arg2[%c1, %c0_5, %c0_6] : memref<3x48x276xbf16, #tpu.memory_space<vmem>>, vector<1x48x276xbf16>
    %10 = vector.shape_cast %9 : vector<1x48x276xbf16> to vector<48x276xbf16>
    %11 = arith.truncf %8 : vector<736x48xf32> to vector<736x48xbf16>
    %cst_7 = arith.constant dense<0.000000e+00> : vector<736x276xf32>
    %12 = tpu.matmul %11, %10, %cst_7 {dimension_numbers = #tpu.dot_dimension_numbers<[1], [0], [0], [1], [0, 0, 1, 1], [], []>} : vector<736x48xbf16>, vector<48x276xbf16>, vector<736x276xf32> -> vector<736x276xf32>
    %13 = arith.addf %6, %12 : vector<736x276xf32>
    %14 = vector.extract_strided_slice %0 {offsets = [2, 0, 0], sizes = [46, 16, 48], strides = [1, 1, 1]} : vector<48x16x48xf32> to vector<46x16x48xf32>
    %15 = vector.shape_cast %14 : vector<46x16x48xf32> to vector<736x48xf32>
    %c2 = arith.constant 2 : index
    %c0_8 = arith.constant 0 : index
    %c0_9 = arith.constant 0 : index
    %16 = vector.load %arg2[%c2, %c0_8, %c0_9] : memref<3x48x276xbf16, #tpu.memory_space<vmem>>, vector<1x48x276xbf16>
    %17 = vector.shape_cast %16 : vector<1x48x276xbf16> to vector<48x276xbf16>
    %18 = arith.truncf %15 : vector<736x48xf32> to vector<736x48xbf16>
    %cst_10 = arith.constant dense<0.000000e+00> : vector<736x276xf32>
    %19 = tpu.matmul %18, %17, %cst_10 {dimension_numbers = #tpu.dot_dimension_numbers<[1], [0], [0], [1], [0, 0, 1, 1], [], []>} : vector<736x48xbf16>, vector<48x276xbf16>, vector<736x276xf32> -> vector<736x276xf32>
    %20 = arith.addf %13, %19 : vector<736x276xf32>
    %c0_11 = arith.constant 0 : index
    %c0_12 = arith.constant 0 : index
    %21 = vector.load %arg3[%c0_11, %c0_12] : memref<1x276xf32, #tpu.memory_space<vmem>>, vector<1x276xf32>
    %22 = vector.broadcast %21 : vector<1x276xf32> to vector<736x276xf32>
    %23 = arith.addf %20, %22 : vector<736x276xf32>
    %cst_13 = arith.constant 0.000000e+00 : f32
    %24 = vector.broadcast %cst_13 : f32 to vector<736x276xf32>
    %25 = arith.maximumf %23, %24 : vector<736x276xf32>
    %26 = vector.shape_cast %25 : vector<736x276xf32> to vector<46x16x276xf32>
    %27 = vector.shape_cast %26 : vector<46x16x276xf32> to vector<23x2x16x276xf32>
    %28 = vector.extract_strided_slice %27 {offsets = [0, 0, 0, 0], sizes = [23, 1, 16, 276], strides = [1, 1, 1, 1]} : vector<23x2x16x276xf32> to vector<23x1x16x276xf32>
    %29 = vector.shape_cast %28 : vector<23x1x16x276xf32> to vector<23x16x276xf32>
    %30 = vector.extract_strided_slice %27 {offsets = [0, 1, 0, 0], sizes = [23, 1, 16, 276], strides = [1, 1, 1, 1]} : vector<23x2x16x276xf32> to vector<23x1x16x276xf32>
    %31 = vector.shape_cast %30 : vector<23x1x16x276xf32> to vector<23x16x276xf32>
    %32 = arith.maximumf %29, %31 : vector<23x16x276xf32>
    %33 = vector.extract_strided_slice %32 {offsets = [0, 0, 0], sizes = [23, 16, 270], strides = [1, 1, 1]} : vector<23x16x276xf32> to vector<23x16x270xf32>
    %34 = vector.extract_strided_slice %32 {offsets = [0, 0, 6], sizes = [23, 16, 270], strides = [1, 1, 1]} : vector<23x16x276xf32> to vector<23x16x270xf32>
    %35 = arith.maximumf %33, %34 : vector<23x16x270xf32>
    %36 = vector.shape_cast %35 : vector<23x16x270xf32> to vector<368x270xf32>
    %c0_14 = arith.constant 0 : index
    %c0_15 = arith.constant 0 : index
    %37 = vector.load %arg4[%c0_14, %c0_15] : memref<270x138xbf16, #tpu.memory_space<vmem>>, vector<270x138xbf16>
    %38 = arith.truncf %36 : vector<368x270xf32> to vector<368x270xbf16>
    %cst_16 = arith.constant dense<0.000000e+00> : vector<368x138xf32>
    %39 = tpu.matmul %38, %37, %cst_16 {dimension_numbers = #tpu.dot_dimension_numbers<[1], [0], [0], [1], [0, 0, 1, 1], [], []>} : vector<368x270xbf16>, vector<270x138xbf16>, vector<368x138xf32> -> vector<368x138xf32>
    %40 = vector.shape_cast %39 : vector<368x138xf32> to vector<23x16x138xf32>
    %41 = vector.extract_strided_slice %40 {offsets = [0, 0, 0], sizes = [21, 16, 138], strides = [1, 1, 1]} : vector<23x16x138xf32> to vector<21x16x138xf32>
    %42 = vector.shape_cast %41 : vector<21x16x138xf32> to vector<336x138xf32>
    %c0_17 = arith.constant 0 : index
    %c0_18 = arith.constant 0 : index
    %c0_19 = arith.constant 0 : index
    %43 = vector.load %arg5[%c0_17, %c0_18, %c0_19] : memref<3x138x336xbf16, #tpu.memory_space<vmem>>, vector<1x138x336xbf16>
    %44 = vector.shape_cast %43 : vector<1x138x336xbf16> to vector<138x336xbf16>
    %45 = arith.truncf %42 : vector<336x138xf32> to vector<336x138xbf16>
    %cst_20 = arith.constant dense<0.000000e+00> : vector<336x336xf32>
    %46 = tpu.matmul %45, %44, %cst_20 {dimension_numbers = #tpu.dot_dimension_numbers<[1], [0], [0], [1], [0, 0, 1, 1], [], []>} : vector<336x138xbf16>, vector<138x336xbf16>, vector<336x336xf32> -> vector<336x336xf32>
    %47 = vector.extract_strided_slice %40 {offsets = [1, 0, 0], sizes = [21, 16, 138], strides = [1, 1, 1]} : vector<23x16x138xf32> to vector<21x16x138xf32>
    %48 = vector.shape_cast %47 : vector<21x16x138xf32> to vector<336x138xf32>
    %c1_21 = arith.constant 1 : index
    %c0_22 = arith.constant 0 : index
    %c0_23 = arith.constant 0 : index
    %49 = vector.load %arg5[%c1_21, %c0_22, %c0_23] : memref<3x138x336xbf16, #tpu.memory_space<vmem>>, vector<1x138x336xbf16>
    %50 = vector.shape_cast %49 : vector<1x138x336xbf16> to vector<138x336xbf16>
    %51 = arith.truncf %48 : vector<336x138xf32> to vector<336x138xbf16>
    %cst_24 = arith.constant dense<0.000000e+00> : vector<336x336xf32>
    %52 = tpu.matmul %51, %50, %cst_24 {dimension_numbers = #tpu.dot_dimension_numbers<[1], [0], [0], [1], [0, 0, 1, 1], [], []>} : vector<336x138xbf16>, vector<138x336xbf16>, vector<336x336xf32> -> vector<336x336xf32>
    %53 = arith.addf %46, %52 : vector<336x336xf32>
    %54 = vector.extract_strided_slice %40 {offsets = [2, 0, 0], sizes = [21, 16, 138], strides = [1, 1, 1]} : vector<23x16x138xf32> to vector<21x16x138xf32>
    %55 = vector.shape_cast %54 : vector<21x16x138xf32> to vector<336x138xf32>
    %c2_25 = arith.constant 2 : index
    %c0_26 = arith.constant 0 : index
    %c0_27 = arith.constant 0 : index
    %56 = vector.load %arg5[%c2_25, %c0_26, %c0_27] : memref<3x138x336xbf16, #tpu.memory_space<vmem>>, vector<1x138x336xbf16>
    %57 = vector.shape_cast %56 : vector<1x138x336xbf16> to vector<138x336xbf16>
    %58 = arith.truncf %55 : vector<336x138xf32> to vector<336x138xbf16>
    %cst_28 = arith.constant dense<0.000000e+00> : vector<336x336xf32>
    %59 = tpu.matmul %58, %57, %cst_28 {dimension_numbers = #tpu.dot_dimension_numbers<[1], [0], [0], [1], [0, 0, 1, 1], [], []>} : vector<336x138xbf16>, vector<138x336xbf16>, vector<336x336xf32> -> vector<336x336xf32>
    %60 = arith.addf %53, %59 : vector<336x336xf32>
    %c0_29 = arith.constant 0 : index
    %c0_30 = arith.constant 0 : index
    %61 = vector.load %arg6[%c0_29, %c0_30] : memref<1x336xf32, #tpu.memory_space<vmem>>, vector<1x336xf32>
    %62 = vector.broadcast %61 : vector<1x336xf32> to vector<336x336xf32>
    %63 = arith.addf %60, %62 : vector<336x336xf32>
    %cst_31 = arith.constant 0.000000e+00 : f32
    %64 = vector.broadcast %cst_31 : f32 to vector<336x336xf32>
    %65 = arith.maximumf %63, %64 : vector<336x336xf32>
    %66 = vector.shape_cast %65 : vector<336x336xf32> to vector<21x16x336xf32>
    %67 = vector.extract_strided_slice %66 {offsets = [0, 0, 0], sizes = [20, 16, 336], strides = [1, 1, 1]} : vector<21x16x336xf32> to vector<20x16x336xf32>
    %68 = vector.shape_cast %67 : vector<20x16x336xf32> to vector<10x2x16x336xf32>
    %69 = vector.extract_strided_slice %68 {offsets = [0, 0, 0, 0], sizes = [10, 1, 16, 336], strides = [1, 1, 1, 1]} : vector<10x2x16x336xf32> to vector<10x1x16x336xf32>
    %70 = vector.shape_cast %69 : vector<10x1x16x336xf32> to vector<10x16x336xf32>
    %71 = vector.extract_strided_slice %68 {offsets = [0, 1, 0, 0], sizes = [10, 1, 16, 336], strides = [1, 1, 1, 1]} : vector<10x2x16x336xf32> to vector<10x1x16x336xf32>
    %72 = vector.shape_cast %71 : vector<10x1x16x336xf32> to vector<10x16x336xf32>
    %73 = arith.maximumf %70, %72 : vector<10x16x336xf32>
    %74 = vector.extract_strided_slice %73 {offsets = [0, 0, 0], sizes = [10, 16, 320], strides = [1, 1, 1]} : vector<10x16x336xf32> to vector<10x16x320xf32>
    %75 = vector.extract_strided_slice %73 {offsets = [0, 0, 16], sizes = [10, 16, 320], strides = [1, 1, 1]} : vector<10x16x336xf32> to vector<10x16x320xf32>
    %76 = arith.maximumf %74, %75 : vector<10x16x320xf32>
    %77 = vector.extract_strided_slice %76 {offsets = [0, 0, 0], sizes = [8, 16, 320], strides = [1, 1, 1]} : vector<10x16x320xf32> to vector<8x16x320xf32>
    %78 = vector.shape_cast %77 : vector<8x16x320xf32> to vector<128x320xf32>
    %c0_32 = arith.constant 0 : index
    %c0_33 = arith.constant 0 : index
    %c0_34 = arith.constant 0 : index
    %79 = vector.load %arg7[%c0_32, %c0_33, %c0_34] : memref<3x320x48xbf16, #tpu.memory_space<vmem>>, vector<1x320x48xbf16>
    %80 = vector.shape_cast %79 : vector<1x320x48xbf16> to vector<320x48xbf16>
    %81 = arith.truncf %78 : vector<128x320xf32> to vector<128x320xbf16>
    %cst_35 = arith.constant dense<0.000000e+00> : vector<128x48xf32>
    %82 = tpu.matmul %81, %80, %cst_35 {dimension_numbers = #tpu.dot_dimension_numbers<[1], [0], [0], [1], [0, 0, 1, 1], [], []>} : vector<128x320xbf16>, vector<320x48xbf16>, vector<128x48xf32> -> vector<128x48xf32>
    %83 = vector.extract_strided_slice %76 {offsets = [1, 0, 0], sizes = [8, 16, 320], strides = [1, 1, 1]} : vector<10x16x320xf32> to vector<8x16x320xf32>
    %84 = vector.shape_cast %83 : vector<8x16x320xf32> to vector<128x320xf32>
    %c1_36 = arith.constant 1 : index
    %c0_37 = arith.constant 0 : index
    %c0_38 = arith.constant 0 : index
    %85 = vector.load %arg7[%c1_36, %c0_37, %c0_38] : memref<3x320x48xbf16, #tpu.memory_space<vmem>>, vector<1x320x48xbf16>
    %86 = vector.shape_cast %85 : vector<1x320x48xbf16> to vector<320x48xbf16>
    %87 = arith.truncf %84 : vector<128x320xf32> to vector<128x320xbf16>
    %cst_39 = arith.constant dense<0.000000e+00> : vector<128x48xf32>
    %88 = tpu.matmul %87, %86, %cst_39 {dimension_numbers = #tpu.dot_dimension_numbers<[1], [0], [0], [1], [0, 0, 1, 1], [], []>} : vector<128x320xbf16>, vector<320x48xbf16>, vector<128x48xf32> -> vector<128x48xf32>
    %89 = arith.addf %82, %88 : vector<128x48xf32>
    %90 = vector.extract_strided_slice %76 {offsets = [2, 0, 0], sizes = [8, 16, 320], strides = [1, 1, 1]} : vector<10x16x320xf32> to vector<8x16x320xf32>
    %91 = vector.shape_cast %90 : vector<8x16x320xf32> to vector<128x320xf32>
    %c2_40 = arith.constant 2 : index
    %c0_41 = arith.constant 0 : index
    %c0_42 = arith.constant 0 : index
    %92 = vector.load %arg7[%c2_40, %c0_41, %c0_42] : memref<3x320x48xbf16, #tpu.memory_space<vmem>>, vector<1x320x48xbf16>
    %93 = vector.shape_cast %92 : vector<1x320x48xbf16> to vector<320x48xbf16>
    %94 = arith.truncf %91 : vector<128x320xf32> to vector<128x320xbf16>
    %cst_43 = arith.constant dense<0.000000e+00> : vector<128x48xf32>
    %95 = tpu.matmul %94, %93, %cst_43 {dimension_numbers = #tpu.dot_dimension_numbers<[1], [0], [0], [1], [0, 0, 1, 1], [], []>} : vector<128x320xbf16>, vector<320x48xbf16>, vector<128x48xf32> -> vector<128x48xf32>
    %96 = arith.addf %89, %95 : vector<128x48xf32>
    %c0_44 = arith.constant 0 : index
    %c0_45 = arith.constant 0 : index
    %97 = vector.load %arg8[%c0_44, %c0_45] : memref<1x48xf32, #tpu.memory_space<vmem>>, vector<1x48xf32>
    %98 = vector.broadcast %97 : vector<1x48xf32> to vector<128x48xf32>
    %99 = arith.addf %96, %98 : vector<128x48xf32>
    %cst_46 = arith.constant 0.000000e+00 : f32
    %100 = vector.broadcast %cst_46 : f32 to vector<128x48xf32>
    %101 = arith.maximumf %99, %100 : vector<128x48xf32>
    %102 = vector.shape_cast %101 : vector<128x48xf32> to vector<8x16x48xf32>
    %103 = vector.shape_cast %102 : vector<8x16x48xf32> to vector<4x2x16x48xf32>
    %104 = vector.extract_strided_slice %103 {offsets = [0, 0, 0, 0], sizes = [4, 1, 16, 48], strides = [1, 1, 1, 1]} : vector<4x2x16x48xf32> to vector<4x1x16x48xf32>
    %105 = vector.shape_cast %104 : vector<4x1x16x48xf32> to vector<4x16x48xf32>
    %106 = vector.extract_strided_slice %103 {offsets = [0, 1, 0, 0], sizes = [4, 1, 16, 48], strides = [1, 1, 1, 1]} : vector<4x2x16x48xf32> to vector<4x1x16x48xf32>
    %107 = vector.shape_cast %106 : vector<4x1x16x48xf32> to vector<4x16x48xf32>
    %108 = arith.maximumf %105, %107 : vector<4x16x48xf32>
    %109 = vector.extract_strided_slice %108 {offsets = [0, 0, 0], sizes = [4, 16, 42], strides = [1, 1, 1]} : vector<4x16x48xf32> to vector<4x16x42xf32>
    %110 = vector.extract_strided_slice %108 {offsets = [0, 0, 6], sizes = [4, 16, 42], strides = [1, 1, 1]} : vector<4x16x48xf32> to vector<4x16x42xf32>
    %111 = arith.maximumf %109, %110 : vector<4x16x42xf32>
    %c0_47 = arith.constant 0 : index
    %c0_48 = arith.constant 0 : index
    %112 = vector.load %arg10[%c0_47, %c0_48] : memref<1x128xf32, #tpu.memory_space<vmem>>, vector<1x128xf32>
    %113 = vector.extract_strided_slice %111 {offsets = [0, 0, 0], sizes = [1, 16, 42], strides = [1, 1, 1]} : vector<4x16x42xf32> to vector<1x16x42xf32>
    %114 = vector.shape_cast %113 : vector<1x16x42xf32> to vector<16x42xf32>
    %c0_49 = arith.constant 0 : index
    %c0_50 = arith.constant 0 : index
    %c0_51 = arith.constant 0 : index
    %115 = vector.load %arg9[%c0_49, %c0_50, %c0_51] : memref<4x42x128xbf16, #tpu.memory_space<vmem>>, vector<1x42x128xbf16>
    %116 = vector.shape_cast %115 : vector<1x42x128xbf16> to vector<42x128xbf16>
    %117 = arith.truncf %114 : vector<16x42xf32> to vector<16x42xbf16>
    %cst_52 = arith.constant dense<0.000000e+00> : vector<16x128xf32>
    %118 = tpu.matmul %117, %116, %cst_52 {dimension_numbers = #tpu.dot_dimension_numbers<[1], [0], [0], [1], [0, 0, 1, 1], [], []>} : vector<16x42xbf16>, vector<42x128xbf16>, vector<16x128xf32> -> vector<16x128xf32>
    %119 = vector.broadcast %112 : vector<1x128xf32> to vector<16x128xf32>
    %120 = arith.addf %119, %118 : vector<16x128xf32>
    %121 = vector.extract_strided_slice %111 {offsets = [1, 0, 0], sizes = [1, 16, 42], strides = [1, 1, 1]} : vector<4x16x42xf32> to vector<1x16x42xf32>
    %122 = vector.shape_cast %121 : vector<1x16x42xf32> to vector<16x42xf32>
    %c1_53 = arith.constant 1 : index
    %c0_54 = arith.constant 0 : index
    %c0_55 = arith.constant 0 : index
    %123 = vector.load %arg9[%c1_53, %c0_54, %c0_55] : memref<4x42x128xbf16, #tpu.memory_space<vmem>>, vector<1x42x128xbf16>
    %124 = vector.shape_cast %123 : vector<1x42x128xbf16> to vector<42x128xbf16>
    %125 = arith.truncf %122 : vector<16x42xf32> to vector<16x42xbf16>
    %cst_56 = arith.constant dense<0.000000e+00> : vector<16x128xf32>
    %126 = tpu.matmul %125, %124, %cst_56 {dimension_numbers = #tpu.dot_dimension_numbers<[1], [0], [0], [1], [0, 0, 1, 1], [], []>} : vector<16x42xbf16>, vector<42x128xbf16>, vector<16x128xf32> -> vector<16x128xf32>
    %127 = arith.addf %120, %126 : vector<16x128xf32>
    %128 = vector.extract_strided_slice %111 {offsets = [2, 0, 0], sizes = [1, 16, 42], strides = [1, 1, 1]} : vector<4x16x42xf32> to vector<1x16x42xf32>
    %129 = vector.shape_cast %128 : vector<1x16x42xf32> to vector<16x42xf32>
    %c2_57 = arith.constant 2 : index
    %c0_58 = arith.constant 0 : index
    %c0_59 = arith.constant 0 : index
    %130 = vector.load %arg9[%c2_57, %c0_58, %c0_59] : memref<4x42x128xbf16, #tpu.memory_space<vmem>>, vector<1x42x128xbf16>
    %131 = vector.shape_cast %130 : vector<1x42x128xbf16> to vector<42x128xbf16>
    %132 = arith.truncf %129 : vector<16x42xf32> to vector<16x42xbf16>
    %cst_60 = arith.constant dense<0.000000e+00> : vector<16x128xf32>
    %133 = tpu.matmul %132, %131, %cst_60 {dimension_numbers = #tpu.dot_dimension_numbers<[1], [0], [0], [1], [0, 0, 1, 1], [], []>} : vector<16x42xbf16>, vector<42x128xbf16>, vector<16x128xf32> -> vector<16x128xf32>
    %134 = arith.addf %127, %133 : vector<16x128xf32>
    %135 = vector.extract_strided_slice %111 {offsets = [3, 0, 0], sizes = [1, 16, 42], strides = [1, 1, 1]} : vector<4x16x42xf32> to vector<1x16x42xf32>
    %136 = vector.shape_cast %135 : vector<1x16x42xf32> to vector<16x42xf32>
    %c3 = arith.constant 3 : index
    %c0_61 = arith.constant 0 : index
    %c0_62 = arith.constant 0 : index
    %137 = vector.load %arg9[%c3, %c0_61, %c0_62] : memref<4x42x128xbf16, #tpu.memory_space<vmem>>, vector<1x42x128xbf16>
    %138 = vector.shape_cast %137 : vector<1x42x128xbf16> to vector<42x128xbf16>
    %139 = arith.truncf %136 : vector<16x42xf32> to vector<16x42xbf16>
    %cst_63 = arith.constant dense<0.000000e+00> : vector<16x128xf32>
    %140 = tpu.matmul %139, %138, %cst_63 {dimension_numbers = #tpu.dot_dimension_numbers<[1], [0], [0], [1], [0, 0, 1, 1], [], []>} : vector<16x42xbf16>, vector<42x128xbf16>, vector<16x128xf32> -> vector<16x128xf32>
    %141 = arith.addf %134, %140 : vector<16x128xf32>
    %cst_64 = arith.constant 0.000000e+00 : f32
    %142 = vector.broadcast %cst_64 : f32 to vector<16x128xf32>
    %143 = arith.maximumf %141, %142 : vector<16x128xf32>
    %c0_65 = arith.constant 0 : index
    %c0_66 = arith.constant 0 : index
    %144 = vector.load %arg11[%c0_65, %c0_66] : memref<128x48xbf16, #tpu.memory_space<vmem>>, vector<128x48xbf16>
    %145 = arith.truncf %143 : vector<16x128xf32> to vector<16x128xbf16>
    %cst_67 = arith.constant dense<0.000000e+00> : vector<16x48xf32>
    %146 = tpu.matmul %145, %144, %cst_67 {dimension_numbers = #tpu.dot_dimension_numbers<[1], [0], [0], [1], [0, 0, 1, 1], [], []>} : vector<16x128xbf16>, vector<128x48xbf16>, vector<16x48xf32> -> vector<16x48xf32>
    %c0_68 = arith.constant 0 : index
    %c0_69 = arith.constant 0 : index
    %147 = vector.load %arg12[%c0_68, %c0_69] : memref<1x48xf32, #tpu.memory_space<vmem>>, vector<1x48xf32>
    %148 = vector.broadcast %147 : vector<1x48xf32> to vector<16x48xf32>
    %149 = arith.addf %146, %148 : vector<16x48xf32>
    %cst_70 = arith.constant 0.000000e+00 : f32
    %150 = vector.broadcast %cst_70 : f32 to vector<16x48xf32>
    %151 = arith.maximumf %149, %150 : vector<16x48xf32>
    %c0_71 = arith.constant 0 : index
    %c0_72 = arith.constant 0 : index
    %152 = vector.load %arg13[%c0_71, %c0_72] : memref<48x128xbf16, #tpu.memory_space<vmem>>, vector<48x128xbf16>
    %153 = arith.truncf %151 : vector<16x48xf32> to vector<16x48xbf16>
    %cst_73 = arith.constant dense<0.000000e+00> : vector<16x128xf32>
    %154 = tpu.matmul %153, %152, %cst_73 {dimension_numbers = #tpu.dot_dimension_numbers<[1], [0], [0], [1], [0, 0, 1, 1], [], []>} : vector<16x48xbf16>, vector<48x128xbf16>, vector<16x128xf32> -> vector<16x128xf32>
    %c0_74 = arith.constant 0 : index
    %c0_75 = arith.constant 0 : index
    %155 = vector.load %arg14[%c0_74, %c0_75] : memref<1x128xf32, #tpu.memory_space<vmem>>, vector<1x128xf32>
    %156 = vector.broadcast %155 : vector<1x128xf32> to vector<16x128xf32>
    %157 = arith.addf %154, %156 : vector<16x128xf32>
    %cst_76 = arith.constant dense<0xFF800000> : vector<16xf32>
    %158 = vector.multi_reduction <maximumf>, %157, %cst_76 [1] : vector<16x128xf32> to vector<16xf32>
    %159 = vector.shape_cast %158 : vector<16xf32> to vector<16x1xf32>
    %160 = vector.broadcast %159 : vector<16x1xf32> to vector<16x128xf32>
    %161 = arith.subf %157, %160 : vector<16x128xf32>
    %162 = math.exp %161 : vector<16x128xf32>
    %cst_77 = arith.constant dense<0.000000e+00> : vector<16xf32>
    %163 = vector.multi_reduction <add>, %162, %cst_77 [1] : vector<16x128xf32> to vector<16xf32>
    %164 = vector.shape_cast %163 : vector<16xf32> to vector<16x1xf32>
    %165 = math.log %164 : vector<16x1xf32>
    %166 = arith.addf %165, %159 : vector<16x1xf32>
    %167 = vector.broadcast %166 : vector<16x1xf32> to vector<16x128xf32>
    %168 = arith.subf %157, %167 : vector<16x128xf32>
    %c0_78 = arith.constant 0 : index
    %c0_79 = arith.constant 0 : index
    %169 = vector.load %arg15[%c0_78, %c0_79] : memref<16x128xf32, #tpu.memory_space<vmem>>, vector<16x128xf32>
    tpu.vector_store %arg15[%c0_78, %c0_79], %168 {strides = array<i32>} : memref<16x128xf32, #tpu.memory_space<vmem>>, vector<16x128xf32>,
    return
  }
  func.func @transform_0(%arg0: i32) -> (i32, i32, i32) {
    %c0_i32 = arith.constant 0 : i32
    %c0_i32_0 = arith.constant 0 : i32
    %c0_i32_1 = arith.constant 0 : i32
    return %c0_i32, %arg0, %c0_i32_0 : i32, i32, i32
  }
  func.func @transform_1(%arg0: i32) -> (i32, i32, i32) {
    %c0_i32 = arith.constant 0 : i32
    %c0_i32_0 = arith.constant 0 : i32
    %c0_i32_1 = arith.constant 0 : i32
    %c0_i32_2 = arith.constant 0 : i32
    return %c0_i32, %c0_i32_0, %c0_i32_1 : i32, i32, i32
  }
  func.func @transform_2(%arg0: i32) -> (i32, i32) {
    %c0_i32 = arith.constant 0 : i32
    %c0_i32_0 = arith.constant 0 : i32
    %c0_i32_1 = arith.constant 0 : i32
    return %c0_i32, %c0_i32_0 : i32, i32
  }
  func.func @transform_3(%arg0: i32) -> (i32, i32) {
    %c0_i32 = arith.constant 0 : i32
    %c0_i32_0 = arith.constant 0 : i32
    %c0_i32_1 = arith.constant 0 : i32
    return %c0_i32, %c0_i32_0 : i32, i32
  }
  func.func @transform_4(%arg0: i32) -> (i32, i32, i32) {
    %c0_i32 = arith.constant 0 : i32
    %c0_i32_0 = arith.constant 0 : i32
    %c0_i32_1 = arith.constant 0 : i32
    %c0_i32_2 = arith.constant 0 : i32
    return %c0_i32, %c0_i32_0, %c0_i32_1 : i32, i32, i32
  }
  func.func @transform_5(%arg0: i32) -> (i32, i32) {
    %c0_i32 = arith.constant 0 : i32
    %c0_i32_0 = arith.constant 0 : i32
    %c0_i32_1 = arith.constant 0 : i32
    return %c0_i32, %c0_i32_0 : i32, i32
  }
  func.func @transform_6(%arg0: i32) -> (i32, i32, i32) {
    %c0_i32 = arith.constant 0 : i32
    %c0_i32_0 = arith.constant 0 : i32
    %c0_i32_1 = arith.constant 0 : i32
    %c0_i32_2 = arith.constant 0 : i32
    return %c0_i32, %c0_i32_0, %c0_i32_1 : i32, i32, i32
  }
  func.func @transform_7(%arg0: i32) -> (i32, i32) {
    %c0_i32 = arith.constant 0 : i32
    %c0_i32_0 = arith.constant 0 : i32
    %c0_i32_1 = arith.constant 0 : i32
    return %c0_i32, %c0_i32_0 : i32, i32
  }
  func.func @transform_8(%arg0: i32) -> (i32, i32, i32) {
    %c0_i32 = arith.constant 0 : i32
    %c0_i32_0 = arith.constant 0 : i32
    %c0_i32_1 = arith.constant 0 : i32
    %c0_i32_2 = arith.constant 0 : i32
    return %c0_i32, %c0_i32_0, %c0_i32_1 : i32, i32, i32
  }
  func.func @transform_9(%arg0: i32) -> (i32, i32) {
    %c0_i32 = arith.constant 0 : i32
    %c0_i32_0 = arith.constant 0 : i32
    %c0_i32_1 = arith.constant 0 : i32
    return %c0_i32, %c0_i32_0 : i32, i32
  }
  func.func @transform_10(%arg0: i32) -> (i32, i32) {
    %c0_i32 = arith.constant 0 : i32
    %c0_i32_0 = arith.constant 0 : i32
    %c0_i32_1 = arith.constant 0 : i32
    return %c0_i32, %c0_i32_0 : i32, i32
  }
  func.func @transform_11(%arg0: i32) -> (i32, i32) {
    %c0_i32 = arith.constant 0 : i32
    %c0_i32_0 = arith.constant 0 : i32
    %c0_i32_1 = arith.constant 0 : i32
    return %c0_i32, %c0_i32_0 : i32, i32
  }
  func.func @transform_12(%arg0: i32) -> (i32, i32) {
    %c0_i32 = arith.constant 0 : i32
    %c0_i32_0 = arith.constant 0 : i32
    %c0_i32_1 = arith.constant 0 : i32
    return %c0_i32, %c0_i32_0 : i32, i32
  }
  func.func @transform_13(%arg0: i32) -> (i32, i32) {
    %c0_i32 = arith.constant 0 : i32
    %c0_i32_0 = arith.constant 0 : i32
    %c0_i32_1 = arith.constant 0 : i32
    return %c0_i32, %c0_i32_0 : i32, i32
  }
  func.func @transform_14(%arg0: i32) -> (i32, i32) {
    %c0_i32 = arith.constant 0 : i32
    %c0_i32_0 = arith.constant 0 : i32
    return %arg0, %c0_i32 : i32, i32
  }
}

</mosaic_0001>

<bundles_post_ra>
// kernel: tpu_custom_call.1
= control target key start
LH: loop header
LB: loop body
LE: loop exit
PB: predicated region body
PF: predicated region fallthrough
CT: control target
= control target key end

     0   :  { %19 = vsyncpa [#allocation3], 0  ;;  %s18440_s0 = inlined_call_operand.vmem [shape: f32[48,16,48], index: 0, kind: input, shape index: {}]   ;;  %s18441_s1 = inlined_call_operand.hbm [shape: bf16[3,48,276], index: 1, kind: input, shape index: {}]   ;;  %s18442_s2 = inlined_call_operand.vmem [shape: f32[1,276], index: 2, kind: input, shape index: {}]   ;;  %s18443_s3 = inlined_call_operand.vmem [shape: bf16[270,138], index: 3, kind: input, shape index: {}]   ;;  %s18444_s4 = inlined_call_operand.vmem [shape: bf16[3,138,336], index: 4, kind: input, shape index: {}]   ;;  %s18445_s5 = inlined_call_operand.vmem [shape: f32[1,336], index: 5, kind: input, shape index: {}]   ;;  %s18446_s6 = inlined_call_operand.vmem [shape: bf16[3,320,48], index: 6, kind: input, shape index: {}]   ;;  %s18447_s7 = inlined_call_operand.vmem [shape: f32[1,48], index: 7, kind: input, shape index: {}]   ;;  %s18448_s8 = inlined_call_operand.vmem [shape: bf16[4,42,128], index: 8, kind: input, shape index: {}]   ;;  %s18449_s9 = inlined_call_operand.vmem [shape: f32[1,128], index: 9, kind: input, shape index: {}]   ;;  %s18450_s10 = inlined_call_operand.vmem [shape: bf16[128,48], index: 10, kind: input, shape index: {}]   ;;  %s18451_s11 = inlined_call_operand.vmem [shape: f32[1,48], index: 11, kind: input, shape index: {}]   ;;  %s18452_s12 = inlined_call_operand.vmem [shape: bf16[48,128], index: 12, kind: input, shape index: {}]   ;;  %s18453_s13 = inlined_call_operand.vmem [shape: f32[1,128], index: 13, kind: input, shape index: {}]   ;;  %s18454_s14 = inlined_call_operand.hbm [shape: f32[16,128], index: 14, kind: output, shape index: {}]  }
   0x1   :  { %20 = vsyncpa [#allocation4], 0  ;;  %s13845_s29 = smov [#allocation2]   ;;  %s13797_s17 = scalar_lea.hbm %s18441_s1, 3456 }
   0x2   :  { %s28_s30 = sshll.u32 %s13845_s29, 4  ;;  %p13798_p0 = scmp.ne.s32.totalorder %s18441_s1, %s13797_s17  ;;  %s29_s30 = int_to_ptr.vmem [resolvable:$true] %s28_s30 }
   0x3   :  { %p13801_p1 = scmp.lt.u32.totalorder %s13797_s17, %s18441_s1 }
   0x5   :  { %p13803_p2 = pnand %p13801_p1, %p13798_p0 }
   0x7   :  { %13806 = shalt.err (!%p13803_p2)
}
   0x8   :  { %s13807_s22 = scalar_lea.vmem %s29_s30, 3456  ;;  %p13812_p4 = scmp.lt.s32.totalorder %s29_s30, %s29_s30 }
   0x9   :  { %p13808_p3 = scmp.ne.s32.totalorder %s29_s30, %s13807_s22  ;;  %p13813_p5 = scmp.lt.s32.totalorder %s13807_s22, %s13807_s22 }
   0xb   :  { %p13814_p6 = por %p13813_p5, %p13812_p4 }
   0xd   :  { %p13815_p7 = pnand %p13814_p6, %p13808_p3 }
   0xf   :  { %13818 = shalt.err (!%p13815_p7)
}
  0x10   :  { %s13846_s23 = smov 192   ;;  %s13847_s24 = smov 12  }
  0x11   :  { %34 = dma.hbm_to_vmem [thread:$0]  %s18441_s1, 3456, %s29_s30, [#allocation3], %s13846_s23, %s13846_s23, %s13847_s24  }
  0x12   :  { %13841 = dma.done.wait [#allocation3], 3456  }
  0x13   :  { %13842 = vsyncadd [#allocation3], 4294963840  ;;  %v18455_v0 = vmov 0   ;;  %v13511_v1 = vld [vmem:[#allocation2 + $0x4c] ss:$12 sps:$4 sm:$0xff]   ;;  %v65_v6 = vld [vmem:[%s18440_s0 + $0x10] sm:$0xff] }
  0x14   :  { %450 = vmatprep.mubr.bf16.mxu0 %v18455_v0  ;;  %v13513_v2 = vld [vmem:[#allocation2 + $0x48] ss:$12 sps:$4 sm:$0xff]   ;;  %418 = vmatprep.subr.bf16.mxu0 %v13511_v1  ;;  %v13514_v3 = vld [vmem:[#allocation2 + $0x64] ss:$12 sps:$4 sm:$0xff]   ;;  %v13516_v4 = vld [vmem:[#allocation2 + $0x60] ss:$12 sps:$4 sm:$0xff]  }
  0x15   :  { %419 = vmatpush1.bf16.msra.mxu0 %v13513_v2  ;;  %v13517_v5 = vld [vmem:[#allocation2 + $0x7c] ss:$12 sps:$4 sm:$0xff]   ;;  %vm279_vm0 = vcmask 392192   ;;  %v13519_v9 = vld [vmem:[#allocation2 + $0x78] ss:$12 sps:$4 sm:$0xff]   ;;  %v69_v17 = vld [vmem:[%s18440_s0 + $0x30] sm:$0xff] }
  0x16   :  { %420 = vmatprep.subr.bf16.mxu0 %v13514_v3  ;;  %v66_v7 = vld [vmem:[%s18440_s0 + $0x18] sm:$0xff]  ;;  %v13522_v10 = vld [vmem:[#allocation2 + $0x4] ss:$12 sps:$4 sm:$0xff]   ;;  %v13520_v11 = vld [vmem:[#allocation2] ss:$12 sps:$4 sm:$0xff]   ;;  %s13849_s22 = smov 122  }
  0x17   :  { %v13950_v8 = vpack.c.bf16 %v66_v7, %v65_v6  ;;  %v67_v12 = vld [vmem:[%s18440_s0 + $0x20] sm:$0xff]  ;;  %v68_v13 = vld [vmem:[%s18440_s0 + $0x28] sm:$0xff]  ;;  %v70_v18 = vld [vmem:[%s18440_s0 + $0x38] sm:$0xff]  ;;  %vm4613_vm1 = vcmask 998400   ;;  %vm5323_vm2 = vcmask 1046528   ;;  %vm5253_vm3 = vcmask 113664  }
  0x18   :  { %v13523_v14 = vld [vmem:[#allocation2 + $0x18] ss:$12 sps:$4 sm:$0xff]   ;;  %v13525_v15 = vld [vmem:[#allocation2 + $0x1c] ss:$12 sps:$4 sm:$0xff]   ;;  %v13963_v16 = vpack.c.bf16 %v68_v13, %v67_v12  ;;  %v13974_v19 = vpack.c.bf16 %v70_v18, %v69_v17  ;;  %v73_v23 = vld [vmem:[%s18440_s0 + $0x50] sm:$0xff]  ;;  %vm6178_vm4 = vcmask 1044480  }
  0x19   :  { %421 = vmatpush1.bf16.msra.mxu0 %v13516_v4  ;;  %11657 = vmatprep.mubr.msk.bf16.mxu1 %vm279_vm0, %v13950_v8  ;;  %v71_v20 = vld [vmem:[%s18440_s0 + $0x40] sm:$0xff]  ;;  %v72_v21 = vld [vmem:[%s18440_s0 + $0x48] sm:$0xff]  ;;  %v74_v24 = vld [vmem:[%s18440_s0 + $0x58] sm:$0xff]  ;;  %vm6114_vm5 = vcmask 80896   ;;  %s13850_s27 = smov 112   ;;  %vm8464_vm6 = vcmask 916480  }
  0x1a   :  { %422 = vmatprep.subr.bf16.mxu0 %v13517_v5  ;;  %v13985_v22 = vpack.c.bf16 %v72_v21, %v71_v20  ;;  %v13996_v25 = vpack.c.bf16 %v74_v24, %v73_v23  ;;  %v75_v26 = vld [vmem:[%s18440_s0 + $0x60] sm:$0xff]  ;;  %v76_v27 = vld [vmem:[%s18440_s0 + $0x68] sm:$0xff]  ;;  %v13526_v29 = vld [vmem:[#allocation2 + $0x50] ss:$12 sps:$4 sm:$0xff]   ;;  %vm8853_vm7 = vcmask 523264   ;;  %vm13852_vm8 = vmmov 0  }
  0x1b   :  { %v14007_v28 = vpack.c.bf16 %v76_v27, %v75_v26  ;;  %11651 = vmatprep.subr.bf16.mxu1 %v13526_v29  ;;  %v13527_v30 = vld [vmem:[#allocation2 + $0x68] ss:$12 sps:$4 sm:$0xff]   ;;  %v78_v32 = vld [vmem:[%s18440_s0 + $0x78] sm:$0xff]  ;;  %v13528_v34 = vld [vmem:[#allocation2 + $0x80] ss:$12 sps:$4 sm:$0xff]   ;;  %vm9878_vm9 = vcmask 343040  }
  0x1c   :  { %v77_v31 = vld [vmem:[%s18440_s0 + $0x70] sm:$0xff]  ;;  %11652 = vmatpush3.bf16.msra.mxu1 %v13526_v29  ;;  %v79_v35 = vld [vmem:[%s18440_s0 + $0x80] sm:$0xff]  ;;  %v80_v36 = vld [vmem:[%s18440_s0 + $0x88] sm:$0xff] }
  0x1d   :  { %423 = vmatpush1.bf16.msra.mxu0 %v13519_v9  ;;  %11653 = vmatprep.subr.bf16.mxu1 %v13527_v30  ;;  %v14018_v33 = vpack.c.bf16 %v78_v32, %v77_v31  ;;  %v14029_v37 = vpack.c.bf16 %v80_v36, %v79_v35  ;;  %v81_v38 = vld [vmem:[%s18440_s0 + $0x90] sm:$0xff]  ;;  %v82_v39 = vld [vmem:[%s18440_s0 + $0x98] sm:$0xff]  ;;  %v83_v41 = vld [vmem:[%s18440_s0 + $0xa0] sm:$0xff] }
  0x1e   :  { %1363 = vmatprep.subr.bf16.mxu0 %v13522_v10  ;;  %v14044_v40 = vpack.c.bf16 %v82_v39, %v81_v38  ;;  %v84_v42 = vld [vmem:[%s18440_s0 + $0xa8] sm:$0xff]  ;;  %v85_v44 = vld [vmem:[%s18440_s0 + $0xb0] sm:$0xff]  ;;  %v86_v45 = vld [vmem:[%s18440_s0 + $0xb8] sm:$0xff] }
  0x1f   :  { %v14059_v43 = vpack.c.bf16 %v84_v42, %v83_v41  ;;  %v14074_v46 = vpack.c.bf16 %v86_v45, %v85_v44  ;;  %v87_v47 = vld [vmem:[%s18440_s0 + $0xc0] sm:$0xff]  ;;  %v88_v48 = vld [vmem:[%s18440_s0 + $0xc8] sm:$0xff]  ;;  %v89_v50 = vld [vmem:[%s18440_s0 + $0xd0] sm:$0xff] }
  0x20   :  { %10399 = vmatmul.mubr.msk.bf16.vlgmr.msra.gmra.mrb[0].mxu0 %vm279_vm0, %v13950_v8  ;;  %11654 = vmatpush3.bf16.msra.mxu1 %v13527_v30  ;;  %v14089_v49 = vpack.c.bf16 %v88_v48, %v87_v47  ;;  %v90_v51 = vld [vmem:[%s18440_s0 + $0xd8] sm:$0xff]  ;;  %v91_v53 = vld [vmem:[%s18440_s0 + $0xe0] sm:$0xff]  ;;  %v92_v54 = vld [vmem:[%s18440_s0 + $0xe8] sm:$0xff] }
  0x21   :  { %1364 = vmatpush1.bf16.msra.mxu0 %v13520_v11  ;;  %460 = vmatprep.mubr.bf16.mxu0 %v18455_v0  ;;  %v14104_v52 = vpack.c.bf16 %v90_v51, %v89_v50  ;;  %v93_v55 = vld [vmem:[%s18440_s0 + $0xf0] sm:$0xff]  ;;  %v94_v56 = vld [vmem:[%s18440_s0 + $0xf8] sm:$0xff]  ;;  %v14125_v57 = vpack.c.bf16 %v92_v54, %v91_v53  ;;  %v95_v59 = vld [vmem:[%s18440_s0 + $0x100] sm:$0xff] }
  0x22   :  { %1365 = vmatprep.subr.bf16.mxu0 %v13525_v15  ;;  %11655 = vmatprep.subr.bf16.mxu1 %v13528_v34  ;;  %v14127_v58 = vpack.c.bf16 %v94_v56, %v93_v55  ;;  %v96_v60 = vld [vmem:[%s18440_s0 + $0x108] sm:$0xff]  ;;  %v97_v61 = vld [vmem:[%s18440_s0 + $0x110] sm:$0xff]  ;;  %v98_v62 = vld [vmem:[%s18440_s0 + $0x118] sm:$0xff] }
  0x23   :  { %v14148_v63 = vpack.c.bf16 %v96_v60, %v95_v59  ;;  %v14150_v1 = vpack.c.bf16 %v98_v62, %v97_v61  ;;  %v99_v2 = vld [vmem:[%s18440_s0 + $0x120] sm:$0xff]  ;;  %v100_v3 = vld [vmem:[%s18440_s0 + $0x128] sm:$0xff]  ;;  %v101_v4 = vld [vmem:[%s18440_s0 + $0x130] sm:$0xff] }
  0x24   :  { %11656 = vmatpush3.bf16.msra.mxu1 %v13528_v34  ;;  %v102_v5 = vld [vmem:[%s18440_s0 + $0x138] sm:$0xff]  ;;  %v13531_v7 = vld [vmem:[#allocation2 + $0x34] ss:$12 sps:$4 sm:$0xff]   ;;  %v14171_v9 = vpack.c.bf16 %v100_v3, %v99_v2  ;;  %v104_v12 = vld [vmem:[%s18440_s0 + $0x148] sm:$0xff] }
  0x25   :  { %1366 = vmatpush1.bf16.msra.mxu0 %v13523_v14  ;;  %v13529_v6 = vld [vmem:[#allocation2 + $0x30] ss:$12 sps:$4 sm:$0xff]   ;;  %v14173_v10 = vpack.c.bf16 %v102_v5, %v101_v4  ;;  %v103_v11 = vld [vmem:[%s18440_s0 + $0x140] sm:$0xff]  ;;  %v108_v20 = vld [vmem:[%s18440_s0 + $0x168] sm:$0xff] }
  0x26   :  { %1367 = vmatprep.subr.bf16.mxu0 %v13531_v7  ;;  %v105_v13 = vld [vmem:[%s18440_s0 + $0x150] sm:$0xff]  ;;  %v106_v14 = vld [vmem:[%s18440_s0 + $0x158] sm:$0xff]  ;;  %v14194_v15 = vpack.c.bf16 %v104_v12, %v103_v11  ;;  %v107_v18 = vld [vmem:[%s18440_s0 + $0x160] sm:$0xff] }
  0x27   :  { %11658 = vmatmul.mubr.msk.bf16.vlgmr.msra.gmra.mrb[0].mxu1 %vm279_vm0, %v13963_v16  ;;  %v14196_v17 = vpack.c.bf16 %v106_v14, %v105_v13  ;;  %v109_v21 = vld [vmem:[%s18440_s0 + $0x170] sm:$0xff]  ;;  %v110_v23 = vld [vmem:[%s18440_s0 + $0x178] sm:$0xff]  ;;  %v14217_v24 = vpack.c.bf16 %v108_v20, %v107_v18  ;;  %v111_v27 = vld [vmem:[%s18440_s0 + $0x180] sm:$0xff] }
  0x28   :  { %10400 = vmatmul.mubr.msk.bf16.gmra.mrb[4].mxu0 %vm279_vm0, %v13963_v16  ;;  %11661 = vmatprep.mubr.msk.bf16.mxu1 %vm279_vm0, %v13974_v19  ;;  %v14219_v26 = vpack.c.bf16 %v110_v23, %v109_v21  ;;  %v112_v29 = vld [vmem:[%s18440_s0 + $0x188] sm:$0xff]  ;;  %v113_v30 = vld [vmem:[%s18440_s0 + $0x190] sm:$0xff]  ;;  %v114_v31 = vld [vmem:[%s18440_s0 + $0x198] sm:$0xff] }
  0x29   :  { %470 = vmatprep.mubr.bf16.mxu0 %v18455_v0  ;;  %1368 = vmatpush1.bf16.msra.mxu0 %v13529_v6  ;;  %v14240_v32 = vpack.c.bf16 %v112_v29, %v111_v27  ;;  %v14242_v34 = vpack.c.bf16 %v114_v31, %v113_v30  ;;  %v115_v35 = vld [vmem:[%s18440_s0 + $0x1a0] sm:$0xff]  ;;  %v116_v36 = vld [vmem:[%s18440_s0 + $0x1a8] sm:$0xff]  ;;  %v117_v38 = vld [vmem:[%s18440_s0 + $0x1b0] sm:$0xff] }
  0x2a   :  { %v118_v39 = vld [vmem:[%s18440_s0 + $0x1b8] sm:$0xff]  ;;  %v14263_v41 = vpack.c.bf16 %v116_v36, %v115_v35  ;;  %v119_v44 = vld [vmem:[%s18440_s0 + $0x1c0] sm:$0xff]  ;;  %v120_v45 = vld [vmem:[%s18440_s0 + $0x1c8] sm:$0xff] }
  0x2b   :  { %v14265_v42 = vpack.c.bf16 %v118_v39, %v117_v38  ;;  %v121_v47 = vld [vmem:[%s18440_s0 + $0x1d0] sm:$0xff]  ;;  %v122_v48 = vld [vmem:[%s18440_s0 + $0x1d8] sm:$0xff]  ;;  %v14286_v50 = vpack.c.bf16 %v120_v45, %v119_v44  ;;  %v123_v53 = vld [vmem:[%s18440_s0 + $0x1e0] sm:$0xff] }
  0x2c   :  { %v14288_v51 = vpack.c.bf16 %v122_v48, %v121_v47  ;;  %v124_v54 = vld [vmem:[%s18440_s0 + $0x1e8] sm:$0xff]  ;;  %v125_v55 = vld [vmem:[%s18440_s0 + $0x1f0] sm:$0xff]  ;;  %v126_v56 = vld [vmem:[%s18440_s0 + $0x1f8] sm:$0xff] }
  0x2d   :  { %v14309_v59 = vpack.c.bf16 %v124_v54, %v123_v53  ;;  %v14311_v60 = vpack.c.bf16 %v126_v56, %v125_v55  ;;  %v127_v61 = vld [vmem:[%s18440_s0 + $0x200] sm:$0xff]  ;;  %v128_v62 = vld [vmem:[%s18440_s0 + $0x208] sm:$0xff]  ;;  %v129_v2 = vld [vmem:[%s18440_s0 + $0x210] sm:$0xff] }
  0x2e   :  { %v130_v3 = vld [vmem:[%s18440_s0 + $0x218] sm:$0xff]  ;;  %v14332_v4 = vpack.c.bf16 %v128_v62, %v127_v61  ;;  %v131_v6 = vld [vmem:[%s18440_s0 + $0x220] sm:$0xff]  ;;  %v132_v7 = vld [vmem:[%s18440_s0 + $0x228] sm:$0xff] }
  0x2f   :  { %11662 = vmatmul.mubr.msk.bf16.gmra.mrb[4].mxu1 %vm279_vm0, %v13985_v22  ;;  %v14334_v5 = vpack.c.bf16 %v130_v3, %v129_v2  ;;  %v133_v11 = vld [vmem:[%s18440_s0 + $0x230] sm:$0xff]  ;;  %v134_v12 = vld [vmem:[%s18440_s0 + $0x238] sm:$0xff]  ;;  %v14355_v13 = vpack.c.bf16 %v132_v7, %v131_v6  ;;  %v135_v18 = vld [vmem:[%s18440_s0 + $0x240] sm:$0xff] }
  0x30   :  { %10401 = vmatmul.mubr.msk.bf16.gmra.mrb[8].mxu0 %vm279_vm0, %v13974_v19  ;;  %11665 = vmatprep.mubr.msk.bf16.mxu1 %vm279_vm0, %v13996_v25  ;;  %v14357_v14 = vpack.c.bf16 %v134_v12, %v133_v11  ;;  %v136_v20 = vld [vmem:[%s18440_s0 + $0x248] sm:$0xff]  ;;  %v137_v21 = vld [vmem:[%s18440_s0 + $0x250] sm:$0xff]  ;;  %v138_v23 = vld [vmem:[%s18440_s0 + $0x258] sm:$0xff] }
  0x31   :  { %480 = vmatprep.mubr.bf16.mxu0 %v18455_v0  ;;  %18624 = vst [vmem:[#allocation8_spill] sm:$0xff] %v14334_v5  ;;  %18625 = vst [vmem:[#allocation9_spill] sm:$0xff] %v14355_v13  ;;  %v14378_v27 = vpack.c.bf16 %v136_v20, %v135_v18  ;;  %v14380_v29 = vpack.c.bf16 %v138_v23, %v137_v21  ;;  %v139_v30 = vld [vmem:[%s18440_s0 + $0x260] sm:$0xff]  ;;  %v140_v31 = vld [vmem:[%s18440_s0 + $0x268] sm:$0xff] }
  0x32   :  { %18626 = vst [vmem:[#allocation10_spill] sm:$0xff] %v14357_v14  ;;  %v141_v35 = vld [vmem:[%s18440_s0 + $0x270] sm:$0xff]  ;;  %v142_v36 = vld [vmem:[%s18440_s0 + $0x278] sm:$0xff]  ;;  %v14401_v38 = vpack.c.bf16 %v140_v31, %v139_v30  ;;  %v143_v44 = vld [vmem:[%s18440_s0 + $0x280] sm:$0xff] }
  0x33   :  { %18627 = vst [vmem:[#allocation11_spill] sm:$0xff] %v14378_v27  ;;  %18628 = vst [vmem:[#allocation12_spill] sm:$0xff] %v14380_v29  ;;  %v14403_v39 = vpack.c.bf16 %v142_v36, %v141_v35  ;;  %v144_v45 = vld [vmem:[%s18440_s0 + $0x288] sm:$0xff]  ;;  %v145_v47 = vld [vmem:[%s18440_s0 + $0x290] sm:$0xff] }
  0x34   :  { %v146_v48 = vld [vmem:[%s18440_s0 + $0x298] sm:$0xff]  ;;  %v14424_v53 = vpack.c.bf16 %v144_v45, %v143_v44  ;;  %v147_v55 = vld [vmem:[%s18440_s0 + $0x2a0] sm:$0xff]  ;;  %v148_v56 = vld [vmem:[%s18440_s0 + $0x2a8] sm:$0xff] }
  0x35   :  { %v14426_v54 = vpack.c.bf16 %v146_v48, %v145_v47  ;;  %v149_v61 = vld [vmem:[%s18440_s0 + $0x2b0] sm:$0xff]  ;;  %v150_v62 = vld [vmem:[%s18440_s0 + $0x2b8] sm:$0xff]  ;;  %v14447_v2 = vpack.c.bf16 %v148_v56, %v147_v55  ;;  %v151_v6 = vld [vmem:[%s18440_s0 + $0x2c0] sm:$0xff] }
  0x36   :  { %18629 = vst [vmem:[#allocation13_spill] sm:$0xff] %v14424_v53  ;;  %v14449_v3 = vpack.c.bf16 %v150_v62, %v149_v61  ;;  %v152_v7 = vld [vmem:[%s18440_s0 + $0x2c8] sm:$0xff]  ;;  %v153_v11 = vld [vmem:[%s18440_s0 + $0x2d0] sm:$0xff]  ;;  %v154_v12 = vld [vmem:[%s18440_s0 + $0x2d8] sm:$0xff] }
  0x37   :  { %11666 = vmatmul.mubr.msk.bf16.gmra.mrb[8].mxu1 %vm279_vm0, %v14007_v28  ;;  %18630 = vst [vmem:[#allocation14_spill] sm:$0xff] %v14426_v54  ;;  %18631 = vst [vmem:[#allocation15_spill] sm:$0xff] %v14447_v2  ;;  %v14470_v18 = vpack.c.bf16 %v152_v7, %v151_v6  ;;  %v14472_v20 = vpack.c.bf16 %v154_v12, %v153_v11  ;;  %v13532_v21 = vld [vmem:[#allocation2 + $0x8] ss:$12 sps:$4 sm:$0xff]   ;;  %v155_v23 = vld [vmem:[%s18440_s0 + $0x2e0] sm:$0xff] }
  0x38   :  { %10402 = vmatmul.mubr.msk.bf16.gmra.mrb[12].mxu0 %vm279_vm0, %v13985_v22  ;;  %11669 = vmatprep.mubr.msk.bf16.mxu1 %vm279_vm0, %v14018_v33  ;;  %v156_v30 = vld [vmem:[%s18440_s0 + $0x2e8] sm:$0xff]  ;;  %v13534_v36 = vld [vmem:[#allocation2 + $0x38] ss:$12 sps:$4 sm:$0xff]   ;;  %v13537_v48 = vld [vmem:[#allocation2 + $0x94] ss:$12 sps:$4 sm:$0xff]  }
  0x39   :  { %490 = vmatprep.mubr.bf16.mxu0 %v18455_v0  ;;  %11749 = vmatprep.subr.bf16.mxu1 %v13532_v21  ;;  %v13533_v31 = vld [vmem:[#allocation2 + $0x20] ss:$12 sps:$4 sm:$0xff]   ;;  %v14487_v35 = vpack.c.bf16 %v156_v30, %v155_v23  ;;  %v13535_v55 = vld [vmem:[#allocation2 + $0x90] ss:$12 sps:$4 sm:$0xff]   ;;  %v13538_v61 = vld [vmem:[#allocation2 + $0xa8] ss:$12 sps:$4 sm:$0xff]   ;;  %v3494_v30 = vlaneseq }
  0x3a   :  { %11750 = vmatpush3.bf16.msra.mxu1 %v13532_v21  ;;  %v63_v44 = vld [vmem:[%s18440_s0] sm:$0xff]  ;;  %v64_v45 = vld [vmem:[%s18440_s0 + $0x8] sm:$0xff]  ;;  %2322 = vmatprep.subr.bf16.mxu0 %v13537_v48  ;;  %v13542_v62 = vld [vmem:[#allocation2 + $0xb0] ss:$12 sps:$4 sm:$0xff]  }
  0x3b   :  { %18632 = vst [vmem:[#allocation16_spill] sm:$0xff] %v14487_v35  ;;  %11751 = vmatprep.subr.bf16.mxu1 %v13533_v31  ;;  %v14500_v47 = vpack.c.bf16 %v64_v45, %v63_v44  ;;  %v13540_v56 = vld [vmem:[#allocation2 + $0xac] ss:$12 sps:$4 sm:$0xff]   ;;  %v13543_v6 = vld [vmem:[#allocation2 + $0xc8] ss:$12 sps:$4 sm:$0xff]  }
  0x3c   :  { %v13544_v7 = vld [vmem:[#allocation2 + $0xc0] ss:$12 sps:$4 sm:$0xff]   ;;  %v13546_v11 = vld [vmem:[#allocation2 + $0xc4] ss:$12 sps:$4 sm:$0xff]   ;;  %v158_v21 = vld [vmem:[%s18440_s0 + $0x2f8] sm:$0xff] }
  0x3d   :  { %v157_v12 = vld [vmem:[%s18440_s0 + $0x2f0] sm:$0xff] }
  0x3e   :  { %11752 = vmatpush3.bf16.msra.mxu1 %v13533_v31  ;;  %v14826_v23 = vpack.c.bf16 %v158_v21, %v157_v12  ;;  %v14842_v31 = vshrl.u32 %v3494_v30, 7 }
  0x3f   :  { %11670 = vmatmul.mubr.msk.bf16.gmra.mrb[12].mxu1 %vm279_vm0, %v14029_v37  ;;  %11753 = vmatprep.subr.bf16.mxu1 %v13534_v36 }
  0x40   :  { %10403 = vmatmul.mubr.msk.bf16.gmra.mrb[16].mxu0 %vm279_vm0, %v13996_v25  ;;  %11673 = vmatprep.mubr.msk.bf16.mxu1 %vm279_vm0, %v14044_v40  ;;  %18633 = vst [vmem:[#allocation17_spill] sm:$0xff] %v14826_v23  ;;  %18634 = vst [vmem:[#allocation18_spill] sm:$0xff] %v14842_v31  ;;  %v18458_v44 = vsub.s32 2, %v14842_v31 }
  0x41   :  { %500 = vmatprep.mubr.bf16.mxu0 %v18455_v0 }
  0x42   :  { %11754 = vmatpush3.bf16.msra.mxu1 %v13534_v36 }
  0x47   :  { %11674 = vmatmul.mubr.msk.bf16.gmra.mrb[16].mxu1 %vm279_vm0, %v14059_v43 }
  0x48   :  { %10404 = vmatmul.mubr.msk.bf16.gmra.mrb[20].mxu0 %vm279_vm0, %v14007_v28  ;;  %11677 = vmatprep.mubr.msk.bf16.mxu1 %vm279_vm0, %v14074_v46 }
  0x49   :  { %510 = vmatprep.mubr.bf16.mxu0 %v18455_v0 }
  0x4f   :  { %11678 = vmatmul.mubr.msk.bf16.gmra.mrb[20].mxu1 %vm279_vm0, %v14089_v49 }
  0x50   :  { %10405 = vmatmul.mubr.msk.bf16.gmra.mrb[24].mxu0 %vm279_vm0, %v14018_v33  ;;  %11681 = vmatprep.mubr.msk.bf16.mxu1 %vm279_vm0, %v14104_v52 }
  0x51   :  { %520 = vmatprep.mubr.bf16.mxu0 %v18455_v0 }
  0x57   :  { %11682 = vmatmul.mubr.msk.bf16.gmra.mrb[24].mxu1 %vm279_vm0, %v14125_v57 }
  0x58   :  { %10406 = vmatmul.mubr.msk.bf16.gmra.mrb[28].mxu0 %vm279_vm0, %v14029_v37  ;;  %11685 = vmatprep.mubr.msk.bf16.mxu1 %vm279_vm0, %v14127_v58 }
  0x59   :  { %530 = vmatprep.mubr.bf16.mxu0 %v18455_v0 }
  0x5f   :  { %11686 = vmatmul.mubr.msk.bf16.gmra.mrb[28].mxu1 %vm279_vm0, %v14148_v63 }
  0x60   :  { %10407 = vmatmul.mubr.msk.bf16.gmra.mrb[32].mxu0 %vm279_vm0, %v14044_v40  ;;  %11689 = vmatprep.mubr.msk.bf16.mxu1 %vm279_vm0, %v14150_v1 }
  0x61   :  { %540 = vmatprep.mubr.bf16.mxu0 %v18455_v0 }
  0x67   :  { %11690 = vmatmul.mubr.msk.bf16.gmra.mrb[32].mxu1 %vm279_vm0, %v14171_v9 }
  0x68   :  { %10408 = vmatmul.mubr.msk.bf16.gmra.mrb[36].mxu0 %vm279_vm0, %v14059_v43  ;;  %11693 = vmatprep.mubr.msk.bf16.mxu1 %vm279_vm0, %v14173_v10 }
  0x69   :  { %550 = vmatprep.mubr.bf16.mxu0 %v18455_v0 }
  0x6f   :  { %11694 = vmatmul.mubr.msk.bf16.gmra.mrb[36].mxu1 %vm279_vm0, %v14194_v15 }
  0x70   :  { %10409 = vmatmul.mubr.msk.bf16.gmra.mrb[40].mxu0 %vm279_vm0, %v14074_v46  ;;  %11697 = vmatprep.mubr.msk.bf16.mxu1 %vm279_vm0, %v14196_v17 }
  0x71   :  { %560 = vmatprep.mubr.bf16.mxu0 %v18455_v0 }
  0x77   :  { %11698 = vmatmul.mubr.msk.bf16.gmra.mrb[40].mxu1 %vm279_vm0, %v14217_v24 }
  0x78   :  { %10410 = vmatmul.mubr.msk.bf16.gmra.mrb[44].mxu0 %vm279_vm0, %v14089_v49  ;;  %11701 = vmatprep.mubr.msk.bf16.mxu1 %vm279_vm0, %v14219_v26 }
  0x79   :  { %570 = vmatprep.mubr.bf16.mxu0 %v18455_v0 }
  0x7f   :  { %11702 = vmatmul.mubr.msk.bf16.gmra.mrb[44].mxu1 %vm279_vm0, %v14240_v32 }
  0x80   :  { %10411 = vmatmul.mubr.msk.bf16.gmra.mrb[48].mxu0 %vm279_vm0, %v14104_v52  ;;  %11705 = vmatprep.mubr.msk.bf16.mxu1 %vm279_vm0, %v14242_v34 }
  0x81   :  { %580 = vmatprep.mubr.bf16.mxu0 %v18455_v0 }
  0x87   :  { %11706 = vmatmul.mubr.msk.bf16.gmra.mrb[48].mxu1 %vm279_vm0, %v14263_v41 }
  0x88   :  { %10412 = vmatmul.mubr.msk.bf16.gmra.mrb[52].mxu0 %vm279_vm0, %v14125_v57  ;;  %11709 = vmatprep.mubr.msk.bf16.mxu1 %vm279_vm0, %v14265_v42 }
  0x89   :  { %590 = vmatprep.mubr.bf16.mxu0 %v18455_v0 }
  0x8f   :  { %11710 = vmatmul.mubr.msk.bf16.gmra.mrb[52].mxu1 %vm279_vm0, %v14286_v50 }
  0x90   :  { %10413 = vmatmul.mubr.msk.bf16.gmra.mrb[56].mxu0 %vm279_vm0, %v14127_v58  ;;  %11713 = vmatprep.mubr.msk.bf16.mxu1 %vm279_vm0, %v14288_v51 }
  0x91   :  { %600 = vmatprep.mubr.bf16.mxu0 %v18455_v0 }
  0x97   :  { %11714 = vmatmul.mubr.msk.bf16.gmra.mrb[56].mxu1 %vm279_vm0, %v14309_v59 }
  0x98   :  { %10414 = vmatmul.mubr.msk.bf16.gmra.mrb[60].mxu0 %vm279_vm0, %v14148_v63  ;;  %11717 = vmatprep.mubr.msk.bf16.mxu1 %vm279_vm0, %v14311_v60 }
  0x99   :  { %610 = vmatprep.mubr.bf16.mxu0 %v18455_v0 }
  0x9f   :  { %11718 = vmatmul.mubr.msk.bf16.gmra.mrb[60].mxu1 %vm279_vm0, %v14332_v4 }
  0xa0   :  { %10415 = vmatmul.mubr.msk.bf16.gmra.mrb[64].mxu0 %vm279_vm0, %v14150_v1  ;;  %11721 = vmatprep.mubr.msk.bf16.mxu1 %vm279_vm0, %v14334_v5 }
  0xa1   :  { %620 = vmatprep.mubr.bf16.mxu0 %v18455_v0 }
  0xa7   :  { %11722 = vmatmul.mubr.msk.bf16.gmra.mrb[64].mxu1 %vm279_vm0, %v14355_v13 }
  0xa8   :  { %10416 = vmatmul.mubr.msk.bf16.gmra.mrb[68].mxu0 %vm279_vm0, %v14171_v9  ;;  %11725 = vmatprep.mubr.msk.bf16.mxu1 %vm279_vm0, %v14357_v14 }
  0xa9   :  { %630 = vmatprep.mubr.bf16.mxu0 %v18455_v0 }
  0xaf   :  { %11726 = vmatmul.mubr.msk.bf16.gmra.mrb[68].mxu1 %vm279_vm0, %v14378_v27 }
  0xb0   :  { %10417 = vmatmul.mubr.msk.bf16.gmra.mrb[72].mxu0 %vm279_vm0, %v14173_v10  ;;  %11729 = vmatprep.mubr.msk.bf16.mxu1 %vm279_vm0, %v14380_v29 }
  0xb1   :  { %640 = vmatprep.mubr.bf16.mxu0 %v18455_v0 }
  0xb7   :  { %11730 = vmatmul.mubr.msk.bf16.gmra.mrb[72].mxu1 %vm279_vm0, %v14401_v38 }
  0xb8   :  { %10418 = vmatmul.mubr.msk.bf16.gmra.mrb[76].mxu0 %vm279_vm0, %v14194_v15  ;;  %11733 = vmatprep.mubr.msk.bf16.mxu1 %vm279_vm0, %v14403_v39 }
  0xb9   :  { %650 = vmatprep.mubr.bf16.mxu0 %v18455_v0 }
  0xbf   :  { %11734 = vmatmul.mubr.msk.bf16.gmra.mrb[76].mxu1 %vm279_vm0, %v14424_v53 }
  0xc0   :  { %10419 = vmatmul.mubr.msk.bf16.gmra.mrb[80].mxu0 %vm279_vm0, %v14196_v17  ;;  %11737 = vmatprep.mubr.msk.bf16.mxu1 %vm279_vm0, %v14426_v54 }
  0xc1   :  { %660 = vmatprep.mubr.bf16.mxu0 %v18455_v0 }
  0xc7   :  { %11738 = vmatmul.mubr.msk.bf16.gmra.mrb[80].mxu1 %vm279_vm0, %v14447_v2 }
  0xc8   :  { %10420 = vmatmul.mubr.msk.bf16.gmra.mrb[84].mxu0 %vm279_vm0, %v14217_v24  ;;  %11741 = vmatprep.mubr.msk.bf16.mxu1 %vm279_vm0, %v14449_v3 }
  0xc9   :  { %670 = vmatprep.mubr.bf16.mxu0 %v18455_v0 }
  0xcf   :  { %11742 = vmatmul.mubr.msk.bf16.gmra.mrb[84].mxu1 %vm279_vm0, %v14470_v18 }
  0xd0   :  { %10421 = vmatmul.mubr.msk.bf16.gmra.mrb[88].mxu0 %vm279_vm0, %v14219_v26  ;;  %11745 = vmatprep.mubr.msk.bf16.mxu1 %vm279_vm0, %v14472_v20 }
  0xd1   :  { %680 = vmatprep.mubr.bf16.mxu0 %v18455_v0 }
  0xd7   :  { %11746 = vmatmul.mubr.msk.bf16.gmra.mrb[88].mxu1 %vm279_vm0, %v14487_v35 }
  0xd8   :  { %10422 = vmatmul.mubr.msk.bf16.gmra.mrb[92].mxu0 %vm279_vm0, %v14240_v32  ;;  %11755 = vmatprep.mubr.msk.bf16.mxu1 %vm279_vm0, %v14500_v47 }
  0xd9   :  { %690 = vmatprep.mubr.bf16.mxu0 %v18455_v0 }
  0xdf   :  { %11756 = vmatmul.mubr.msk.bf16.vlgmr.msra.gmra.mrb[0].mxu1 %vm279_vm0, %v13950_v8 }
  0xe0   :  { %10423 = vmatmul.mubr.msk.bf16.gmra.mrb[96].mxu0 %vm279_vm0, %v14242_v34  ;;  %11759 = vmatprep.mubr.msk.bf16.mxu1 %vm279_vm0, %v13963_v16 }
  0xe1   :  { %700 = vmatprep.mubr.bf16.mxu0 %v18455_v0 }
  0xe7   :  { %11760 = vmatmul.mubr.msk.bf16.gmra.mrb[4].mxu1 %vm279_vm0, %v13974_v19 }
  0xe8   :  { %10424 = vmatmul.mubr.msk.bf16.gmra.mrb[100].mxu0 %vm279_vm0, %v14263_v41  ;;  %11763 = vmatprep.mubr.msk.bf16.mxu1 %vm279_vm0, %v13985_v22 }
  0xe9   :  { %710 = vmatprep.mubr.bf16.mxu0 %v18455_v0 }
  0xef   :  { %11764 = vmatmul.mubr.msk.bf16.gmra.mrb[8].mxu1 %vm279_vm0, %v13996_v25 }
  0xf0   :  { %10425 = vmatmul.mubr.msk.bf16.gmra.mrb[104].mxu0 %vm279_vm0, %v14265_v42  ;;  %11767 = vmatprep.mubr.msk.bf16.mxu1 %vm279_vm0, %v14007_v28 }
  0xf1   :  { %720 = vmatprep.mubr.bf16.mxu0 %v18455_v0 }
  0xf7   :  { %11768 = vmatmul.mubr.msk.bf16.gmra.mrb[12].mxu1 %vm279_vm0, %v14018_v33 }
  0xf8   :  { %10426 = vmatmul.mubr.msk.bf16.gmra.mrb[108].mxu0 %vm279_vm0, %v14286_v50  ;;  %11771 = vmatprep.mubr.msk.bf16.mxu1 %vm279_vm0, %v14029_v37 }
  0xf9   :  { %730 = vmatprep.mubr.bf16.mxu0 %v18455_v0 }
  0xff   :  { %11772 = vmatmul.mubr.msk.bf16.gmra.mrb[16].mxu1 %vm279_vm0, %v14044_v40 }
 0x100   :  { %10427 = vmatmul.mubr.msk.bf16.gmra.mrb[112].mxu0 %vm279_vm0, %v14288_v51  ;;  %11775 = vmatprep.mubr.msk.bf16.mxu1 %vm279_vm0, %v14059_v43 }
 0x101   :  { %740 = vmatprep.mubr.bf16.mxu0 %v18455_v0 }
 0x107   :  { %11776 = vmatmul.mubr.msk.bf16.gmra.mrb[20].mxu1 %vm279_vm0, %v14074_v46 }
 0x108   :  { %10428 = vmatmul.mubr.msk.bf16.gmra.mrb[116].mxu0 %vm279_vm0, %v14309_v59  ;;  %11779 = vmatprep.mubr.msk.bf16.mxu1 %vm279_vm0, %v14089_v49 }
 0x109   :  { %750 = vmatprep.mubr.bf16.mxu0 %v18455_v0 }
 0x10f   :  { %11780 = vmatmul.mubr.msk.bf16.gmra.mrb[24].mxu1 %vm279_vm0, %v14104_v52 }
 0x110   :  { %10429 = vmatmul.mubr.msk.bf16.gmra.mrb[120].mxu0 %vm279_vm0, %v14311_v60  ;;  %11783 = vmatprep.mubr.msk.bf16.mxu1 %vm279_vm0, %v14125_v57 }
 0x111   :  { %760 = vmatprep.mubr.bf16.mxu0 %v18455_v0 }
 0x117   :  { %11784 = vmatmul.mubr.msk.bf16.gmra.mrb[28].mxu1 %vm279_vm0, %v14127_v58 }
 0x118   :  { %10430 = vmatmul.mubr.msk.bf16.gmra.mrb[124].mxu0 %vm279_vm0, %v14332_v4  ;;  %11787 = vmatprep.mubr.msk.bf16.mxu1 %vm279_vm0, %v14148_v63 }
 0x119   :  { %770 = vmatprep.mubr.bf16.mxu0 %v18455_v0 }
 0x11f   :  { %11788 = vmatmul.mubr.msk.bf16.gmra.mrb[32].mxu1 %vm279_vm0, %v14150_v1 }
 0x120   :  { %10431 = vmatmul.mubr.msk.bf16.gmra.mrb[128].mxu0 %vm279_vm0, %v14334_v5  ;;  %11791 = vmatprep.mubr.msk.bf16.mxu1 %vm279_vm0, %v14171_v9 }
 0x121   :  { %780 = vmatprep.mubr.bf16.mxu0 %v18455_v0 }
 0x127   :  { %11792 = vmatmul.mubr.msk.bf16.gmra.mrb[36].mxu1 %vm279_vm0, %v14173_v10 }
 0x128   :  { %10432 = vmatmul.mubr.msk.bf16.gmra.mrb[132].mxu0 %vm279_vm0, %v14355_v13  ;;  %11795 = vmatprep.mubr.msk.bf16.mxu1 %vm279_vm0, %v14194_v15 }
 0x129   :  { %790 = vmatprep.mubr.bf16.mxu0 %v18455_v0 }
 0x12f   :  { %11796 = vmatmul.mubr.msk.bf16.gmra.mrb[40].mxu1 %vm279_vm0, %v14196_v17 }
 0x130   :  { %10433 = vmatmul.mubr.msk.bf16.gmra.mrb[136].mxu0 %vm279_vm0, %v14357_v14  ;;  %11799 = vmatprep.mubr.msk.bf16.mxu1 %vm279_vm0, %v14217_v24 }
 0x131   :  { %800 = vmatprep.mubr.bf16.mxu0 %v18455_v0 }
 0x137   :  { %11800 = vmatmul.mubr.msk.bf16.gmra.mrb[44].mxu1 %vm279_vm0, %v14219_v26 }
 0x138   :  { %10434 = vmatmul.mubr.msk.bf16.gmra.mrb[140].mxu0 %vm279_vm0, %v14378_v27  ;;  %11803 = vmatprep.mubr.msk.bf16.mxu1 %vm279_vm0, %v14240_v32 }
 0x139   :  { %810 = vmatprep.mubr.bf16.mxu0 %v18455_v0 }
 0x13f   :  { %11804 = vmatmul.mubr.msk.bf16.gmra.mrb[48].mxu1 %vm279_vm0, %v14242_v34 }
 0x140   :  { %10435 = vmatmul.mubr.msk.bf16.gmra.mrb[144].mxu0 %vm279_vm0, %v14380_v29  ;;  %11807 = vmatprep.mubr.msk.bf16.mxu1 %vm279_vm0, %v14263_v41 }
 0x141   :  { %820 = vmatprep.mubr.bf16.mxu0 %v18455_v0 }
 0x147   :  { %11808 = vmatmul.mubr.msk.bf16.gmra.mrb[52].mxu1 %vm279_vm0, %v14265_v42 }
 0x148   :  { %10436 = vmatmul.mubr.msk.bf16.gmra.mrb[148].mxu0 %vm279_vm0, %v14401_v38  ;;  %11811 = vmatprep.mubr.msk.bf16.mxu1 %vm279_vm0, %v14286_v50 }
 0x149   :  { %830 = vmatprep.mubr.bf16.mxu0 %v18455_v0 }
 0x14f   :  { %11812 = vmatmul.mubr.msk.bf16.gmra.mrb[56].mxu1 %vm279_vm0, %v14288_v51 }
 0x150   :  { %10437 = vmatmul.mubr.msk.bf16.gmra.mrb[152].mxu0 %vm279_vm0, %v14403_v39  ;;  %11815 = vmatprep.mubr.msk.bf16.mxu1 %vm279_vm0, %v14309_v59 }
 0x151   :  { %840 = vmatprep.mubr.bf16.mxu0 %v18455_v0 }
 0x157   :  { %11816 = vmatmul.mubr.msk.bf16.gmra.mrb[60].mxu1 %vm279_vm0, %v14311_v60 }
 0x158   :  { %10438 = vmatmul.mubr.msk.bf16.gmra.mrb[156].mxu0 %vm279_vm0, %v14424_v53  ;;  %11819 = vmatprep.mubr.msk.bf16.mxu1 %vm279_vm0, %v14332_v4 }
 0x159   :  { %850 = vmatprep.mubr.bf16.mxu0 %v18455_v0 }
 0x15f   :  { %11820 = vmatmul.mubr.msk.bf16.gmra.mrb[64].mxu1 %vm279_vm0, %v14334_v5 }
 0x160   :  { %10439 = vmatmul.mubr.msk.bf16.gmra.mrb[160].mxu0 %vm279_vm0, %v14426_v54  ;;  %11823 = vmatprep.mubr.msk.bf16.mxu1 %vm279_vm0, %v14355_v13 }
 0x161   :  { %860 = vmatprep.mubr.bf16.mxu0 %v18455_v0 }
 0x167   :  { %11824 = vmatmul.mubr.msk.bf16.gmra.mrb[68].mxu1 %vm279_vm0, %v14357_v14 }
 0x168   :  { %10440 = vmatmul.mubr.msk.bf16.gmra.mrb[164].mxu0 %vm279_vm0, %v14447_v2  ;;  %11827 = vmatprep.mubr.msk.bf16.mxu1 %vm279_vm0, %v14378_v27 }
 0x169   :  { %870 = vmatprep.mubr.bf16.mxu0 %v18455_v0 }
 0x16f   :  { %11828 = vmatmul.mubr.msk.bf16.gmra.mrb[72].mxu1 %vm279_vm0, %v14380_v29 }
 0x170   :  { %10441 = vmatmul.mubr.msk.bf16.gmra.mrb[168].mxu0 %vm279_vm0, %v14449_v3  ;;  %11831 = vmatprep.mubr.msk.bf16.mxu1 %vm279_vm0, %v14401_v38 }
 0x171   :  { %880 = vmatprep.mubr.bf16.mxu0 %v18455_v0 }
 0x177   :  { %11832 = vmatmul.mubr.msk.bf16.gmra.mrb[76].mxu1 %vm279_vm0, %v14403_v39 }
 0x178   :  { %10442 = vmatmul.mubr.msk.bf16.gmra.mrb[172].mxu0 %vm279_vm0, %v14470_v18  ;;  %11835 = vmatprep.mubr.msk.bf16.mxu1 %vm279_vm0, %v14424_v53 }
 0x179   :  { %890 = vmatprep.mubr.bf16.mxu0 %v18455_v0 }
 0x17f   :  { %11836 = vmatmul.mubr.msk.bf16.gmra.mrb[80].mxu1 %vm279_vm0, %v14426_v54 }
 0x180   :  { %10443 = vmatmul.mubr.msk.bf16.gmra.mrb[176].mxu0 %vm279_vm0, %v14472_v20  ;;  %11839 = vmatprep.mubr.msk.bf16.mxu1 %vm279_vm0, %v14447_v2 }
 0x181   :  { %900 = vmatprep.mubr.bf16.mxu0 %v18455_v0 }
 0x187   :  { %11840 = vmatmul.mubr.msk.bf16.gmra.mrb[84].mxu1 %vm279_vm0, %v14449_v3 }
 0x188   :  { %10444 = vmatmul.mubr.msk.bf16.gmra.mrb[180].mxu0 %vm279_vm0, %v14487_v35  ;;  %11843 = vmatprep.mubr.msk.bf16.mxu1 %vm279_vm0, %v14470_v18 }
 0x189   :  { %1395 = vmatprep.mubr.bf16.mxu0 %v18455_v0 }
 0x18f   :  { %11844 = vmatmul.mubr.msk.bf16.gmra.mrb[88].mxu1 %vm279_vm0, %v14472_v20 }
 0x190   :  { %10500 = vmatmul.mubr.msk.bf16.vlgmr.msra.gmra.mrb[0].mxu0 %vm279_vm0, %v14500_v47  ;;  %11853 = vmatprep.mubr.msk.bf16.mxu1 %vm279_vm0, %v13963_v16  ;;  %v14850_v47 = vld [vmem:[%s18442_s2] sm:$0x7] }
 0x191   :  { %2323 = vmatpush1.bf16.msra.mxu0 %v13535_v55  ;;  %1405 = vmatprep.mubr.bf16.mxu0 %v18455_v0  ;;  %v14856_v55 = vrot.slane %v14850_v47, %v18458_v44 }
 0x192   :  { %2324 = vmatprep.subr.bf16.mxu0 %v13540_v56 }
 0x195   :  { %2325 = vmatpush1.bf16.msra.mxu0 %v13538_v61 }
 0x196   :  { %2326 = vmatprep.subr.bf16.mxu0 %v13546_v11 }
 0x198   :  { %10501 = vmatmul.mubr.msk.bf16.gmra.mrb[4].mxu0 %vm279_vm0, %v13950_v8  ;;  %v13541_v8 = vld [vmem:[#allocation2 + $0x98] ss:$12 sps:$4 sm:$0xff]  }
 0x199   :  { %1415 = vmatprep.mubr.bf16.mxu0 %v18455_v0  ;;  %11847 = vmatprep.subr.bf16.mxu1 %v13541_v8 }
 0x19a   :  { %11848 = vmatpush3.bf16.msra.mxu1 %v13541_v8  ;;  %2327 = vmatpush1.bf16.msra.mxu0 %v13544_v7 }
 0x19b   :  { %11849 = vmatprep.subr.bf16.mxu1 %v13542_v62  ;;  %7018 = vmatprep.subr.bf16.mxu0 %v18455_v0 }
 0x19e   :  { %11850 = vmatpush3.bf16.msra.mxu1 %v13542_v62 }
 0x19f   :  { %11851 = vmatprep.subr.bf16.mxu1 %v13543_v6 }
 0x1a0   :  { %10502 = vmatmul.mubr.msk.bf16.gmra.mrb[8].mxu0 %vm279_vm0, %v13963_v16 }
 0x1a1   :  { %1425 = vmatprep.mubr.bf16.mxu0 %v18455_v0 }
 0x1a2   :  { %11852 = vmatpush3.bf16.msra.mxu1 %v13543_v6 }
 0x1a5   :  { %11854 = vmatmul.mubr.msk.bf16.vlgmr.msra.gmra.mrb[0].mxu1 %vm279_vm0, %v13974_v19 }
 0x1a6   :  { %11857 = vmatprep.mubr.msk.bf16.mxu1 %vm279_vm0, %v13985_v22 }
 0x1a8   :  { %10503 = vmatmul.mubr.msk.bf16.gmra.mrb[12].mxu0 %vm279_vm0, %v13974_v19 }
 0x1a9   :  { %1435 = vmatprep.mubr.bf16.mxu0 %v18455_v0 }
 0x1ad   :  { %11858 = vmatmul.mubr.msk.bf16.gmra.mrb[4].mxu1 %vm279_vm0, %v13996_v25 }
 0x1ae   :  { %11861 = vmatprep.mubr.msk.bf16.mxu1 %vm279_vm0, %v14007_v28 }
 0x1b0   :  { %10504 = vmatmul.mubr.msk.bf16.gmra.mrb[16].mxu0 %vm279_vm0, %v13985_v22 }
 0x1b1   :  { %1445 = vmatprep.mubr.bf16.mxu0 %v18455_v0 }
 0x1b5   :  { %11862 = vmatmul.mubr.msk.bf16.gmra.mrb[8].mxu1 %vm279_vm0, %v14018_v33 }
 0x1b6   :  { %11865 = vmatprep.mubr.msk.bf16.mxu1 %vm279_vm0, %v14029_v37 }
 0x1b8   :  { %10505 = vmatmul.mubr.msk.bf16.gmra.mrb[20].mxu0 %vm279_vm0, %v13996_v25 }
 0x1b9   :  { %1455 = vmatprep.mubr.bf16.mxu0 %v18455_v0 }
 0x1bd   :  { %11866 = vmatmul.mubr.msk.bf16.gmra.mrb[12].mxu1 %vm279_vm0, %v14044_v40 }
 0x1be   :  { %11869 = vmatprep.mubr.msk.bf16.mxu1 %vm279_vm0, %v14059_v43 }
 0x1c0   :  { %10506 = vmatmul.mubr.msk.bf16.gmra.mrb[24].mxu0 %vm279_vm0, %v14007_v28 }
 0x1c1   :  { %1465 = vmatprep.mubr.bf16.mxu0 %v18455_v0 }
 0x1c5   :  { %11870 = vmatmul.mubr.msk.bf16.gmra.mrb[16].mxu1 %vm279_vm0, %v14074_v46 }
 0x1c6   :  { %11873 = vmatprep.mubr.msk.bf16.mxu1 %vm279_vm0, %v14089_v49 }
 0x1c8   :  { %10507 = vmatmul.mubr.msk.bf16.gmra.mrb[28].mxu0 %vm279_vm0, %v14018_v33 }
 0x1c9   :  { %1475 = vmatprep.mubr.bf16.mxu0 %v18455_v0 }
 0x1cd   :  { %11874 = vmatmul.mubr.msk.bf16.gmra.mrb[20].mxu1 %vm279_vm0, %v14104_v52 }
 0x1ce   :  { %11877 = vmatprep.mubr.msk.bf16.mxu1 %vm279_vm0, %v14125_v57 }
 0x1d0   :  { %10508 = vmatmul.mubr.msk.bf16.gmra.mrb[32].mxu0 %vm279_vm0, %v14029_v37 }
 0x1d1   :  { %1485 = vmatprep.mubr.bf16.mxu0 %v18455_v0 }
 0x1d5   :  { %11878 = vmatmul.mubr.msk.bf16.gmra.mrb[24].mxu1 %vm279_vm0, %v14127_v58 }
 0x1d6   :  { %11881 = vmatprep.mubr.msk.bf16.mxu1 %vm279_vm0, %v14148_v63 }
 0x1d8   :  { %10509 = vmatmul.mubr.msk.bf16.gmra.mrb[36].mxu0 %vm279_vm0, %v14044_v40 }
 0x1d9   :  { %1495 = vmatprep.mubr.bf16.mxu0 %v18455_v0 }
 0x1dd   :  { %11882 = vmatmul.mubr.msk.bf16.gmra.mrb[28].mxu1 %vm279_vm0, %v14150_v1 }
 0x1de   :  { %11885 = vmatprep.mubr.msk.bf16.mxu1 %vm279_vm0, %v14171_v9 }
 0x1e0   :  { %10510 = vmatmul.mubr.msk.bf16.gmra.mrb[40].mxu0 %vm279_vm0, %v14059_v43 }
 0x1e1   :  { %1505 = vmatprep.mubr.bf16.mxu0 %v18455_v0 }
 0x1e5   :  { %11886 = vmatmul.mubr.msk.bf16.gmra.mrb[32].mxu1 %vm279_vm0, %v14173_v10 }
 0x1e6   :  { %11889 = vmatprep.mubr.msk.bf16.mxu1 %vm279_vm0, %v14194_v15 }
 0x1e8   :  { %10511 = vmatmul.mubr.msk.bf16.gmra.mrb[44].mxu0 %vm279_vm0, %v14074_v46 }
 0x1e9   :  { %1515 = vmatprep.mubr.bf16.mxu0 %v18455_v0 }
 0x1ed   :  { %11890 = vmatmul.mubr.msk.bf16.gmra.mrb[36].mxu1 %vm279_vm0, %v14196_v17 }
 0x1ee   :  { %11893 = vmatprep.mubr.msk.bf16.mxu1 %vm279_vm0, %v14217_v24 }
 0x1f0   :  { %10512 = vmatmul.mubr.msk.bf16.gmra.mrb[48].mxu0 %vm279_vm0, %v14089_v49 }
 0x1f1   :  { %1525 = vmatprep.mubr.bf16.mxu0 %v18455_v0 }
 0x1f5   :  { %11894 = vmatmul.mubr.msk.bf16.gmra.mrb[40].mxu1 %vm279_vm0, %v14219_v26 }
 0x1f6   :  { %11897 = vmatprep.mubr.msk.bf16.mxu1 %vm279_vm0, %v14240_v32 }
 0x1f8   :  { %10513 = vmatmul.mubr.msk.bf16.gmra.mrb[52].mxu0 %vm279_vm0, %v14104_v52 }
 0x1f9   :  { %1535 = vmatprep.mubr.bf16.mxu0 %v18455_v0 }
 0x1fd   :  { %11898 = vmatmul.mubr.msk.bf16.gmra.mrb[44].mxu1 %vm279_vm0, %v14242_v34 }
 0x1fe   :  { %11901 = vmatprep.mubr.msk.bf16.mxu1 %vm279_vm0, %v14263_v41 }
 0x200   :  { %10514 = vmatmul.mubr.msk.bf16.gmra.mrb[56].mxu0 %vm279_vm0, %v14125_v57 }
 0x201   :  { %1545 = vmatprep.mubr.bf16.mxu0 %v18455_v0 }
 0x205   :  { %11902 = vmatmul.mubr.msk.bf16.gmra.mrb[48].mxu1 %vm279_vm0, %v14265_v42 }
 0x206   :  { %11905 = vmatprep.mubr.msk.bf16.mxu1 %vm279_vm0, %v14286_v50 }
 0x208   :  { %10515 = vmatmul.mubr.msk.bf16.gmra.mrb[60].mxu0 %vm279_vm0, %v14127_v58 }
 0x209   :  { %1555 = vmatprep.mubr.bf16.mxu0 %v18455_v0 }
 0x20d   :  { %11906 = vmatmul.mubr.msk.bf16.gmra.mrb[52].mxu1 %vm279_vm0, %v14288_v51 }
 0x20e   :  { %11909 = vmatprep.mubr.msk.bf16.mxu1 %vm279_vm0, %v14309_v59 }
 0x210   :  { %10516 = vmatmul.mubr.msk.bf16.gmra.mrb[64].mxu0 %vm279_vm0, %v14148_v63 }
 0x211   :  { %1565 = vmatprep.mubr.bf16.mxu0 %v18455_v0 }
 0x215   :  { %11910 = vmatmul.mubr.msk.bf16.gmra.mrb[56].mxu1 %vm279_vm0, %v14311_v60 }
 0x216   :  { %11913 = vmatprep.mubr.msk.bf16.mxu1 %vm279_vm0, %v14332_v4 }
 0x218   :  { %10517 = vmatmul.mubr.msk.bf16.gmra.mrb[68].mxu0 %vm279_vm0, %v14150_v1 }
 0x219   :  { %1575 = vmatprep.mubr.bf16.mxu0 %v18455_v0 }
 0x21d   :  { %11914 = vmatmul.mubr.msk.bf16.gmra.mrb[60].mxu1 %vm279_vm0, %v14334_v5 }
 0x21e   :  { %11917 = vmatprep.mubr.msk.bf16.mxu1 %vm279_vm0, %v14355_v13 }
 0x220   :  { %10518 = vmatmul.mubr.msk.bf16.gmra.mrb[72].mxu0 %vm279_vm0, %v14171_v9 }
 0x221   :  { %1585 = vmatprep.mubr.bf16.mxu0 %v18455_v0 }
 0x225   :  { %11918 = vmatmul.mubr.msk.bf16.gmra.mrb[64].mxu1 %vm279_vm0, %v14357_v14 }
 0x226   :  { %11921 = vmatprep.mubr.msk.bf16.mxu1 %vm279_vm0, %v14378_v27 }
 0x228   :  { %10519 = vmatmul.mubr.msk.bf16.gmra.mrb[76].mxu0 %vm279_vm0, %v14173_v10 }
 0x229   :  { %1595 = vmatprep.mubr.bf16.mxu0 %v18455_v0 }
 0x22d   :  { %11922 = vmatmul.mubr.msk.bf16.gmra.mrb[68].mxu1 %vm279_vm0, %v14380_v29 }
 0x22e   :  { %11925 = vmatprep.mubr.msk.bf16.mxu1 %vm279_vm0, %v14401_v38 }
 0x230   :  { %10520 = vmatmul.mubr.msk.bf16.gmra.mrb[80].mxu0 %vm279_vm0, %v14194_v15 }
 0x231   :  { %1605 = vmatprep.mubr.bf16.mxu0 %v18455_v0 }
 0x235   :  { %11926 = vmatmul.mubr.msk.bf16.gmra.mrb[72].mxu1 %vm279_vm0, %v14403_v39 }
 0x236   :  { %11929 = vmatprep.mubr.msk.bf16.mxu1 %vm279_vm0, %v14424_v53 }
 0x238   :  { %10521 = vmatmul.mubr.msk.bf16.gmra.mrb[84].mxu0 %vm279_vm0, %v14196_v17 }
 0x239   :  { %1615 = vmatprep.mubr.bf16.mxu0 %v18455_v0 }
 0x23d   :  { %11930 = vmatmul.mubr.msk.bf16.gmra.mrb[76].mxu1 %vm279_vm0, %v14426_v54 }
 0x23e   :  { %11933 = vmatprep.mubr.msk.bf16.mxu1 %vm279_vm0, %v14447_v2 }
 0x240   :  { %10522 = vmatmul.mubr.msk.bf16.gmra.mrb[88].mxu0 %vm279_vm0, %v14217_v24 }
 0x241   :  { %1625 = vmatprep.mubr.bf16.mxu0 %v18455_v0 }
 0x245   :  { %11934 = vmatmul.mubr.msk.bf16.gmra.mrb[80].mxu1 %vm279_vm0, %v14449_v3 }
 0x246   :  { %11937 = vmatprep.mubr.msk.bf16.mxu1 %vm279_vm0, %v14470_v18 }
 0x248   :  { %10523 = vmatmul.mubr.msk.bf16.gmra.mrb[92].mxu0 %vm279_vm0, %v14219_v26 }
 0x249   :  { %1635 = vmatprep.mubr.bf16.mxu0 %v18455_v0 }
 0x24d   :  { %11938 = vmatmul.mubr.msk.bf16.gmra.mrb[84].mxu1 %vm279_vm0, %v14472_v20 }
 0x24e   :  { %11941 = vmatprep.mubr.msk.bf16.mxu1 %vm279_vm0, %v14487_v35 }
 0x250   :  { %10524 = vmatmul.mubr.msk.bf16.gmra.mrb[96].mxu0 %vm279_vm0, %v14240_v32 }
 0x251   :  { %1645 = vmatprep.mubr.bf16.mxu0 %v18455_v0 }
 0x255   :  { %11942 = vmatmul.mubr.msk.bf16.gmra.mrb[88].mxu1 %vm279_vm0, %v14826_v23 }
 0x258   :  { %10525 = vmatmul.mubr.msk.bf16.gmra.mrb[100].mxu0 %vm279_vm0, %v14242_v34 }
 0x259   :  { %1655 = vmatprep.mubr.bf16.mxu0 %v18455_v0 }
 0x260   :  { %10526 = vmatmul.mubr.msk.bf16.gmra.mrb[104].mxu0 %vm279_vm0, %v14263_v41 }
 0x261   :  { %1665 = vmatprep.mubr.bf16.mxu0 %v18455_v0 }
 0x268   :  { %10527 = vmatmul.mubr.msk.bf16.gmra.mrb[108].mxu0 %vm279_vm0, %v14265_v42 }
 0x269   :  { %1675 = vmatprep.mubr.bf16.mxu0 %v18455_v0 }
 0x270   :  { %10528 = vmatmul.mubr.msk.bf16.gmra.mrb[112].mxu0 %vm279_vm0, %v14286_v50 }
 0x271   :  { %1685 = vmatprep.mubr.bf16.mxu0 %v18455_v0 }
 0x278   :  { %10529 = vmatmul.mubr.msk.bf16.gmra.mrb[116].mxu0 %vm279_vm0, %v14288_v51  ;;  %v11855_v36 = vpop.f32.mrb[0].mxu1 }
 0x279   :  { %1695 = vmatprep.mubr.bf16.mxu0 %v18455_v0  ;;  %v2849_v45 = vpop.f32.mrb[1].mxu1  ;;  %v3517_v8 = vadd.f32 %v11855_v36, %v14856_v55 }
 0x27a   :  { %v11856_v48 = vpop.f32.mrb[2].mxu1  ;;  %v3511_v61 = vadd.f32 %v14856_v55, %v2849_v45  ;;  %v18635_v45 = vmov 0  }
 0x27b   :  { %v2852_v56 = vpop.f32.mrb[3].mxu1  ;;  %v3520_v6 = vadd.f32 %v11856_v48, %v14856_v55  ;;  %v3793_v11 = vmax.f32 %v3517_v8, 0.0 }
 0x27c   :  { %v3514_v62 = vadd.f32 %v14856_v55, %v2852_v56  ;;  %v3787_v7 = vmax.f32 %v3511_v61, 0.0 }
 0x27d   :  { %v3796_v21 = vmax.f32 %v3520_v6, 0.0 }
 0x27e   :  { %v3790_v12 = vmax.f32 %v3514_v62, 0.0 }
 0x280   :  { %10530 = vmatmul.mubr.msk.bf16.gmra.mrb[120].mxu0 %vm279_vm0, %v14309_v59  ;;  %v11859_v30 = vpop.f32.mrb[4].mxu1  ;;  %v14864_v23 = vmax.f32 %v3790_v12, %v3796_v21 }
 0x281   :  { %1705 = vmatprep.mubr.bf16.mxu0 %v18455_v0  ;;  %v2865_v44 = vpop.f32.mrb[5].mxu1  ;;  %v3529_v48 = vadd.f32 %v11859_v30, %v14856_v55 }
 0x282   :  { %v11860_v36 = vpop.f32.mrb[6].mxu1  ;;  %v3523_v56 = vadd.f32 %v14856_v55, %v2865_v44 }
 0x283   :  { %v2868_v35 = vpop.f32.mrb[7].mxu1  ;;  %v3532_v8 = vadd.f32 %v11860_v36, %v14856_v55  ;;  %v3805_v6 = vmax.f32 %v3529_v48, 0.0 }
 0x284   :  { %v3526_v61 = vadd.f32 %v14856_v55, %v2868_v35  ;;  %v3799_v62 = vmax.f32 %v3523_v56, 0.0 }
 0x286   :  { %v14873_v21 = vmax.f32 %v3799_v62, %v3805_v6 }
 0x288   :  { %10531 = vmatmul.mubr.msk.bf16.gmra.mrb[124].mxu0 %vm279_vm0, %v14311_v60  ;;  %v11863_v12 = vpop.f32.mrb[8].mxu1 }
 0x289   :  { %1715 = vmatprep.mubr.bf16.mxu0 %v18455_v0  ;;  %v3541_v44 = vadd.f32 %v11863_v12, %v14856_v55 }
 0x28b   :  { %v3817_v48 = vmax.f32 %v3541_v44, 0.0 }
 0x290   :  { %10532 = vmatmul.mubr.msk.bf16.gmra.mrb[128].mxu0 %vm279_vm0, %v14332_v4 }
 0x291   :  { %1725 = vmatprep.mubr.bf16.mxu0 %v18455_v0 }
 0x298   :  { %10533 = vmatmul.mubr.msk.bf16.gmra.mrb[132].mxu0 %vm279_vm0, %v14334_v5  ;;  %v2881_v5 = vpop.f32.mrb[9].mxu1 }
 0x299   :  { %1735 = vmatprep.mubr.bf16.mxu0 %v18455_v0  ;;  %v14862_v0 = vmax.f32 %v3787_v7, %v3793_v11  ;;  %v3802_v7 = vmax.f32 %v3526_v61, 0.0  ;;  %v3808_v11 = vmax.f32 %v3532_v8, 0.0  ;;  %v3535_v35 = vadd.f32 %v14856_v55, %v2881_v5  ;;  %v11864_v30 = vpop.f32.mrb[10].mxu1 }
 0x29a   :  { %v3544_v36 = vadd.f32 %v11864_v30, %v14856_v55  ;;  %v2884_v56 = vpop.f32.mrb[11].mxu1 }
 0x29b   :  { %v3811_v61 = vmax.f32 %v3535_v35, 0.0  ;;  %v3538_v8 = vadd.f32 %v14856_v55, %v2884_v56 }
 0x29c   :  { %v3820_v62 = vmax.f32 %v3544_v36, 0.0 }
 0x29d   :  { %v3814_v6 = vmax.f32 %v3538_v8, 0.0 }
 0x2a0   :  { %10534 = vmatmul.mubr.msk.bf16.gmra.mrb[136].mxu0 %vm279_vm0, %v14355_v13  ;;  %v14875_v13 = vmax.f32 %v3802_v7, %v3808_v11  ;;  %v11867_v7 = vpop.f32.mrb[12].mxu1  ;;  %v14884_v11 = vmax.f32 %v3811_v61, %v3817_v48 }
 0x2a1   :  { %1745 = vmatprep.mubr.bf16.mxu0 %v18635_v45  ;;  %v3553_v5 = vadd.f32 %v11867_v7, %v14856_v55  ;;  %v2897_v12 = vpop.f32.mrb[13].mxu1 }
 0x2a2   :  { %v3547_v44 = vadd.f32 %v14856_v55, %v2897_v12  ;;  %v11868_v35 = vpop.f32.mrb[14].mxu1 }
 0x2a3   :  { %v3556_v30 = vadd.f32 %v11868_v35, %v14856_v55  ;;  %v2900_v36 = vpop.f32.mrb[15].mxu1  ;;  %v3829_v56 = vmax.f32 %v3553_v5, 0.0 }
 0x2a4   :  { %v3823_v8 = vmax.f32 %v3547_v44, 0.0  ;;  %v3550_v48 = vadd.f32 %v14856_v55, %v2900_v36 }
 0x2a5   :  { %v3832_v61 = vmax.f32 %v3556_v30, 0.0 }
 0x2a8   :  { %10535 = vmatmul.mubr.msk.bf16.gmra.mrb[140].mxu0 %vm279_vm0, %v14357_v14  ;;  %v14886_v14 = vmax.f32 %v3814_v6, %v3820_v62  ;;  %v3826_v62 = vmax.f32 %v3550_v48, 0.0  ;;  %v11871_v6 = vpop.f32.mrb[16].mxu1 }
 0x2a9   :  { %1755 = vmatprep.mubr.bf16.mxu0 %v18635_v45  ;;  %v3565_v7 = vadd.f32 %v11871_v6, %v14856_v55  ;;  %v2913_v12 = vpop.f32.mrb[17].mxu1 }
 0x2aa   :  { %18636 = vst [vmem:[#allocation19_spill] sm:$0xff] %v14886_v14  ;;  %v14895_v14 = vmax.f32 %v3823_v8, %v3829_v56  ;;  %v3559_v5 = vadd.f32 %v14856_v55, %v2913_v12  ;;  %v11872_v44 = vpop.f32.mrb[18].mxu1 }
 0x2ab   :  { %v3568_v35 = vadd.f32 %v11872_v44, %v14856_v55  ;;  %v2916_v30 = vpop.f32.mrb[19].mxu1  ;;  %v3841_v36 = vmax.f32 %v3565_v7, 0.0 }
 0x2ac   :  { %v3835_v48 = vmax.f32 %v3559_v5, 0.0  ;;  %v3562_v56 = vadd.f32 %v14856_v55, %v2916_v30 }
 0x2ad   :  { %v3844_v8 = vmax.f32 %v3568_v35, 0.0 }
 0x2b0   :  { %10536 = vmatmul.mubr.msk.bf16.gmra.mrb[144].mxu0 %vm279_vm0, %v14378_v27  ;;  %v14897_v27 = vmax.f32 %v3826_v62, %v3832_v61  ;;  %v3838_v61 = vmax.f32 %v3562_v56, 0.0  ;;  %v11875_v62 = vpop.f32.mrb[20].mxu1 }
 0x2b1   :  { %1765 = vmatprep.mubr.bf16.mxu0 %v18635_v45  ;;  %v3577_v6 = vadd.f32 %v11875_v62, %v14856_v55  ;;  %v2929_v12 = vpop.f32.mrb[21].mxu1 }
 0x2b2   :  { %18637 = vst [vmem:[#allocation20_spill] sm:$0xff] %v14897_v27  ;;  %v14906_v27 = vmax.f32 %v3835_v48, %v3841_v36  ;;  %v3571_v7 = vadd.f32 %v14856_v55, %v2929_v12  ;;  %v11876_v5 = vpop.f32.mrb[22].mxu1 }
 0x2b3   :  { %v3580_v44 = vadd.f32 %v11876_v5, %v14856_v55  ;;  %v2932_v35 = vpop.f32.mrb[23].mxu1  ;;  %v3853_v30 = vmax.f32 %v3577_v6, 0.0 }
 0x2b4   :  { %18638 = vst [vmem:[#allocation21_spill] sm:$0xff] %v14906_v27  ;;  %v3847_v56 = vmax.f32 %v3571_v7, 0.0  ;;  %v3574_v36 = vadd.f32 %v14856_v55, %v2932_v35 }
 0x2b5   :  { %v3856_v48 = vmax.f32 %v3580_v44, 0.0 }
 0x2b8   :  { %10537 = vmatmul.mubr.msk.bf16.gmra.mrb[148].mxu0 %vm279_vm0, %v14380_v29  ;;  %v14908_v29 = vmax.f32 %v3838_v61, %v3844_v8  ;;  %v3850_v8 = vmax.f32 %v3574_v36, 0.0  ;;  %v11879_v61 = vpop.f32.mrb[24].mxu1 }
 0x2b9   :  { %1775 = vmatprep.mubr.bf16.mxu0 %v18635_v45  ;;  %v3589_v62 = vadd.f32 %v11879_v61, %v14856_v55  ;;  %v2945_v12 = vpop.f32.mrb[25].mxu1 }
 0x2ba   :  { %18639 = vst [vmem:[#allocation22_spill] sm:$0xff] %v14908_v29  ;;  %v14917_v29 = vmax.f32 %v3847_v56, %v3853_v30  ;;  %v14919_v27 = vmax.f32 %v3850_v8, %v3856_v48  ;;  %v3583_v6 = vadd.f32 %v14856_v55, %v2945_v12  ;;  %v11880_v7 = vpop.f32.mrb[26].mxu1 }
 0x2bb   :  { %v3592_v5 = vadd.f32 %v11880_v7, %v14856_v55  ;;  %v2948_v44 = vpop.f32.mrb[27].mxu1  ;;  %v3865_v35 = vmax.f32 %v3589_v62, 0.0 }
 0x2bc   :  { %18640 = vst [vmem:[#allocation23_spill] sm:$0xff] %v14917_v29  ;;  %18641 = vst [vmem:[#allocation24_spill] sm:$0xff] %v14919_v27  ;;  %v3859_v36 = vmax.f32 %v3583_v6, 0.0  ;;  %v3586_v30 = vadd.f32 %v14856_v55, %v2948_v44  ;;  %v11883_v8 = vpop.f32.mrb[28].mxu1 }
 0x2bd   :  { %v3868_v56 = vmax.f32 %v3592_v5, 0.0  ;;  %v3601_v61 = vadd.f32 %v11883_v8, %v14856_v55  ;;  %v2961_v12 = vpop.f32.mrb[29].mxu1 }
 0x2be   :  { %v3862_v48 = vmax.f32 %v3586_v30, 0.0  ;;  %v14928_v27 = vmax.f32 %v3859_v36, %v3865_v35  ;;  %v3595_v62 = vadd.f32 %v14856_v55, %v2961_v12  ;;  %v11884_v6 = vpop.f32.mrb[30].mxu1 }
 0x2bf   :  { %v3604_v7 = vadd.f32 %v11884_v6, %v14856_v55  ;;  %v2964_v5 = vpop.f32.mrb[31].mxu1  ;;  %v3877_v44 = vmax.f32 %v3601_v61, 0.0 }
 0x2c0   :  { %10538 = vmatmul.mubr.msk.bf16.gmra.mrb[152].mxu0 %vm279_vm0, %v14401_v38  ;;  %18642 = vst [vmem:[#allocation25_spill] sm:$0xff] %v14928_v27  ;;  %v14930_v29 = vmax.f32 %v3862_v48, %v3868_v56  ;;  %v3871_v30 = vmax.f32 %v3595_v62, 0.0  ;;  %v3598_v35 = vadd.f32 %v14856_v55, %v2964_v5  ;;  %v11887_v48 = vpop.f32.mrb[32].mxu1 }
 0x2c1   :  { %1785 = vmatprep.mubr.bf16.mxu0 %v18635_v45  ;;  %v3880_v36 = vmax.f32 %v3604_v7, 0.0  ;;  %v3613_v8 = vadd.f32 %v11887_v48, %v14856_v55  ;;  %v2977_v12 = vpop.f32.mrb[33].mxu1 }
 0x2c2   :  { %18643 = vst [vmem:[#allocation26_spill] sm:$0xff] %v14930_v29  ;;  %v3874_v56 = vmax.f32 %v3598_v35, 0.0  ;;  %v14939_v29 = vmax.f32 %v3871_v30, %v3877_v44  ;;  %v3607_v61 = vadd.f32 %v14856_v55, %v2977_v12  ;;  %v11888_v62 = vpop.f32.mrb[34].mxu1 }
 0x2c3   :  { %v3616_v6 = vadd.f32 %v11888_v62, %v14856_v55  ;;  %v2980_v7 = vpop.f32.mrb[35].mxu1  ;;  %v3889_v44 = vmax.f32 %v3613_v8, 0.0 }
 0x2c4   :  { %18644 = vst [vmem:[#allocation27_spill] sm:$0xff] %v14939_v29  ;;  %v14941_v27 = vmax.f32 %v3874_v56, %v3880_v36  ;;  %v3610_v5 = vadd.f32 %v14856_v55, %v2980_v7  ;;  %v3883_v30 = vmax.f32 %v3607_v61, 0.0  ;;  %v11891_v56 = vpop.f32.mrb[36].mxu1 }
 0x2c5   :  { %v3892_v35 = vmax.f32 %v3616_v6, 0.0  ;;  %v3625_v48 = vadd.f32 %v11891_v56, %v14856_v55 }
 0x2c6   :  { %18645 = vst [vmem:[#allocation28_spill] sm:$0xff] %v14941_v27  ;;  %v3886_v36 = vmax.f32 %v3610_v5, 0.0  ;;  %v2993_v27 = vpop.f32.mrb[37].mxu1  ;;  %v14953_v29 = vmax.f32 %v3883_v30, %v3889_v44 }
 0x2c7   :  { %v3619_v62 = vadd.f32 %v14856_v55, %v2993_v27  ;;  %v11892_v7 = vpop.f32.mrb[38].mxu1  ;;  %v3901_v5 = vmax.f32 %v3625_v48, 0.0 }
 0x2c8   :  { %10539 = vmatmul.mubr.msk.bf16.gmra.mrb[156].mxu0 %vm279_vm0, %v14403_v39  ;;  %18646 = vst [vmem:[#allocation29_spill] sm:$0xff] %v14953_v29  ;;  %v14955_v12 = vmax.f32 %v3886_v36, %v3892_v35  ;;  %v3628_v8 = vadd.f32 %v11892_v7, %v14856_v55  ;;  %v2996_v61 = vpop.f32.mrb[39].mxu1 }
 0x2c9   :  { %1795 = vmatprep.mubr.bf16.mxu0 %v18635_v45  ;;  %v3622_v6 = vadd.f32 %v14856_v55, %v2996_v61  ;;  %v11895_v56 = vpop.f32.mrb[40].mxu1 }
 0x2ca   :  { %18647 = vst [vmem:[#allocation30_spill] sm:$0xff] %v14955_v12  ;;  %v3637_v44 = vadd.f32 %v11895_v56, %v14856_v55  ;;  %v3009_v30 = vpop.f32.mrb[41].mxu1 }
 0x2cb   :  { %v3631_v36 = vadd.f32 %v14856_v55, %v3009_v30  ;;  %v11896_v7 = vpop.f32.mrb[42].mxu1 }
 0x2cc   :  { %v3640_v48 = vadd.f32 %v11896_v7, %v14856_v55  ;;  %v3913_v61 = vmax.f32 %v3637_v44, 0.0 }
 0x2ce   :  { %v3916_v12 = vmax.f32 %v3640_v48, 0.0 }
 0x2d0   :  { %10540 = vmatmul.mubr.msk.bf16.gmra.mrb[160].mxu0 %vm279_vm0, %v14424_v53  ;;  %v3898_v53 = vmax.f32 %v3622_v6, 0.0  ;;  %v3907_v6 = vmax.f32 %v3631_v36, 0.0 }
 0x2d1   :  { %1805 = vmatprep.mubr.bf16.mxu0 %v18635_v45 }
 0x2d8   :  { %10541 = vmatmul.mubr.msk.bf16.gmra.mrb[164].mxu0 %vm279_vm0, %v14426_v54  ;;  %v3895_v54 = vmax.f32 %v3619_v62, 0.0  ;;  %v3012_v62 = vpop.f32.mrb[43].mxu1 }
 0x2d9   :  { %1815 = vmatprep.mubr.bf16.mxu0 %v18635_v45  ;;  %v11899_v56 = vpop.f32.mrb[44].mxu1 }
 0x2da   :  { %v14964_v35 = vmax.f32 %v3895_v54, %v3901_v5  ;;  %v3025_v54 = vpop.f32.mrb[45].mxu1 }
 0x2db   :  { %v3643_v30 = vadd.f32 %v14856_v55, %v3025_v54  ;;  %v11900_v7 = vpop.f32.mrb[46].mxu1 }
 0x2dc   :  { %18648 = vst [vmem:[#allocation31_spill] sm:$0xff] %v14964_v35  ;;  %v3652_v44 = vadd.f32 %v11900_v7, %v14856_v55  ;;  %v3028_v36 = vpop.f32.mrb[47].mxu1 }
 0x2dd   :  { %v3646_v48 = vadd.f32 %v14856_v55, %v3028_v36 }
 0x2df   :  { %v3922_v35 = vmax.f32 %v3646_v48, 0.0 }
 0x2e0   :  { %10542 = vmatmul.mubr.msk.bf16.gmra.mrb[168].mxu0 %vm279_vm0, %v14447_v2  ;;  %v3904_v2 = vmax.f32 %v3628_v8, 0.0  ;;  %v3634_v8 = vadd.f32 %v14856_v55, %v3012_v62 }
 0x2e1   :  { %1825 = vmatprep.mubr.bf16.mxu0 %v18635_v45 }
 0x2e2   :  { %v14966_v27 = vmax.f32 %v3898_v53, %v3904_v2  ;;  %v3910_v29 = vmax.f32 %v3634_v8, 0.0  ;;  %v3649_v53 = vadd.f32 %v11899_v56, %v14856_v55  ;;  %v14975_v2 = vmax.f32 %v3907_v6, %v3913_v61  ;;  %v11903_v56 = vpop.f32.mrb[48].mxu1 }
 0x2e3   :  { %v3919_v8 = vmax.f32 %v3643_v30, 0.0 }
 0x2e4   :  { %18649 = vst [vmem:[#allocation32_spill] sm:$0xff] %v14966_v27  ;;  %18650 = vst [vmem:[#allocation33_spill] sm:$0xff] %v14975_v2  ;;  %v14977_v5 = vmax.f32 %v3910_v29, %v3916_v12  ;;  %v3925_v62 = vmax.f32 %v3649_v53, 0.0  ;;  %v3928_v27 = vmax.f32 %v3652_v44, 0.0  ;;  %v3661_v29 = vadd.f32 %v11903_v56, %v14856_v55  ;;  %v3041_v12 = vpop.f32.mrb[49].mxu1 }
 0x2e5   :  { %v3655_v54 = vadd.f32 %v14856_v55, %v3041_v12  ;;  %v11904_v7 = vpop.f32.mrb[50].mxu1 }
 0x2e6   :  { %18651 = vst [vmem:[#allocation34_spill] sm:$0xff] %v14977_v5  ;;  %v14986_v61 = vmax.f32 %v3919_v8, %v3925_v62  ;;  %v14988_v6 = vmax.f32 %v3922_v35, %v3928_v27  ;;  %v3664_v53 = vadd.f32 %v11904_v7, %v14856_v55  ;;  %v3044_v30 = vpop.f32.mrb[51].mxu1  ;;  %v3937_v36 = vmax.f32 %v3661_v29, 0.0 }
 0x2e7   :  { %v3658_v44 = vadd.f32 %v14856_v55, %v3044_v30  ;;  %v3931_v48 = vmax.f32 %v3655_v54, 0.0  ;;  %v11907_v56 = vpop.f32.mrb[52].mxu1 }
 0x2e8   :  { %10543 = vmatmul.mubr.msk.bf16.gmra.mrb[172].mxu0 %vm279_vm0, %v14449_v3  ;;  %18652 = vst [vmem:[#allocation35_spill] sm:$0xff] %v14988_v6  ;;  %v3940_v5 = vmax.f32 %v3664_v53, 0.0  ;;  %v3673_v35 = vadd.f32 %v11907_v56, %v14856_v55  ;;  %v3057_v27 = vpop.f32.mrb[53].mxu1 }
 0x2e9   :  { %1835 = vmatprep.mubr.bf16.mxu0 %v18635_v45  ;;  %v3934_v2 = vmax.f32 %v3658_v44, 0.0  ;;  %v14997_v62 = vmax.f32 %v3931_v48, %v3937_v36  ;;  %v3667_v12 = vadd.f32 %v14856_v55, %v3057_v27  ;;  %v11908_v7 = vpop.f32.mrb[54].mxu1 }
 0x2ea   :  { %v3676_v29 = vadd.f32 %v11908_v7, %v14856_v55  ;;  %v3060_v54 = vpop.f32.mrb[55].mxu1  ;;  %v3949_v30 = vmax.f32 %v3673_v35, 0.0 }
 0x2eb   :  { %v14999_v8 = vmax.f32 %v3934_v2, %v3940_v5  ;;  %v3670_v53 = vadd.f32 %v14856_v55, %v3060_v54  ;;  %v3943_v44 = vmax.f32 %v3667_v12, 0.0  ;;  %v11911_v56 = vpop.f32.mrb[56].mxu1 }
 0x2ec   :  { %v3685_v2 = vadd.f32 %v11911_v56, %v14856_v55  ;;  %v3073_v5 = vpop.f32.mrb[57].mxu1 }
 0x2ed   :  { %18653 = vst [vmem:[#allocation36_spill] sm:$0xff] %v14999_v8  ;;  %v3946_v6 = vmax.f32 %v3670_v53, 0.0  ;;  %v15008_v36 = vmax.f32 %v3943_v44, %v3949_v30  ;;  %v3679_v27 = vadd.f32 %v14856_v55, %v3073_v5  ;;  %v11912_v7 = vpop.f32.mrb[58].mxu1 }
 0x2ee   :  { %v3688_v35 = vadd.f32 %v11912_v7, %v14856_v55  ;;  %v3076_v12 = vpop.f32.mrb[59].mxu1  ;;  %v3961_v54 = vmax.f32 %v3685_v2, 0.0 }
 0x2ef   :  { %18654 = vst [vmem:[#allocation37_spill] sm:$0xff] %v15008_v36  ;;  %v3955_v53 = vmax.f32 %v3679_v27, 0.0 }
 0x2f0   :  { %10544 = vmatmul.mubr.msk.bf16.gmra.mrb[176].mxu0 %vm279_vm0, %v14470_v18  ;;  %v11915_v56 = vpop.f32.mrb[60].mxu1 }
 0x2f1   :  { %1845 = vmatprep.mubr.bf16.mxu0 %v18635_v45  ;;  %v3089_v30 = vpop.f32.mrb[61].mxu1  ;;  %v15019_v44 = vmax.f32 %v3955_v53, %v3961_v54 }
 0x2f2   :  { %v3691_v5 = vadd.f32 %v14856_v55, %v3089_v30  ;;  %v11916_v7 = vpop.f32.mrb[62].mxu1 }
 0x2f3   :  { %18656 = vst [vmem:[#allocation39_spill] sm:$0xff] %v15019_v44  ;;  %v3700_v2 = vadd.f32 %v11916_v7, %v14856_v55  ;;  %v3092_v27 = vpop.f32.mrb[63].mxu1 }
 0x2f8   :  { %10545 = vmatmul.mubr.msk.bf16.gmra.mrb[180].mxu0 %vm279_vm0, %v14472_v20 }
 0x2f9   :  { %2354 = vmatprep.mubr.bf16.mxu0 %v18635_v45 }
 0x300   :  { %10601 = vmatmul.mubr.msk.bf16.vlgmr.msra.gmra.mrb[0].mxu0 %vm279_vm0, %v13963_v16  ;;  %v3952_v16 = vmax.f32 %v3676_v29, 0.0  ;;  %v3682_v29 = vadd.f32 %v14856_v55, %v3076_v12 }
 0x301   :  { %2364 = vmatprep.mubr.bf16.mxu0 %v18635_v45 }
 0x302   :  { %v15010_v48 = vmax.f32 %v3946_v6, %v3952_v16  ;;  %v3958_v8 = vmax.f32 %v3682_v29, 0.0  ;;  %v3697_v6 = vadd.f32 %v11915_v56, %v14856_v55  ;;  %v3967_v29 = vmax.f32 %v3691_v5, 0.0  ;;  %v11919_v56 = vpop.f32.mrb[64].mxu1 }
 0x303   :  { %v3105_v54 = vpop.f32.mrb[65].mxu1 }
 0x304   :  { %18655 = vst [vmem:[#allocation38_spill] sm:$0xff] %v15010_v48  ;;  %v3973_v12 = vmax.f32 %v3697_v6, 0.0  ;;  %v3703_v30 = vadd.f32 %v14856_v55, %v3105_v54  ;;  %v11920_v7 = vpop.f32.mrb[66].mxu1 }
 0x305   :  { %v3712_v6 = vadd.f32 %v11920_v7, %v14856_v55  ;;  %v3108_v5 = vpop.f32.mrb[67].mxu1 }
 0x306   :  { %v15030_v53 = vmax.f32 %v3967_v29, %v3973_v12 }
 0x308   :  { %10602 = vmatmul.mubr.msk.bf16.gmra.mrb[4].mxu0 %vm279_vm0, %v13974_v19  ;;  %v3964_v19 = vmax.f32 %v3688_v35, 0.0  ;;  %v3694_v35 = vadd.f32 %v14856_v55, %v3092_v27  ;;  %18658 = vst [vmem:[#allocation41_spill] sm:$0xff] %v15030_v53 }
 0x309   :  { %2374 = vmatprep.mubr.bf16.mxu0 %v18635_v45 }
 0x30a   :  { %v15021_v16 = vmax.f32 %v3958_v8, %v3964_v19  ;;  %v3970_v48 = vmax.f32 %v3694_v35, 0.0  ;;  %v3709_v8 = vadd.f32 %v11919_v56, %v14856_v55  ;;  %v3979_v35 = vmax.f32 %v3703_v30, 0.0  ;;  %v11923_v56 = vpop.f32.mrb[68].mxu1 }
 0x30c   :  { %18657 = vst [vmem:[#allocation40_spill] sm:$0xff] %v15021_v16  ;;  %v3985_v27 = vmax.f32 %v3709_v8, 0.0 }
 0x30e   :  { %v15040_v12 = vmax.f32 %v3979_v35, %v3985_v27 }
 0x310   :  { %10603 = vmatmul.mubr.msk.bf16.gmra.mrb[8].mxu0 %vm279_vm0, %v13985_v22  ;;  %v3976_v22 = vmax.f32 %v3700_v2, 0.0  ;;  %v3706_v2 = vadd.f32 %v14856_v55, %v3108_v5  ;;  %18660 = vst [vmem:[#allocation43_spill] sm:$0xff] %v15040_v12 }
 0x311   :  { %2384 = vmatprep.mubr.bf16.mxu0 %v18635_v45 }
 0x312   :  { %v15032_v19 = vmax.f32 %v3970_v48, %v3976_v22  ;;  %v3982_v16 = vmax.f32 %v3706_v2, 0.0  ;;  %v3121_v48 = vpop.f32.mrb[69].mxu1  ;;  %v3721_v22 = vadd.f32 %v11923_v56, %v14856_v55 }
 0x313   :  { %v3715_v54 = vadd.f32 %v14856_v55, %v3121_v48  ;;  %v11924_v7 = vpop.f32.mrb[70].mxu1 }
 0x314   :  { %18659 = vst [vmem:[#allocation42_spill] sm:$0xff] %v15032_v19  ;;  %v3724_v8 = vadd.f32 %v11924_v7, %v14856_v55  ;;  %v3124_v30 = vpop.f32.mrb[71].mxu1  ;;  %v3997_v5 = vmax.f32 %v3721_v22, 0.0 }
 0x315   :  { %v3991_v2 = vmax.f32 %v3715_v54, 0.0  ;;  %v11927_v27 = vpop.f32.mrb[72].mxu1 }
 0x316   :  { %v3733_v35 = vadd.f32 %v11927_v27, %v14856_v55 }
 0x317   :  { %v15054_v48 = vmax.f32 %v3991_v2, %v3997_v5 }
 0x318   :  { %10604 = vmatmul.mubr.msk.bf16.gmra.mrb[12].mxu0 %vm279_vm0, %v13996_v25  ;;  %v3988_v25 = vmax.f32 %v3712_v6, 0.0  ;;  %v3718_v6 = vadd.f32 %v14856_v55, %v3124_v30  ;;  %v4009_v30 = vmax.f32 %v3733_v35, 0.0 }
 0x319   :  { %2394 = vmatprep.mubr.bf16.mxu0 %v18635_v45  ;;  %18662 = vst [vmem:[#allocation45_spill] sm:$0xff] %v15054_v48 }
 0x31a   :  { %v15042_v29 = vmax.f32 %v3982_v16, %v3988_v25  ;;  %v3994_v19 = vmax.f32 %v3718_v6, 0.0  ;;  %v3137_v16 = vpop.f32.mrb[73].mxu1 }
 0x31b   :  { %v3727_v25 = vadd.f32 %v14856_v55, %v3137_v16  ;;  %v11928_v56 = vpop.f32.mrb[74].mxu1 }
 0x31c   :  { %18661 = vst [vmem:[#allocation44_spill] sm:$0xff] %v15042_v29  ;;  %v3736_v22 = vadd.f32 %v11928_v56, %v14856_v55  ;;  %v3140_v54 = vpop.f32.mrb[75].mxu1 }
 0x31d   :  { %v4003_v6 = vmax.f32 %v3727_v25, 0.0  ;;  %v11931_v12 = vpop.f32.mrb[76].mxu1 }
 0x31e   :  { %v3153_v27 = vpop.f32.mrb[77].mxu1  ;;  %v3745_v5 = vadd.f32 %v11931_v12, %v14856_v55 }
 0x31f   :  { %v11932_v2 = vpop.f32.mrb[78].mxu1 }
 0x320   :  { %10605 = vmatmul.mubr.msk.bf16.gmra.mrb[16].mxu0 %vm279_vm0, %v14007_v28  ;;  %v4000_v28 = vmax.f32 %v3724_v8, 0.0  ;;  %v3730_v8 = vadd.f32 %v14856_v55, %v3140_v54  ;;  %v3748_v35 = vadd.f32 %v11932_v2, %v14856_v55  ;;  %v3156_v25 = vpop.f32.mrb[79].mxu1 }
 0x321   :  { %2404 = vmatprep.mubr.bf16.mxu0 %v18635_v45  ;;  %v3742_v56 = vadd.f32 %v14856_v55, %v3156_v25 }
 0x322   :  { %v15056_v7 = vmax.f32 %v3994_v19, %v4000_v28  ;;  %v4006_v29 = vmax.f32 %v3730_v8, 0.0  ;;  %v3739_v19 = vadd.f32 %v14856_v55, %v3153_v27  ;;  %v15065_v28 = vmax.f32 %v4003_v6, %v4009_v30 }
 0x323   :  { %v4018_v8 = vmax.f32 %v3742_v56, 0.0 }
 0x324   :  { %18663 = vst [vmem:[#allocation46_spill] sm:$0xff] %v15056_v7  ;;  %18664 = vst [vmem:[#allocation47_spill] sm:$0xff] %v15065_v28  ;;  %v4015_v54 = vmax.f32 %v3739_v19, 0.0  ;;  %v11935_v7 = vpop.f32.mrb[80].mxu1 }
 0x325   :  { %v3169_v12 = vpop.f32.mrb[81].mxu1  ;;  %v3757_v30 = vadd.f32 %v11935_v7, %v14856_v55 }
 0x326   :  { %v11936_v6 = vpop.f32.mrb[82].mxu1 }
 0x327   :  { %v3172_v19 = vpop.f32.mrb[83].mxu1 }
 0x328   :  { %10606 = vmatmul.mubr.msk.bf16.gmra.mrb[20].mxu0 %vm279_vm0, %v14018_v33  ;;  %v4012_v33 = vmax.f32 %v3736_v22, 0.0  ;;  %v4021_v22 = vmax.f32 %v3745_v5, 0.0  ;;  %v3760_v5 = vadd.f32 %v11936_v6, %v14856_v55  ;;  %v3754_v2 = vadd.f32 %v14856_v55, %v3172_v19 }
 0x329   :  { %2414 = vmatprep.mubr.bf16.mxu0 %v18635_v45 }
 0x32a   :  { %v15067_v16 = vmax.f32 %v4006_v29, %v4012_v33  ;;  %v3751_v29 = vadd.f32 %v14856_v55, %v3169_v12  ;;  %v15076_v33 = vmax.f32 %v4015_v54, %v4021_v22  ;;  %v4030_v56 = vmax.f32 %v3754_v2, 0.0 }
 0x32c   :  { %18665 = vst [vmem:[#allocation48_spill] sm:$0xff] %v15067_v16  ;;  %18666 = vst [vmem:[#allocation49_spill] sm:$0xff] %v15076_v33  ;;  %v4027_v25 = vmax.f32 %v3751_v29, 0.0  ;;  %v11939_v16 = vpop.f32.mrb[84].mxu1 }
 0x32d   :  { %v3185_v7 = vpop.f32.mrb[85].mxu1  ;;  %v3769_v22 = vadd.f32 %v11939_v16, %v14856_v55 }
 0x32e   :  { %v3763_v54 = vadd.f32 %v14856_v55, %v3185_v7 }
 0x330   :  { %10607 = vmatmul.mubr.msk.bf16.gmra.mrb[24].mxu0 %vm279_vm0, %v14029_v37  ;;  %v4024_v37 = vmax.f32 %v3748_v35, 0.0  ;;  %v4033_v35 = vmax.f32 %v3757_v30, 0.0  ;;  %v4039_v19 = vmax.f32 %v3763_v54, 0.0 }
 0x331   :  { %2424 = vmatprep.mubr.bf16.mxu0 %v18635_v45 }
 0x332   :  { %v15078_v27 = vmax.f32 %v4018_v8, %v4024_v37  ;;  %v11940_v37 = vpop.f32.mrb[86].mxu1  ;;  %v15087_v8 = vmax.f32 %v4027_v25, %v4033_v35 }
 0x333   :  { %v3772_v30 = vadd.f32 %v11940_v37, %v14856_v55  ;;  %v3188_v29 = vpop.f32.mrb[87].mxu1 }
 0x334   :  { %18667 = vst [vmem:[#allocation50_spill] sm:$0xff] %v15078_v27  ;;  %18668 = vst [vmem:[#allocation51_spill] sm:$0xff] %v15087_v8  ;;  %v3766_v6 = vadd.f32 %v14856_v55, %v3188_v29  ;;  %v11943_v27 = vpop.f32.mrb[88].mxu1 }
 0x335   :  { %v3201_v16 = vpop.f32.mrb[89].mxu1  ;;  %v3781_v35 = vadd.f32 %v11943_v27, %v14856_v55 }
 0x336   :  { %v4042_v2 = vmax.f32 %v3766_v6, 0.0  ;;  %v3775_v25 = vadd.f32 %v14856_v55, %v3201_v16  ;;  %v13576_v16 = vld [vmem:[%s18443_s3 + $0x94] ss:$8 sps:$4 sm:$0xff]  }
 0x338   :  { %10608 = vmatmul.mubr.msk.bf16.gmra.mrb[28].mxu0 %vm279_vm0, %v14044_v40  ;;  %v4036_v40 = vmax.f32 %v3760_v5, 0.0  ;;  %v4045_v5 = vmax.f32 %v3769_v22, 0.0  ;;  %v4051_v29 = vmax.f32 %v3775_v25, 0.0  ;;  %v13577_v25 = vld [vmem:[%s18443_s3 + $0xa0] ss:$8 sps:$4 sm:$0xff]  }
 0x339   :  { %2434 = vmatprep.mubr.bf16.mxu0 %v18635_v45 }
 0x33a   :  { %v15089_v12 = vmax.f32 %v4030_v56, %v4036_v40  ;;  %v11944_v40 = vpop.f32.mrb[90].mxu1  ;;  %v15098_v56 = vmax.f32 %v4039_v19, %v4045_v5  ;;  %v13570_v19 = vld [vmem:[%s18443_s3 + $0x74] ss:$8 sps:$4 sm:$0xff]  }
 0x33b   :  { %v3784_v22 = vadd.f32 %v11944_v40, %v14856_v55  ;;  %v3204_v54 = vpop.f32.mrb[91].mxu1  ;;  %v13582_v40 = vld [vmem:[%s18443_s3 + $0xb4] ss:$8 sps:$4 sm:$0xff]  }
 0x33c   :  { %18669 = vst [vmem:[#allocation52_spill] sm:$0xff] %v15089_v12  ;;  %18670 = vst [vmem:[#allocation53_spill] sm:$0xff] %v15098_v56  ;;  %v3778_v37 = vadd.f32 %v14856_v55, %v3204_v54  ;;  %v13565_v55 = vld [vmem:[%s18443_s3 + $0x60] ss:$8 sps:$4 sm:$0xff]   ;;  %v13585_v54 = vld [vmem:[%s18443_s3 + $0xc4] ss:$8 sps:$4 sm:$0xff]  }
 0x33e   :  { %v4054_v6 = vmax.f32 %v3778_v37, 0.0 }
 0x340   :  { %10609 = vmatmul.mubr.msk.bf16.gmra.mrb[32].mxu0 %vm279_vm0, %v14059_v43  ;;  %v4048_v43 = vmax.f32 %v3772_v30, 0.0  ;;  %v4057_v30 = vmax.f32 %v3781_v35, 0.0  ;;  %v13579_v35 = vld [vmem:[%s18443_s3 + $0xa4] ss:$8 sps:$4 sm:$0xff]  }
 0x341   :  { %2444 = vmatprep.mubr.bf16.mxu0 %v18635_v45 }
 0x342   :  { %v15100_v7 = vmax.f32 %v4042_v2, %v4048_v43  ;;  %v15107_v27 = vmax.f32 %v4051_v29, %v4057_v30  ;;  %v13573_v43 = vld [vmem:[%s18443_s3 + $0x84] ss:$8 sps:$4 sm:$0xff]   ;;  %v13571_v2 = vld [vmem:[%s18443_s3 + $0x80] ss:$8 sps:$4 sm:$0xff]   ;;  %v18494_v30 = vsub.s32 1, %v14842_v31 }
 0x343   :  { %v13583_v29 = vld [vmem:[%s18443_s3 + $0xc0] ss:$8 sps:$4 sm:$0xff]  }
 0x344   :  { %18671 = vst [vmem:[#allocation54_spill] sm:$0xff] %v15100_v7  ;;  %18672 = vst [vmem:[#allocation55_spill] sm:$0xff] %v15107_v27 }
 0x348   :  { %10610 = vmatmul.mubr.msk.bf16.gmra.mrb[36].mxu0 %vm279_vm0, %v14074_v46  ;;  %v4060_v46 = vmax.f32 %v3784_v22, 0.0  ;;  %v18495_v22 = vsub.s32 0, %v14842_v31 }
 0x349   :  { %2454 = vmatprep.mubr.bf16.mxu0 %v18635_v45 }
 0x34a   :  { %v15109_v5 = vmax.f32 %v4054_v6, %v4060_v46  ;;  %v15242_v6 = vrot.slane %v14850_v47, %v18495_v22 }
 0x34c   :  { %18673 = vst [vmem:[#allocation56_spill] sm:$0xff] %v15109_v5 }
 0x350   :  { %10611 = vmatmul.mubr.msk.bf16.gmra.mrb[40].mxu0 %vm279_vm0, %v14089_v49  ;;  %v13549_v49 = vld [vmem:[%s18443_s3 + $0x4] ss:$8 sps:$4 sm:$0xff]  }
 0x351   :  { %2464 = vmatprep.mubr.bf16.mxu0 %v18635_v45  ;;  %5330 = vmatprep.subr.bf16.mxu1 %v13549_v49 }
 0x358   :  { %10612 = vmatmul.mubr.msk.bf16.gmra.mrb[44].mxu0 %vm279_vm0, %v14104_v52  ;;  %v13547_v52 = vld [vmem:[%s18443_s3] ss:$8 sps:$4 sm:$0xff]  }
 0x359   :  { %2474 = vmatprep.mubr.bf16.mxu0 %v18635_v45  ;;  %5331 = vmatpush1.bf16.msra.mxu1 %v13547_v52  ;;  %v13588_v52 = vld [vmem:[%s18443_s3 + $0xd4] ss:$8 sps:$4 sm:$0xff]  }
 0x360   :  { %10613 = vmatmul.mubr.msk.bf16.gmra.mrb[48].mxu0 %vm279_vm0, %v14125_v57  ;;  %v13552_v57 = vld [vmem:[%s18443_s3 + $0x14] ss:$8 sps:$4 sm:$0xff]  }
 0x361   :  { %2484 = vmatprep.mubr.bf16.mxu0 %v18635_v45  ;;  %5332 = vmatprep.subr.bf16.mxu1 %v13552_v57  ;;  %v15250_v57 = vrot.slane %v14850_v47, %v18494_v30 }
 0x368   :  { %10614 = vmatmul.mubr.msk.bf16.gmra.mrb[52].mxu0 %vm279_vm0, %v14127_v58  ;;  %v13550_v58 = vld [vmem:[%s18443_s3 + $0x10] ss:$8 sps:$4 sm:$0xff]  }
 0x369   :  { %2494 = vmatprep.mubr.bf16.mxu0 %v18635_v45  ;;  %5333 = vmatpush1.bf16.msra.mxu1 %v13550_v58  ;;  %v13586_v58 = vld [vmem:[%s18443_s3 + $0xd0] ss:$8 sps:$4 sm:$0xff]  }
 0x370   :  { %10615 = vmatmul.mubr.msk.bf16.gmra.mrb[56].mxu0 %vm279_vm0, %v14148_v63  ;;  %v13555_v63 = vld [vmem:[%s18443_s3 + $0x24] ss:$8 sps:$4 sm:$0xff]  }
 0x371   :  { %2504 = vmatprep.mubr.bf16.mxu0 %v18635_v45  ;;  %5334 = vmatprep.subr.bf16.mxu1 %v13555_v63 }
 0x378   :  { %10616 = vmatmul.mubr.msk.bf16.gmra.mrb[60].mxu0 %vm279_vm0, %v14150_v1  ;;  %v13553_v1 = vld [vmem:[%s18443_s3 + $0x20] ss:$8 sps:$4 sm:$0xff]  }
 0x379   :  { %2514 = vmatprep.mubr.bf16.mxu0 %v18635_v45  ;;  %5335 = vmatpush1.bf16.msra.mxu1 %v13553_v1  ;;  %v13591_v1 = vld [vmem:[%s18443_s3 + $0xe4] ss:$8 sps:$4 sm:$0xff]  }
 0x380   :  { %10617 = vmatmul.mubr.msk.bf16.gmra.mrb[64].mxu0 %vm279_vm0, %v14171_v9  ;;  %v13558_v9 = vld [vmem:[%s18443_s3 + $0x34] ss:$8 sps:$4 sm:$0xff]  }
 0x381   :  { %2524 = vmatprep.mubr.bf16.mxu0 %v18635_v45  ;;  %5336 = vmatprep.subr.bf16.mxu1 %v13558_v9 }
 0x388   :  { %10618 = vmatmul.mubr.msk.bf16.gmra.mrb[68].mxu0 %vm279_vm0, %v14173_v10  ;;  %v13556_v10 = vld [vmem:[%s18443_s3 + $0x30] ss:$8 sps:$4 sm:$0xff]  }
 0x389   :  { %2534 = vmatprep.mubr.bf16.mxu0 %v18635_v45  ;;  %5337 = vmatpush1.bf16.msra.mxu1 %v13556_v10  ;;  %v13589_v10 = vld [vmem:[%s18443_s3 + $0xe0] ss:$8 sps:$4 sm:$0xff]  }
 0x390   :  { %10619 = vmatmul.mubr.msk.bf16.gmra.mrb[72].mxu0 %vm279_vm0, %v14194_v15  ;;  %v13561_v15 = vld [vmem:[%s18443_s3 + $0x44] ss:$8 sps:$4 sm:$0xff]  }
 0x391   :  { %2544 = vmatprep.mubr.bf16.mxu0 %v18635_v45  ;;  %5338 = vmatprep.subr.bf16.mxu1 %v13561_v15 }
 0x398   :  { %10620 = vmatmul.mubr.msk.bf16.gmra.mrb[76].mxu0 %vm279_vm0, %v14196_v17  ;;  %v13559_v17 = vld [vmem:[%s18443_s3 + $0x40] ss:$8 sps:$4 sm:$0xff]  }
 0x399   :  { %2554 = vmatprep.mubr.bf16.mxu0 %v18635_v45  ;;  %5339 = vmatpush1.bf16.msra.mxu1 %v13559_v17 }
 0x3a0   :  { %10621 = vmatmul.mubr.msk.bf16.gmra.mrb[80].mxu0 %vm279_vm0, %v14217_v24  ;;  %v13564_v24 = vld [vmem:[%s18443_s3 + $0x54] ss:$8 sps:$4 sm:$0xff]  }
 0x3a1   :  { %2564 = vmatprep.mubr.bf16.mxu0 %v18635_v45  ;;  %5340 = vmatprep.subr.bf16.mxu1 %v13564_v24 }
 0x3a8   :  { %10622 = vmatmul.mubr.msk.bf16.gmra.mrb[84].mxu0 %vm279_vm0, %v14219_v26  ;;  %v13562_v26 = vld [vmem:[%s18443_s3 + $0x50] ss:$8 sps:$4 sm:$0xff]  }
 0x3a9   :  { %2574 = vmatprep.mubr.bf16.mxu0 %v18635_v45  ;;  %5341 = vmatpush1.bf16.msra.mxu1 %v13562_v26 }
 0x3b0   :  { %10623 = vmatmul.mubr.msk.bf16.gmra.mrb[88].mxu0 %vm279_vm0, %v14240_v32  ;;  %v13567_v32 = vld [vmem:[%s18443_s3 + $0x64] ss:$8 sps:$4 sm:$0xff]  }
 0x3b1   :  { %2584 = vmatprep.mubr.bf16.mxu0 %v18635_v45  ;;  %5342 = vmatprep.subr.bf16.mxu1 %v13567_v32 }
 0x3b2   :  { %5343 = vmatpush1.bf16.msra.mxu1 %v13565_v55 }
 0x3b3   :  { %5344 = vmatprep.subr.bf16.mxu1 %v13570_v19 }
 0x3b8   :  { %10624 = vmatmul.mubr.msk.bf16.gmra.mrb[92].mxu0 %vm279_vm0, %v14242_v34  ;;  %v13568_v34 = vld [vmem:[%s18443_s3 + $0x70] ss:$8 sps:$4 sm:$0xff]  }
 0x3b9   :  { %2594 = vmatprep.mubr.bf16.mxu0 %v18635_v45  ;;  %5345 = vmatpush1.bf16.msra.mxu1 %v13568_v34 }
 0x3ba   :  { %5346 = vmatprep.subr.bf16.mxu1 %v13573_v43 }
 0x3bd   :  { %5347 = vmatpush1.bf16.msra.mxu1 %v13571_v2  ;;  %v13594_v2 = vld [vmem:[%s18443_s3 + $0xf4] ss:$8 sps:$4 sm:$0xff]  }
 0x3be   :  { %5348 = vmatprep.subr.bf16.mxu1 %v13576_v16 }
 0x3c0   :  { %10625 = vmatmul.mubr.msk.bf16.gmra.mrb[96].mxu0 %vm279_vm0, %v14263_v41  ;;  %v13574_v41 = vld [vmem:[%s18443_s3 + $0x90] ss:$8 sps:$4 sm:$0xff]  }
 0x3c1   :  { %2604 = vmatprep.mubr.bf16.mxu0 %v18635_v45  ;;  %5349 = vmatpush1.bf16.msra.mxu1 %v13574_v41 }
 0x3c2   :  { %5350 = vmatprep.subr.bf16.mxu1 %v13579_v35 }
 0x3c5   :  { %5351 = vmatpush1.bf16.msra.mxu1 %v13577_v25  ;;  %v13592_v25 = vld [vmem:[%s18443_s3 + $0xf0] ss:$8 sps:$4 sm:$0xff]  }
 0x3c6   :  { %5352 = vmatprep.subr.bf16.mxu1 %v13582_v40 }
 0x3c8   :  { %10626 = vmatmul.mubr.msk.bf16.gmra.mrb[100].mxu0 %vm279_vm0, %v14265_v42  ;;  %v13580_v42 = vld [vmem:[%s18443_s3 + $0xb0] ss:$8 sps:$4 sm:$0xff]  }
 0x3c9   :  { %2614 = vmatprep.mubr.bf16.mxu0 %v18635_v45  ;;  %5353 = vmatpush1.bf16.msra.mxu1 %v13580_v42 }
 0x3ca   :  { %5354 = vmatprep.subr.bf16.mxu1 %v13585_v54 }
 0x3cd   :  { %5355 = vmatpush1.bf16.msra.mxu1 %v13583_v29 }
 0x3ce   :  { %5356 = vmatprep.subr.bf16.mxu1 %v13588_v52 }
 0x3d0   :  { %10627 = vmatmul.mubr.msk.bf16.gmra.mrb[104].mxu0 %vm279_vm0, %v14286_v50 }
 0x3d1   :  { %2624 = vmatprep.mubr.bf16.mxu0 %v18635_v45  ;;  %5357 = vmatpush1.bf16.msra.mxu1 %v13586_v58 }
 0x3d2   :  { %5358 = vmatprep.subr.bf16.mxu1 %v13591_v1 }
 0x3d3   :  { %v2356_v37 = vpop.f32.mrb[0].mxu0 }
 0x3d4   :  { %v2358_v46 = vpop.f32.mrb[1].mxu0  ;;  %v3509_v63 = vadd.f32 %v15242_v6, %v2356_v37 }
 0x3d5   :  { %v2360_v50 = vpop.f32.mrb[2].mxu0  ;;  %v3510_v47 = vadd.f32 %v15250_v57, %v2358_v46  ;;  %5359 = vmatpush1.bf16.msra.mxu1 %v13589_v10 }
 0x3d6   :  { %v2362_v49 = vpop.f32.mrb[3].mxu0  ;;  %v3512_v15 = vadd.f32 %v15242_v6, %v2360_v50  ;;  %v3785_v55 = vmax.f32 %v3509_v63, 0.0  ;;  %5360 = vmatprep.subr.bf16.mxu1 %v13594_v2 }
 0x3d7   :  { %v3513_v24 = vadd.f32 %v15250_v57, %v2362_v49  ;;  %v3786_v16 = vmax.f32 %v3510_v47, 0.0 }
 0x3d8   :  { %10628 = vmatmul.mubr.msk.bf16.gmra.mrb[108].mxu0 %vm279_vm0, %v14288_v51  ;;  %v3788_v40 = vmax.f32 %v3512_v15, 0.0 }
 0x3d9   :  { %2634 = vmatprep.mubr.bf16.mxu0 %v18635_v45  ;;  %v3789_v37 = vmax.f32 %v3513_v24, 0.0  ;;  %5361 = vmatpush1.bf16.msra.mxu1 %v13592_v25 }
 0x3db   :  { %v2366_v9 = vpop.f32.mrb[4].mxu0 }
 0x3dc   :  { %v3515_v51 = vadd.f32 %v15242_v6, %v2366_v9  ;;  %v2368_v17 = vpop.f32.mrb[5].mxu0 }
 0x3dd   :  { %v3516_v26 = vadd.f32 %v15250_v57, %v2368_v17  ;;  %v2370_v32 = vpop.f32.mrb[6].mxu0 }
 0x3de   :  { %v3791_v19 = vmax.f32 %v3515_v51, 0.0  ;;  %v3518_v34 = vadd.f32 %v15242_v6, %v2370_v32  ;;  %v2372_v43 = vpop.f32.mrb[7].mxu0 }
 0x3df   :  { %v3792_v41 = vmax.f32 %v3516_v26, 0.0  ;;  %v3519_v35 = vadd.f32 %v15250_v57, %v2372_v43 }
 0x3e0   :  { %v3794_v42 = vmax.f32 %v3518_v34, 0.0  ;;  %10629 = vmatmul.mubr.msk.bf16.gmra.mrb[112].mxu0 %vm279_vm0, %v14309_v59  ;;  %v15280_v54 = vmax.f32 %v3785_v55, %v3791_v19 }
 0x3e1   :  { %v3795_v29 = vmax.f32 %v3519_v35, 0.0  ;;  %v15282_v46 = vmax.f32 %v3786_v16, %v3792_v41  ;;  %2644 = vmatprep.mubr.bf16.mxu0 %v18635_v45 }
 0x3e2   :  { %v15285_v50 = vmax.f32 %v3788_v40, %v3794_v42 }
 0x3e3   :  { %v2376_v49 = vpop.f32.mrb[8].mxu0  ;;  %v12996_v52 = vpack.i.bf16 %v14862_v0, %v15282_v46  ;;  %v15289_v58 = vmax.f32 %v3789_v37, %v3795_v29 }
 0x3e4   :  { %v2378_v63 = vpop.f32.mrb[9].mxu0  ;;  %v13006_v59 = vpack.i.bf16 %v15285_v50, %v15280_v54  ;;  %v3521_v10 = vadd.f32 %v15242_v6, %v2376_v49 }
 0x3e5   :  { %12997 = vrot.lane.b32.xlu0 %v12996_v52, %s13849_s22  ;;  %v2380_v1 = vpop.f32.mrb[10].mxu0  ;;  %v13001_v9 = vpack.i.bf16 %v14864_v23, %v15289_v58  ;;  %v3522_v15 = vadd.f32 %v15250_v57, %v2378_v63 }
 0x3e6   :  { %13007 = vrot.lane.b32.xlu1 %v13006_v59, %s13849_s22  ;;  %v2382_v47 = vpop.f32.mrb[11].mxu0  ;;  %v3524_v17 = vadd.f32 %v15242_v6, %v2380_v1 }
 0x3e7   :  { %v3525_v32 = vadd.f32 %v15250_v57, %v2382_v47  ;;  %v3798_v16 = vmax.f32 %v3522_v15, 0.0 }
 0x3e8   :  { %10630 = vmatmul.mubr.msk.bf16.gmra.mrb[116].mxu0 %vm279_vm0, %v14311_v60  ;;  %v3797_v60 = vmax.f32 %v3521_v10, 0.0  ;;  %v3800_v25 = vmax.f32 %v3524_v17, 0.0 }
 0x3e9   :  { %13002 = vrot.lane.b32.xlu0 %v13001_v9, %s13849_s22  ;;  %2654 = vmatprep.mubr.bf16.mxu0 %v18635_v45  ;;  %v3801_v37 = vmax.f32 %v3525_v32, 0.0 }
 0x3eb   :  { %v2386_v51 = vpop.f32.mrb[12].mxu0 }
 0x3ec   :  { %v3527_v24 = vadd.f32 %v15242_v6, %v2386_v51  ;;  %v2388_v26 = vpop.f32.mrb[13].mxu0  ;;  %v18674_v51 = vld [vmem:[#allocation8_spill] sm:$0xff] }
 0x3ed   :  { %v3528_v55 = vadd.f32 %v15250_v57, %v2388_v26  ;;  %v2390_v19 = vpop.f32.mrb[14].mxu0 }
 0x3ee   :  { %v3803_v34 = vmax.f32 %v3527_v24, 0.0  ;;  %v3530_v43 = vadd.f32 %v15242_v6, %v2390_v19  ;;  %v2392_v2 = vpop.f32.mrb[15].mxu0 }
 0x3ef   :  { %v3804_v41 = vmax.f32 %v3528_v55, 0.0  ;;  %v3531_v35 = vadd.f32 %v15250_v57, %v2392_v2 }
 0x3f0   :  { %v3806_v40 = vmax.f32 %v3530_v43, 0.0  ;;  %10631 = vmatmul.mubr.msk.bf16.gmra.mrb[120].mxu0 %vm279_vm0, %v14332_v4  ;;  %v15311_v42 = vmax.f32 %v3797_v60, %v3803_v34 }
 0x3f1   :  { %v3807_v29 = vmax.f32 %v3531_v35, 0.0  ;;  %v15313_v49 = vmax.f32 %v3798_v16, %v3804_v41  ;;  %2664 = vmatprep.mubr.bf16.mxu0 %v18635_v45 }
 0x3f2   :  { %v15316_v52 = vmax.f32 %v3800_v25, %v3806_v40 }
 0x3f3   :  { %v2396_v63 = vpop.f32.mrb[16].mxu0  ;;  %v13011_v59 = vpack.i.bf16 %v14873_v21, %v15313_v49  ;;  %v15320_v1 = vmax.f32 %v3801_v37, %v3807_v29 }
 0x3f4   :  { %v2398_v47 = vpop.f32.mrb[17].mxu0  ;;  %v13021_v15 = vpack.i.bf16 %v15316_v52, %v15311_v42  ;;  %v3533_v17 = vadd.f32 %v15242_v6, %v2396_v63 }
 0x3f5   :  { %13012 = vrot.lane.b32.xlu1 %v13011_v59, %s13849_s22  ;;  %v2400_v4 = vpop.f32.mrb[18].mxu0  ;;  %v13016_v9 = vpack.i.bf16 %v14875_v13, %v15320_v1  ;;  %v3534_v24 = vadd.f32 %v15250_v57, %v2398_v47  ;;  %v18675_v59 = vld [vmem:[#allocation9_spill] sm:$0xff] }
 0x3f6   :  { %v2402_v10 = vpop.f32.mrb[19].mxu0  ;;  %v3536_v32 = vadd.f32 %v15242_v6, %v2400_v4  ;;  %v3809_v2 = vmax.f32 %v3533_v17, 0.0 }
 0x3f7   :  { %13017 = vrot.lane.b32.xlu0 %v13016_v9, %s13849_s22  ;;  %v3537_v60 = vadd.f32 %v15250_v57, %v2402_v10  ;;  %v3810_v25 = vmax.f32 %v3534_v24, 0.0 }
 0x3f8   :  { %10632 = vmatmul.mubr.msk.bf16.gmra.mrb[124].mxu0 %vm279_vm0, %v18674_v51  ;;  %v3812_v29 = vmax.f32 %v3536_v32, 0.0 }
 0x3f9   :  { %13022 = vrot.lane.b32.xlu1 %v13021_v15, %s13849_s22  ;;  %2674 = vmatprep.mubr.bf16.mxu0 %v18635_v45  ;;  %v3813_v4 = vmax.f32 %v3537_v60, 0.0 }
 0x3fb   :  { %v2406_v26 = vpop.f32.mrb[20].mxu0 }
 0x3fc   :  { %v3539_v55 = vadd.f32 %v15242_v6, %v2406_v26  ;;  %v2408_v19 = vpop.f32.mrb[21].mxu0 }
 0x3fd   :  { %v3540_v34 = vadd.f32 %v15250_v57, %v2408_v19  ;;  %v2410_v43 = vpop.f32.mrb[22].mxu0 }
 0x3fe   :  { %v3815_v16 = vmax.f32 %v3539_v55, 0.0  ;;  %v3542_v41 = vadd.f32 %v15242_v6, %v2410_v43  ;;  %v2412_v35 = vpop.f32.mrb[23].mxu0  ;;  %v18676_v55 = vld [vmem:[#allocation19_spill] sm:$0xff]  ;;  %v18677_v43 = vld [vmem:[#allocation10_spill] sm:$0xff] }
 0x3ff   :  { %v3816_v40 = vmax.f32 %v3540_v34, 0.0  ;;  %v3543_v37 = vadd.f32 %v15250_v57, %v2412_v35 }
 0x400   :  { %v3818_v63 = vmax.f32 %v3542_v41, 0.0  ;;  %10633 = vmatmul.mubr.msk.bf16.gmra.mrb[128].mxu0 %vm279_vm0, %v18675_v59  ;;  %v15342_v47 = vmax.f32 %v3809_v2, %v3815_v16 }
 0x401   :  { %v3819_v9 = vmax.f32 %v3543_v37, 0.0  ;;  %v15344_v10 = vmax.f32 %v3810_v25, %v3816_v40  ;;  %2684 = vmatprep.mubr.bf16.mxu0 %v18635_v45 }
 0x402   :  { %v15347_v15 = vmax.f32 %v3812_v29, %v3818_v63 }
 0x403   :  { %v2416_v51 = vpop.f32.mrb[24].mxu0  ;;  %v13026_v17 = vpack.i.bf16 %v14884_v11, %v15344_v10  ;;  %v15351_v24 = vmax.f32 %v3813_v4, %v3819_v9 }
 0x404   :  { %v2418_v26 = vpop.f32.mrb[25].mxu0  ;;  %v13036_v34 = vpack.i.bf16 %v15347_v15, %v15342_v47  ;;  %v3545_v2 = vadd.f32 %v15242_v6, %v2416_v51 }
 0x405   :  { %13027 = vrot.lane.b32.xlu0 %v13026_v17, %s13849_s22  ;;  %v2420_v32 = vpop.f32.mrb[26].mxu0  ;;  %v13031_v19 = vpack.i.bf16 %v18676_v55, %v15351_v24  ;;  %v3546_v16 = vadd.f32 %v15250_v57, %v2418_v26 }
 0x406   :  { %v2422_v60 = vpop.f32.mrb[27].mxu0  ;;  %v3548_v35 = vadd.f32 %v15242_v6, %v2420_v32  ;;  %v3821_v59 = vmax.f32 %v3545_v2, 0.0  ;;  %v18678_v32 = vld [vmem:[#allocation11_spill] sm:$0xff] }
 0x407   :  { %13032 = vrot.lane.b32.xlu1 %v13031_v19, %s13849_s22  ;;  %v3549_v37 = vadd.f32 %v15250_v57, %v2422_v60  ;;  %v3822_v19 = vmax.f32 %v3546_v16, 0.0 }
 0x408   :  { %10634 = vmatmul.mubr.msk.bf16.gmra.mrb[132].mxu0 %vm279_vm0, %v18677_v43 }
 0x409   :  { %13037 = vrot.lane.b32.xlu0 %v13036_v34, %s13849_s22  ;;  %2694 = vmatprep.mubr.bf16.mxu0 %v18635_v45  ;;  %v3824_v34 = vmax.f32 %v3548_v35, 0.0  ;;  %v3825_v60 = vmax.f32 %v3549_v37, 0.0 }
 0x40b   :  { %v2426_v41 = vpop.f32.mrb[28].mxu0 }
 0x40c   :  { %v3551_v25 = vadd.f32 %v15242_v6, %v2426_v41  ;;  %v2428_v40 = vpop.f32.mrb[29].mxu0 }
 0x40d   :  { %v3552_v29 = vadd.f32 %v15250_v57, %v2428_v40  ;;  %v2430_v63 = vpop.f32.mrb[30].mxu0 }
 0x40e   :  { %v3827_v4 = vmax.f32 %v3551_v25, 0.0  ;;  %v3554_v9 = vadd.f32 %v15242_v6, %v2430_v63  ;;  %v2432_v17 = vpop.f32.mrb[31].mxu0 }
 0x40f   :  { %v3828_v51 = vmax.f32 %v3552_v29, 0.0  ;;  %v3555_v26 = vadd.f32 %v15250_v57, %v2432_v17  ;;  %v18680_v17 = vld [vmem:[#allocation12_spill] sm:$0xff] }
 0x410   :  { %v3830_v43 = vmax.f32 %v3554_v9, 0.0  ;;  %10635 = vmatmul.mubr.msk.bf16.gmra.mrb[136].mxu0 %vm279_vm0, %v18678_v32  ;;  %v15373_v41 = vmax.f32 %v3821_v59, %v3827_v4  ;;  %v18679_v59 = vld [vmem:[#allocation20_spill] sm:$0xff] }
 0x411   :  { %v3831_v30 = vmax.f32 %v3555_v26, 0.0  ;;  %v15375_v40 = vmax.f32 %v3822_v19, %v3828_v51  ;;  %2704 = vmatprep.mubr.bf16.mxu0 %v18635_v45 }
 0x412   :  { %v15378_v2 = vmax.f32 %v3824_v34, %v3830_v43 }
 0x413   :  { %v2436_v25 = vpop.f32.mrb[32].mxu0  ;;  %v13041_v16 = vpack.i.bf16 %v14895_v14, %v15375_v40  ;;  %v15382_v29 = vmax.f32 %v3825_v60, %v3831_v30 }
 0x414   :  { %v2438_v35 = vpop.f32.mrb[33].mxu0  ;;  %v13051_v9 = vpack.i.bf16 %v15378_v2, %v15373_v41  ;;  %v3557_v30 = vadd.f32 %v15242_v6, %v2436_v25 }
 0x415   :  { %13042 = vrot.lane.b32.xlu1 %v13041_v16, %s13849_s22  ;;  %v2440_v63 = vpop.f32.mrb[34].mxu0  ;;  %v13046_v37 = vpack.i.bf16 %v18679_v59, %v15382_v29  ;;  %v3558_v19 = vadd.f32 %v15250_v57, %v2438_v35 }
 0x416   :  { %v2442_v4 = vpop.f32.mrb[35].mxu0  ;;  %v3560_v26 = vadd.f32 %v15242_v6, %v2440_v63 }
 0x417   :  { %13047 = vrot.lane.b32.xlu0 %v13046_v37, %s13849_s22  ;;  %v3561_v32 = vadd.f32 %v15250_v57, %v2442_v4  ;;  %v3833_v37 = vmax.f32 %v3557_v30, 0.0  ;;  %v3834_v31 = vmax.f32 %v3558_v19, 0.0  ;;  %v18681_v19 = vld [vmem:[#allocation21_spill] sm:$0xff] }
 0x418   :  { %10636 = vmatmul.mubr.msk.bf16.gmra.mrb[140].mxu0 %vm279_vm0, %v18680_v17  ;;  %v3836_v5 = vmax.f32 %v3560_v26, 0.0 }
 0x419   :  { %13052 = vrot.lane.b32.xlu1 %v13051_v9, %s13849_s22  ;;  %2714 = vmatprep.mubr.bf16.mxu0 %v18635_v45  ;;  %v3837_v4 = vmax.f32 %v3561_v32, 0.0 }
 0x41b   :  { %v2446_v51 = vpop.f32.mrb[36].mxu0 }
 0x41c   :  { %v3563_v34 = vadd.f32 %v15242_v6, %v2446_v51  ;;  %v2448_v43 = vpop.f32.mrb[37].mxu0 }
 0x41d   :  { %v3564_v60 = vadd.f32 %v15250_v57, %v2448_v43  ;;  %v2450_v16 = vpop.f32.mrb[38].mxu0 }
 0x41e   :  { %v3839_v17 = vmax.f32 %v3563_v34, 0.0  ;;  %v3566_v9 = vadd.f32 %v15242_v6, %v2450_v16  ;;  %v2452_v22 = vpop.f32.mrb[39].mxu0  ;;  %v18682_v16 = vld [vmem:[#allocation22_spill] sm:$0xff] }
 0x41f   :  { %v3840_v25 = vmax.f32 %v3564_v60, 0.0  ;;  %v3567_v35 = vadd.f32 %v15250_v57, %v2452_v22 }
 0x420   :  { %v3842_v27 = vmax.f32 %v3566_v9, 0.0  ;;  %10637 = vmatmul.mubr.msk.bf16.gmra.mrb[144].mxu0 %vm279_vm0, %v14401_v38  ;;  %v15404_v63 = vmax.f32 %v3833_v37, %v3839_v17 }
 0x421   :  { %v3843_v51 = vmax.f32 %v3567_v35, 0.0  ;;  %v15406_v43 = vmax.f32 %v3834_v31, %v3840_v25  ;;  %2724 = vmatprep.mubr.bf16.mxu0 %v18635_v45 }
 0x422   :  { %v15409_v30 = vmax.f32 %v3836_v5, %v3842_v27 }
 0x423   :  { %v2456_v34 = vpop.f32.mrb[40].mxu0  ;;  %v13056_v60 = vpack.i.bf16 %v18681_v19, %v15406_v43  ;;  %v15413_v22 = vmax.f32 %v3837_v4, %v3843_v51 }
 0x424   :  { %v2458_v26 = vpop.f32.mrb[41].mxu0  ;;  %v13066_v31 = vpack.i.bf16 %v15409_v30, %v15404_v63  ;;  %v3569_v27 = vadd.f32 %v15242_v6, %v2456_v34 }
 0x425   :  { %13057 = vrot.lane.b32.xlu0 %v13056_v60, %s13849_s22  ;;  %v2460_v38 = vpop.f32.mrb[42].mxu0  ;;  %v13061_v32 = vpack.i.bf16 %v18682_v16, %v15413_v22  ;;  %v3570_v5 = vadd.f32 %v15250_v57, %v2458_v26 }
 0x426   :  { %v2462_v37 = vpop.f32.mrb[43].mxu0  ;;  %v3572_v9 = vadd.f32 %v15242_v6, %v2460_v38  ;;  %v18683_v38 = vld [vmem:[#allocation13_spill] sm:$0xff] }
 0x427   :  { %13062 = vrot.lane.b32.xlu1 %v13061_v32, %s13849_s22  ;;  %v3573_v4 = vadd.f32 %v15250_v57, %v2462_v37  ;;  %v3846_v56 = vmax.f32 %v3570_v5, 0.0  ;;  %v18685_v5 = vld [vmem:[#allocation23_spill] sm:$0xff] }
 0x428   :  { %10638 = vmatmul.mubr.msk.bf16.gmra.mrb[148].mxu0 %vm279_vm0, %v14403_v39  ;;  %v3845_v39 = vmax.f32 %v3569_v27, 0.0  ;;  %v3848_v12 = vmax.f32 %v3572_v9, 0.0 }
 0x429   :  { %13067 = vrot.lane.b32.xlu0 %v13066_v31, %s13849_s22  ;;  %2734 = vmatprep.mubr.bf16.mxu0 %v18635_v45  ;;  %v3849_v37 = vmax.f32 %v3573_v4, 0.0 }
 0x42b   :  { %v2466_v17 = vpop.f32.mrb[44].mxu0 }
 0x42c   :  { %v3575_v25 = vadd.f32 %v15242_v6, %v2466_v17  ;;  %v2468_v35 = vpop.f32.mrb[45].mxu0 }
 0x42d   :  { %v3576_v51 = vadd.f32 %v15250_v57, %v2468_v35  ;;  %v2470_v60 = vpop.f32.mrb[46].mxu0 }
 0x42e   :  { %v3851_v32 = vmax.f32 %v3575_v25, 0.0  ;;  %v3578_v31 = vadd.f32 %v15242_v6, %v2470_v60  ;;  %v2472_v7 = vpop.f32.mrb[47].mxu0 }
 0x42f   :  { %v3852_v34 = vmax.f32 %v3576_v51, 0.0  ;;  %v3579_v26 = vadd.f32 %v15250_v57, %v2472_v7 }
 0x430   :  { %v3854_v8 = vmax.f32 %v3578_v31, 0.0  ;;  %10639 = vmatmul.mubr.msk.bf16.gmra.mrb[152].mxu0 %vm279_vm0, %v18683_v38  ;;  %v15435_v17 = vmax.f32 %v3845_v39, %v3851_v32  ;;  %v18686_v39 = vld [vmem:[#allocation24_spill] sm:$0xff] }
 0x431   :  { %v3855_v33 = vmax.f32 %v3579_v26, 0.0  ;;  %v15437_v35 = vmax.f32 %v3846_v56, %v3852_v34  ;;  %2744 = vmatprep.mubr.bf16.mxu0 %v18635_v45 }
 0x432   :  { %v15440_v27 = vmax.f32 %v3848_v12, %v3854_v8  ;;  %v18687_v12 = vld [vmem:[#allocation14_spill] sm:$0xff] }
 0x433   :  { %v2476_v25 = vpop.f32.mrb[48].mxu0  ;;  %v13071_v51 = vpack.i.bf16 %v18685_v5, %v15437_v35  ;;  %v15444_v7 = vmax.f32 %v3849_v37, %v3855_v33 }
 0x434   :  { %18684 = vst [vmem:[#allocation8_spill] sm:$0xff] %v15440_v27  ;;  %v2478_v9 = vpop.f32.mrb[49].mxu0  ;;  %v13081_v8 = vpack.i.bf16 %v15440_v27, %v15435_v17  ;;  %v3581_v33 = vadd.f32 %v15242_v6, %v2476_v25 }
 0x435   :  { %13072 = vrot.lane.b32.xlu1 %v13071_v51, %s13849_s22  ;;  %v2480_v60 = vpop.f32.mrb[50].mxu0  ;;  %v13076_v4 = vpack.i.bf16 %v18686_v39, %v15444_v7  ;;  %v3582_v56 = vadd.f32 %v15250_v57, %v2478_v9 }
 0x436   :  { %v2482_v32 = vpop.f32.mrb[51].mxu0  ;;  %v3584_v34 = vadd.f32 %v15242_v6, %v2480_v60  ;;  %v18688_v60 = vld [vmem:[#allocation15_spill] sm:$0xff] }
 0x437   :  { %13077 = vrot.lane.b32.xlu0 %v13076_v4, %s13849_s22  ;;  %v3585_v37 = vadd.f32 %v15250_v57, %v2482_v32  ;;  %v3858_v53 = vmax.f32 %v3582_v56, 0.0  ;;  %v18692_v56 = vld [vmem:[#allocation25_spill] sm:$0xff] }
 0x438   :  { %10640 = vmatmul.mubr.msk.bf16.gmra.mrb[156].mxu0 %vm279_vm0, %v18687_v12  ;;  %v3857_v12 = vmax.f32 %v3581_v33, 0.0  ;;  %v3860_v44 = vmax.f32 %v3584_v34, 0.0 }
 0x439   :  { %13082 = vrot.lane.b32.xlu1 %v13081_v8, %s13849_s22  ;;  %2754 = vmatprep.mubr.bf16.mxu0 %v18635_v45  ;;  %v3861_v32 = vmax.f32 %v3585_v37, 0.0 }
 0x43b   :  { %v2486_v31 = vpop.f32.mrb[52].mxu0 }
 0x43c   :  { %v3587_v26 = vadd.f32 %v15242_v6, %v2486_v31  ;;  %v2488_v38 = vpop.f32.mrb[53].mxu0 }
 0x43d   :  { %v3588_v51 = vadd.f32 %v15250_v57, %v2488_v38  ;;  %v2490_v4 = vpop.f32.mrb[54].mxu0 }
 0x43e   :  { %v3863_v28 = vmax.f32 %v3587_v26, 0.0  ;;  %v3590_v8 = vadd.f32 %v15242_v6, %v2490_v4  ;;  %v2492_v48 = vpop.f32.mrb[55].mxu0 }
 0x43f   :  { %v3864_v25 = vmax.f32 %v3588_v51, 0.0  ;;  %v3591_v9 = vadd.f32 %v15250_v57, %v2492_v48 }
 0x440   :  { %v3866_v36 = vmax.f32 %v3590_v8, 0.0  ;;  %10641 = vmatmul.mubr.msk.bf16.gmra.mrb[160].mxu0 %vm279_vm0, %v18688_v60  ;;  %v15466_v31 = vmax.f32 %v3857_v12, %v3863_v28  ;;  %v18694_v28 = vld [vmem:[#allocation26_spill] sm:$0xff] }
 0x441   :  { %v3867_v27 = vmax.f32 %v3591_v9, 0.0  ;;  %v15468_v38 = vmax.f32 %v3858_v53, %v3864_v25  ;;  %2764 = vmatprep.mubr.bf16.mxu0 %v18635_v45 }
 0x442   :  { %18689 = vst [vmem:[#allocation9_spill] sm:$0xff] %v15466_v31  ;;  %v15471_v33 = vmax.f32 %v3860_v44, %v3866_v36 }
 0x443   :  { %18690 = vst [vmem:[#allocation19_spill] sm:$0xff] %v15468_v38  ;;  %v2496_v26 = vpop.f32.mrb[56].mxu0  ;;  %v13086_v51 = vpack.i.bf16 %v18692_v56, %v15468_v38  ;;  %v15475_v48 = vmax.f32 %v3861_v32, %v3867_v27 }
 0x444   :  { %18691 = vst [vmem:[#allocation10_spill] sm:$0xff] %v15471_v33  ;;  %v2498_v34 = vpop.f32.mrb[57].mxu0  ;;  %v13096_v36 = vpack.i.bf16 %v15471_v33, %v15466_v31  ;;  %v3593_v44 = vadd.f32 %v15242_v6, %v2496_v26 }
 0x445   :  { %18693 = vst [vmem:[#allocation11_spill] sm:$0xff] %v15475_v48  ;;  %13087 = vrot.lane.b32.xlu0 %v13086_v51, %s13849_s22  ;;  %v2500_v4 = vpop.f32.mrb[58].mxu0  ;;  %v13091_v37 = vpack.i.bf16 %v18694_v28, %v15475_v48  ;;  %v3594_v53 = vadd.f32 %v15250_v57, %v2498_v34 }
 0x446   :  { %v2502_v12 = vpop.f32.mrb[59].mxu0  ;;  %v3596_v8 = vadd.f32 %v15242_v6, %v2500_v4 }
 0x447   :  { %13092 = vrot.lane.b32.xlu1 %v13091_v37, %s13849_s22  ;;  %v3597_v60 = vadd.f32 %v15250_v57, %v2502_v12  ;;  %v3870_v31 = vmax.f32 %v3594_v53, 0.0  ;;  %v18698_v53 = vld [vmem:[#allocation27_spill] sm:$0xff] }
 0x448   :  { %10642 = vmatmul.mubr.msk.bf16.gmra.mrb[164].mxu0 %vm279_vm0, %v14449_v3  ;;  %v3869_v3 = vmax.f32 %v3593_v44, 0.0  ;;  %v3872_v48 = vmax.f32 %v3596_v8, 0.0 }
 0x449   :  { %13097 = vrot.lane.b32.xlu0 %v13096_v36, %s13849_s22  ;;  %2774 = vmatprep.mubr.bf16.mxu0 %v18635_v45  ;;  %v3873_v12 = vmax.f32 %v3597_v60, 0.0 }
 0x44b   :  { %v2506_v27 = vpop.f32.mrb[60].mxu0 }
 0x44c   :  { %v3599_v25 = vadd.f32 %v15242_v6, %v2506_v27  ;;  %v2508_v9 = vpop.f32.mrb[61].mxu0 }
 0x44d   :  { %v3600_v32 = vadd.f32 %v15250_v57, %v2508_v9  ;;  %v2510_v51 = vpop.f32.mrb[62].mxu0 }
 0x44e   :  { %v3875_v37 = vmax.f32 %v3599_v25, 0.0  ;;  %v3602_v36 = vadd.f32 %v15242_v6, %v2510_v51  ;;  %v2512_v33 = vpop.f32.mrb[63].mxu0  ;;  %v18700_v51 = vld [vmem:[#allocation28_spill] sm:$0xff] }
 0x44f   :  { %v3876_v26 = vmax.f32 %v3600_v32, 0.0  ;;  %v3603_v34 = vadd.f32 %v15250_v57, %v2512_v33 }
 0x450   :  { %v3878_v38 = vmax.f32 %v3602_v36, 0.0  ;;  %10643 = vmatmul.mubr.msk.bf16.gmra.mrb[168].mxu0 %vm279_vm0, %v14470_v18  ;;  %v15497_v4 = vmax.f32 %v3869_v3, %v3875_v37 }
 0x451   :  { %v3879_v27 = vmax.f32 %v3603_v34, 0.0  ;;  %v15499_v9 = vmax.f32 %v3870_v31, %v3876_v26  ;;  %2784 = vmatprep.mubr.bf16.mxu0 %v18635_v45 }
 0x452   :  { %18695 = vst [vmem:[#allocation20_spill] sm:$0xff] %v15497_v4  ;;  %v15502_v44 = vmax.f32 %v3872_v48, %v3878_v38 }
 0x453   :  { %18696 = vst [vmem:[#allocation12_spill] sm:$0xff] %v15499_v9  ;;  %v2516_v25 = vpop.f32.mrb[64].mxu0  ;;  %v13101_v32 = vpack.i.bf16 %v18698_v53, %v15499_v9  ;;  %v15506_v33 = vmax.f32 %v3873_v12, %v3879_v27 }
 0x454   :  { %18697 = vst [vmem:[#allocation21_spill] sm:$0xff] %v15502_v44  ;;  %v2518_v8 = vpop.f32.mrb[65].mxu0  ;;  %v3605_v31 = vadd.f32 %v15242_v6, %v2516_v25  ;;  %v13111_v36 = vpack.i.bf16 %v15502_v44, %v15497_v4 }
 0x455   :  { %18699 = vst [vmem:[#allocation22_spill] sm:$0xff] %v15506_v33  ;;  %13102 = vrot.lane.b32.xlu1 %v13101_v32, %s13849_s22  ;;  %v2520_v18 = vpop.f32.mrb[66].mxu0  ;;  %v13106_v60 = vpack.i.bf16 %v18700_v51, %v15506_v33  ;;  %v3606_v37 = vadd.f32 %v15250_v57, %v2518_v8 }
 0x456   :  { %v2522_v3 = vpop.f32.mrb[67].mxu0  ;;  %v3608_v38 = vadd.f32 %v15242_v6, %v2520_v18  ;;  %v3881_v25 = vmax.f32 %v3605_v31, 0.0 }
 0x457   :  { %v12998_v48 = vpop.permute.xlu0 %12997  ;;  %13107 = vrot.lane.b32.xlu0 %v13106_v60, %s13849_s22  ;;  %v3882_v8 = vmax.f32 %v3606_v37, 0.0  ;;  %v3609_v60 = vadd.f32 %v15250_v57, %v2522_v3 }
 0x458   :  { %v13000_v26 = vunpack.i.h.bf16 %v12998_v48  ;;  %v12999_v34 = vunpack.i.l.bf16 %v12998_v48  ;;  %10644 = vmatmul.mubr.msk.bf16.gmra.mrb[172].mxu0 %vm279_vm0, %v14472_v20  ;;  %v13008_v12 = vpop.permute.xlu1 %13007  ;;  %v3884_v18 = vmax.f32 %v3608_v38, 0.0 }
 0x459   :  { %v13009_v27 = vunpack.i.l.bf16 %v13008_v12  ;;  %13112 = vrot.lane.b32.xlu1 %v13111_v36, %s13849_s22  ;;  %2794 = vmatprep.mubr.bf16.mxu0 %v18635_v45  ;;  %v13010_v33 = vunpack.i.h.bf16 %v13008_v12 }
 0x45a   :  { %v4615_v32 = vsel %vm4613_vm1, %v12999_v34, %v13000_v26  ;;  %v15526_v36 = vmax.f32 %v14862_v0, %v13000_v26 }
 0x45b   :  { %v4614_v44 = vsel %vm4613_vm1, %v13009_v27, %v12999_v34  ;;  %v13003_v4 = vpop.permute.xlu0 %13002  ;;  %v2526_v48 = vpop.f32.mrb[68].mxu0  ;;  %v4845_v3 = vmax.f32 %v15282_v46, %v4615_v32 }
 0x45c   :  { %v13005_v9 = vunpack.i.h.bf16 %v13003_v4  ;;  %v13004_v20 = vunpack.i.l.bf16 %v13003_v4  ;;  %v3611_v51 = vadd.f32 %v15242_v6, %v2526_v48  ;;  %v2528_v53 = vpop.f32.mrb[69].mxu0  ;;  %18701 = vst [vmem:[#allocation13_spill] sm:$0xff] %v15526_v36  ;;  %v4844_v31 = vmax.f32 %v15280_v54, %v4614_v44 }
 0x45d   :  { %v3612_v37 = vadd.f32 %v15250_v57, %v2528_v53  ;;  %v2530_v38 = vpop.f32.mrb[70].mxu0  ;;  %v18703_v53 = vld [vmem:[#allocation16_spill] sm:$0xff] }
 0x45e   :  { %v15532_v34 = vmax.f32 %v14864_v23, %v13005_v9  ;;  %v4616_v12 = vsel %vm4613_vm1, %v13010_v33, %v13004_v20  ;;  %v3887_v27 = vmax.f32 %v3611_v51, 0.0  ;;  %v3614_v4 = vadd.f32 %v15242_v6, %v2530_v38  ;;  %v2532_v48 = vpop.f32.mrb[71].mxu0 }
 0x45f   :  { %v4847_v28 = vmax.f32 %v15285_v50, %v4616_v12  ;;  %v3888_v0 = vmax.f32 %v3612_v37, 0.0  ;;  %v3615_v26 = vadd.f32 %v15250_v57, %v2532_v48  ;;  %v4617_v54 = vsel %vm4613_vm1, %v13004_v20, %v13005_v9  ;;  %v18706_v12 = vld [vmem:[#allocation29_spill] sm:$0xff] }
 0x460   :  { %18702 = vst [vmem:[#allocation23_spill] sm:$0xff] %v15532_v34  ;;  %v3890_v46 = vmax.f32 %v3614_v4, 0.0  ;;  %10645 = vmatmul.mubr.msk.bf16.gmra.mrb[176].mxu0 %vm279_vm0, %v18703_v53  ;;  %v4848_v23 = vmax.f32 %v15289_v58, %v4617_v54  ;;  %v15544_v33 = vmax.f32 %v3881_v25, %v3887_v27  ;;  %v3885_v51 = vmax.f32 %v3609_v60, 0.0  ;;  %v18707_v25 = vld [vmem:[#allocation30_spill] sm:$0xff] }
 0x461   :  { %v5016_v32 = vpack.c.bf16 %v4847_v28, %v4844_v31  ;;  %v3891_v38 = vmax.f32 %v3615_v26, 0.0  ;;  %v15546_v50 = vmax.f32 %v3882_v8, %v3888_v0  ;;  %2804 = vmatprep.mubr.bf16.mxu0 %v18635_v45 }
 0x462   :  { %18704 = vst [vmem:[#allocation24_spill] sm:$0xff] %v15544_v33  ;;  %v5017_v37 = vpack.c.bf16 %v4848_v23, %v4845_v3  ;;  %v15549_v9 = vmax.f32 %v3884_v18, %v3890_v46  ;;  %v18708_v46 = vld [vmem:[#allocation17_spill] sm:$0xff] }
 0x463   :  { %v2536_v20 = vpop.f32.mrb[72].mxu0  ;;  %v13116_v4 = vpack.i.bf16 %v18706_v12, %v15546_v50  ;;  %v15553_v48 = vmax.f32 %v3885_v51, %v3891_v38 }
 0x464   :  { %18705 = vst [vmem:[#allocation14_spill] sm:$0xff] %v15549_v9  ;;  %5362 = vmatprep.mubr.bf16.mxu1 %v5017_v37  ;;  %v2538_v58 = vpop.f32.mrb[73].mxu0  ;;  %v3617_v31 = vadd.f32 %v15242_v6, %v2536_v20  ;;  %v13126_v0 = vpack.i.bf16 %v15549_v9, %v15544_v33 }
 0x465   :  { %5363 = vmatmul.mubr.bf16.vlgmr.msra.gmra.mrb[92].mxu1 %v5016_v32  ;;  %13117 = vrot.lane.b32.xlu0 %v13116_v4, %s13849_s22  ;;  %v2540_v28 = vpop.f32.mrb[74].mxu0  ;;  %v13121_v8 = vpack.i.bf16 %v18707_v25, %v15553_v48  ;;  %v3618_v18 = vadd.f32 %v15250_v57, %v2538_v58 }
 0x466   :  { %v2542_v60 = vpop.f32.mrb[75].mxu0  ;;  %v3620_v3 = vadd.f32 %v15242_v6, %v2540_v28  ;;  %v3893_v38 = vmax.f32 %v3617_v31, 0.0 }
 0x467   :  { %v13013_v27 = vpop.permute.xlu1 %13012  ;;  %13122 = vrot.lane.b32.xlu1 %v13121_v8, %s13849_s22  ;;  %v3894_v37 = vmax.f32 %v3618_v18, 0.0  ;;  %v3621_v4 = vadd.f32 %v15250_v57, %v2542_v60 }
 0x468   :  { %v13015_v26 = vunpack.i.h.bf16 %v13013_v27  ;;  %v13014_v54 = vunpack.i.l.bf16 %v13013_v27  ;;  %10646 = vmatmul.mubr.msk.bf16.gmra.mrb[180].mxu0 %vm279_vm0, %v18708_v46  ;;  %v3896_v20 = vmax.f32 %v3620_v3, 0.0 }
 0x469   :  { %v13018_v53 = vpop.permute.xlu0 %13017  ;;  %13127 = vrot.lane.b32.xlu0 %v13126_v0, %s13849_s22 }
 0x46a   :  { %v13020_v23 = vunpack.i.h.bf16 %v13018_v53  ;;  %v13019_v51 = vunpack.i.l.bf16 %v13018_v53  ;;  %v4619_v32 = vsel %vm4613_vm1, %v13014_v54, %v13015_v26  ;;  %v15570_v8 = vmax.f32 %v14873_v21, %v13015_v26 }
 0x46b   :  { %v13023_v58 = vpop.permute.xlu1 %13022  ;;  %v2546_v28 = vpop.f32.mrb[76].mxu0  ;;  %v4851_v60 = vmax.f32 %v15313_v49, %v4619_v32  ;;  %v3897_v32 = vmax.f32 %v3621_v4, 0.0 }
 0x46c   :  { %18709 = vst [vmem:[#allocation15_spill] sm:$0xff] %v15570_v8  ;;  %v13025_v27 = vunpack.i.h.bf16 %v13023_v58  ;;  %v13024_v44 = vunpack.i.l.bf16 %v13023_v58  ;;  %v3623_v46 = vadd.f32 %v15242_v6, %v2546_v28  ;;  %v2548_v36 = vpop.f32.mrb[77].mxu0  ;;  %v15574_v0 = vmax.f32 %v14875_v13, %v13020_v23 }
 0x46d   :  { %v3624_v53 = vadd.f32 %v15250_v57, %v2548_v36  ;;  %v2550_v31 = vpop.f32.mrb[78].mxu0  ;;  %v4621_v18 = vsel %vm4613_vm1, %v13019_v51, %v13020_v23 }
 0x46e   :  { %18710 = vst [vmem:[#allocation25_spill] sm:$0xff] %v15574_v0  ;;  %v3899_v3 = vmax.f32 %v3623_v46, 0.0  ;;  %v3626_v34 = vadd.f32 %v15242_v6, %v2550_v31  ;;  %v2552_v21 = vpop.f32.mrb[79].mxu0  ;;  %v4854_v26 = vmax.f32 %v15320_v1, %v4621_v18  ;;  %v4618_v58 = vsel %vm4613_vm1, %v13024_v44, %v13014_v54 }
 0x46f   :  { %v3900_v28 = vmax.f32 %v3624_v53, 0.0  ;;  %v3627_v45 = vadd.f32 %v15250_v57, %v2552_v21  ;;  %v4620_v13 = vsel %vm4613_vm1, %v13025_v27, %v13019_v51  ;;  %v4850_v36 = vmax.f32 %v15311_v42, %v4618_v58  ;;  %v18711_v42 = vld [vmem:[#allocation31_spill] sm:$0xff] }
 0x470   :  { %v3902_v9 = vmax.f32 %v3626_v34, 0.0  ;;  %v5020_v33 = vpack.c.bf16 %v4854_v26, %v4851_v60  ;;  %v4853_v23 = vmax.f32 %v15316_v52, %v4620_v13  ;;  %v15586_v49 = vmax.f32 %v3893_v38, %v3899_v3  ;;  %v18712_v38 = vld [vmem:[#allocation32_spill] sm:$0xff] }
 0x471   :  { %v3903_v46 = vmax.f32 %v3627_v45, 0.0  ;;  %v15588_v31 = vmax.f32 %v3894_v37, %v3900_v28 }
 0x472   :  { %5372 = vmatprep.mubr.bf16.mxu1 %v5020_v33  ;;  %v5019_v44 = vpack.c.bf16 %v4853_v23, %v4850_v36  ;;  %v15592_v54 = vmax.f32 %v3896_v20, %v3902_v9 }
 0x473   :  { %v2556_v51 = vpop.f32.mrb[80].mxu0  ;;  %v13131_v34 = vpack.i.bf16 %v18711_v42, %v15588_v31  ;;  %v15596_v27 = vmax.f32 %v3897_v32, %v3903_v46 }
 0x474   :  { %5373 = vmatmul.mubr.bf16.gmra.mrb[96].mxu1 %v5019_v44  ;;  %v2558_v52 = vpop.f32.mrb[81].mxu0  ;;  %v3629_v33 = vadd.f32 %v15242_v6, %v2556_v51  ;;  %v13141_v18 = vpack.i.bf16 %v15592_v54, %v15586_v49 }
 0x475   :  { %13132 = vrot.lane.b32.xlu1 %v13131_v34, %s13849_s22  ;;  %v2560_v45 = vpop.f32.mrb[82].mxu0  ;;  %v13136_v37 = vpack.i.bf16 %v18712_v38, %v15596_v27  ;;  %v3630_v9 = vadd.f32 %v15250_v57, %v2558_v52 }
 0x476   :  { %v2562_v4 = vpop.f32.mrb[83].mxu0  ;;  %v3632_v20 = vadd.f32 %v15242_v6, %v2560_v45  ;;  %v3905_v13 = vmax.f32 %v3629_v33, 0.0 }
 0x477   :  { %v13028_v53 = vpop.permute.xlu0 %13027  ;;  %13137 = vrot.lane.b32.xlu0 %v13136_v37, %s13849_s22  ;;  %v3906_v36 = vmax.f32 %v3630_v9, 0.0  ;;  %v3633_v32 = vadd.f32 %v15250_v57, %v2562_v4 }
 0x478   :  { %v13030_v60 = vunpack.i.h.bf16 %v13028_v53  ;;  %v13029_v3 = vunpack.i.l.bf16 %v13028_v53  ;;  %v3908_v23 = vmax.f32 %v3632_v20, 0.0 }
 0x479   :  { %v13033_v21 = vpop.permute.xlu1 %13032  ;;  %13142 = vrot.lane.b32.xlu1 %v13141_v18, %s13849_s22 }
 0x47a   :  { %v13035_v26 = vunpack.i.h.bf16 %v13033_v21  ;;  %v13034_v58 = vunpack.i.l.bf16 %v13033_v21  ;;  %v4623_v28 = vsel %vm4613_vm1, %v13029_v3, %v13030_v60  ;;  %v15611_v51 = vmax.f32 %v14884_v11, %v13030_v60 }
 0x47b   :  { %v13038_v46 = vpop.permute.xlu0 %13037  ;;  %v2566_v44 = vpop.f32.mrb[84].mxu0  ;;  %v4857_v4 = vmax.f32 %v15344_v10, %v4623_v28  ;;  %v3909_v28 = vmax.f32 %v3633_v32, 0.0 }
 0x47c   :  { %18713 = vst [vmem:[#allocation16_spill] sm:$0xff] %v15611_v51  ;;  %v13040_v34 = vunpack.i.h.bf16 %v13038_v46  ;;  %v13039_v52 = vunpack.i.l.bf16 %v13038_v46  ;;  %v3635_v45 = vadd.f32 %v15242_v6, %v2566_v44  ;;  %v2568_v37 = vpop.f32.mrb[85].mxu0  ;;  %v15615_v53 = vmax.f32 %v18676_v55, %v13035_v26 }
 0x47d   :  { %v3636_v18 = vadd.f32 %v15250_v57, %v2568_v37  ;;  %v2570_v33 = vpop.f32.mrb[86].mxu0  ;;  %v4625_v9 = vsel %vm4613_vm1, %v13034_v58, %v13035_v26 }
 0x47e   :  { %18714 = vst [vmem:[#allocation29_spill] sm:$0xff] %v15615_v53  ;;  %v3911_v20 = vmax.f32 %v3635_v45, 0.0  ;;  %v3638_v21 = vadd.f32 %v15242_v6, %v2570_v33  ;;  %v2572_v11 = vpop.f32.mrb[87].mxu0  ;;  %v4860_v60 = vmax.f32 %v15351_v24, %v4625_v9  ;;  %v4622_v46 = vsel %vm4613_vm1, %v13039_v52, %v13029_v3 }
 0x47f   :  { %v3912_v44 = vmax.f32 %v3636_v18, 0.0  ;;  %v3639_v1 = vadd.f32 %v15250_v57, %v2572_v11  ;;  %v4624_v55 = vsel %vm4613_vm1, %v13040_v34, %v13034_v58  ;;  %v4856_v37 = vmax.f32 %v15342_v47, %v4622_v46  ;;  %v18715_v47 = vld [vmem:[#allocation33_spill] sm:$0xff] }
 0x480   :  { %v3914_v8 = vmax.f32 %v3638_v21, 0.0  ;;  %v5023_v0 = vpack.c.bf16 %v4860_v60, %v4857_v4  ;;  %v4859_v26 = vmax.f32 %v15347_v15, %v4624_v55  ;;  %v15627_v10 = vmax.f32 %v3905_v13, %v3911_v20  ;;  %v18716_v13 = vld [vmem:[#allocation34_spill] sm:$0xff] }
 0x481   :  { %v3915_v45 = vmax.f32 %v3639_v1, 0.0  ;;  %v15629_v33 = vmax.f32 %v3906_v36, %v3912_v44 }
 0x482   :  { %5382 = vmatprep.mubr.bf16.mxu1 %v5023_v0  ;;  %v5022_v3 = vpack.c.bf16 %v4859_v26, %v4856_v37  ;;  %v15633_v52 = vmax.f32 %v3908_v23, %v3914_v8 }
 0x483   :  { %v2576_v58 = vpop.f32.mrb[88].mxu0  ;;  %v13146_v34 = vpack.i.bf16 %v18715_v47, %v15629_v33  ;;  %v15637_v18 = vmax.f32 %v3909_v28, %v3915_v45 }
 0x484   :  { %5383 = vmatmul.mubr.bf16.gmra.mrb[100].mxu1 %v5022_v3  ;;  %v2578_v15 = vpop.f32.mrb[89].mxu0  ;;  %v3641_v32 = vadd.f32 %v15242_v6, %v2576_v58  ;;  %v13156_v9 = vpack.i.bf16 %v15633_v52, %v15627_v10 }
 0x485   :  { %13147 = vrot.lane.b32.xlu0 %v13146_v34, %s13849_s22  ;;  %v2580_v1 = vpop.f32.mrb[90].mxu0  ;;  %v13151_v36 = vpack.i.bf16 %v18716_v13, %v15637_v18  ;;  %v3642_v8 = vadd.f32 %v15250_v57, %v2578_v15 }
 0x486   :  { %v2582_v0 = vpop.f32.mrb[91].mxu0  ;;  %v3917_v11 = vmax.f32 %v3641_v32, 0.0  ;;  %v3644_v37 = vadd.f32 %v15242_v6, %v2580_v1 }
 0x487   :  { %v13043_v23 = vpop.permute.xlu1 %13042  ;;  %13152 = vrot.lane.b32.xlu1 %v13151_v36, %s13849_s22  ;;  %v3918_v55 = vmax.f32 %v3642_v8, 0.0  ;;  %v3645_v26 = vadd.f32 %v15250_v57, %v2582_v0 }
 0x488   :  { %v13045_v4 = vunpack.i.h.bf16 %v13043_v23  ;;  %v13044_v20 = vunpack.i.l.bf16 %v13043_v23  ;;  %v3920_v51 = vmax.f32 %v3644_v37, 0.0 }
 0x489   :  { %v13048_v21 = vpop.permute.xlu0 %13047  ;;  %13157 = vrot.lane.b32.xlu0 %v13156_v9, %s13849_s22 }
 0x48a   :  { %v4627_v60 = vsel %vm4613_vm1, %v13044_v20, %v13045_v4  ;;  %v13050_v46 = vunpack.i.h.bf16 %v13048_v21  ;;  %v13049_v44 = vunpack.i.l.bf16 %v13048_v21  ;;  %v15652_v28 = vmax.f32 %v14895_v14, %v13045_v4 }
 0x48b   :  { %v13053_v45 = vpop.permute.xlu1 %13052  ;;  %v2586_v3 = vpop.f32.mrb[92].mxu0  ;;  %v4863_v0 = vmax.f32 %v15375_v40, %v4627_v60  ;;  %v3921_v60 = vmax.f32 %v3645_v26, 0.0  ;;  %v18719_v26 = vld [vmem:[#allocation35_spill] sm:$0xff] }
 0x48c   :  { %18717 = vst [vmem:[#allocation30_spill] sm:$0xff] %v15652_v28  ;;  %v15655_v58 = vmax.f32 %v18679_v59, %v13050_v46  ;;  %v4629_v34 = vsel %vm4613_vm1, %v13049_v44, %v13050_v46  ;;  %v13055_v15 = vunpack.i.h.bf16 %v13053_v45  ;;  %v13054_v36 = vunpack.i.l.bf16 %v13053_v45  ;;  %v2588_v32 = vpop.f32.mrb[93].mxu0 }
 0x48d   :  { %v3647_v23 = vadd.f32 %v15242_v6, %v2586_v3  ;;  %v3648_v8 = vadd.f32 %v15250_v57, %v2588_v32  ;;  %v2590_v1 = vpop.f32.mrb[94].mxu0  ;;  %v4866_v14 = vmax.f32 %v15382_v29, %v4629_v34 }
 0x48e   :  { %18718 = vst [vmem:[#allocation17_spill] sm:$0xff] %v15655_v58  ;;  %v4626_v59 = vsel %vm4613_vm1, %v13054_v36, %v13044_v20  ;;  %v4628_v4 = vsel %vm4613_vm1, %v13055_v15, %v13049_v44  ;;  %v3650_v21 = vadd.f32 %v15242_v6, %v2590_v1  ;;  %v2592_v46 = vpop.f32.mrb[95].mxu0 }
 0x48f   :  { %v3923_v45 = vmax.f32 %v3647_v23, 0.0  ;;  %v3924_v24 = vmax.f32 %v3648_v8, 0.0  ;;  %v3651_v3 = vadd.f32 %v15250_v57, %v2592_v46  ;;  %v5026_v32 = vpack.c.bf16 %v4866_v14, %v4863_v0  ;;  %v13597_v14 = vld [vmem:[%s18443_s3 + $0x100] ss:$8 sps:$4 sm:$0x7f]  }
 0x490   :  { %v3926_v53 = vmax.f32 %v3650_v21, 0.0  ;;  %v4862_v40 = vmax.f32 %v15373_v41, %v4626_v59  ;;  %v4865_v29 = vmax.f32 %v15378_v2, %v4628_v4  ;;  %v5325_v46 = vsel %vm5323_vm2, %v13597_v14, 0 }
 0x491   :  { %v3927_v34 = vmax.f32 %v3651_v3, 0.0  ;;  %5392 = vmatprep.mubr.bf16.mxu1 %v5026_v32  ;;  %v15670_v20 = vmax.f32 %v3918_v55, %v3924_v24  ;;  %v15672_v44 = vmax.f32 %v3917_v11, %v3923_v45 }
 0x492   :  { %v5025_v15 = vpack.c.bf16 %v4865_v29, %v4862_v40  ;;  %v15674_v36 = vmax.f32 %v3920_v51, %v3926_v53  ;;  %v13595_v51 = vld [vmem:[%s18443_s3 + $0x104] ss:$8 sps:$4 sm:$0x7f]  }
 0x493   :  { %v2596_v23 = vpop.f32.mrb[96].mxu0  ;;  %v13161_v8 = vpack.i.bf16 %v14986_v61, %v15670_v20  ;;  %v15678_v37 = vmax.f32 %v3921_v60, %v3927_v34  ;;  %10727 = vmatprep.subr.msk.bf16.mxu1 %vm5323_vm2, %v13595_v51 }
 0x494   :  { %5393 = vmatmul.mubr.bf16.gmra.mrb[104].mxu1 %v5025_v15  ;;  %v2598_v41 = vpop.f32.mrb[97].mxu0  ;;  %v3653_v11 = vadd.f32 %v15242_v6, %v2596_v23  ;;  %v13171_v0 = vpack.i.bf16 %v15674_v36, %v15672_v44 }
 0x495   :  { %13162 = vrot.lane.b32.xlu1 %v13161_v8, %s13849_s22  ;;  %v2600_v2 = vpop.f32.mrb[98].mxu0  ;;  %v13166_v24 = vpack.i.bf16 %v18719_v26, %v15678_v37  ;;  %v3654_v53 = vadd.f32 %v15250_v57, %v2598_v41  ;;  %5594 = vmatpush1.bf16.msra.mxu1 %v5325_v46 }
 0x496   :  { %v2602_v55 = vpop.f32.mrb[99].mxu0  ;;  %v3929_v45 = vmax.f32 %v3653_v11, 0.0  ;;  %v3656_v60 = vadd.f32 %v15242_v6, %v2600_v2 }
 0x497   :  { %v13058_v1 = vpop.permute.xlu0 %13057  ;;  %13167 = vrot.lane.b32.xlu0 %v13166_v24, %s13849_s22  ;;  %v3930_v29 = vmax.f32 %v3654_v53, 0.0  ;;  %v3657_v34 = vadd.f32 %v15250_v57, %v2602_v55 }
 0x498   :  { %v13060_v59 = vunpack.i.h.bf16 %v13058_v1  ;;  %v13059_v4 = vunpack.i.l.bf16 %v13058_v1  ;;  %v3932_v9 = vmax.f32 %v3656_v60, 0.0 }
 0x499   :  { %v13063_v21 = vpop.permute.xlu1 %13062  ;;  %13172 = vrot.lane.b32.xlu1 %v13171_v0, %s13849_s22 }
 0x49a   :  { %v4631_v3 = vsel %vm4613_vm1, %v13059_v4, %v13060_v59  ;;  %v13065_v32 = vunpack.i.h.bf16 %v13063_v21  ;;  %v13064_v40 = vunpack.i.l.bf16 %v13063_v21  ;;  %v15699_v15 = vmax.f32 %v18681_v19, %v13060_v59 }
 0x49b   :  { %v13068_v23 = vpop.permute.xlu0 %13067  ;;  %v2606_v8 = vpop.f32.mrb[100].mxu0  ;;  %v4869_v55 = vmax.f32 %v15406_v43, %v4631_v3  ;;  %v3933_v3 = vmax.f32 %v3657_v34, 0.0  ;;  %v18722_v34 = vld [vmem:[#allocation36_spill] sm:$0xff] }
 0x49c   :  { %18720 = vst [vmem:[#allocation31_spill] sm:$0xff] %v15699_v15  ;;  %v15702_v41 = vmax.f32 %v18682_v16, %v13065_v32  ;;  %v4633_v24 = vsel %vm4613_vm1, %v13064_v40, %v13065_v32  ;;  %v13070_v11 = vunpack.i.h.bf16 %v13068_v23  ;;  %v13069_v51 = vunpack.i.l.bf16 %v13068_v23  ;;  %v2608_v1 = vpop.f32.mrb[101].mxu0 }
 0x49d   :  { %v3659_v0 = vadd.f32 %v15242_v6, %v2606_v8  ;;  %v3660_v53 = vadd.f32 %v15250_v57, %v2608_v1  ;;  %v2610_v2 = vpop.f32.mrb[102].mxu0  ;;  %v4872_v19 = vmax.f32 %v15413_v22, %v4633_v24 }
 0x49e   :  { %18721 = vst [vmem:[#allocation32_spill] sm:$0xff] %v15702_v41  ;;  %v4630_v16 = vsel %vm4613_vm1, %v13069_v51, %v13059_v4  ;;  %v4632_v59 = vsel %vm4613_vm1, %v13070_v11, %v13064_v40  ;;  %v3662_v21 = vadd.f32 %v15242_v6, %v2610_v2  ;;  %v2612_v46 = vpop.f32.mrb[103].mxu0 }
 0x49f   :  { %v3935_v32 = vmax.f32 %v3659_v0, 0.0  ;;  %v3936_v23 = vmax.f32 %v3660_v53, 0.0  ;;  %v3663_v8 = vadd.f32 %v15250_v57, %v2612_v46  ;;  %v5029_v1 = vpack.c.bf16 %v4872_v19, %v4869_v55 }
 0x4a0   :  { %v3938_v28 = vmax.f32 %v3662_v21, 0.0  ;;  %v4868_v43 = vmax.f32 %v15404_v63, %v4630_v16  ;;  %v4871_v22 = vmax.f32 %v15409_v30, %v4632_v59 }
 0x4a1   :  { %v3939_v24 = vmax.f32 %v3663_v8, 0.0  ;;  %5402 = vmatprep.mubr.bf16.mxu1 %v5029_v1  ;;  %v15717_v4 = vmax.f32 %v3930_v29, %v3936_v23  ;;  %v15719_v40 = vmax.f32 %v3929_v45, %v3935_v32 }
 0x4a2   :  { %v5028_v11 = vpack.c.bf16 %v4871_v22, %v4868_v43  ;;  %v15721_v51 = vmax.f32 %v3932_v9, %v3938_v28 }
 0x4a3   :  { %v2616_v0 = vpop.f32.mrb[104].mxu0  ;;  %v13176_v53 = vpack.i.bf16 %v14997_v62, %v15717_v4  ;;  %v15725_v60 = vmax.f32 %v3933_v3, %v3939_v24 }
 0x4a4   :  { %5403 = vmatmul.mubr.bf16.gmra.mrb[108].mxu1 %v5028_v11  ;;  %v2618_v63 = vpop.f32.mrb[105].mxu0  ;;  %v3665_v45 = vadd.f32 %v15242_v6, %v2616_v0  ;;  %v13186_v55 = vpack.i.bf16 %v15721_v51, %v15719_v40 }
 0x4a5   :  { %13177 = vrot.lane.b32.xlu0 %v13176_v53, %s13849_s22  ;;  %v2620_v30 = vpop.f32.mrb[106].mxu0  ;;  %v13181_v29 = vpack.i.bf16 %v18722_v34, %v15725_v60  ;;  %v3666_v28 = vadd.f32 %v15250_v57, %v2618_v63 }
 0x4a6   :  { %v2622_v2 = vpop.f32.mrb[107].mxu0  ;;  %v3941_v21 = vmax.f32 %v3665_v45, 0.0  ;;  %v3668_v1 = vadd.f32 %v15242_v6, %v2620_v30 }
 0x4a7   :  { %v13073_v9 = vpop.permute.xlu1 %13072  ;;  %13182 = vrot.lane.b32.xlu1 %v13181_v29, %s13849_s22  ;;  %v3942_v8 = vmax.f32 %v3666_v28, 0.0  ;;  %v3669_v43 = vadd.f32 %v15250_v57, %v2622_v2 }
 0x4a8   :  { %v13075_v19 = vunpack.i.h.bf16 %v13073_v9  ;;  %v13074_v16 = vunpack.i.l.bf16 %v13073_v9  ;;  %v3944_v14 = vmax.f32 %v3668_v1, 0.0 }
 0x4a9   :  { %v13078_v59 = vpop.permute.xlu0 %13077  ;;  %13187 = vrot.lane.b32.xlu0 %v13186_v55, %s13849_s22 }
 0x4aa   :  { %v4635_v46 = vsel %vm4613_vm1, %v13074_v16, %v13075_v19  ;;  %v13080_v32 = vunpack.i.h.bf16 %v13078_v59  ;;  %v13079_v23 = vunpack.i.l.bf16 %v13078_v59  ;;  %v15740_v22 = vmax.f32 %v18685_v5, %v13075_v19 }
 0x4ab   :  { %v13083_v3 = vpop.permute.xlu1 %13082  ;;  %v2626_v24 = vpop.f32.mrb[108].mxu0  ;;  %v4875_v2 = vmax.f32 %v15437_v35, %v4635_v46 }
 0x4ac   :  { %18723 = vst [vmem:[#allocation33_spill] sm:$0xff] %v15740_v22  ;;  %v15743_v11 = vmax.f32 %v18686_v39, %v13080_v32  ;;  %v4637_v0 = vsel %vm4613_vm1, %v13079_v23, %v13080_v32  ;;  %v13085_v53 = vunpack.i.h.bf16 %v13083_v3  ;;  %v13084_v63 = vunpack.i.l.bf16 %v13083_v3  ;;  %v2628_v29 = vpop.f32.mrb[109].mxu0  ;;  %v18735_v22 = vld [vmem:[#allocation11_spill] sm:$0xff] }
 0x4ad   :  { %v3671_v45 = vadd.f32 %v15242_v6, %v2626_v24  ;;  %v3672_v28 = vadd.f32 %v15250_v57, %v2628_v29  ;;  %v2630_v30 = vpop.f32.mrb[110].mxu0  ;;  %v4878_v5 = vmax.f32 %v15444_v7, %v4637_v0  ;;  %v18725_v7 = vld [vmem:[#allocation8_spill] sm:$0xff]  ;;  %v3945_v0 = vmax.f32 %v3669_v43, 0.0 }
 0x4ae   :  { %18724 = vst [vmem:[#allocation34_spill] sm:$0xff] %v15743_v11  ;;  %v4634_v39 = vsel %vm4613_vm1, %v13084_v63, %v13074_v16  ;;  %v4636_v55 = vsel %vm4613_vm1, %v13085_v53, %v13079_v23  ;;  %v3674_v19 = vadd.f32 %v15242_v6, %v2630_v30  ;;  %v2632_v59 = vpop.f32.mrb[111].mxu0 }
 0x4af   :  { %v3947_v32 = vmax.f32 %v3671_v45, 0.0  ;;  %v3948_v3 = vmax.f32 %v3672_v28, 0.0  ;;  %v3675_v24 = vadd.f32 %v15250_v57, %v2632_v59  ;;  %v5032_v29 = vpack.c.bf16 %v4878_v5, %v4875_v2  ;;  %v18728_v28 = vld [vmem:[#allocation37_spill] sm:$0xff]  ;;  %v18730_v2 = vld [vmem:[#allocation38_spill] sm:$0xff] }
 0x4b0   :  { %v3950_v15 = vmax.f32 %v3674_v19, 0.0  ;;  %v4874_v35 = vmax.f32 %v15435_v17, %v4634_v39  ;;  %v4877_v46 = vmax.f32 %v18725_v7, %v4636_v55 }
 0x4b1   :  { %v3951_v9 = vmax.f32 %v3675_v24, 0.0  ;;  %5412 = vmatprep.mubr.bf16.mxu1 %v5032_v29  ;;  %v15758_v16 = vmax.f32 %v3942_v8, %v3948_v3  ;;  %v15760_v23 = vmax.f32 %v3941_v21, %v3947_v32 }
 0x4b2   :  { %v5031_v53 = vpack.c.bf16 %v4877_v46, %v4874_v35  ;;  %v15762_v63 = vmax.f32 %v3944_v14, %v3950_v15 }
 0x4b3   :  { %18726 = vst [vmem:[#allocation35_spill] sm:$0xff] %v15760_v23  ;;  %v2636_v45 = vpop.f32.mrb[112].mxu0  ;;  %v13191_v30 = vpack.i.bf16 %v18728_v28, %v15758_v16  ;;  %v15766_v1 = vmax.f32 %v3945_v0, %v3951_v9 }
 0x4b4   :  { %18727 = vst [vmem:[#allocation36_spill] sm:$0xff] %v15762_v63  ;;  %5413 = vmatmul.mubr.bf16.gmra.mrb[112].mxu1 %v5031_v53  ;;  %v2638_v17 = vpop.f32.mrb[113].mxu0  ;;  %v3677_v21 = vadd.f32 %v15242_v6, %v2636_v45  ;;  %v13201_v9 = vpack.i.bf16 %v15762_v63, %v15760_v23  ;;  %v18732_v45 = vld [vmem:[#allocation26_spill] sm:$0xff] }
 0x4b5   :  { %18729 = vst [vmem:[#allocation8_spill] sm:$0xff] %v15766_v1  ;;  %13192 = vrot.lane.b32.xlu1 %v13191_v30, %s13849_s22  ;;  %v2640_v43 = vpop.f32.mrb[114].mxu0  ;;  %v13196_v8 = vpack.i.bf16 %v18730_v2, %v15766_v1  ;;  %v3678_v15 = vadd.f32 %v15250_v57, %v2638_v17 }
 0x4b6   :  { %v2642_v5 = vpop.f32.mrb[115].mxu0  ;;  %v3953_v59 = vmax.f32 %v3677_v21, 0.0  ;;  %v3680_v35 = vadd.f32 %v15242_v6, %v2640_v43 }
 0x4b7   :  { %v13088_v14 = vpop.permute.xlu0 %13087  ;;  %13197 = vrot.lane.b32.xlu0 %v13196_v8, %s13849_s22  ;;  %v3954_v29 = vmax.f32 %v3678_v15, 0.0  ;;  %v3681_v7 = vadd.f32 %v15250_v57, %v2642_v5 }
 0x4b8   :  { %v13090_v39 = vunpack.i.h.bf16 %v13088_v14  ;;  %v13089_v55 = vunpack.i.l.bf16 %v13088_v14  ;;  %v3956_v63 = vmax.f32 %v3680_v35, 0.0 }
 0x4b9   :  { %v13093_v19 = vpop.permute.xlu1 %13092  ;;  %13202 = vrot.lane.b32.xlu1 %v13201_v9, %s13849_s22  ;;  %v3957_v1 = vmax.f32 %v3681_v7, 0.0  ;;  %v18743_v7 = vld [vmem:[#allocation40_spill] sm:$0xff] }
 0x4ba   :  { %v4639_v32 = vsel %vm4613_vm1, %v13089_v55, %v13090_v39  ;;  %v13095_v3 = vunpack.i.h.bf16 %v13093_v19  ;;  %v13094_v24 = vunpack.i.l.bf16 %v13093_v19  ;;  %v15781_v46 = vmax.f32 %v18692_v56, %v13090_v39  ;;  %v18734_v19 = vld [vmem:[#allocation19_spill] sm:$0xff] }
 0x4bb   :  { %v13098_v0 = vpop.permute.xlu0 %13097  ;;  %v2646_v53 = vpop.f32.mrb[116].mxu0  ;;  %v4881_v5 = vmax.f32 %v18734_v19, %v4639_v32  ;;  %v18736_v32 = vld [vmem:[#allocation9_spill] sm:$0xff] }
 0x4bc   :  { %18731 = vst [vmem:[#allocation37_spill] sm:$0xff] %v15781_v46  ;;  %v15784_v30 = vmax.f32 %v18732_v45, %v13095_v3  ;;  %v4641_v17 = vsel %vm4613_vm1, %v13094_v24, %v13095_v3  ;;  %v13100_v8 = vunpack.i.h.bf16 %v13098_v0  ;;  %v13099_v21 = vunpack.i.l.bf16 %v13098_v0  ;;  %v2648_v14 = vpop.f32.mrb[117].mxu0  ;;  %v18748_v46 = vld [vmem:[#allocation12_spill] sm:$0xff] }
 0x4bd   :  { %v3683_v9 = vadd.f32 %v15242_v6, %v2646_v53  ;;  %v3684_v15 = vadd.f32 %v15250_v57, %v2648_v14  ;;  %v2650_v43 = vpop.f32.mrb[118].mxu0  ;;  %v4884_v56 = vmax.f32 %v18735_v22, %v4641_v17  ;;  %v18737_v22 = vld [vmem:[#allocation10_spill] sm:$0xff] }
 0x4be   :  { %18733 = vst [vmem:[#allocation38_spill] sm:$0xff] %v15784_v30  ;;  %v4638_v45 = vsel %vm4613_vm1, %v13099_v21, %v13089_v55  ;;  %v4640_v11 = vsel %vm4613_vm1, %v13100_v8, %v13094_v24  ;;  %v3686_v3 = vadd.f32 %v15242_v6, %v2650_v43  ;;  %v2652_v0 = vpop.f32.mrb[119].mxu0  ;;  %v18749_v30 = vld [vmem:[#allocation22_spill] sm:$0xff] }
 0x4bf   :  { %v3959_v41 = vmax.f32 %v3683_v9, 0.0  ;;  %v3960_v58 = vmax.f32 %v3684_v15, 0.0  ;;  %v3687_v53 = vadd.f32 %v15250_v57, %v2652_v0  ;;  %v5035_v14 = vpack.c.bf16 %v4884_v56, %v4881_v5  ;;  %v18741_v15 = vld [vmem:[#allocation39_spill] sm:$0xff] }
 0x4c0   :  { %v3962_v23 = vmax.f32 %v3686_v3, 0.0  ;;  %v4880_v19 = vmax.f32 %v18736_v32, %v4638_v45  ;;  %v4883_v17 = vmax.f32 %v18737_v22, %v4640_v11  ;;  %v18744_v22 = vld [vmem:[#allocation27_spill] sm:$0xff] }
 0x4c1   :  { %v3963_v39 = vmax.f32 %v3687_v53, 0.0  ;;  %5422 = vmatprep.mubr.bf16.mxu1 %v5035_v14  ;;  %v15799_v55 = vmax.f32 %v3954_v29, %v3960_v58  ;;  %v15801_v24 = vmax.f32 %v3953_v59, %v3959_v41 }
 0x4c2   :  { %v5034_v8 = vpack.c.bf16 %v4883_v17, %v4880_v19  ;;  %v15803_v21 = vmax.f32 %v3956_v63, %v3962_v23 }
 0x4c3   :  { %18738 = vst [vmem:[#allocation26_spill] sm:$0xff] %v15799_v55  ;;  %18739 = vst [vmem:[#allocation19_spill] sm:$0xff] %v15801_v24  ;;  %v2656_v9 = vpop.f32.mrb[120].mxu0  ;;  %v13206_v43 = vpack.i.bf16 %v18741_v15, %v15799_v55  ;;  %v15807_v35 = vmax.f32 %v3957_v1, %v3963_v39 }
 0x4c4   :  { %18740 = vst [vmem:[#allocation11_spill] sm:$0xff] %v15803_v21  ;;  %5423 = vmatmul.mubr.bf16.gmra.mrb[116].mxu1 %v5034_v8  ;;  %v2658_v5 = vpop.f32.mrb[121].mxu0  ;;  %v3689_v41 = vadd.f32 %v15242_v6, %v2656_v9  ;;  %v13216_v1 = vpack.i.bf16 %v15803_v21, %v15801_v24 }
 0x4c5   :  { %18742 = vst [vmem:[#allocation9_spill] sm:$0xff] %v15807_v35  ;;  %13207 = vrot.lane.b32.xlu0 %v13206_v43, %s13849_s22  ;;  %v2660_v11 = vpop.f32.mrb[122].mxu0  ;;  %v13211_v58 = vpack.i.bf16 %v18743_v7, %v15807_v35  ;;  %v3690_v23 = vadd.f32 %v15250_v57, %v2658_v5  ;;  %v18746_v43 = vld [vmem:[#allocation28_spill] sm:$0xff] }
 0x4c6   :  { %v2662_v59 = vpop.f32.mrb[123].mxu0  ;;  %v3965_v45 = vmax.f32 %v3689_v41, 0.0  ;;  %v3692_v32 = vadd.f32 %v15242_v6, %v2660_v11 }
 0x4c7   :  { %v13103_v63 = vpop.permute.xlu1 %13102  ;;  %13212 = vrot.lane.b32.xlu1 %v13211_v58, %s13849_s22  ;;  %v3966_v14 = vmax.f32 %v3690_v23, 0.0  ;;  %v3693_v19 = vadd.f32 %v15250_v57, %v2662_v59 }
 0x4c8   :  { %v13105_v29 = vunpack.i.h.bf16 %v13103_v63  ;;  %v13104_v56 = vunpack.i.l.bf16 %v13103_v63  ;;  %v3968_v55 = vmax.f32 %v3692_v32, 0.0 }
 0x4c9   :  { %v13108_v39 = vpop.permute.xlu0 %13107  ;;  %13217 = vrot.lane.b32.xlu0 %v13216_v1, %s13849_s22  ;;  %v3969_v15 = vmax.f32 %v3693_v19, 0.0  ;;  %v18754_v19 = vld [vmem:[#allocation42_spill] sm:$0xff] }
 0x4ca   :  { %v4643_v3 = vsel %vm4613_vm1, %v13104_v56, %v13105_v29  ;;  %v13110_v0 = vunpack.i.h.bf16 %v13108_v39  ;;  %v13109_v53 = vunpack.i.l.bf16 %v13108_v39  ;;  %v15822_v17 = vmax.f32 %v18744_v22, %v13105_v29 }
 0x4cb   :  { %v13113_v8 = vpop.permute.xlu1 %13112  ;;  %v2666_v9 = vpop.f32.mrb[124].mxu0  ;;  %v4887_v59 = vmax.f32 %v18748_v46, %v4643_v3  ;;  %v18750_v46 = vld [vmem:[#allocation20_spill] sm:$0xff] }
 0x4cc   :  { %18745 = vst [vmem:[#allocation10_spill] sm:$0xff] %v15822_v17  ;;  %v15825_v5 = vmax.f32 %v18746_v43, %v13110_v0  ;;  %v4645_v58 = vsel %vm4613_vm1, %v13109_v53, %v13110_v0  ;;  %v13115_v41 = vunpack.i.h.bf16 %v13113_v8  ;;  %v13114_v63 = vunpack.i.l.bf16 %v13113_v8  ;;  %v2668_v1 = vpop.f32.mrb[125].mxu0  ;;  %v18757_v17 = vld [vmem:[#allocation24_spill] sm:$0xff] }
 0x4cd   :  { %v3695_v39 = vadd.f32 %v15242_v6, %v2666_v9  ;;  %v3696_v23 = vadd.f32 %v15250_v57, %v2668_v1  ;;  %v2670_v11 = vpop.f32.mrb[126].mxu0  ;;  %v4890_v29 = vmax.f32 %v18749_v30, %v4645_v58  ;;  %v18751_v30 = vld [vmem:[#allocation21_spill] sm:$0xff] }
 0x4ce   :  { %18747 = vst [vmem:[#allocation27_spill] sm:$0xff] %v15825_v5  ;;  %v4642_v43 = vsel %vm4613_vm1, %v13114_v63, %v13104_v56  ;;  %v4644_v21 = vsel %vm4613_vm1, %v13115_v41, %v13109_v53  ;;  %v3698_v0 = vadd.f32 %v15242_v6, %v2670_v11  ;;  %v2672_v8 = vpop.f32.mrb[127].mxu0 }
 0x4cf   :  { %v3971_v24 = vmax.f32 %v3695_v39, 0.0  ;;  %v3972_v35 = vmax.f32 %v3696_v23, 0.0  ;;  %v3699_v9 = vadd.f32 %v15250_v57, %v2672_v8  ;;  %v5038_v1 = vpack.c.bf16 %v4890_v29, %v4887_v59  ;;  %v18753_v23 = vld [vmem:[#allocation41_spill] sm:$0xff] }
 0x4d0   :  { %v3974_v7 = vmax.f32 %v3698_v0, 0.0  ;;  %v4886_v3 = vmax.f32 %v18750_v46, %v4642_v43  ;;  %v4889_v58 = vmax.f32 %v18751_v30, %v4644_v21 }
 0x4d1   :  { %v3975_v22 = vmax.f32 %v3699_v9, 0.0  ;;  %5432 = vmatprep.mubr.bf16.mxu1 %v5038_v1  ;;  %v15840_v56 = vmax.f32 %v3966_v14, %v3972_v35  ;;  %v15842_v53 = vmax.f32 %v3965_v45, %v3971_v24 }
 0x4d2   :  { %v5037_v41 = vpack.c.bf16 %v4889_v58, %v4886_v3  ;;  %v15844_v63 = vmax.f32 %v3968_v55, %v3974_v7 }
 0x4d3   :  { %v2676_v39 = vpop.f32.mrb[128].mxu0  ;;  %v13221_v11 = vpack.i.bf16 %v18753_v23, %v15840_v56  ;;  %v15848_v32 = vmax.f32 %v3969_v15, %v3975_v22 }
 0x4d4   :  { %18752 = vst [vmem:[#allocation28_spill] sm:$0xff] %v15844_v63  ;;  %5433 = vmatmul.mubr.bf16.gmra.mrb[120].mxu1 %v5037_v41  ;;  %v2678_v59 = vpop.f32.mrb[129].mxu0  ;;  %v13231_v55 = vpack.i.bf16 %v15844_v63, %v15842_v53  ;;  %v3701_v15 = vadd.f32 %v15242_v6, %v2676_v39 }
 0x4d5   :  { %13222 = vrot.lane.b32.xlu1 %v13221_v11, %s13849_s22  ;;  %v2680_v21 = vpop.f32.mrb[130].mxu0  ;;  %v13226_v35 = vpack.i.bf16 %v18754_v19, %v15848_v32  ;;  %v3702_v7 = vadd.f32 %v15250_v57, %v2678_v59 }
 0x4d6   :  { %v2682_v14 = vpop.f32.mrb[131].mxu0  ;;  %v3704_v9 = vadd.f32 %v15242_v6, %v2680_v21  ;;  %v3977_v41 = vmax.f32 %v3701_v15, 0.0 }
 0x4d7   :  { %v13118_v24 = vpop.permute.xlu0 %13117  ;;  %13227 = vrot.lane.b32.xlu0 %v13226_v35, %s13849_s22  ;;  %v3978_v30 = vmax.f32 %v3702_v7, 0.0  ;;  %v3705_v58 = vadd.f32 %v15250_v57, %v2682_v14 }
 0x4d8   :  { %v13120_v45 = vunpack.i.h.bf16 %v13118_v24  ;;  %v13119_v29 = vunpack.i.l.bf16 %v13118_v24 }
 0x4d9   :  { %v13123_v22 = vpop.permute.xlu1 %13122  ;;  %13232 = vrot.lane.b32.xlu1 %v13231_v55, %s13849_s22 }
 0x4da   :  { %v4647_v43 = vsel %vm4613_vm1, %v13119_v29, %v13120_v45  ;;  %v13125_v0 = vunpack.i.h.bf16 %v13123_v22  ;;  %v13124_v8 = vunpack.i.l.bf16 %v13123_v22  ;;  %v15862_v1 = vmax.f32 %v18706_v12, %v13120_v45 }
 0x4db   :  { %v13128_v46 = vpop.permute.xlu0 %13127  ;;  %v2686_v3 = vpop.f32.mrb[132].mxu0  ;;  %v4893_v21 = vmax.f32 %v15546_v50, %v4647_v43  ;;  %v18758_v50 = vld [vmem:[#allocation14_spill] sm:$0xff] }
 0x4dc   :  { %18755 = vst [vmem:[#allocation12_spill] sm:$0xff] %v15862_v1  ;;  %v15866_v39 = vmax.f32 %v18707_v25, %v13125_v0  ;;  %v4649_v11 = vsel %vm4613_vm1, %v13124_v8, %v13125_v0  ;;  %v13130_v59 = vunpack.i.h.bf16 %v13128_v46  ;;  %v13129_v35 = vunpack.i.l.bf16 %v13128_v46  ;;  %v2688_v24 = vpop.f32.mrb[133].mxu0 }
 0x4dd   :  { %v2690_v55 = vpop.f32.mrb[134].mxu0  ;;  %v4896_v12 = vmax.f32 %v15553_v48, %v4649_v11  ;;  %v3708_v45 = vadd.f32 %v15250_v57, %v2688_v24  ;;  %v3707_v7 = vadd.f32 %v15242_v6, %v2686_v3  ;;  %v3980_v24 = vmax.f32 %v3704_v9, 0.0 }
 0x4de   :  { %18756 = vst [vmem:[#allocation22_spill] sm:$0xff] %v15866_v39  ;;  %v4646_v25 = vsel %vm4613_vm1, %v13129_v35, %v13119_v29  ;;  %v4648_v15 = vsel %vm4613_vm1, %v13130_v59, %v13124_v8  ;;  %v2692_v22 = vpop.f32.mrb[135].mxu0  ;;  %v3710_v0 = vadd.f32 %v15242_v6, %v2690_v55  ;;  %v3981_v29 = vmax.f32 %v3705_v58, 0.0 }
 0x4df   :  { %v5041_v46 = vpack.c.bf16 %v4896_v12, %v4893_v21  ;;  %v4892_v5 = vmax.f32 %v18757_v17, %v4646_v25  ;;  %v4895_v43 = vmax.f32 %v18758_v50, %v4648_v15  ;;  %v3984_v48 = vmax.f32 %v3708_v45, 0.0  ;;  %v18759_v17 = vld [vmem:[#allocation43_spill] sm:$0xff] }
 0x4e0   :  { %v3711_v11 = vadd.f32 %v15250_v57, %v2692_v22  ;;  %v3983_v3 = vmax.f32 %v3707_v7, 0.0  ;;  %v3986_v63 = vmax.f32 %v3710_v0, 0.0 }
 0x4e1   :  { %5442 = vmatprep.mubr.bf16.mxu1 %v5041_v46  ;;  %v5040_v14 = vpack.c.bf16 %v4895_v43, %v4892_v5  ;;  %v15881_v1 = vmax.f32 %v3978_v30, %v3984_v48  ;;  %v18760_v30 = vld [vmem:[#allocation44_spill] sm:$0xff] }
 0x4e2   :  { %v3987_v8 = vmax.f32 %v3711_v11, 0.0  ;;  %v15883_v59 = vmax.f32 %v3977_v41, %v3983_v3  ;;  %v15885_v35 = vmax.f32 %v3980_v24, %v3986_v63 }
 0x4e3   :  { %v2696_v55 = vpop.f32.mrb[136].mxu0  ;;  %5443 = vmatmul.mubr.bf16.gmra.mrb[124].mxu1 %v5040_v14  ;;  %v13236_v21 = vpack.i.bf16 %v18759_v17, %v15881_v1 }
 0x4e4   :  { %v2698_v12 = vpop.f32.mrb[137].mxu0  ;;  %v15889_v45 = vmax.f32 %v3981_v29, %v3987_v8  ;;  %v13246_v63 = vpack.i.bf16 %v15885_v35, %v15883_v59  ;;  %v3713_v14 = vadd.f32 %v15242_v6, %v2696_v55 }
 0x4e5   :  { %13237 = vrot.lane.b32.xlu0 %v13236_v21, %s13849_s22  ;;  %v2700_v9 = vpop.f32.mrb[138].mxu0  ;;  %v3714_v41 = vadd.f32 %v15250_v57, %v2698_v12 }
 0x4e6   :  { %v2702_v5 = vpop.f32.mrb[139].mxu0  ;;  %v13241_v58 = vpack.i.bf16 %v18760_v30, %v15889_v45  ;;  %v3716_v43 = vadd.f32 %v15242_v6, %v2700_v9  ;;  %v3989_v8 = vmax.f32 %v3713_v14, 0.0 }
 0x4e7   :  { %v13133_v7 = vpop.permute.xlu1 %13132  ;;  %v3990_v3 = vmax.f32 %v3714_v41, 0.0  ;;  %v3717_v29 = vadd.f32 %v15250_v57, %v2702_v5 }
 0x4e8   :  { %v13135_v25 = vunpack.i.h.bf16 %v13133_v7  ;;  %v13134_v15 = vunpack.i.l.bf16 %v13133_v7  ;;  %13242 = vrot.lane.b32.xlu1 %v13241_v58, %s13849_s22 }
 0x4e9   :  { %v13138_v22 = vpop.permute.xlu0 %13137  ;;  %13247 = vrot.lane.b32.xlu0 %v13246_v63, %s13849_s22 }
 0x4ea   :  { %v4651_v0 = vsel %vm4613_vm1, %v13134_v15, %v13135_v25  ;;  %v13140_v46 = vunpack.i.h.bf16 %v13138_v22  ;;  %v13139_v50 = vunpack.i.l.bf16 %v13138_v22  ;;  %v15903_v48 = vmax.f32 %v18711_v42, %v13135_v25 }
 0x4eb   :  { %v13143_v11 = vpop.permute.xlu1 %13142  ;;  %v2706_v24 = vpop.f32.mrb[140].mxu0  ;;  %v4899_v9 = vmax.f32 %v15588_v31, %v4651_v0 }
 0x4ec   :  { %18761 = vst [vmem:[#allocation20_spill] sm:$0xff] %v15903_v48  ;;  %v15907_v55 = vmax.f32 %v18712_v38, %v13140_v46  ;;  %v4653_v21 = vsel %vm4613_vm1, %v13139_v50, %v13140_v46  ;;  %v13145_v12 = vunpack.i.h.bf16 %v13143_v11  ;;  %v13144_v58 = vunpack.i.l.bf16 %v13143_v11  ;;  %v2708_v7 = vpop.f32.mrb[141].mxu0 }
 0x4ed   :  { %v2710_v63 = vpop.f32.mrb[142].mxu0  ;;  %v4902_v42 = vmax.f32 %v15596_v27, %v4653_v21  ;;  %v3720_v25 = vadd.f32 %v15250_v57, %v2708_v7  ;;  %v3719_v41 = vadd.f32 %v15242_v6, %v2706_v24  ;;  %v3992_v21 = vmax.f32 %v3716_v43, 0.0 }
 0x4ee   :  { %18762 = vst [vmem:[#allocation21_spill] sm:$0xff] %v15907_v55  ;;  %v4650_v38 = vsel %vm4613_vm1, %v13144_v58, %v13134_v15  ;;  %v4652_v14 = vsel %vm4613_vm1, %v13145_v12, %v13139_v50  ;;  %v2712_v22 = vpop.f32.mrb[143].mxu0  ;;  %v3722_v46 = vadd.f32 %v15242_v6, %v2710_v63  ;;  %v3993_v15 = vmax.f32 %v3717_v29, 0.0  ;;  %v18766_v29 = vld [vmem:[#allocation46_spill] sm:$0xff] }
 0x4ef   :  { %v5044_v11 = vpack.c.bf16 %v4902_v42, %v4899_v9  ;;  %v4898_v39 = vmax.f32 %v15586_v49, %v4650_v38  ;;  %v4901_v31 = vmax.f32 %v15592_v54, %v4652_v14  ;;  %v3996_v27 = vmax.f32 %v3720_v25, 0.0  ;;  %v18765_v49 = vld [vmem:[#allocation45_spill] sm:$0xff] }
 0x4f0   :  { %v3723_v0 = vadd.f32 %v15250_v57, %v2712_v22  ;;  %v3995_v24 = vmax.f32 %v3719_v41, 0.0  ;;  %v3998_v7 = vmax.f32 %v3722_v46, 0.0 }
 0x4f1   :  { %5452 = vmatprep.mubr.bf16.mxu1 %v5044_v11  ;;  %v5043_v5 = vpack.c.bf16 %v4901_v31, %v4898_v39  ;;  %v15922_v48 = vmax.f32 %v3990_v3, %v3996_v27 }
 0x4f2   :  { %v3999_v50 = vmax.f32 %v3723_v0, 0.0  ;;  %v15924_v12 = vmax.f32 %v3989_v8, %v3995_v24  ;;  %v15926_v58 = vmax.f32 %v3992_v21, %v3998_v7 }
 0x4f3   :  { %v2716_v63 = vpop.f32.mrb[144].mxu0  ;;  %5453 = vmatmul.mubr.bf16.gmra.mrb[128].mxu1 %v5043_v5  ;;  %v13251_v54 = vpack.i.bf16 %v18765_v49, %v15922_v48 }
 0x4f4   :  { %18763 = vst [vmem:[#allocation41_spill] sm:$0xff] %v15924_v12  ;;  %18764 = vst [vmem:[#allocation42_spill] sm:$0xff] %v15926_v58  ;;  %v2718_v9 = vpop.f32.mrb[145].mxu0  ;;  %v15930_v42 = vmax.f32 %v3993_v15, %v3999_v50  ;;  %v3725_v39 = vadd.f32 %v15242_v6, %v2716_v63  ;;  %v13261_v5 = vpack.i.bf16 %v15926_v58, %v15924_v12 }
 0x4f5   :  { %13252 = vrot.lane.b32.xlu1 %v13251_v54, %s13849_s22  ;;  %v2720_v43 = vpop.f32.mrb[146].mxu0  ;;  %v3726_v25 = vadd.f32 %v15250_v57, %v2718_v9 }
 0x4f6   :  { %v2722_v3 = vpop.f32.mrb[147].mxu0  ;;  %v13256_v8 = vpack.i.bf16 %v18766_v29, %v15930_v42  ;;  %v4001_v46 = vmax.f32 %v3725_v39, 0.0  ;;  %v3728_v21 = vadd.f32 %v15242_v6, %v2720_v43 }
 0x4f7   :  { %v13148_v41 = vpop.permute.xlu0 %13147  ;;  %v4002_v0 = vmax.f32 %v3726_v25, 0.0  ;;  %v3729_v24 = vadd.f32 %v15250_v57, %v2722_v3 }
 0x4f8   :  { %v13150_v38 = vunpack.i.h.bf16 %v13148_v41  ;;  %v13149_v14 = vunpack.i.l.bf16 %v13148_v41  ;;  %13257 = vrot.lane.b32.xlu0 %v13256_v8, %s13849_s22  ;;  %v4004_v58 = vmax.f32 %v3728_v21, 0.0 }
 0x4f9   :  { %v13153_v22 = vpop.permute.xlu1 %13152  ;;  %13262 = vrot.lane.b32.xlu1 %v13261_v5, %s13849_s22 }
 0x4fa   :  { %v4655_v11 = vsel %vm4613_vm1, %v13149_v14, %v13150_v38  ;;  %v13155_v31 = vunpack.i.h.bf16 %v13153_v22  ;;  %v13154_v27 = vunpack.i.l.bf16 %v13153_v22  ;;  %v15945_v7 = vmax.f32 %v18715_v47, %v13150_v38 }
 0x4fb   :  { %v13158_v15 = vpop.permute.xlu0 %13157  ;;  %v2726_v50 = vpop.f32.mrb[148].mxu0  ;;  %v4905_v3 = vmax.f32 %v15629_v33, %v4655_v11  ;;  %v4005_v11 = vmax.f32 %v3729_v24, 0.0  ;;  %v18770_v24 = vld [vmem:[#allocation48_spill] sm:$0xff] }
 0x4fc   :  { %18767 = vst [vmem:[#allocation24_spill] sm:$0xff] %v15945_v7  ;;  %v15948_v63 = vmax.f32 %v18716_v13, %v13155_v31  ;;  %v4657_v54 = vsel %vm4613_vm1, %v13154_v27, %v13155_v31  ;;  %v13160_v9 = vunpack.i.h.bf16 %v13158_v15  ;;  %v13159_v39 = vunpack.i.l.bf16 %v13158_v15  ;;  %v2728_v8 = vpop.f32.mrb[149].mxu0 }
 0x4fd   :  { %v3731_v41 = vadd.f32 %v15242_v6, %v2726_v50  ;;  %v3732_v25 = vadd.f32 %v15250_v57, %v2728_v8  ;;  %v2730_v43 = vpop.f32.mrb[150].mxu0  ;;  %v4908_v47 = vmax.f32 %v15637_v18, %v4657_v54 }
 0x4fe   :  { %18768 = vst [vmem:[#allocation14_spill] sm:$0xff] %v15948_v63  ;;  %v4654_v13 = vsel %vm4613_vm1, %v13159_v39, %v13149_v14  ;;  %v4656_v38 = vsel %vm4613_vm1, %v13160_v9, %v13154_v27  ;;  %v3734_v22 = vadd.f32 %v15242_v6, %v2730_v43  ;;  %v2732_v31 = vpop.f32.mrb[151].mxu0 }
 0x4ff   :  { %v4007_v15 = vmax.f32 %v3731_v41, 0.0  ;;  %v4008_v55 = vmax.f32 %v3732_v25, 0.0  ;;  %v3735_v50 = vadd.f32 %v15250_v57, %v2732_v31  ;;  %v5047_v8 = vpack.c.bf16 %v4908_v47, %v4905_v3  ;;  %v18769_v25 = vld [vmem:[#allocation47_spill] sm:$0xff] }
 0x500   :  { %v4010_v12 = vmax.f32 %v3734_v22, 0.0  ;;  %v4904_v33 = vmax.f32 %v15627_v10, %v4654_v13  ;;  %v4907_v18 = vmax.f32 %v15633_v52, %v4656_v38 }
 0x501   :  { %v4011_v54 = vmax.f32 %v3735_v50, 0.0  ;;  %5462 = vmatprep.mubr.bf16.mxu1 %v5047_v8  ;;  %v15963_v14 = vmax.f32 %v4002_v0, %v4008_v55  ;;  %v15965_v27 = vmax.f32 %v4001_v46, %v4007_v15 }
 0x502   :  { %v5046_v9 = vpack.c.bf16 %v4907_v18, %v4904_v33  ;;  %v15967_v39 = vmax.f32 %v4004_v58, %v4010_v12 }
 0x503   :  { %v2736_v41 = vpop.f32.mrb[152].mxu0  ;;  %v13266_v43 = vpack.i.bf16 %v18769_v25, %v15963_v14  ;;  %v15971_v21 = vmax.f32 %v4005_v11, %v4011_v54 }
 0x504   :  { %5463 = vmatmul.mubr.bf16.gmra.mrb[132].mxu1 %v5046_v9  ;;  %v2738_v10 = vpop.f32.mrb[153].mxu0  ;;  %v3737_v46 = vadd.f32 %v15242_v6, %v2736_v41  ;;  %v13276_v3 = vpack.i.bf16 %v15967_v39, %v15965_v27 }
 0x505   :  { %13267 = vrot.lane.b32.xlu0 %v13266_v43, %s13849_s22  ;;  %v2740_v52 = vpop.f32.mrb[154].mxu0  ;;  %v13271_v55 = vpack.i.bf16 %v18770_v24, %v15971_v21  ;;  %v3738_v12 = vadd.f32 %v15250_v57, %v2738_v10 }
 0x506   :  { %v2742_v0 = vpop.f32.mrb[155].mxu0  ;;  %v4013_v22 = vmax.f32 %v3737_v46, 0.0  ;;  %v3740_v33 = vadd.f32 %v15242_v6, %v2740_v52 }
 0x507   :  { %v13163_v58 = vpop.permute.xlu1 %13162  ;;  %13272 = vrot.lane.b32.xlu1 %v13271_v55, %s13849_s22  ;;  %v4014_v8 = vmax.f32 %v3738_v12, 0.0  ;;  %v3741_v18 = vadd.f32 %v15250_v57, %v2742_v0 }
 0x508   :  { %v13165_v47 = vunpack.i.h.bf16 %v13163_v58  ;;  %v13164_v13 = vunpack.i.l.bf16 %v13163_v58  ;;  %v4016_v7 = vmax.f32 %v3740_v33, 0.0 }
 0x509   :  { %v13168_v38 = vpop.permute.xlu0 %13167  ;;  %13277 = vrot.lane.b32.xlu0 %v13276_v3, %s13849_s22 }
 0x50a   :  { %v4659_v31 = vsel %vm4613_vm1, %v13164_v13, %v13165_v47  ;;  %v13170_v15 = vunpack.i.h.bf16 %v13168_v38  ;;  %v13169_v50 = vunpack.i.l.bf16 %v13168_v38  ;;  %v15986_v11 = vmax.f32 %v14986_v61, %v13165_v47 }
 0x50b   :  { %v13173_v54 = vpop.permute.xlu1 %13172  ;;  %v2746_v9 = vpop.f32.mrb[156].mxu0  ;;  %v4911_v0 = vmax.f32 %v15670_v20, %v4659_v31  ;;  %v4017_v31 = vmax.f32 %v3741_v18, 0.0  ;;  %v18774_v18 = vld [vmem:[#allocation50_spill] sm:$0xff] }
 0x50c   :  { %18771 = vst [vmem:[#allocation43_spill] sm:$0xff] %v15986_v11  ;;  %v15989_v41 = vmax.f32 %v18719_v26, %v13170_v15  ;;  %v4661_v43 = vsel %vm4613_vm1, %v13169_v50, %v13170_v15  ;;  %v13175_v10 = vunpack.i.h.bf16 %v13173_v54  ;;  %v13174_v55 = vunpack.i.l.bf16 %v13173_v54  ;;  %v2748_v46 = vpop.f32.mrb[157].mxu0 }
 0x50d   :  { %v3743_v58 = vadd.f32 %v15242_v6, %v2746_v9  ;;  %v3744_v12 = vadd.f32 %v15250_v57, %v2748_v46  ;;  %v2750_v52 = vpop.f32.mrb[158].mxu0  ;;  %v4914_v61 = vmax.f32 %v15678_v37, %v4661_v43 }
 0x50e   :  { %18772 = vst [vmem:[#allocation44_spill] sm:$0xff] %v15989_v41  ;;  %v4658_v26 = vsel %vm4613_vm1, %v13174_v55, %v13164_v13  ;;  %v4660_v47 = vsel %vm4613_vm1, %v13175_v10, %v13169_v50  ;;  %v3746_v38 = vadd.f32 %v15242_v6, %v2750_v52  ;;  %v2752_v15 = vpop.f32.mrb[159].mxu0 }
 0x50f   :  { %v4019_v54 = vmax.f32 %v3743_v58, 0.0  ;;  %v4020_v5 = vmax.f32 %v3744_v12, 0.0  ;;  %v3747_v9 = vadd.f32 %v15250_v57, %v2752_v15  ;;  %v5050_v46 = vpack.c.bf16 %v4914_v61, %v4911_v0  ;;  %v18773_v12 = vld [vmem:[#allocation49_spill] sm:$0xff] }
 0x510   :  { %v4022_v63 = vmax.f32 %v3746_v38, 0.0  ;;  %v4910_v20 = vmax.f32 %v15672_v44, %v4658_v26  ;;  %v4913_v37 = vmax.f32 %v15674_v36, %v4660_v47 }
 0x511   :  { %v4023_v43 = vmax.f32 %v3747_v9, 0.0  ;;  %5472 = vmatprep.mubr.bf16.mxu1 %v5050_v46  ;;  %v16004_v13 = vmax.f32 %v4014_v8, %v4020_v5  ;;  %v16006_v50 = vmax.f32 %v4013_v22, %v4019_v54 }
 0x512   :  { %v5049_v10 = vpack.c.bf16 %v4913_v37, %v4910_v20  ;;  %v16008_v55 = vmax.f32 %v4016_v7, %v4022_v63 }
 0x513   :  { %v2756_v58 = vpop.f32.mrb[160].mxu0  ;;  %v13281_v52 = vpack.i.bf16 %v18773_v12, %v16004_v13  ;;  %v16012_v33 = vmax.f32 %v4017_v31, %v4023_v43 }
 0x514   :  { %5473 = vmatmul.mubr.bf16.gmra.mrb[136].mxu1 %v5049_v10  ;;  %v2758_v44 = vpop.f32.mrb[161].mxu0  ;;  %v3749_v22 = vadd.f32 %v15242_v6, %v2756_v58  ;;  %v13291_v0 = vpack.i.bf16 %v16008_v55, %v16006_v50 }
 0x515   :  { %13282 = vrot.lane.b32.xlu1 %v13281_v52, %s13849_s22  ;;  %v2760_v36 = vpop.f32.mrb[162].mxu0  ;;  %v13286_v5 = vpack.i.bf16 %v18774_v18, %v16012_v33  ;;  %v3750_v7 = vadd.f32 %v15250_v57, %v2758_v44 }
 0x516   :  { %v2762_v8 = vpop.f32.mrb[163].mxu0  ;;  %v4025_v38 = vmax.f32 %v3749_v22, 0.0  ;;  %v3752_v20 = vadd.f32 %v15242_v6, %v2760_v36 }
 0x517   :  { %v13178_v63 = vpop.permute.xlu0 %13177  ;;  %13287 = vrot.lane.b32.xlu0 %v13286_v5, %s13849_s22  ;;  %v4026_v46 = vmax.f32 %v3750_v7, 0.0  ;;  %v3753_v37 = vadd.f32 %v15250_v57, %v2762_v8 }
 0x518   :  { %v13180_v61 = vunpack.i.h.bf16 %v13178_v63  ;;  %v13179_v26 = vunpack.i.l.bf16 %v13178_v63  ;;  %v4028_v11 = vmax.f32 %v3752_v20, 0.0 }
 0x519   :  { %v13183_v47 = vpop.permute.xlu1 %13182  ;;  %13292 = vrot.lane.b32.xlu1 %v13291_v0, %s13849_s22 }
 0x51a   :  { %v4663_v15 = vsel %vm4613_vm1, %v13179_v26, %v13180_v61  ;;  %v13185_v54 = vunpack.i.h.bf16 %v13183_v47  ;;  %v13184_v9 = vunpack.i.l.bf16 %v13183_v47  ;;  %v16027_v31 = vmax.f32 %v14997_v62, %v13180_v61 }
 0x51b   :  { %v13188_v43 = vpop.permute.xlu0 %13187  ;;  %v2766_v10 = vpop.f32.mrb[164].mxu0  ;;  %v4917_v8 = vmax.f32 %v15717_v4, %v4663_v15  ;;  %v4029_v15 = vmax.f32 %v3753_v37, 0.0  ;;  %v18780_v37 = vld [vmem:[#allocation52_spill] sm:$0xff] }
 0x51c   :  { %18775 = vst [vmem:[#allocation45_spill] sm:$0xff] %v16027_v31  ;;  %v16030_v58 = vmax.f32 %v18722_v34, %v13185_v54  ;;  %v4665_v52 = vsel %vm4613_vm1, %v13184_v9, %v13185_v54  ;;  %v13190_v44 = vunpack.i.h.bf16 %v13188_v43  ;;  %v13189_v5 = vunpack.i.l.bf16 %v13188_v43  ;;  %v2768_v22 = vpop.f32.mrb[165].mxu0 }
 0x51d   :  { %v3755_v63 = vadd.f32 %v15242_v6, %v2766_v10  ;;  %v3756_v7 = vadd.f32 %v15250_v57, %v2768_v22  ;;  %v2770_v36 = vpop.f32.mrb[166].mxu0  ;;  %v4920_v62 = vmax.f32 %v15725_v60, %v4665_v52 }
 0x51e   :  { %18776 = vst [vmem:[#allocation46_spill] sm:$0xff] %v16030_v58  ;;  %v4662_v34 = vsel %vm4613_vm1, %v13189_v5, %v13179_v26  ;;  %v4664_v61 = vsel %vm4613_vm1, %v13190_v44, %v13184_v9  ;;  %v3758_v47 = vadd.f32 %v15242_v6, %v2770_v36  ;;  %v2772_v54 = vpop.f32.mrb[167].mxu0 }
 0x51f   :  { %v4031_v43 = vmax.f32 %v3755_v63, 0.0  ;;  %v4032_v3 = vmax.f32 %v3756_v7, 0.0  ;;  %v3759_v10 = vadd.f32 %v15250_v57, %v2772_v54  ;;  %v5053_v22 = vpack.c.bf16 %v4920_v62, %v4917_v8  ;;  %v18779_v7 = vld [vmem:[#allocation51_spill] sm:$0xff] }
 0x520   :  { %v4034_v41 = vmax.f32 %v3758_v47, 0.0  ;;  %v4916_v4 = vmax.f32 %v15719_v40, %v4662_v34  ;;  %v4919_v60 = vmax.f32 %v15721_v51, %v4664_v61 }
 0x521   :  { %v4035_v52 = vmax.f32 %v3759_v10, 0.0  ;;  %5482 = vmatprep.mubr.bf16.mxu1 %v5053_v22  ;;  %v16045_v26 = vmax.f32 %v4026_v46, %v4032_v3  ;;  %v16047_v9 = vmax.f32 %v4025_v38, %v4031_v43 }
 0x522   :  { %v5052_v44 = vpack.c.bf16 %v4919_v60, %v4916_v4  ;;  %v16049_v5 = vmax.f32 %v4028_v11, %v4034_v41 }
 0x523   :  { %18777 = vst [vmem:[#allocation47_spill] sm:$0xff] %v16047_v9  ;;  %v2776_v63 = vpop.f32.mrb[168].mxu0  ;;  %v13296_v36 = vpack.i.bf16 %v18779_v7, %v16045_v26  ;;  %v16053_v20 = vmax.f32 %v4029_v15, %v4035_v52 }
 0x524   :  { %18778 = vst [vmem:[#allocation48_spill] sm:$0xff] %v16049_v5  ;;  %5483 = vmatmul.mubr.bf16.gmra.mrb[140].mxu1 %v5052_v44  ;;  %v2778_v40 = vpop.f32.mrb[169].mxu0  ;;  %v3761_v38 = vadd.f32 %v15242_v6, %v2776_v63  ;;  %v13306_v8 = vpack.i.bf16 %v16049_v5, %v16047_v9 }
 0x525   :  { %13297 = vrot.lane.b32.xlu0 %v13296_v36, %s13849_s22  ;;  %v2780_v51 = vpop.f32.mrb[170].mxu0  ;;  %v13301_v3 = vpack.i.bf16 %v18780_v37, %v16053_v20  ;;  %v3762_v11 = vadd.f32 %v15250_v57, %v2778_v40 }
 0x526   :  { %v2782_v46 = vpop.f32.mrb[171].mxu0  ;;  %v4037_v47 = vmax.f32 %v3761_v38, 0.0  ;;  %v3764_v4 = vadd.f32 %v15242_v6, %v2780_v51 }
 0x527   :  { %v13193_v41 = vpop.permute.xlu1 %13192  ;;  %13302 = vrot.lane.b32.xlu1 %v13301_v3, %s13849_s22  ;;  %v4038_v22 = vmax.f32 %v3762_v11, 0.0  ;;  %v3765_v60 = vadd.f32 %v15250_v57, %v2782_v46 }
 0x528   :  { %v13195_v62 = vunpack.i.h.bf16 %v13193_v41  ;;  %v13194_v34 = vunpack.i.l.bf16 %v13193_v41  ;;  %v4040_v58 = vmax.f32 %v3764_v4, 0.0 }
 0x529   :  { %v13198_v61 = vpop.permute.xlu0 %13197  ;;  %13307 = vrot.lane.b32.xlu0 %v13306_v8, %s13849_s22  ;;  %v18783_v8 = vld [vmem:[#allocation8_spill] sm:$0xff]  ;;  %v4041_v9 = vmax.f32 %v3765_v60, 0.0 }
 0x52a   :  { %v4667_v54 = vsel %vm4613_vm1, %v13194_v34, %v13195_v62  ;;  %v13200_v43 = vunpack.i.h.bf16 %v13198_v61  ;;  %v13199_v10 = vunpack.i.l.bf16 %v13198_v61  ;;  %v16068_v15 = vmax.f32 %v18728_v28, %v13195_v62 }
 0x52b   :  { %v13203_v52 = vpop.permute.xlu1 %13202  ;;  %v2786_v44 = vpop.f32.mrb[172].mxu0  ;;  %v4923_v46 = vmax.f32 %v15758_v16, %v4667_v54  ;;  %v18784_v16 = vld [vmem:[#allocation35_spill] sm:$0xff] }
 0x52c   :  { %18781 = vst [vmem:[#allocation49_spill] sm:$0xff] %v16068_v15  ;;  %v16071_v63 = vmax.f32 %v18730_v2, %v13200_v43  ;;  %v4669_v36 = vsel %vm4613_vm1, %v13199_v10, %v13200_v43  ;;  %v13205_v40 = vunpack.i.h.bf16 %v13203_v52  ;;  %v13204_v3 = vunpack.i.l.bf16 %v13203_v52  ;;  %v2788_v38 = vpop.f32.mrb[173].mxu0  ;;  %v18794_v15 = vld [vmem:[#allocation26_spill] sm:$0xff] }
 0x52d   :  { %v3767_v41 = vadd.f32 %v15242_v6, %v2786_v44  ;;  %v3768_v11 = vadd.f32 %v15250_v57, %v2788_v38  ;;  %v2790_v51 = vpop.f32.mrb[174].mxu0  ;;  %v4926_v28 = vmax.f32 %v18783_v8, %v4669_v36  ;;  %v18785_v36 = vld [vmem:[#allocation36_spill] sm:$0xff] }
 0x52e   :  { %18782 = vst [vmem:[#allocation50_spill] sm:$0xff] %v16071_v63  ;;  %v4666_v2 = vsel %vm4613_vm1, %v13204_v3, %v13194_v34  ;;  %v4668_v61 = vsel %vm4613_vm1, %v13205_v40, %v13199_v10  ;;  %v3770_v43 = vadd.f32 %v15242_v6, %v2790_v51  ;;  %v2792_v52 = vpop.f32.mrb[175].mxu0  ;;  %v18795_v63 = vld [vmem:[#allocation9_spill] sm:$0xff] }
 0x52f   :  { %v4043_v0 = vmax.f32 %v3767_v41, 0.0  ;;  %v4044_v31 = vmax.f32 %v3768_v11, 0.0  ;;  %v3771_v44 = vadd.f32 %v15250_v57, %v2792_v52  ;;  %v5056_v38 = vpack.c.bf16 %v4926_v28, %v4923_v46  ;;  %v18789_v11 = vld [vmem:[#allocation53_spill] sm:$0xff]  ;;  %v18791_v28 = vld [vmem:[#allocation54_spill] sm:$0xff] }
 0x530   :  { %v4046_v5 = vmax.f32 %v3770_v43, 0.0  ;;  %v4922_v54 = vmax.f32 %v18784_v16, %v4666_v2  ;;  %v4925_v8 = vmax.f32 %v18785_v36, %v4668_v61  ;;  %v18792_v36 = vld [vmem:[#allocation39_spill] sm:$0xff] }
 0x531   :  { %v4047_v62 = vmax.f32 %v3771_v44, 0.0  ;;  %5492 = vmatprep.mubr.bf16.mxu1 %v5056_v38  ;;  %v16086_v34 = vmax.f32 %v4038_v22, %v4044_v31  ;;  %v16088_v10 = vmax.f32 %v4037_v47, %v4043_v0 }
 0x532   :  { %v5055_v40 = vpack.c.bf16 %v4925_v8, %v4922_v54  ;;  %v16090_v3 = vmax.f32 %v4040_v58, %v4046_v5 }
 0x533   :  { %18786 = vst [vmem:[#allocation51_spill] sm:$0xff] %v16086_v34  ;;  %18787 = vst [vmem:[#allocation52_spill] sm:$0xff] %v16088_v10  ;;  %v2796_v41 = vpop.f32.mrb[176].mxu0  ;;  %v13311_v51 = vpack.i.bf16 %v18789_v11, %v16086_v34  ;;  %v16094_v4 = vmax.f32 %v4041_v9, %v4047_v62 }
 0x534   :  { %18788 = vst [vmem:[#allocation8_spill] sm:$0xff] %v16090_v3  ;;  %5493 = vmatmul.mubr.bf16.gmra.mrb[144].mxu1 %v5055_v40  ;;  %v2798_v46 = vpop.f32.mrb[177].mxu0  ;;  %v3773_v0 = vadd.f32 %v15242_v6, %v2796_v41  ;;  %v13321_v9 = vpack.i.bf16 %v16090_v3, %v16088_v10 }
 0x535   :  { %18790 = vst [vmem:[#allocation35_spill] sm:$0xff] %v16094_v4  ;;  %13312 = vrot.lane.b32.xlu1 %v13311_v51, %s13849_s22  ;;  %v2800_v60 = vpop.f32.mrb[178].mxu0  ;;  %v13316_v31 = vpack.i.bf16 %v18791_v28, %v16094_v4  ;;  %v3774_v58 = vadd.f32 %v15250_v57, %v2798_v46  ;;  %v18793_v51 = vld [vmem:[#allocation40_spill] sm:$0xff] }
 0x536   :  { %v2802_v47 = vpop.f32.mrb[179].mxu0  ;;  %v4049_v61 = vmax.f32 %v3773_v0, 0.0  ;;  %v3776_v16 = vadd.f32 %v15242_v6, %v2800_v60 }
 0x537   :  { %v13208_v5 = vpop.permute.xlu0 %13207  ;;  %13317 = vrot.lane.b32.xlu0 %v13316_v31, %s13849_s22  ;;  %v4050_v38 = vmax.f32 %v3774_v58, 0.0  ;;  %v3777_v54 = vadd.f32 %v15250_v57, %v2802_v47 }
 0x538   :  { %v13210_v22 = vunpack.i.h.bf16 %v13208_v5  ;;  %v13209_v62 = vunpack.i.l.bf16 %v13208_v5  ;;  %v4052_v34 = vmax.f32 %v3776_v16, 0.0 }
 0x539   :  { %v13213_v2 = vpop.permute.xlu1 %13212  ;;  %13322 = vrot.lane.b32.xlu1 %v13321_v9, %s13849_s22  ;;  %v4053_v11 = vmax.f32 %v3777_v54, 0.0 }
 0x53a   :  { %v4671_v43 = vsel %vm4613_vm1, %v13209_v62, %v13210_v22  ;;  %v13215_v52 = vunpack.i.h.bf16 %v13213_v2  ;;  %v13214_v44 = vunpack.i.l.bf16 %v13213_v2  ;;  %v16109_v8 = vmax.f32 %v18792_v36, %v13210_v22 }
 0x53b   :  { %v13218_v40 = vpop.permute.xlu0 %13217  ;;  %v2806_v41 = vpop.f32.mrb[180].mxu0  ;;  %v4929_v47 = vmax.f32 %v18794_v15, %v4671_v43  ;;  %v18796_v15 = vld [vmem:[#allocation19_spill] sm:$0xff] }
 0x53c   :  { %v16112_v46 = vmax.f32 %v18793_v51, %v13215_v52  ;;  %v4673_v31 = vsel %vm4613_vm1, %v13214_v44, %v13215_v52  ;;  %v13220_v0 = vunpack.i.h.bf16 %v13218_v40  ;;  %v13219_v5 = vunpack.i.l.bf16 %v13218_v40  ;;  %v2808_v9 = vpop.f32.mrb[181].mxu0 }
 0x53d   :  { %v3779_v2 = vadd.f32 %v15242_v6, %v2806_v41  ;;  %v3780_v58 = vadd.f32 %v15250_v57, %v2808_v9  ;;  %v2810_v60 = vpop.f32.mrb[182].mxu0  ;;  %v4932_v22 = vmax.f32 %v18795_v63, %v4673_v31  ;;  %v18797_v63 = vld [vmem:[#allocation11_spill] sm:$0xff] }
 0x53e   :  { %v4670_v51 = vsel %vm4613_vm1, %v13219_v5, %v13209_v62  ;;  %v4672_v3 = vsel %vm4613_vm1, %v13220_v0, %v13214_v44  ;;  %v3782_v52 = vadd.f32 %v15242_v6, %v2810_v60  ;;  %v2812_v40 = vpop.f32.mrb[183].mxu0  ;;  %v18798_v5 = vld [vmem:[#allocation55_spill] sm:$0xff] }
 0x53f   :  { %v4055_v10 = vmax.f32 %v3779_v2, 0.0  ;;  %v4056_v4 = vmax.f32 %v3780_v58, 0.0  ;;  %v3783_v41 = vadd.f32 %v15250_v57, %v2812_v40  ;;  %v5059_v9 = vpack.c.bf16 %v4932_v22, %v4929_v47 }
 0x540   :  { %v4058_v28 = vmax.f32 %v3782_v52, 0.0  ;;  %v4928_v43 = vmax.f32 %v18796_v15, %v4670_v51  ;;  %v4931_v31 = vmax.f32 %v18797_v63, %v4672_v3  ;;  %v18799_v3 = vld [vmem:[#allocation56_spill] sm:$0xff] }
 0x541   :  { %v4059_v36 = vmax.f32 %v3783_v41, 0.0  ;;  %5502 = vmatprep.mubr.bf16.mxu1 %v5059_v9  ;;  %v16127_v62 = vmax.f32 %v4050_v38, %v4056_v4  ;;  %v16129_v44 = vmax.f32 %v4049_v61, %v4055_v10 }
 0x542   :  { %v5058_v6 = vpack.c.bf16 %v4931_v31, %v4928_v43  ;;  %v16131_v0 = vmax.f32 %v4052_v34, %v4058_v28 }
 0x543   :  { %v13326_v57 = vpack.i.bf16 %v18798_v5, %v16127_v62  ;;  %v16135_v2 = vmax.f32 %v4053_v11, %v4059_v36 }
 0x544   :  { %5503 = vmatmul.mubr.bf16.gmra.mrb[148].mxu1 %v5058_v6  ;;  %v13336_v10 = vpack.i.bf16 %v16131_v0, %v16129_v44 }
 0x545   :  { %13327 = vrot.lane.b32.xlu0 %v13326_v57, %s13849_s22  ;;  %v13331_v16 = vpack.i.bf16 %v18799_v3, %v16135_v2 }
 0x547   :  { %v13223_v54 = vpop.permute.xlu1 %13222  ;;  %13332 = vrot.lane.b32.xlu1 %v13331_v16, %s13849_s22 }
 0x548   :  { %v13225_v4 = vunpack.i.h.bf16 %v13223_v54  ;;  %v13224_v34 = vunpack.i.l.bf16 %v13223_v54 }
 0x549   :  { %v13228_v28 = vpop.permute.xlu0 %13227  ;;  %13337 = vrot.lane.b32.xlu0 %v13336_v10, %s13849_s22 }
 0x54a   :  { %v4675_v11 = vsel %vm4613_vm1, %v13224_v34, %v13225_v4  ;;  %v13230_v61 = vunpack.i.h.bf16 %v13228_v28  ;;  %v13229_v38 = vunpack.i.l.bf16 %v13228_v28  ;;  %v16146_v58 = vmax.f32 %v18753_v23, %v13225_v4 }
 0x54b   :  { %v13233_v60 = vpop.permute.xlu1 %13232  ;;  %v4935_v52 = vmax.f32 %v15840_v56, %v4675_v11 }
 0x54c   :  { %v16149_v47 = vmax.f32 %v18754_v19, %v13230_v61  ;;  %v4677_v22 = vsel %vm4613_vm1, %v13229_v38, %v13230_v61  ;;  %v13235_v36 = vunpack.i.h.bf16 %v13233_v60  ;;  %v13234_v51 = vunpack.i.l.bf16 %v13233_v60  ;;  %v18800_v19 = vld [vmem:[#allocation28_spill] sm:$0xff] }
 0x54d   :  { %v4938_v40 = vmax.f32 %v15848_v32, %v4677_v22 }
 0x54e   :  { %v5063_v41 = vpack.c.bf16 %v16149_v47, %v16146_v58  ;;  %v4674_v9 = vsel %vm4613_vm1, %v13234_v51, %v13224_v34  ;;  %v4676_v23 = vsel %vm4613_vm1, %v13235_v36, %v13229_v38 }
 0x54f   :  { %v5062_v15 = vpack.c.bf16 %v4938_v40, %v4935_v52  ;;  %v4934_v43 = vmax.f32 %v15842_v53, %v4674_v9  ;;  %v4937_v63 = vmax.f32 %v18800_v19, %v4676_v23 }
 0x551   :  { %5512 = vmatprep.mubr.bf16.mxu1 %v5062_v15  ;;  %v5061_v31 = vpack.c.bf16 %v4937_v63, %v4934_v43 }
 0x553   :  { %5513 = vmatmul.mubr.bf16.gmra.mrb[152].mxu1 %v5061_v31 }
 0x557   :  { %v13238_v6 = vpop.permute.xlu0 %13237 }
 0x558   :  { %v13240_v57 = vunpack.i.h.bf16 %v13238_v6  ;;  %v13239_v56 = vunpack.i.l.bf16 %v13238_v6 }
 0x55a   :  { %v13243_v16 = vpop.permute.xlu1 %13242  ;;  %v4679_v32 = vsel %vm4613_vm1, %v13239_v56, %v13240_v57  ;;  %v16162_v11 = vmax.f32 %v18759_v17, %v13240_v57 }
 0x55b   :  { %v13245_v54 = vunpack.i.h.bf16 %v13243_v16  ;;  %v13244_v10 = vunpack.i.l.bf16 %v13243_v16  ;;  %v13248_v4 = vpop.permute.xlu0 %13247  ;;  %v4941_v22 = vmax.f32 %v15881_v1, %v4679_v32 }
 0x55c   :  { %v13250_v34 = vunpack.i.h.bf16 %v13248_v4  ;;  %v13249_v28 = vunpack.i.l.bf16 %v13248_v4  ;;  %v18801_v4 = vld [vmem:[#allocation41_spill] sm:$0xff] }
 0x55d   :  { %v16165_v53 = vmax.f32 %v18760_v30, %v13245_v54  ;;  %v4681_v61 = vsel %vm4613_vm1, %v13244_v10, %v13245_v54 }
 0x55e   :  { %v4678_v38 = vsel %vm4613_vm1, %v13249_v28, %v13239_v56  ;;  %v4680_v60 = vsel %vm4613_vm1, %v13250_v34, %v13244_v10  ;;  %v4944_v36 = vmax.f32 %v15889_v45, %v4681_v61 }
 0x55f   :  { %v5066_v51 = vpack.c.bf16 %v16165_v53, %v16162_v11  ;;  %v4940_v52 = vmax.f32 %v15883_v59, %v4678_v38  ;;  %v4943_v17 = vmax.f32 %v15885_v35, %v4680_v60  ;;  %v13600_v38 = vld [vmem:[%s18444_s4 + $0xdc] ss:$12 sps:$4 sm:$0xff]  }
 0x560   :  { %v5065_v40 = vpack.c.bf16 %v4944_v36, %v4941_v22  ;;  %6188 = vmatprep.subr.bf16.mxu1 %v13600_v38 }
 0x561   :  { %v5064_v30 = vpack.c.bf16 %v4943_v17, %v4940_v52 }
 0x562   :  { %5522 = vmatprep.mubr.bf16.mxu1 %v5065_v40 }
 0x563   :  { %5523 = vmatmul.mubr.bf16.gmra.mrb[156].mxu1 %v5064_v30 }
 0x567   :  { %v13253_v9 = vpop.permute.xlu1 %13252 }
 0x568   :  { %v13255_v23 = vunpack.i.h.bf16 %v13253_v9  ;;  %v13254_v15 = vunpack.i.l.bf16 %v13253_v9 }
 0x56a   :  { %v13258_v43 = vpop.permute.xlu0 %13257  ;;  %v4683_v19 = vsel %vm4613_vm1, %v13254_v15, %v13255_v23  ;;  %v16178_v57 = vmax.f32 %v18765_v49, %v13255_v23  ;;  %v18802_v49 = vld [vmem:[#allocation42_spill] sm:$0xff] }
 0x56b   :  { %v13260_v1 = vunpack.i.h.bf16 %v13258_v43  ;;  %v13259_v63 = vunpack.i.l.bf16 %v13258_v43  ;;  %v13263_v45 = vpop.permute.xlu1 %13262  ;;  %v4947_v32 = vmax.f32 %v15922_v48, %v4683_v19 }
 0x56c   :  { %v13265_v31 = vunpack.i.h.bf16 %v13263_v45  ;;  %v13264_v6 = vunpack.i.l.bf16 %v13263_v45 }
 0x56d   :  { %v16181_v59 = vmax.f32 %v18766_v29, %v13260_v1  ;;  %v4685_v35 = vsel %vm4613_vm1, %v13259_v63, %v13260_v1 }
 0x56e   :  { %v4682_v56 = vsel %vm4613_vm1, %v13264_v6, %v13254_v15  ;;  %v4684_v16 = vsel %vm4613_vm1, %v13265_v31, %v13259_v63  ;;  %v4950_v54 = vmax.f32 %v15930_v42, %v4685_v35 }
 0x56f   :  { %v5069_v10 = vpack.c.bf16 %v16181_v59, %v16178_v57  ;;  %v4946_v34 = vmax.f32 %v18801_v4, %v4682_v56  ;;  %v4949_v28 = vmax.f32 %v18802_v49, %v4684_v16 }
 0x570   :  { %v5068_v61 = vpack.c.bf16 %v4950_v54, %v4947_v32 }
 0x571   :  { %v5067_v29 = vpack.c.bf16 %v4949_v28, %v4946_v34 }
 0x572   :  { %5532 = vmatprep.mubr.bf16.mxu1 %v5068_v61 }
 0x573   :  { %5533 = vmatmul.mubr.bf16.gmra.mrb[160].mxu1 %v5067_v29 }
 0x577   :  { %v13268_v60 = vpop.permute.xlu0 %13267 }
 0x578   :  { %v13270_v48 = vunpack.i.h.bf16 %v13268_v60  ;;  %v13269_v22 = vunpack.i.l.bf16 %v13268_v60 }
 0x579   :  { %v13273_v42 = vpop.permute.xlu1 %13272 }
 0x57a   :  { %v4687_v36 = vsel %vm4613_vm1, %v13269_v22, %v13270_v48  ;;  %v13275_v52 = vunpack.i.h.bf16 %v13273_v42  ;;  %v13274_v17 = vunpack.i.l.bf16 %v13273_v42  ;;  %v16197_v40 = vmax.f32 %v18769_v25, %v13270_v48 }
 0x57b   :  { %v13278_v30 = vpop.permute.xlu0 %13277  ;;  %v4953_v19 = vmax.f32 %v15963_v14, %v4687_v36 }
 0x57c   :  { %v16200_v9 = vmax.f32 %v18770_v24, %v13275_v52  ;;  %v4689_v23 = vsel %vm4613_vm1, %v13274_v17, %v13275_v52  ;;  %v13280_v15 = vunpack.i.h.bf16 %v13278_v30  ;;  %v13279_v43 = vunpack.i.l.bf16 %v13278_v30 }
 0x57d   :  { %v4956_v1 = vmax.f32 %v15971_v21, %v4689_v23 }
 0x57e   :  { %v5072_v63 = vpack.c.bf16 %v16200_v9, %v16197_v40  ;;  %v4686_v45 = vsel %vm4613_vm1, %v13279_v43, %v13269_v22  ;;  %v4688_v25 = vsel %vm4613_vm1, %v13280_v15, %v13274_v17  ;;  %v13634_v9 = vld [vmem:[%s18444_s4 + $0xe0] ss:$12 sps:$4 sm:$0xff]  }
 0x57f   :  { %v5071_v31 = vpack.c.bf16 %v4956_v1, %v4953_v19  ;;  %v4952_v6 = vmax.f32 %v15965_v27, %v4686_v45  ;;  %v4955_v24 = vmax.f32 %v15967_v39, %v4688_v25 }
 0x581   :  { %5542 = vmatprep.mubr.bf16.mxu1 %v5071_v31  ;;  %v5070_v35 = vpack.c.bf16 %v4955_v24, %v4952_v6 }
 0x583   :  { %5543 = vmatmul.mubr.bf16.gmra.mrb[164].mxu1 %v5070_v35 }
 0x587   :  { %v13283_v56 = vpop.permute.xlu1 %13282 }
 0x588   :  { %v13285_v16 = vunpack.i.h.bf16 %v13283_v56  ;;  %v13284_v14 = vunpack.i.l.bf16 %v13283_v56  ;;  %v18803_v56 = vld [vmem:[#allocation47_spill] sm:$0xff] }
 0x589   :  { %v13288_v32 = vpop.permute.xlu0 %13287 }
 0x58a   :  { %v4691_v21 = vsel %vm4613_vm1, %v13284_v14, %v13285_v16  ;;  %v13290_v54 = vunpack.i.h.bf16 %v13288_v32  ;;  %v13289_v4 = vunpack.i.l.bf16 %v13288_v32  ;;  %v16213_v34 = vmax.f32 %v18773_v12, %v13285_v16 }
 0x58b   :  { %v13293_v49 = vpop.permute.xlu1 %13292  ;;  %v4959_v29 = vmax.f32 %v16004_v13, %v4691_v21 }
 0x58c   :  { %v16216_v28 = vmax.f32 %v18774_v18, %v13290_v54  ;;  %v4693_v27 = vsel %vm4613_vm1, %v13289_v4, %v13290_v54  ;;  %v13295_v39 = vunpack.i.h.bf16 %v13293_v49  ;;  %v13294_v61 = vunpack.i.l.bf16 %v13293_v49 }
 0x58d   :  { %v4962_v38 = vmax.f32 %v16012_v33, %v4693_v27 }
 0x58e   :  { %v5075_v60 = vpack.c.bf16 %v16216_v28, %v16213_v34  ;;  %v4690_v48 = vsel %vm4613_vm1, %v13294_v61, %v13284_v14  ;;  %v4692_v12 = vsel %vm4613_vm1, %v13295_v39, %v13289_v4  ;;  %v18805_v39 = vld [vmem:[#allocation53_spill] sm:$0xff]  ;;  %v13635_v28 = vld [vmem:[%s18444_s4 + $0xf8] ss:$12 sps:$4 sm:$0xff]  }
 0x58f   :  { %v5074_v22 = vpack.c.bf16 %v4962_v38, %v4959_v29  ;;  %v4958_v42 = vmax.f32 %v16006_v50, %v4690_v48  ;;  %v4961_v18 = vmax.f32 %v16008_v55, %v4692_v12  ;;  %v18806_v38 = vld [vmem:[#allocation54_spill] sm:$0xff] }
 0x591   :  { %5552 = vmatprep.mubr.bf16.mxu1 %v5074_v22  ;;  %v5073_v36 = vpack.c.bf16 %v4961_v18, %v4958_v42  ;;  %v18807_v18 = vld [vmem:[#allocation51_spill] sm:$0xff] }
 0x593   :  { %5553 = vmatmul.mubr.bf16.gmra.mrb[168].mxu1 %v5073_v36 }
 0x597   :  { %v13298_v52 = vpop.permute.xlu0 %13297 }
 0x598   :  { %v13300_v17 = vunpack.i.h.bf16 %v13298_v52  ;;  %v13299_v13 = vunpack.i.l.bf16 %v13298_v52  ;;  %v18808_v52 = vld [vmem:[#allocation35_spill] sm:$0xff] }
 0x599   :  { %v13303_v30 = vpop.permute.xlu1 %13302 }
 0x59a   :  { %v4695_v33 = vsel %vm4613_vm1, %v13299_v13, %v13300_v17  ;;  %v13305_v23 = vunpack.i.h.bf16 %v13303_v30  ;;  %v13304_v15 = vunpack.i.l.bf16 %v13303_v30  ;;  %v16229_v43 = vmax.f32 %v18779_v7, %v13300_v17 }
 0x59b   :  { %v13308_v19 = vpop.permute.xlu0 %13307  ;;  %v4965_v25 = vmax.f32 %v16045_v26, %v4695_v33 }
 0x59c   :  { %v16232_v1 = vmax.f32 %v18780_v37, %v13305_v23  ;;  %v4697_v50 = vsel %vm4613_vm1, %v13304_v15, %v13305_v23  ;;  %v13310_v55 = vunpack.i.h.bf16 %v13308_v19  ;;  %v13309_v45 = vunpack.i.l.bf16 %v13308_v19  ;;  %v18804_v37 = vld [vmem:[#allocation48_spill] sm:$0xff] }
 0x59d   :  { %v4968_v31 = vmax.f32 %v16053_v20, %v4697_v50  ;;  %v18810_v50 = vld [vmem:[#allocation8_spill] sm:$0xff] }
 0x59e   :  { %v5078_v6 = vpack.c.bf16 %v16232_v1, %v16229_v43  ;;  %v4694_v24 = vsel %vm4613_vm1, %v13309_v45, %v13299_v13  ;;  %v4696_v7 = vsel %vm4613_vm1, %v13310_v55, %v13304_v15  ;;  %v18809_v15 = vld [vmem:[#allocation52_spill] sm:$0xff] }
 0x59f   :  { %v5077_v35 = vpack.c.bf16 %v4968_v31, %v4965_v25  ;;  %v4964_v16 = vmax.f32 %v18803_v56, %v4694_v24  ;;  %v4967_v14 = vmax.f32 %v18804_v37, %v4696_v7 }
 0x5a1   :  { %5562 = vmatprep.mubr.bf16.mxu1 %v5077_v35  ;;  %v5076_v32 = vpack.c.bf16 %v4967_v14, %v4964_v16 }
 0x5a3   :  { %5563 = vmatmul.mubr.bf16.gmra.mrb[172].mxu1 %v5076_v32 }
 0x5a7   :  { %v13313_v21 = vpop.permute.xlu1 %13312 }
 0x5a8   :  { %v13315_v54 = vunpack.i.h.bf16 %v13313_v21  ;;  %v13314_v26 = vunpack.i.l.bf16 %v13313_v21 }
 0x5a9   :  { %v13318_v4 = vpop.permute.xlu0 %13317 }
 0x5aa   :  { %v4699_v20 = vsel %vm4613_vm1, %v13314_v26, %v13315_v54  ;;  %v13320_v49 = vunpack.i.h.bf16 %v13318_v4  ;;  %v13319_v27 = vunpack.i.l.bf16 %v13318_v4  ;;  %v16245_v61 = vmax.f32 %v18805_v39, %v13315_v54 }
 0x5ab   :  { %v13323_v29 = vpop.permute.xlu1 %13322  ;;  %v4971_v36 = vmax.f32 %v18807_v18, %v4699_v20 }
 0x5ac   :  { %v16248_v48 = vmax.f32 %v18806_v38, %v13320_v49  ;;  %v4701_v12 = vsel %vm4613_vm1, %v13319_v27, %v13320_v49  ;;  %v13325_v22 = vunpack.i.h.bf16 %v13323_v29  ;;  %v13324_v42 = vunpack.i.l.bf16 %v13323_v29 }
 0x5ad   :  { %v4974_v17 = vmax.f32 %v18808_v52, %v4701_v12  ;;  %v18811_v12 = vmov 0   ;;  %v13609_v52 = vld [vmem:[%s18444_s4 + $0x124] ss:$12 sps:$4 sm:$0xff]  }
 0x5ae   :  { %v5081_v13 = vpack.c.bf16 %v16248_v48, %v16245_v61  ;;  %v4698_v30 = vsel %vm4613_vm1, %v13324_v42, %v13314_v26  ;;  %v4700_v33 = vsel %vm4613_vm1, %v13325_v22, %v13319_v27  ;;  %v18812_v22 = vld [vmem:[#allocation23_spill] sm:$0xff]  ;;  %v18813_v42 = vld [vmem:[#allocation13_spill] sm:$0xff] }
 0x5af   :  { %v5080_v23 = vpack.c.bf16 %v4974_v17, %v4971_v36  ;;  %v4970_v19 = vmax.f32 %v18809_v15, %v4698_v30  ;;  %v4973_v55 = vmax.f32 %v18810_v50, %v4700_v33  ;;  %v18814_v18 = vpack.c.bf16 %v18812_v22, %v18813_v42  ;;  %v13604_v36 = vld [vmem:[%s18444_s4 + $0x108] ss:$12 sps:$4 sm:$0xff]   ;;  %v18816_v30 = vld [vmem:[#allocation15_spill] sm:$0xff] }
 0x5b0   :  { %v18815_v17 = vld [vmem:[#allocation25_spill] sm:$0xff]  ;;  %v13612_v15 = vld [vmem:[%s18444_s4 + $0x13c] ss:$12 sps:$4 sm:$0xff]   ;;  %v13630_v22 = vld [vmem:[%s18444_s4 + $0x198] ss:$12 sps:$4 sm:$0x1f]  }
 0x5b1   :  { %5572 = vmatprep.mubr.bf16.mxu1 %v5080_v23  ;;  %v5079_v45 = vpack.c.bf16 %v4973_v55, %v4970_v19  ;;  %v18817_v33 = vpack.c.bf16 %v18815_v17, %v18816_v30  ;;  %v13607_v23 = vld [vmem:[%s18444_s4 + $0x120] ss:$12 sps:$4 sm:$0xff]   ;;  %v13610_v19 = vld [vmem:[%s18444_s4 + $0x138] ss:$12 sps:$4 sm:$0xff]   ;;  %v18818_v50 = vld [vmem:[#allocation29_spill] sm:$0xff]  ;;  %v6180_v42 = vsel %vm6178_vm4, %v13630_v22, 0 }
 0x5b2   :  { %v18819_v55 = vld [vmem:[#allocation16_spill] sm:$0xff]  ;;  %v18836_v30 = vld [vmem:[#allocation22_spill] sm:$0xff] }
 0x5b3   :  { %5573 = vmatmul.mubr.bf16.gmra.mrb[176].mxu1 %v5079_v45  ;;  %v18820_v45 = vpack.c.bf16 %v18818_v50, %v18819_v55  ;;  %v13626_v17 = vld [vmem:[%s18444_s4 + $0x68] ss:$12 sps:$4 sm:$0xff]  }
 0x5b4   :  { %v18839_v50 = vld [vmem:[#allocation21_spill] sm:$0xff]  ;;  %v18840_v55 = vld [vmem:[#allocation20_spill] sm:$0xff] }
 0x5b7   :  { %v13328_v25 = vpop.permute.xlu0 %13327 }
 0x5b8   :  { %v13330_v31 = vunpack.i.h.bf16 %v13328_v25  ;;  %v13329_v24 = vunpack.i.l.bf16 %v13328_v25  ;;  %v13615_v25 = vld [vmem:[%s18444_s4 + $0x154] ss:$12 sps:$4 sm:$0xff]  }
 0x5b9   :  { %v13333_v7 = vpop.permute.xlu1 %13332 }
 0x5ba   :  { %v4703_v35 = vsel %vm4613_vm1, %v13329_v24, %v13330_v31  ;;  %v13335_v56 = vunpack.i.h.bf16 %v13333_v7  ;;  %v13334_v16 = vunpack.i.l.bf16 %v13333_v7  ;;  %v16261_v37 = vmax.f32 %v18798_v5, %v13330_v31  ;;  %v13613_v31 = vld [vmem:[%s18444_s4 + $0x150] ss:$12 sps:$4 sm:$0xff]  }
 0x5bb   :  { %v13338_v14 = vpop.permute.xlu0 %13337  ;;  %v4977_v4 = vmax.f32 %v16127_v62, %v4703_v35  ;;  %v13598_v62 = vld [vmem:[%s18444_s4 + $0xd8] ss:$12 sps:$4 sm:$0xff]  }
 0x5bc   :  { %v16264_v32 = vmax.f32 %v18799_v3, %v13335_v56  ;;  %v4705_v21 = vsel %vm4613_vm1, %v13334_v16, %v13335_v56  ;;  %v13340_v54 = vunpack.i.h.bf16 %v13338_v14  ;;  %v13339_v26 = vunpack.i.l.bf16 %v13338_v14  ;;  %v18822_v7 = vld [vmem:[#allocation30_spill] sm:$0xff]  ;;  %v18824_v56 = vld [vmem:[#allocation32_spill] sm:$0xff] }
 0x5bd   :  { %v4980_v20 = vmax.f32 %v16135_v2, %v4705_v21  ;;  %v13603_v2 = vld [vmem:[%s18444_s4 + $0xf4] ss:$12 sps:$4 sm:$0xff]  }
 0x5be   :  { %v5084_v49 = vpack.c.bf16 %v16264_v32, %v16261_v37  ;;  %v4702_v27 = vsel %vm4613_vm1, %v13339_v26, %v13329_v24  ;;  %v4704_v5 = vsel %vm4613_vm1, %v13340_v54, %v13334_v16  ;;  %v18821_v24 = vld [vmem:[#allocation17_spill] sm:$0xff]  ;;  %v18825_v16 = vld [vmem:[#allocation31_spill] sm:$0xff]  ;;  %v13618_v54 = vld [vmem:[%s18444_s4 + $0x16c] ss:$12 sps:$4 sm:$0xff]  }
 0x5bf   :  { %v5083_v39 = vpack.c.bf16 %v4980_v20, %v4977_v4  ;;  %v4976_v29 = vmax.f32 %v16129_v44, %v4702_v27  ;;  %v4979_v3 = vmax.f32 %v16131_v0, %v4704_v5  ;;  %v13601_v44 = vld [vmem:[%s18444_s4 + $0xf0] ss:$12 sps:$4 sm:$0xff]   ;;  %v13606_v0 = vld [vmem:[%s18444_s4 + $0x10c] ss:$12 sps:$4 sm:$0xff]   ;;  %v18823_v35 = vpack.c.bf16 %v18821_v24, %v18822_v7  ;;  %v13616_v21 = vld [vmem:[%s18444_s4 + $0x168] ss:$12 sps:$4 sm:$0xff]  }
 0x5c0   :  { %v18826_v14 = vpack.c.bf16 %v18824_v56, %v18825_v16  ;;  %v18827_v26 = vld [vmem:[#allocation34_spill] sm:$0xff]  ;;  %v18828_v4 = vld [vmem:[#allocation33_spill] sm:$0xff]  ;;  %v18845_v56 = vld [vmem:[#allocation44_spill] sm:$0xff] }
 0x5c1   :  { %5582 = vmatprep.mubr.bf16.mxu1 %v5083_v39  ;;  %v5082_v38 = vpack.c.bf16 %v4979_v3, %v4976_v29  ;;  %v18829_v20 = vpack.c.bf16 %v18827_v26, %v18828_v4  ;;  %v18830_v27 = vld [vmem:[#allocation38_spill] sm:$0xff]  ;;  %v18831_v5 = vld [vmem:[#allocation37_spill] sm:$0xff]  ;;  %v13620_v3 = vld [vmem:[%s18444_s4 + $0x180] ss:$12 sps:$4 sm:$0xff]  }
 0x5c2   :  { %v18832_v39 = vpack.c.bf16 %v18830_v27, %v18831_v5  ;;  %v13619_v29 = vld [vmem:[%s18444_s4 + $0x8] ss:$12 sps:$4 sm:$0xff]   ;;  %v13632_v7 = vld [vmem:[%s18444_s4 + $0xb0] ss:$12 sps:$4 sm:$0xff]   ;;  %v18846_v16 = vld [vmem:[#allocation43_spill] sm:$0xff] }
 0x5c3   :  { %5583 = vmatmul.mubr.bf16.gmra.mrb[180].mxu1 %v5082_v38  ;;  %v13622_v38 = vld [vmem:[%s18444_s4 + $0x184] ss:$12 sps:$4 sm:$0xff]   ;;  %7019 = vmatpush1.bf16.msra.mxu0 %v13619_v29  ;;  %v13644_v37 = vld [vmem:[%s18444_s4 + $0x1e8] ss:$12 sps:$4 sm:$0xff]   ;;  %v13645_v29 = vld [vmem:[%s18444_s4 + $0x200] ss:$12 sps:$4 sm:$0xff]  }
 0x5c4   :  { %5625 = vmatprep.mubr.bf16.mxu1 %v18811_v12  ;;  %7020 = vmatprep.subr.bf16.mxu0 %v18811_v12  ;;  %v18849_v26 = vld [vmem:[#allocation45_spill] sm:$0xff] }
 0x5c5   :  { %v18852_v27 = vld [vmem:[#allocation49_spill] sm:$0xff] }
 0x5cb   :  { %10728 = vmatmul.mubr.msk.bf16.vlgmr.msra.gmra.mrb[92].mxu1 %vm5253_vm3, %v18814_v18  ;;  %v13624_v18 = vld [vmem:[%s18444_s4 + $0x38] ss:$12 sps:$4 sm:$0xff]  }
 0x5cc   :  { %5635 = vmatprep.mubr.bf16.mxu1 %v18811_v12  ;;  %6189 = vmatpush1.bf16.msra.mxu1 %v13598_v62  ;;  %v13623_v62 = vld [vmem:[%s18444_s4 + $0x20] ss:$12 sps:$4 sm:$0xff]  }
 0x5cd   :  { %6190 = vmatprep.subr.bf16.mxu1 %v13603_v2  ;;  %v13628_v2 = vld [vmem:[%s18444_s4 + $0x19c] ss:$12 sps:$4 sm:$0x1f]   ;;  %7021 = vmatpush1.bf16.msra.mxu0 %v13623_v62 }
 0x5ce   :  { %7022 = vmatprep.subr.bf16.mxu0 %v18811_v12 }
 0x5d0   :  { %6191 = vmatpush1.bf16.msra.mxu1 %v13601_v44  ;;  %v18833_v44 = vld [vmem:[#allocation27_spill] sm:$0xff] }
 0x5d1   :  { %6192 = vmatprep.subr.bf16.mxu1 %v13606_v0  ;;  %v18834_v0 = vld [vmem:[#allocation10_spill] sm:$0xff]  ;;  %7023 = vmatpush1.bf16.msra.mxu0 %v13624_v18 }
 0x5d2   :  { %7024 = vmatprep.subr.bf16.mxu0 %v18811_v12  ;;  %v13646_v18 = vld [vmem:[%s18444_s4 + $0x218] ss:$12 sps:$4 sm:$0xff]  }
 0x5d3   :  { %10729 = vmatmul.mubr.msk.bf16.gmra.mrb[96].mxu1 %vm5253_vm3, %v18817_v33  ;;  %v18837_v33 = vld [vmem:[#allocation12_spill] sm:$0xff] }
 0x5d4   :  { %5645 = vmatprep.mubr.bf16.mxu1 %v18811_v12  ;;  %6193 = vmatpush1.bf16.msra.mxu1 %v13604_v36  ;;  %v18835_v36 = vpack.c.bf16 %v18833_v44, %v18834_v0  ;;  %v13639_v0 = vld [vmem:[%s18444_s4 + $0x158] ss:$12 sps:$4 sm:$0xff]  }
 0x5d5   :  { %6194 = vmatprep.subr.bf16.mxu1 %v13609_v52  ;;  %v13625_v52 = vld [vmem:[%s18444_s4 + $0x50] ss:$12 sps:$4 sm:$0xff]  }
 0x5d6   :  { %7025 = vmatpush1.bf16.msra.mxu0 %v13625_v52 }
 0x5d7   :  { %7026 = vmatprep.subr.bf16.mxu0 %v18811_v12 }
 0x5d8   :  { %6195 = vmatpush1.bf16.msra.mxu1 %v13607_v23  ;;  %v18838_v23 = vpack.c.bf16 %v18836_v30, %v18837_v33 }
 0x5d9   :  { %6196 = vmatprep.subr.bf16.mxu1 %v13612_v15  ;;  %v13627_v15 = vld [vmem:[%s18444_s4 + $0x80] ss:$12 sps:$4 sm:$0xff]  }
 0x5da   :  { %7027 = vmatpush1.bf16.msra.mxu0 %v13626_v17 }
 0x5db   :  { %10730 = vmatmul.mubr.msk.bf16.gmra.mrb[100].mxu1 %vm5253_vm3, %v18820_v45  ;;  %7028 = vmatprep.subr.bf16.mxu0 %v18811_v12  ;;  %v18841_v45 = vpack.c.bf16 %v18839_v50, %v18840_v55  ;;  %v13643_v55 = vld [vmem:[%s18444_s4 + $0x188] ss:$12 sps:$4 sm:$0xff]  }
 0x5dc   :  { %5655 = vmatprep.mubr.bf16.mxu1 %v18811_v12  ;;  %6197 = vmatpush1.bf16.msra.mxu1 %v13610_v19  ;;  %v13631_v19 = vld [vmem:[%s18444_s4 + $0x98] ss:$12 sps:$4 sm:$0xff]  }
 0x5dd   :  { %6198 = vmatprep.subr.bf16.mxu1 %v13615_v25  ;;  %v18842_v25 = vld [vmem:[#allocation14_spill] sm:$0xff] }
 0x5de   :  { %7029 = vmatpush1.bf16.msra.mxu0 %v13627_v15  ;;  %v13640_v15 = vld [vmem:[%s18444_s4 + $0x170] ss:$12 sps:$4 sm:$0xff]  }
 0x5df   :  { %7030 = vmatprep.subr.bf16.mxu0 %v18811_v12 }
 0x5e0   :  { %6199 = vmatpush1.bf16.msra.mxu1 %v13613_v31  ;;  %v18843_v31 = vld [vmem:[#allocation24_spill] sm:$0xff] }
 0x5e1   :  { %6200 = vmatprep.subr.bf16.mxu1 %v13618_v54  ;;  %v18844_v24 = vpack.c.bf16 %v18842_v25, %v18843_v31  ;;  %v18848_v54 = vld [vmem:[#allocation46_spill] sm:$0xff]  ;;  %v13649_v31 = vld [vmem:[%s18444_s4 + $0x1a0] ss:$12 sps:$4 sm:$0x1f]  }
 0x5e2   :  { %7031 = vmatpush1.bf16.msra.mxu0 %v13631_v19  ;;  %v18850_v4 = vpack.c.bf16 %v18848_v54, %v18849_v26  ;;  %v13648_v19 = vld [vmem:[%s18444_s4 + $0x248] ss:$12 sps:$4 sm:$0xff]  }
 0x5e3   :  { %10731 = vmatmul.mubr.msk.bf16.gmra.mrb[104].mxu1 %vm5253_vm3, %v18823_v35  ;;  %7032 = vmatprep.subr.bf16.mxu0 %v18811_v12  ;;  %v13633_v35 = vld [vmem:[%s18444_s4 + $0xc8] ss:$12 sps:$4 sm:$0x1f]  }
 0x5e4   :  { %5665 = vmatprep.mubr.bf16.mxu1 %v18811_v12  ;;  %6201 = vmatpush1.bf16.msra.mxu1 %v13616_v21  ;;  %v6777_v21 = vsel %vm6178_vm4, %v13633_v35, 0 }
 0x5e5   :  { %6202 = vmatprep.subr.bf16.mxu1 %v13622_v38 }
 0x5e6   :  { %7033 = vmatpush1.bf16.msra.mxu0 %v13632_v7 }
 0x5e7   :  { %7034 = vmatprep.subr.bf16.mxu0 %v18811_v12 }
 0x5e8   :  { %6203 = vmatpush1.bf16.msra.mxu1 %v13620_v3 }
 0x5e9   :  { %10814 = vmatprep.subr.msk.bf16.mxu1 %vm6178_vm4, %v13628_v2 }
 0x5ea   :  { %7035 = vmatpush1.bf16.msra.mxu0 %v6777_v21 }
 0x5eb   :  { %10732 = vmatmul.mubr.msk.bf16.gmra.mrb[108].mxu1 %vm5253_vm3, %v18826_v14  ;;  %v18847_v14 = vpack.c.bf16 %v18845_v56, %v18846_v16  ;;  %7648 = vmatprep.subr.bf16.mxu0 %v18811_v12  ;;  %v13651_v16 = vld [vmem:[%s18444_s4 + $0x278] ss:$12 sps:$4 sm:$0x1f]  }
 0x5ec   :  { %5675 = vmatprep.mubr.bf16.mxu1 %v18811_v12  ;;  %6205 = vmatpush1.bf16.msra.mxu1 %v6180_v42  ;;  %v13638_v42 = vld [vmem:[%s18444_s4 + $0x140] ss:$12 sps:$4 sm:$0xff]   ;;  %v7407_v21 = vsel %vm6178_vm4, %v13651_v16, 0 }
 0x5ed   :  { %6427 = vmatprep.subr.bf16.mxu1 %v18811_v12 }
 0x5f3   :  { %10733 = vmatmul.mubr.msk.bf16.gmra.mrb[112].mxu1 %vm5253_vm3, %v18829_v20  ;;  %v18851_v20 = vld [vmem:[#allocation50_spill] sm:$0xff] }
 0x5f4   :  { %5685 = vmatprep.mubr.bf16.mxu1 %v18811_v12  ;;  %v18853_v5 = vpack.c.bf16 %v18851_v20, %v18852_v27 }
 0x5fb   :  { %10734 = vmatmul.mubr.msk.bf16.gmra.mrb[116].mxu1 %vm5253_vm3, %v18832_v39  ;;  %v18854_v39 = vpack.c.bf16 %v16112_v46, %v16109_v8 }
 0x5fc   :  { %5695 = vmatprep.mubr.bf16.mxu1 %v18811_v12 }
 0x603   :  { %10735 = vmatmul.mubr.msk.bf16.gmra.mrb[120].mxu1 %vm5253_vm3, %v18835_v36  ;;  %v13647_v36 = vld [vmem:[%s18444_s4 + $0x230] ss:$12 sps:$4 sm:$0xff]  }
 0x604   :  { %5705 = vmatprep.mubr.bf16.mxu1 %v18811_v12 }
 0x60b   :  { %10736 = vmatmul.mubr.msk.bf16.gmra.mrb[124].mxu1 %vm5253_vm3, %v18838_v23 }
 0x60c   :  { %5715 = vmatprep.mubr.bf16.mxu1 %v18811_v12 }
 0x613   :  { %10737 = vmatmul.mubr.msk.bf16.gmra.mrb[128].mxu1 %vm5253_vm3, %v18841_v45  ;;  %v13650_v45 = vld [vmem:[%s18444_s4 + $0x260] ss:$12 sps:$4 sm:$0xff]  }
 0x614   :  { %5725 = vmatprep.mubr.bf16.mxu1 %v18811_v12 }
 0x61b   :  { %10738 = vmatmul.mubr.msk.bf16.gmra.mrb[132].mxu1 %vm5253_vm3, %v18844_v24 }
 0x61c   :  { %5735 = vmatprep.mubr.bf16.mxu1 %v18811_v12 }
 0x623   :  { %10739 = vmatmul.mubr.msk.bf16.gmra.mrb[136].mxu1 %vm5253_vm3, %v18847_v14  ;;  %v6186_v14 = vsel %vm6178_vm4, %v13649_v31, 0 }
 0x624   :  { %5745 = vmatprep.mubr.bf16.mxu1 %v18811_v12 }
 0x62b   :  { %10740 = vmatmul.mubr.msk.bf16.gmra.mrb[140].mxu1 %vm5253_vm3, %v18850_v4 }
 0x62c   :  { %5755 = vmatprep.mubr.bf16.mxu1 %v18811_v12 }
 0x633   :  { %10741 = vmatmul.mubr.msk.bf16.gmra.mrb[144].mxu1 %vm5253_vm3, %v18853_v5  ;;  %v13654_v5 = vld [vmem:[%s18444_s4 + $0x4] ss:$12 sps:$4 sm:$0xff]  }
 0x634   :  { %5765 = vmatprep.mubr.bf16.mxu1 %v18811_v12 }
 0x63b   :  { %10742 = vmatmul.mubr.msk.bf16.gmra.mrb[148].mxu1 %vm5253_vm3, %v18854_v39 }
 0x63c   :  { %5775 = vmatprep.mubr.bf16.mxu1 %v18811_v12 }
 0x643   :  { %10743 = vmatmul.mubr.msk.bf16.gmra.mrb[152].mxu1 %vm5253_vm3, %v5063_v41 }
 0x644   :  { %5785 = vmatprep.mubr.bf16.mxu1 %v18811_v12 }
 0x64b   :  { %10744 = vmatmul.mubr.msk.bf16.gmra.mrb[156].mxu1 %vm5253_vm3, %v5066_v51 }
 0x64c   :  { %5795 = vmatprep.mubr.bf16.mxu1 %v18811_v12 }
 0x653   :  { %10745 = vmatmul.mubr.msk.bf16.gmra.mrb[160].mxu1 %vm5253_vm3, %v5069_v10 }
 0x654   :  { %5805 = vmatprep.mubr.bf16.mxu1 %v18811_v12 }
 0x65b   :  { %10746 = vmatmul.mubr.msk.bf16.gmra.mrb[164].mxu1 %vm5253_vm3, %v5072_v63  ;;  %v13641_v63 = vld [vmem:[%s18444_s4 + $0x1b8] ss:$12 sps:$4 sm:$0xff]  }
 0x65c   :  { %5815 = vmatprep.mubr.bf16.mxu1 %v18811_v12 }
 0x663   :  { %10747 = vmatmul.mubr.msk.bf16.gmra.mrb[168].mxu1 %vm5253_vm3, %v5075_v60  ;;  %v13642_v60 = vld [vmem:[%s18444_s4 + $0x1d0] ss:$12 sps:$4 sm:$0xff]  }
 0x664   :  { %5825 = vmatprep.mubr.bf16.mxu1 %v18811_v12 }
 0x66b   :  { %10748 = vmatmul.mubr.msk.bf16.gmra.mrb[172].mxu1 %vm5253_vm3, %v5078_v6 }
 0x66c   :  { %5835 = vmatprep.mubr.bf16.mxu1 %v18811_v12 }
 0x673   :  { %10749 = vmatmul.mubr.msk.bf16.gmra.mrb[176].mxu1 %vm5253_vm3, %v5081_v13  ;;  %v13636_v13 = vld [vmem:[%s18444_s4 + $0x110] ss:$12 sps:$4 sm:$0xff]  }
 0x674   :  { %5845 = vmatprep.mubr.bf16.mxu1 %v18811_v12 }
 0x67b   :  { %10750 = vmatmul.mubr.msk.bf16.gmra.mrb[180].mxu1 %vm5253_vm3, %v5084_v49  ;;  %v13637_v49 = vld [vmem:[%s18444_s4 + $0x128] ss:$12 sps:$4 sm:$0xff]  }
 0x69e   :  { %v5627_v8 = vpop.f32.mrb[92].mxu1 }
 0x69f   :  { %v5629_v46 = vpop.f32.mrb[93].mxu1 }
 0x6a0   :  { %v5631_v58 = vpop.f32.mrb[94].mxu1 }
 0x6a1   :  { %v16481_v47 = vpack.c.bf16 %v5631_v58, %v5627_v8  ;;  %v5633_v41 = vpop.f32.mrb[95].mxu1 }
 0x6a2   :  { %v16483_v11 = vpack.c.bf16 %v5633_v41, %v5629_v46 }
 0x6a4   :  { %10906 = vmatprep.mubr.msk.bf16.mxu0 %vm6114_vm5, %v16483_v11 }
 0x6a5   :  { %7051 = vmatmul.mubr.bf16.vlgmr.msra.gmra.mrb[184].mxu0 %v16481_v47 }
 0x6a6   :  { %v5637_v53 = vpop.f32.mrb[96].mxu1  ;;  %7649 = vmatpush1.bf16.msra.mxu0 %v13641_v63 }
 0x6a7   :  { %v5639_v51 = vpop.f32.mrb[97].mxu1  ;;  %7650 = vmatprep.subr.bf16.mxu0 %v18811_v12 }
 0x6a8   :  { %v5641_v57 = vpop.f32.mrb[98].mxu1 }
 0x6a9   :  { %v16488_v59 = vpack.c.bf16 %v5641_v57, %v5637_v53  ;;  %v5643_v10 = vpop.f32.mrb[99].mxu1 }
 0x6aa   :  { %v16490_v40 = vpack.c.bf16 %v5643_v10, %v5639_v51  ;;  %7651 = vmatpush1.bf16.msra.mxu0 %v13642_v60 }
 0x6ab   :  { %7652 = vmatprep.subr.bf16.mxu0 %v18811_v12 }
 0x6ac   :  { %10815 = vmatprep.mubr.msk.bf16.mxu1 %vm6114_vm5, %v16490_v40  ;;  %10907 = vmatprep.mubr.msk.bf16.mxu0 %vm6114_vm5, %v16490_v40 }
 0x6ad   :  { %6221 = vmatmul.mubr.bf16.vlgmr.msra.gmra.mrb[184].mxu1 %v16488_v59  ;;  %7059 = vmatmul.mubr.bf16.gmra.mrb[188].mxu0 %v16488_v59 }
 0x6ae   :  { %v5647_v34 = vpop.f32.mrb[100].mxu1  ;;  %6428 = vmatpush1.bf16.msra.mxu1 %v13634_v9  ;;  %7653 = vmatpush1.bf16.msra.mxu0 %v13644_v37 }
 0x6af   :  { %v5649_v43 = vpop.f32.mrb[101].mxu1  ;;  %6429 = vmatprep.subr.bf16.mxu1 %v18811_v12  ;;  %7654 = vmatprep.subr.bf16.mxu0 %v18811_v12 }
 0x6b0   :  { %v5651_v1 = vpop.f32.mrb[102].mxu1 }
 0x6b1   :  { %v16512_v6 = vpack.c.bf16 %v5651_v1, %v5647_v34  ;;  %v5653_v61 = vpop.f32.mrb[103].mxu1 }
 0x6b2   :  { %v16514_v48 = vpack.c.bf16 %v5653_v61, %v5649_v43  ;;  %6430 = vmatpush1.bf16.msra.mxu1 %v13635_v28  ;;  %7655 = vmatpush1.bf16.msra.mxu0 %v13645_v29 }
 0x6b3   :  { %6431 = vmatprep.subr.bf16.mxu1 %v18811_v12  ;;  %7656 = vmatprep.subr.bf16.mxu0 %v18811_v12 }
 0x6b4   :  { %10816 = vmatprep.mubr.msk.bf16.mxu1 %vm6114_vm5, %v16514_v48  ;;  %10908 = vmatprep.mubr.msk.bf16.mxu0 %vm6114_vm5, %v16514_v48 }
 0x6b5   :  { %6231 = vmatmul.mubr.bf16.gmra.mrb[188].mxu1 %v16512_v6  ;;  %7067 = vmatmul.mubr.bf16.gmra.mrb[192].mxu0 %v16512_v6 }
 0x6b6   :  { %v5657_v32 = vpop.f32.mrb[104].mxu1  ;;  %6432 = vmatpush1.bf16.msra.mxu1 %v13636_v13  ;;  %7657 = vmatpush1.bf16.msra.mxu0 %v13646_v18 }
 0x6b7   :  { %v5659_v3 = vpop.f32.mrb[105].mxu1  ;;  %6433 = vmatprep.subr.bf16.mxu1 %v18811_v12  ;;  %7658 = vmatprep.subr.bf16.mxu0 %v18811_v12 }
 0x6b8   :  { %v5661_v38 = vpop.f32.mrb[106].mxu1 }
 0x6b9   :  { %v16538_v62 = vpack.c.bf16 %v5661_v38, %v5657_v32  ;;  %v5663_v2 = vpop.f32.mrb[107].mxu1 }
 0x6ba   :  { %v16540_v22 = vpack.c.bf16 %v5663_v2, %v5659_v3  ;;  %6434 = vmatpush1.bf16.msra.mxu1 %v13637_v49  ;;  %7659 = vmatpush1.bf16.msra.mxu0 %v13647_v36 }
 0x6bb   :  { %18855 = vst [vmem:[#allocation36_spill] sm:$0xff] %v16538_v62  ;;  %6435 = vmatprep.subr.bf16.mxu1 %v18811_v12  ;;  %7660 = vmatprep.subr.bf16.mxu0 %v18811_v12 }
 0x6bc   :  { %10817 = vmatprep.mubr.msk.bf16.mxu1 %vm6114_vm5, %v16540_v22  ;;  %10909 = vmatprep.mubr.msk.bf16.mxu0 %vm6114_vm5, %v16540_v22 }
 0x6bd   :  { %6241 = vmatmul.mubr.bf16.gmra.mrb[192].mxu1 %v16538_v62  ;;  %7075 = vmatmul.mubr.bf16.gmra.mrb[196].mxu0 %v16538_v62 }
 0x6be   :  { %v5667_v44 = vpop.f32.mrb[108].mxu1  ;;  %6436 = vmatpush1.bf16.msra.mxu1 %v13638_v42  ;;  %7661 = vmatpush1.bf16.msra.mxu0 %v13648_v19 }
 0x6bf   :  { %v5669_v52 = vpop.f32.mrb[109].mxu1  ;;  %6437 = vmatprep.subr.bf16.mxu1 %v18811_v12  ;;  %7662 = vmatprep.subr.bf16.mxu0 %v18811_v12 }
 0x6c0   :  { %v5671_v17 = vpop.f32.mrb[110].mxu1 }
 0x6c1   :  { %v16564_v30 = vpack.c.bf16 %v5671_v17, %v5667_v44  ;;  %v5673_v33 = vpop.f32.mrb[111].mxu1 }
 0x6c2   :  { %v16566_v23 = vpack.c.bf16 %v5673_v33, %v5669_v52  ;;  %6438 = vmatpush1.bf16.msra.mxu1 %v13639_v0  ;;  %7663 = vmatpush1.bf16.msra.mxu0 %v13650_v45 }
 0x6c3   :  { %18856 = vst [vmem:[#allocation39_spill] sm:$0xff] %v16564_v30  ;;  %6439 = vmatprep.subr.bf16.mxu1 %v18811_v12  ;;  %7664 = vmatprep.subr.bf16.mxu0 %v18811_v12 }
 0x6c4   :  { %18857 = vst [vmem:[#allocation40_spill] sm:$0xff] %v16566_v23  ;;  %10818 = vmatprep.mubr.msk.bf16.mxu1 %vm6114_vm5, %v16566_v23  ;;  %10910 = vmatprep.mubr.msk.bf16.mxu0 %vm6114_vm5, %v16566_v23 }
 0x6c5   :  { %6251 = vmatmul.mubr.bf16.gmra.mrb[196].mxu1 %v16564_v30  ;;  %7083 = vmatmul.mubr.bf16.gmra.mrb[200].mxu0 %v16564_v30 }
 0x6c6   :  { %v5677_v50 = vpop.f32.mrb[112].mxu1  ;;  %6440 = vmatpush1.bf16.msra.mxu1 %v13640_v15  ;;  %7665 = vmatpush1.bf16.msra.mxu0 %v7407_v21 }
 0x6c7   :  { %v5679_v25 = vpop.f32.mrb[113].mxu1  ;;  %6441 = vmatprep.subr.bf16.mxu1 %v18811_v12 }
 0x6c8   :  { %v5681_v24 = vpop.f32.mrb[114].mxu1 }
 0x6c9   :  { %v16593_v7 = vpack.c.bf16 %v5681_v24, %v5677_v50  ;;  %v5683_v35 = vpop.f32.mrb[115].mxu1 }
 0x6ca   :  { %v16595_v56 = vpack.c.bf16 %v5683_v35, %v5679_v25  ;;  %6442 = vmatpush1.bf16.msra.mxu1 %v13643_v55 }
 0x6cb   :  { %6443 = vmatprep.subr.bf16.mxu1 %v18811_v12 }
 0x6cc   :  { %18858 = vst [vmem:[#allocation26_spill] sm:$0xff] %v16595_v56  ;;  %10819 = vmatprep.mubr.msk.bf16.mxu1 %vm6114_vm5, %v16595_v56  ;;  %10911 = vmatprep.mubr.msk.bf16.mxu0 %vm6114_vm5, %v16595_v56 }
 0x6cd   :  { %6261 = vmatmul.mubr.bf16.gmra.mrb[200].mxu1 %v16593_v7  ;;  %7091 = vmatmul.mubr.bf16.gmra.mrb[204].mxu0 %v16593_v7 }
 0x6ce   :  { %v5687_v54 = vpop.f32.mrb[116].mxu1  ;;  %6444 = vmatpush1.bf16.msra.mxu1 %v6186_v14 }
 0x6cf   :  { %v5689_v26 = vpop.f32.mrb[117].mxu1  ;;  %6779 = vmatprep.subr.bf16.mxu1 %v13654_v5 }
 0x6d0   :  { %v5691_v4 = vpop.f32.mrb[118].mxu1 }
 0x6d1   :  { %v16610_v20 = vpack.c.bf16 %v5691_v4, %v5687_v54  ;;  %v5693_v12 = vpop.f32.mrb[119].mxu1 }
 0x6d2   :  { %v16612_v27 = vpack.c.bf16 %v5693_v12, %v5689_v26 }
 0x6d3   :  { %18859 = vst [vmem:[#allocation9_spill] sm:$0xff] %v16610_v20 }
 0x6d4   :  { %18860 = vst [vmem:[#allocation19_spill] sm:$0xff] %v16612_v27  ;;  %10820 = vmatprep.mubr.msk.bf16.mxu1 %vm6114_vm5, %v16612_v27  ;;  %10912 = vmatprep.mubr.msk.bf16.mxu0 %vm6114_vm5, %v16612_v27 }
 0x6d5   :  { %6271 = vmatmul.mubr.bf16.gmra.mrb[204].mxu1 %v16610_v20  ;;  %7099 = vmatmul.mubr.bf16.gmra.mrb[208].mxu0 %v16610_v20 }
 0x6d6   :  { %v5697_v39 = vpop.f32.mrb[120].mxu1 }
 0x6d7   :  { %v5699_v8 = vpop.f32.mrb[121].mxu1 }
 0x6d8   :  { %v5701_v46 = vpop.f32.mrb[122].mxu1 }
 0x6d9   :  { %v16623_v58 = vpack.c.bf16 %v5701_v46, %v5697_v39  ;;  %v5703_v41 = vpop.f32.mrb[123].mxu1 }
 0x6da   :  { %v16625_v53 = vpack.c.bf16 %v5703_v41, %v5699_v8 }
 0x6dc   :  { %18861 = vst [vmem:[#allocation11_spill] sm:$0xff] %v16625_v53  ;;  %10821 = vmatprep.mubr.msk.bf16.mxu1 %vm6114_vm5, %v16625_v53  ;;  %10913 = vmatprep.mubr.msk.bf16.mxu0 %vm6114_vm5, %v16625_v53 }
 0x6dd   :  { %6281 = vmatmul.mubr.bf16.gmra.mrb[208].mxu1 %v16623_v58  ;;  %7107 = vmatmul.mubr.bf16.gmra.mrb[212].mxu0 %v16623_v58 }
 0x6de   :  { %v5707_v51 = vpop.f32.mrb[124].mxu1 }
 0x6df   :  { %v5709_v57 = vpop.f32.mrb[125].mxu1 }
 0x6e0   :  { %v5711_v10 = vpop.f32.mrb[126].mxu1 }
 0x6e1   :  { %v16633_v9 = vpack.c.bf16 %v5711_v10, %v5707_v51  ;;  %v5713_v63 = vpop.f32.mrb[127].mxu1 }
 0x6e2   :  { %v16635_v34 = vpack.c.bf16 %v5713_v63, %v5709_v57 }
 0x6e4   :  { %18862 = vst [vmem:[#allocation55_spill] sm:$0xff] %v16635_v34  ;;  %10822 = vmatprep.mubr.msk.bf16.mxu1 %vm6114_vm5, %v16635_v34  ;;  %10914 = vmatprep.mubr.msk.bf16.mxu0 %vm6114_vm5, %v16635_v34 }
 0x6e5   :  { %6291 = vmatmul.mubr.bf16.gmra.mrb[212].mxu1 %v16633_v9  ;;  %7115 = vmatmul.mubr.bf16.gmra.mrb[216].mxu0 %v16633_v9 }
 0x6e6   :  { %v5717_v28 = vpop.f32.mrb[128].mxu1 }
 0x6e7   :  { %v5719_v60 = vpop.f32.mrb[129].mxu1 }
 0x6e8   :  { %v5721_v43 = vpop.f32.mrb[130].mxu1 }
 0x6e9   :  { %v16643_v1 = vpack.c.bf16 %v5721_v43, %v5717_v28  ;;  %v5723_v61 = vpop.f32.mrb[131].mxu1 }
 0x6ea   :  { %v16645_v13 = vpack.c.bf16 %v5723_v61, %v5719_v60 }
 0x6ec   :  { %10823 = vmatprep.mubr.msk.bf16.mxu1 %vm6114_vm5, %v16645_v13  ;;  %10915 = vmatprep.mubr.msk.bf16.mxu0 %vm6114_vm5, %v16645_v13 }
 0x6ed   :  { %6301 = vmatmul.mubr.bf16.gmra.mrb[216].mxu1 %v16643_v1  ;;  %7123 = vmatmul.mubr.bf16.gmra.mrb[220].mxu0 %v16643_v1 }
 0x6ee   :  { %v5727_v37 = vpop.f32.mrb[132].mxu1 }
 0x6ef   :  { %v5729_v32 = vpop.f32.mrb[133].mxu1 }
 0x6f0   :  { %v5731_v49 = vpop.f32.mrb[134].mxu1 }
 0x6f1   :  { %v16653_v29 = vpack.c.bf16 %v5731_v49, %v5727_v37  ;;  %v5733_v3 = vpop.f32.mrb[135].mxu1 }
 0x6f2   :  { %v16655_v38 = vpack.c.bf16 %v5733_v3, %v5729_v32 }
 0x6f4   :  { %10824 = vmatprep.mubr.msk.bf16.mxu1 %vm6114_vm5, %v16655_v38  ;;  %10916 = vmatprep.mubr.msk.bf16.mxu0 %vm6114_vm5, %v16655_v38 }
 0x6f5   :  { %6311 = vmatmul.mubr.bf16.gmra.mrb[220].mxu1 %v16653_v29  ;;  %7131 = vmatmul.mubr.bf16.gmra.mrb[224].mxu0 %v16653_v29 }
 0x6f6   :  { %v5737_v2 = vpop.f32.mrb[136].mxu1 }
 0x6f7   :  { %v5739_v42 = vpop.f32.mrb[137].mxu1 }
 0x6f8   :  { %v5741_v18 = vpop.f32.mrb[138].mxu1 }
 0x6f9   :  { %v16663_v44 = vpack.c.bf16 %v5741_v18, %v5737_v2  ;;  %v5743_v0 = vpop.f32.mrb[139].mxu1 }
 0x6fa   :  { %v16665_v36 = vpack.c.bf16 %v5743_v0, %v5739_v42 }
 0x6fc   :  { %10825 = vmatprep.mubr.msk.bf16.mxu1 %vm6114_vm5, %v16665_v36  ;;  %10917 = vmatprep.mubr.msk.bf16.mxu0 %vm6114_vm5, %v16665_v36 }
 0x6fd   :  { %6321 = vmatmul.mubr.bf16.gmra.mrb[224].mxu1 %v16663_v44  ;;  %7139 = vmatmul.mubr.bf16.gmra.mrb[228].mxu0 %v16663_v44 }
 0x6fe   :  { %v5747_v52 = vpop.f32.mrb[140].mxu1 }
 0x6ff   :  { %v5749_v17 = vpop.f32.mrb[141].mxu1 }
 0x700   :  { %v5751_v33 = vpop.f32.mrb[142].mxu1 }
 0x701   :  { %v16673_v15 = vpack.c.bf16 %v5751_v33, %v5747_v52  ;;  %v5753_v19 = vpop.f32.mrb[143].mxu1 }
 0x702   :  { %v16675_v50 = vpack.c.bf16 %v5753_v19, %v5749_v17 }
 0x704   :  { %18863 = vst [vmem:[#allocation56_spill] sm:$0xff] %v16675_v50  ;;  %10826 = vmatprep.mubr.msk.bf16.mxu1 %vm6114_vm5, %v16675_v50  ;;  %10918 = vmatprep.mubr.msk.bf16.mxu0 %vm6114_vm5, %v16675_v50 }
 0x705   :  { %6331 = vmatmul.mubr.bf16.gmra.mrb[228].mxu1 %v16673_v15  ;;  %7147 = vmatmul.mubr.bf16.gmra.mrb[232].mxu0 %v16673_v15 }
 0x706   :  { %v5757_v55 = vpop.f32.mrb[144].mxu1 }
 0x707   :  { %v5759_v45 = vpop.f32.mrb[145].mxu1 }
 0x708   :  { %v5761_v25 = vpop.f32.mrb[146].mxu1 }
 0x709   :  { %v16683_v31 = vpack.c.bf16 %v5761_v25, %v5757_v55  ;;  %v5763_v24 = vpop.f32.mrb[147].mxu1 }
 0x70a   :  { %v16685_v35 = vpack.c.bf16 %v5763_v24, %v5759_v45 }
 0x70c   :  { %18864 = vst [vmem:[#allocation28_spill] sm:$0xff] %v16685_v35  ;;  %10827 = vmatprep.mubr.msk.bf16.mxu1 %vm6114_vm5, %v16685_v35  ;;  %10919 = vmatprep.mubr.msk.bf16.mxu0 %vm6114_vm5, %v16685_v35 }
 0x70d   :  { %6341 = vmatmul.mubr.bf16.gmra.mrb[232].mxu1 %v16683_v31  ;;  %7155 = vmatmul.mubr.bf16.gmra.mrb[236].mxu0 %v16683_v31 }
 0x70e   :  { %v5767_v16 = vpop.f32.mrb[148].mxu1 }
 0x70f   :  { %v5769_v14 = vpop.f32.mrb[149].mxu1 }
 0x710   :  { %v5771_v21 = vpop.f32.mrb[150].mxu1 }
 0x711   :  { %v16693_v54 = vpack.c.bf16 %v5771_v21, %v5767_v16  ;;  %v5773_v26 = vpop.f32.mrb[151].mxu1 }
 0x712   :  { %v16695_v4 = vpack.c.bf16 %v5773_v26, %v5769_v14 }
 0x714   :  { %18865 = vst [vmem:[#allocation41_spill] sm:$0xff] %v16695_v4  ;;  %10828 = vmatprep.mubr.msk.bf16.mxu1 %vm6114_vm5, %v16695_v4  ;;  %10920 = vmatprep.mubr.msk.bf16.mxu0 %vm6114_vm5, %v16695_v4 }
 0x715   :  { %6351 = vmatmul.mubr.bf16.gmra.mrb[236].mxu1 %v16693_v54  ;;  %7163 = vmatmul.mubr.bf16.gmra.mrb[240].mxu0 %v16693_v54 }
 0x716   :  { %v5777_v12 = vpop.f32.mrb[152].mxu1 }
 0x717   :  { %v5779_v5 = vpop.f32.mrb[153].mxu1 }
 0x718   :  { %v5781_v39 = vpop.f32.mrb[154].mxu1 }
 0x719   :  { %v16703_v8 = vpack.c.bf16 %v5781_v39, %v5777_v12  ;;  %v5783_v46 = vpop.f32.mrb[155].mxu1 }
 0x71a   :  { %v16705_v41 = vpack.c.bf16 %v5783_v46, %v5779_v5 }
 0x71c   :  { %18866 = vst [vmem:[#allocation42_spill] sm:$0xff] %v16705_v41  ;;  %10829 = vmatprep.mubr.msk.bf16.mxu1 %vm6114_vm5, %v16705_v41  ;;  %10921 = vmatprep.mubr.msk.bf16.mxu0 %vm6114_vm5, %v16705_v41 }
 0x71d   :  { %6361 = vmatmul.mubr.bf16.gmra.mrb[240].mxu1 %v16703_v8  ;;  %7171 = vmatmul.mubr.bf16.gmra.mrb[244].mxu0 %v16703_v8 }
 0x71e   :  { %v5787_v51 = vpop.f32.mrb[156].mxu1 }
 0x71f   :  { %v5789_v57 = vpop.f32.mrb[157].mxu1 }
 0x720   :  { %v5791_v10 = vpop.f32.mrb[158].mxu1 }
 0x721   :  { %v16713_v63 = vpack.c.bf16 %v5791_v10, %v5787_v51  ;;  %v5793_v28 = vpop.f32.mrb[159].mxu1 }
 0x722   :  { %v16715_v60 = vpack.c.bf16 %v5793_v28, %v5789_v57 }
 0x724   :  { %18867 = vst [vmem:[#allocation47_spill] sm:$0xff] %v16715_v60  ;;  %10830 = vmatprep.mubr.msk.bf16.mxu1 %vm6114_vm5, %v16715_v60  ;;  %10922 = vmatprep.mubr.msk.bf16.mxu0 %vm6114_vm5, %v16715_v60 }
 0x725   :  { %6371 = vmatmul.mubr.bf16.gmra.mrb[244].mxu1 %v16713_v63  ;;  %7179 = vmatmul.mubr.bf16.gmra.mrb[248].mxu0 %v16713_v63 }
 0x726   :  { %v5797_v43 = vpop.f32.mrb[160].mxu1 }
 0x727   :  { %v5799_v61 = vpop.f32.mrb[161].mxu1 }
 0x728   :  { %v5801_v37 = vpop.f32.mrb[162].mxu1 }
 0x729   :  { %v16723_v32 = vpack.c.bf16 %v5801_v37, %v5797_v43  ;;  %v5803_v49 = vpop.f32.mrb[163].mxu1 }
 0x72a   :  { %v16725_v3 = vpack.c.bf16 %v5803_v49, %v5799_v61 }
 0x72c   :  { %18868 = vst [vmem:[#allocation48_spill] sm:$0xff] %v16725_v3  ;;  %10831 = vmatprep.mubr.msk.bf16.mxu1 %vm6114_vm5, %v16725_v3  ;;  %10923 = vmatprep.mubr.msk.bf16.mxu0 %vm6114_vm5, %v16725_v3 }
 0x72d   :  { %6381 = vmatmul.mubr.bf16.gmra.mrb[248].mxu1 %v16723_v32  ;;  %7187 = vmatmul.mubr.bf16.gmra.mrb[252].mxu0 %v16723_v32 }
 0x72e   :  { %v5807_v2 = vpop.f32.mrb[164].mxu1 }
 0x72f   :  { %v5809_v42 = vpop.f32.mrb[165].mxu1 }
 0x730   :  { %v5811_v18 = vpop.f32.mrb[166].mxu1 }
 0x731   :  { %v16733_v0 = vpack.c.bf16 %v5811_v18, %v5807_v2  ;;  %v5813_v52 = vpop.f32.mrb[167].mxu1  ;;  %v13652_v18 = vld [vmem:[%s18444_s4] ss:$12 sps:$4 sm:$0xff]  }
 0x732   :  { %v16735_v17 = vpack.c.bf16 %v5813_v52, %v5809_v42  ;;  %v13657_v52 = vld [vmem:[%s18444_s4 + $0x1c] ss:$12 sps:$4 sm:$0xff]  }
 0x734   :  { %18869 = vst [vmem:[#allocation53_spill] sm:$0xff] %v16735_v17  ;;  %10832 = vmatprep.mubr.msk.bf16.mxu1 %vm6114_vm5, %v16735_v17  ;;  %10924 = vmatprep.mubr.msk.bf16.mxu0 %vm6114_vm5, %v16735_v17 }
 0x735   :  { %6391 = vmatmul.mubr.bf16.gmra.mrb[252].mxu1 %v16733_v0  ;;  %7195 = vmatmul.mubr.bf16.gmra.mrb[0].mxu0 %v16733_v0 }
 0x736   :  { %v5817_v33 = vpop.f32.mrb[168].mxu1 }
 0x737   :  { %v5819_v19 = vpop.f32.mrb[169].mxu1 }
 0x738   :  { %v5821_v55 = vpop.f32.mrb[170].mxu1 }
 0x739   :  { %v16743_v45 = vpack.c.bf16 %v5821_v55, %v5817_v33  ;;  %v5823_v25 = vpop.f32.mrb[171].mxu1  ;;  %v13655_v33 = vld [vmem:[%s18444_s4 + $0x18] ss:$12 sps:$4 sm:$0xff]   ;;  %v13658_v55 = vld [vmem:[%s18444_s4 + $0x30] ss:$12 sps:$4 sm:$0xff]  }
 0x73a   :  { %v16745_v24 = vpack.c.bf16 %v5823_v25, %v5819_v19  ;;  %v13660_v19 = vld [vmem:[%s18444_s4 + $0x34] ss:$12 sps:$4 sm:$0xff]   ;;  %v13663_v25 = vld [vmem:[%s18444_s4 + $0x4c] ss:$12 sps:$4 sm:$0xff]  }
 0x73b   :  { %18870 = vst [vmem:[#allocation54_spill] sm:$0xff] %v16743_v45 }
 0x73c   :  { %18871 = vst [vmem:[#allocation51_spill] sm:$0xff] %v16745_v24  ;;  %10833 = vmatprep.mubr.msk.bf16.mxu1 %vm6114_vm5, %v16745_v24  ;;  %10925 = vmatprep.mubr.msk.bf16.mxu0 %vm6114_vm5, %v16745_v24 }
 0x73d   :  { %6401 = vmatmul.mubr.bf16.gmra.mrb[0].mxu1 %v16743_v45  ;;  %7203 = vmatmul.mubr.bf16.gmra.mrb[4].mxu0 %v16743_v45 }
 0x73e   :  { %v5827_v16 = vpop.f32.mrb[172].mxu1 }
 0x73f   :  { %v5829_v14 = vpop.f32.mrb[173].mxu1 }
 0x740   :  { %v5831_v21 = vpop.f32.mrb[174].mxu1 }
 0x741   :  { %v16753_v26 = vpack.c.bf16 %v5831_v21, %v5827_v16  ;;  %v5833_v12 = vpop.f32.mrb[175].mxu1  ;;  %v13661_v16 = vld [vmem:[%s18444_s4 + $0x48] ss:$12 sps:$4 sm:$0xff]   ;;  %v13664_v21 = vld [vmem:[%s18444_s4 + $0x60] ss:$12 sps:$4 sm:$0xff]  }
 0x742   :  { %v16755_v5 = vpack.c.bf16 %v5833_v12, %v5829_v14  ;;  %v13666_v14 = vld [vmem:[%s18444_s4 + $0x64] ss:$12 sps:$4 sm:$0xff]   ;;  %v13669_v12 = vld [vmem:[%s18444_s4 + $0x7c] ss:$12 sps:$4 sm:$0xff]  }
 0x744   :  { %18872 = vst [vmem:[#allocation35_spill] sm:$0xff] %v16755_v5  ;;  %10834 = vmatprep.mubr.msk.bf16.mxu1 %vm6114_vm5, %v16755_v5  ;;  %10926 = vmatprep.mubr.msk.bf16.mxu0 %vm6114_vm5, %v16755_v5 }
 0x745   :  { %6411 = vmatmul.mubr.bf16.gmra.mrb[4].mxu1 %v16753_v26  ;;  %7211 = vmatmul.mubr.bf16.gmra.mrb[8].mxu0 %v16753_v26 }
 0x746   :  { %v5837_v39 = vpop.f32.mrb[176].mxu1  ;;  %11012 = vmatprep.mubr.msk.bf16.mxu0 %vm6114_vm5, %v16514_v48 }
 0x747   :  { %v5839_v46 = vpop.f32.mrb[177].mxu1 }
 0x748   :  { %v5841_v51 = vpop.f32.mrb[178].mxu1 }
 0x749   :  { %v16765_v57 = vpack.c.bf16 %v5841_v51, %v5837_v39  ;;  %v5843_v10 = vpop.f32.mrb[179].mxu1  ;;  %v13667_v39 = vld [vmem:[%s18444_s4 + $0x78] ss:$12 sps:$4 sm:$0xff]   ;;  %v13670_v51 = vld [vmem:[%s18444_s4 + $0x90] ss:$12 sps:$4 sm:$0xff]  }
 0x74a   :  { %v16767_v28 = vpack.c.bf16 %v5843_v10, %v5839_v46  ;;  %v13672_v46 = vld [vmem:[%s18444_s4 + $0x94] ss:$12 sps:$4 sm:$0xff]   ;;  %v13675_v10 = vld [vmem:[%s18444_s4 + $0xac] ss:$12 sps:$4 sm:$0xff]  }
 0x74b   :  { %18873 = vst [vmem:[#allocation52_spill] sm:$0xff] %v16765_v57 }
 0x74c   :  { %18874 = vst [vmem:[#allocation8_spill] sm:$0xff] %v16767_v28  ;;  %10835 = vmatprep.mubr.msk.bf16.mxu1 %vm6114_vm5, %v16767_v28 }
 0x74d   :  { %6421 = vmatmul.mubr.bf16.gmra.mrb[8].mxu1 %v16765_v57  ;;  %7681 = vmatmul.mubr.bf16.vlgmr.msra.gmra.mrb[12].mxu0 %v16512_v6 }
 0x74e   :  { %v5847_v43 = vpop.f32.mrb[180].mxu1  ;;  %10836 = vmatprep.mubr.msk.bf16.mxu1 %vm6114_vm5, %v16490_v40  ;;  %11013 = vmatprep.mubr.msk.bf16.mxu0 %vm6114_vm5, %v16540_v22 }
 0x74f   :  { %v5849_v61 = vpop.f32.mrb[181].mxu1 }
 0x750   :  { %v5851_v37 = vpop.f32.mrb[182].mxu1 }
 0x751   :  { %v16777_v49 = vpack.c.bf16 %v5851_v37, %v5847_v43  ;;  %v5853_v2 = vpop.f32.mrb[183].mxu1  ;;  %v13673_v43 = vld [vmem:[%s18444_s4 + $0xa8] ss:$12 sps:$4 sm:$0xff]   ;;  %v13678_v37 = vld [vmem:[%s18444_s4 + $0xc0] ss:$12 sps:$4 sm:$0x1f]  }
 0x752   :  { %v16779_v42 = vpack.c.bf16 %v5853_v2, %v5849_v61  ;;  %v13676_v61 = vld [vmem:[%s18444_s4 + $0xc4] ss:$12 sps:$4 sm:$0x1f]   ;;  %v6771_v2 = vsel %vm6178_vm4, %v13678_v37, 0 }
 0x753   :  { %18875 = vst [vmem:[#allocation23_spill] sm:$0xff] %v16777_v49 }
 0x754   :  { %18876 = vst [vmem:[#allocation13_spill] sm:$0xff] %v16779_v42 }
 0x755   :  { %6460 = vmatmul.mubr.bf16.vlgmr.msra.gmra.mrb[12].mxu1 %v16488_v59  ;;  %7689 = vmatmul.mubr.bf16.gmra.mrb[16].mxu0 %v16538_v62 }
 0x756   :  { %10837 = vmatprep.mubr.msk.bf16.mxu1 %vm6114_vm5, %v16514_v48  ;;  %6780 = vmatpush1.bf16.msra.mxu1 %v13652_v18 }
 0x757   :  { %11014 = vmatprep.mubr.msk.bf16.mxu0 %vm6114_vm5, %v16566_v23  ;;  %6781 = vmatprep.subr.bf16.mxu1 %v13657_v52 }
 0x75a   :  { %6782 = vmatpush1.bf16.msra.mxu1 %v13655_v33 }
 0x75b   :  { %6783 = vmatprep.subr.bf16.mxu1 %v13660_v19 }
 0x75d   :  { %6468 = vmatmul.mubr.bf16.gmra.mrb[16].mxu1 %v16512_v6  ;;  %7697 = vmatmul.mubr.bf16.gmra.mrb[20].mxu0 %v16564_v30 }
 0x75e   :  { %10838 = vmatprep.mubr.msk.bf16.mxu1 %vm6114_vm5, %v16540_v22  ;;  %11015 = vmatprep.mubr.msk.bf16.mxu0 %vm6114_vm5, %v16595_v56 }
 0x75f   :  { %6784 = vmatpush1.bf16.msra.mxu1 %v13658_v55  ;;  %v13681_v55 = vld [vmem:[%s18444_s4 + $0x1b4] ss:$12 sps:$4 sm:$0xff]  }
 0x760   :  { %6785 = vmatprep.subr.bf16.mxu1 %v13663_v25 }
 0x763   :  { %6786 = vmatpush1.bf16.msra.mxu1 %v13661_v16 }
 0x764   :  { %6787 = vmatprep.subr.bf16.mxu1 %v13666_v14 }
 0x765   :  { %6476 = vmatmul.mubr.bf16.gmra.mrb[20].mxu1 %v16538_v62  ;;  %7705 = vmatmul.mubr.bf16.gmra.mrb[24].mxu0 %v16593_v7 }
 0x766   :  { %10839 = vmatprep.mubr.msk.bf16.mxu1 %vm6114_vm5, %v16566_v23  ;;  %11016 = vmatprep.mubr.msk.bf16.mxu0 %vm6114_vm5, %v16612_v27 }
 0x767   :  { %6788 = vmatpush1.bf16.msra.mxu1 %v13664_v21 }
 0x768   :  { %6789 = vmatprep.subr.bf16.mxu1 %v13669_v12 }
 0x76b   :  { %6790 = vmatpush1.bf16.msra.mxu1 %v13667_v39 }
 0x76c   :  { %6791 = vmatprep.subr.bf16.mxu1 %v13672_v46 }
 0x76d   :  { %6484 = vmatmul.mubr.bf16.gmra.mrb[24].mxu1 %v16564_v30  ;;  %7713 = vmatmul.mubr.bf16.gmra.mrb[28].mxu0 %v16610_v20 }
 0x76e   :  { %10840 = vmatprep.mubr.msk.bf16.mxu1 %vm6114_vm5, %v16595_v56  ;;  %11017 = vmatprep.mubr.msk.bf16.mxu0 %vm6114_vm5, %v16625_v53 }
 0x76f   :  { %6792 = vmatpush1.bf16.msra.mxu1 %v13670_v51 }
 0x770   :  { %6793 = vmatprep.subr.bf16.mxu1 %v13675_v10 }
 0x773   :  { %6794 = vmatpush1.bf16.msra.mxu1 %v13673_v43 }
 0x774   :  { %10884 = vmatprep.subr.msk.bf16.mxu1 %vm6178_vm4, %v13676_v61 }
 0x775   :  { %6492 = vmatmul.mubr.bf16.gmra.mrb[28].mxu1 %v16593_v7  ;;  %7721 = vmatmul.mubr.bf16.gmra.mrb[32].mxu0 %v16623_v58 }
 0x776   :  { %10841 = vmatprep.mubr.msk.bf16.mxu1 %vm6114_vm5, %v16612_v27  ;;  %11018 = vmatprep.mubr.msk.bf16.mxu0 %vm6114_vm5, %v16635_v34 }
 0x777   :  { %6796 = vmatpush1.bf16.msra.mxu1 %v6771_v2 }
 0x778   :  { %v16864_v18 = vpop.f32.mrb[184].mxu0  ;;  %7409 = vmatprep.subr.bf16.mxu1 %v13681_v55 }
 0x779   :  { %v7054_v52 = vpop.f32.mrb[185].mxu0 }
 0x77a   :  { %v16866_v33 = vpop.f32.mrb[186].mxu0 }
 0x77b   :  { %v7057_v19 = vpop.f32.mrb[187].mxu0 }
 0x77d   :  { %6500 = vmatmul.mubr.bf16.gmra.mrb[32].mxu1 %v16610_v20  ;;  %7729 = vmatmul.mubr.bf16.gmra.mrb[36].mxu0 %v16633_v9 }
 0x77e   :  { %10842 = vmatprep.mubr.msk.bf16.mxu1 %vm6114_vm5, %v16625_v53  ;;  %11019 = vmatprep.mubr.msk.bf16.mxu0 %vm6114_vm5, %v16645_v13 }
 0x780   :  { %v16877_v25 = vpop.f32.mrb[188].mxu0 }
 0x781   :  { %v7062_v16 = vpop.f32.mrb[189].mxu0 }
 0x782   :  { %v16879_v14 = vpop.f32.mrb[190].mxu0 }
 0x783   :  { %v7065_v21 = vpop.f32.mrb[191].mxu0 }
 0x785   :  { %6508 = vmatmul.mubr.bf16.gmra.mrb[36].mxu1 %v16623_v58  ;;  %7737 = vmatmul.mubr.bf16.gmra.mrb[40].mxu0 %v16643_v1 }
 0x786   :  { %10843 = vmatprep.mubr.msk.bf16.mxu1 %vm6114_vm5, %v16635_v34  ;;  %11020 = vmatprep.mubr.msk.bf16.mxu0 %vm6114_vm5, %v16655_v38 }
 0x788   :  { %v16887_v12 = vpop.f32.mrb[192].mxu0 }
 0x789   :  { %v7070_v39 = vpop.f32.mrb[193].mxu0 }
 0x78a   :  { %v16889_v46 = vpop.f32.mrb[194].mxu0 }
 0x78b   :  { %v7073_v51 = vpop.f32.mrb[195].mxu0 }
 0x78d   :  { %6516 = vmatmul.mubr.bf16.gmra.mrb[40].mxu1 %v16633_v9  ;;  %7745 = vmatmul.mubr.bf16.gmra.mrb[44].mxu0 %v16653_v29 }
 0x78e   :  { %10844 = vmatprep.mubr.msk.bf16.mxu1 %vm6114_vm5, %v16645_v13  ;;  %11021 = vmatprep.mubr.msk.bf16.mxu0 %vm6114_vm5, %v16665_v36 }
 0x790   :  { %v16897_v10 = vpop.f32.mrb[196].mxu0 }
 0x791   :  { %v7078_v43 = vpop.f32.mrb[197].mxu0 }
 0x792   :  { %v16899_v61 = vpop.f32.mrb[198].mxu0 }
 0x793   :  { %v7081_v37 = vpop.f32.mrb[199].mxu0 }
 0x795   :  { %6524 = vmatmul.mubr.bf16.gmra.mrb[44].mxu1 %v16643_v1  ;;  %7753 = vmatmul.mubr.bf16.gmra.mrb[48].mxu0 %v16663_v44 }
 0x796   :  { %10845 = vmatprep.mubr.msk.bf16.mxu1 %vm6114_vm5, %v16655_v38  ;;  %11022 = vmatprep.mubr.msk.bf16.mxu0 %vm6114_vm5, %v16675_v50 }
 0x798   :  { %v16907_v2 = vpop.f32.mrb[200].mxu0 }
 0x799   :  { %v7086_v52 = vpop.f32.mrb[201].mxu0 }
 0x79a   :  { %v16909_v19 = vpop.f32.mrb[202].mxu0 }
 0x79b   :  { %v7089_v55 = vpop.f32.mrb[203].mxu0 }
 0x79d   :  { %6532 = vmatmul.mubr.bf16.gmra.mrb[48].mxu1 %v16653_v29  ;;  %7761 = vmatmul.mubr.bf16.gmra.mrb[52].mxu0 %v16673_v15 }
 0x79e   :  { %10846 = vmatprep.mubr.msk.bf16.mxu1 %vm6114_vm5, %v16665_v36  ;;  %11023 = vmatprep.mubr.msk.bf16.mxu0 %vm6114_vm5, %v16685_v35 }
 0x7a0   :  { %v16917_v16 = vpop.f32.mrb[204].mxu0 }
 0x7a1   :  { %v7094_v21 = vpop.f32.mrb[205].mxu0 }
 0x7a2   :  { %v16919_v39 = vpop.f32.mrb[206].mxu0 }
 0x7a3   :  { %v7097_v51 = vpop.f32.mrb[207].mxu0 }
 0x7a5   :  { %6540 = vmatmul.mubr.bf16.gmra.mrb[52].mxu1 %v16663_v44  ;;  %7769 = vmatmul.mubr.bf16.gmra.mrb[56].mxu0 %v16683_v31 }
 0x7a6   :  { %10847 = vmatprep.mubr.msk.bf16.mxu1 %vm6114_vm5, %v16675_v50  ;;  %11024 = vmatprep.mubr.msk.bf16.mxu0 %vm6114_vm5, %v16695_v4 }
 0x7a8   :  { %v16927_v43 = vpop.f32.mrb[208].mxu0 }
 0x7a9   :  { %18877 = vst [vmem:[#allocation25_spill] sm:$0xff] %v16927_v43  ;;  %v7102_v37 = vpop.f32.mrb[209].mxu0 }
 0x7aa   :  { %v16929_v52 = vpop.f32.mrb[210].mxu0 }
 0x7ab   :  { %v7105_v55 = vpop.f32.mrb[211].mxu0 }
 0x7ad   :  { %6548 = vmatmul.mubr.bf16.gmra.mrb[56].mxu1 %v16673_v15  ;;  %7777 = vmatmul.mubr.bf16.gmra.mrb[60].mxu0 %v16693_v54 }
 0x7ae   :  { %10848 = vmatprep.mubr.msk.bf16.mxu1 %vm6114_vm5, %v16685_v35  ;;  %11025 = vmatprep.mubr.msk.bf16.mxu0 %vm6114_vm5, %v16705_v41 }
 0x7b0   :  { %v16937_v21 = vpop.f32.mrb[212].mxu0 }
 0x7b1   :  { %18878 = vst [vmem:[#allocation15_spill] sm:$0xff] %v16937_v21  ;;  %v7110_v51 = vpop.f32.mrb[213].mxu0 }
 0x7b2   :  { %v16939_v50 = vpop.f32.mrb[214].mxu0 }
 0x7b3   :  { %v7113_v43 = vpop.f32.mrb[215].mxu0 }
 0x7b5   :  { %6556 = vmatmul.mubr.bf16.gmra.mrb[60].mxu1 %v16683_v31  ;;  %7785 = vmatmul.mubr.bf16.gmra.mrb[64].mxu0 %v16703_v8 }
 0x7b6   :  { %10849 = vmatprep.mubr.msk.bf16.mxu1 %vm6114_vm5, %v16695_v4  ;;  %11026 = vmatprep.mubr.msk.bf16.mxu0 %vm6114_vm5, %v16715_v60 }
 0x7b8   :  { %v16947_v37 = vpop.f32.mrb[216].mxu0 }
 0x7b9   :  { %18879 = vst [vmem:[#allocation29_spill] sm:$0xff] %v16947_v37  ;;  %v7118_v55 = vpop.f32.mrb[217].mxu0 }
 0x7ba   :  { %v16949_v35 = vpop.f32.mrb[218].mxu0 }
 0x7bb   :  { %v7121_v21 = vpop.f32.mrb[219].mxu0 }
 0x7bd   :  { %6564 = vmatmul.mubr.bf16.gmra.mrb[64].mxu1 %v16693_v54  ;;  %7793 = vmatmul.mubr.bf16.gmra.mrb[68].mxu0 %v16713_v63 }
 0x7be   :  { %10850 = vmatprep.mubr.msk.bf16.mxu1 %vm6114_vm5, %v16705_v41  ;;  %11027 = vmatprep.mubr.msk.bf16.mxu0 %vm6114_vm5, %v16725_v3 }
 0x7c0   :  { %v16957_v43 = vpop.f32.mrb[220].mxu0 }
 0x7c1   :  { %18880 = vst [vmem:[#allocation16_spill] sm:$0xff] %v16957_v43  ;;  %v7126_v51 = vpop.f32.mrb[221].mxu0 }
 0x7c2   :  { %v16959_v4 = vpop.f32.mrb[222].mxu0 }
 0x7c3   :  { %v7129_v37 = vpop.f32.mrb[223].mxu0 }
 0x7c5   :  { %6572 = vmatmul.mubr.bf16.gmra.mrb[68].mxu1 %v16703_v8  ;;  %7801 = vmatmul.mubr.bf16.gmra.mrb[72].mxu0 %v16723_v32 }
 0x7c6   :  { %10851 = vmatprep.mubr.msk.bf16.mxu1 %vm6114_vm5, %v16715_v60  ;;  %11028 = vmatprep.mubr.msk.bf16.mxu0 %vm6114_vm5, %v16735_v17 }
 0x7c8   :  { %v16967_v21 = vpop.f32.mrb[224].mxu0 }
 0x7c9   :  { %18881 = vst [vmem:[#allocation17_spill] sm:$0xff] %v16967_v21  ;;  %v7134_v55 = vpop.f32.mrb[225].mxu0 }
 0x7ca   :  { %v16969_v41 = vpop.f32.mrb[226].mxu0 }
 0x7cb   :  { %v7137_v43 = vpop.f32.mrb[227].mxu0 }
 0x7cd   :  { %6580 = vmatmul.mubr.bf16.gmra.mrb[72].mxu1 %v16713_v63  ;;  %7809 = vmatmul.mubr.bf16.gmra.mrb[76].mxu0 %v16733_v0 }
 0x7ce   :  { %10852 = vmatprep.mubr.msk.bf16.mxu1 %vm6114_vm5, %v16725_v3  ;;  %11029 = vmatprep.mubr.msk.bf16.mxu0 %vm6114_vm5, %v16745_v24 }
 0x7d0   :  { %v16977_v37 = vpop.f32.mrb[228].mxu0 }
 0x7d1   :  { %18882 = vst [vmem:[#allocation30_spill] sm:$0xff] %v16977_v37  ;;  %v7142_v51 = vpop.f32.mrb[229].mxu0 }
 0x7d2   :  { %v16979_v60 = vpop.f32.mrb[230].mxu0 }
 0x7d3   :  { %v7145_v21 = vpop.f32.mrb[231].mxu0 }
 0x7d5   :  { %6588 = vmatmul.mubr.bf16.gmra.mrb[76].mxu1 %v16723_v32  ;;  %7817 = vmatmul.mubr.bf16.gmra.mrb[80].mxu0 %v16743_v45 }
 0x7d6   :  { %10853 = vmatprep.mubr.msk.bf16.mxu1 %vm6114_vm5, %v16735_v17  ;;  %11030 = vmatprep.mubr.msk.bf16.mxu0 %vm6114_vm5, %v16755_v5 }
 0x7d8   :  { %v16987_v43 = vpop.f32.mrb[232].mxu0 }
 0x7d9   :  { %18883 = vst [vmem:[#allocation32_spill] sm:$0xff] %v16987_v43  ;;  %v7150_v55 = vpop.f32.mrb[233].mxu0 }
 0x7da   :  { %v16989_v3 = vpop.f32.mrb[234].mxu0 }
 0x7db   :  { %v7153_v37 = vpop.f32.mrb[235].mxu0 }
 0x7dd   :  { %6596 = vmatmul.mubr.bf16.gmra.mrb[80].mxu1 %v16733_v0  ;;  %7825 = vmatmul.mubr.bf16.gmra.mrb[84].mxu0 %v16753_v26 }
 0x7de   :  { %10854 = vmatprep.mubr.msk.bf16.mxu1 %vm6114_vm5, %v16745_v24  ;;  %11031 = vmatprep.mubr.msk.bf16.mxu0 %vm6114_vm5, %v16767_v28 }
 0x7e0   :  { %v16997_v21 = vpop.f32.mrb[236].mxu0 }
 0x7e1   :  { %18884 = vst [vmem:[#allocation31_spill] sm:$0xff] %v16997_v21  ;;  %v7158_v51 = vpop.f32.mrb[237].mxu0 }
 0x7e2   :  { %v16999_v17 = vpop.f32.mrb[238].mxu0 }
 0x7e3   :  { %v7161_v43 = vpop.f32.mrb[239].mxu0 }
 0x7e5   :  { %6604 = vmatmul.mubr.bf16.gmra.mrb[84].mxu1 %v16743_v45  ;;  %7833 = vmatmul.mubr.bf16.gmra.mrb[88].mxu0 %v16765_v57 }
 0x7e6   :  { %10855 = vmatprep.mubr.msk.bf16.mxu1 %vm6114_vm5, %v16755_v5  ;;  %11032 = vmatprep.mubr.msk.bf16.mxu0 %vm6114_vm5, %v16779_v42 }
 0x7e8   :  { %v17007_v37 = vpop.f32.mrb[240].mxu0 }
 0x7e9   :  { %v7166_v55 = vpop.f32.mrb[241].mxu0 }
 0x7ea   :  { %v17009_v24 = vpop.f32.mrb[242].mxu0 }
 0x7eb   :  { %v7169_v21 = vpop.f32.mrb[243].mxu0 }
 0x7ed   :  { %6612 = vmatmul.mubr.bf16.gmra.mrb[88].mxu1 %v16753_v26  ;;  %7841 = vmatmul.mubr.bf16.gmra.mrb[92].mxu0 %v16777_v49  ;;  %v13679_v49 = vld [vmem:[%s18444_s4 + $0x1b0] ss:$12 sps:$4 sm:$0xff]  }
 0x7ee   :  { %10856 = vmatprep.mubr.msk.bf16.mxu1 %vm6114_vm5, %v16767_v28 }
 0x7f0   :  { %v17015_v43 = vpop.f32.mrb[244].mxu0 }
 0x7f1   :  { %v7174_v51 = vpop.f32.mrb[245].mxu0 }
 0x7f2   :  { %v17017_v5 = vpop.f32.mrb[246].mxu0  ;;  %v13684_v51 = vld [vmem:[%s18444_s4 + $0x1cc] ss:$12 sps:$4 sm:$0xff]  }
 0x7f3   :  { %v7177_v45 = vpop.f32.mrb[247].mxu0 }
 0x7f4   :  { %v13687_v45 = vld [vmem:[%s18444_s4 + $0x1e4] ss:$12 sps:$4 sm:$0xff]  }
 0x7f5   :  { %6620 = vmatmul.mubr.bf16.gmra.mrb[92].mxu1 %v16765_v57 }
 0x7f6   :  { %10885 = vmatprep.mubr.msk.bf16.mxu1 %vm6114_vm5, %v16483_v11  ;;  %v13682_v11 = vld [vmem:[%s18444_s4 + $0x1c8] ss:$12 sps:$4 sm:$0xff]  }
 0x7f8   :  { %v17022_v55 = vpop.f32.mrb[248].mxu0 }
 0x7f9   :  { %v7182_v21 = vpop.f32.mrb[249].mxu0 }
 0x7fa   :  { %v17024_v42 = vpop.f32.mrb[250].mxu0 }
 0x7fb   :  { %18885 = vst [vmem:[#allocation34_spill] sm:$0xff] %v17024_v42  ;;  %v7185_v28 = vpop.f32.mrb[251].mxu0 }
 0x7fd   :  { %6812 = vmatmul.mubr.bf16.vlgmr.msra.gmra.mrb[184].mxu1 %v16481_v47  ;;  %v13685_v47 = vld [vmem:[%s18444_s4 + $0x1e0] ss:$12 sps:$4 sm:$0xff]  }
 0x7fe   :  { %10886 = vmatprep.mubr.msk.bf16.mxu1 %vm6114_vm5, %v16490_v40  ;;  %7410 = vmatpush1.bf16.msra.mxu1 %v13679_v49  ;;  %v13690_v49 = vld [vmem:[%s18444_s4 + $0x1fc] ss:$12 sps:$4 sm:$0xff]  }
 0x7ff   :  { %7411 = vmatprep.subr.bf16.mxu1 %v13684_v51  ;;  %v13688_v51 = vld [vmem:[%s18444_s4 + $0x1f8] ss:$12 sps:$4 sm:$0xff]  }
 0x800   :  { %v17041_v28 = vpop.f32.mrb[252].mxu0 }
 0x801   :  { %18886 = vst [vmem:[#allocation33_spill] sm:$0xff] %v17041_v28  ;;  %v7190_v21 = vpop.f32.mrb[253].mxu0 }
 0x802   :  { %v17043_v57 = vpop.f32.mrb[254].mxu0  ;;  %7412 = vmatpush1.bf16.msra.mxu1 %v13682_v11  ;;  %v13693_v11 = vld [vmem:[%s18444_s4 + $0x214] ss:$12 sps:$4 sm:$0xff]  }
 0x803   :  { %18887 = vst [vmem:[#allocation38_spill] sm:$0xff] %v17043_v57  ;;  %v7193_v40 = vpop.f32.mrb[255].mxu0  ;;  %7413 = vmatprep.subr.bf16.mxu1 %v13687_v45 }
 0x805   :  { %6822 = vmatmul.mubr.bf16.gmra.mrb[188].mxu1 %v16488_v59  ;;  %v13691_v59 = vld [vmem:[%s18444_s4 + $0x210] ss:$12 sps:$4 sm:$0xff]  }
 0x806   :  { %10887 = vmatprep.mubr.msk.bf16.mxu1 %vm6114_vm5, %v16514_v48  ;;  %7414 = vmatpush1.bf16.msra.mxu1 %v13685_v47 }
 0x807   :  { %7415 = vmatprep.subr.bf16.mxu1 %v13690_v49  ;;  %v13696_v49 = vld [vmem:[%s18444_s4 + $0x22c] ss:$12 sps:$4 sm:$0xff]  }
 0x808   :  { %v17060_v45 = vpop.f32.mrb[0].mxu0 }
 0x809   :  { %18888 = vst [vmem:[#allocation37_spill] sm:$0xff] %v17060_v45  ;;  %v7198_v21 = vpop.f32.mrb[1].mxu0  ;;  %v13697_v45 = vld [vmem:[%s18444_s4 + $0x240] ss:$12 sps:$4 sm:$0xff]  }
 0x80a   :  { %v17062_v40 = vpop.f32.mrb[2].mxu0  ;;  %7416 = vmatpush1.bf16.msra.mxu1 %v13688_v51  ;;  %v13694_v51 = vld [vmem:[%s18444_s4 + $0x228] ss:$12 sps:$4 sm:$0xff]   ;;  %v13699_v21 = vld [vmem:[%s18444_s4 + $0x244] ss:$12 sps:$4 sm:$0xff]  }
 0x80b   :  { %18889 = vst [vmem:[#allocation27_spill] sm:$0xff] %v17062_v40  ;;  %v7201_v47 = vpop.f32.mrb[3].mxu0  ;;  %7417 = vmatprep.subr.bf16.mxu1 %v13693_v11 }
 0x80d   :  { %6832 = vmatmul.mubr.bf16.gmra.mrb[192].mxu1 %v16512_v6 }
 0x80e   :  { %10888 = vmatprep.mubr.msk.bf16.mxu1 %vm6114_vm5, %v16540_v22  ;;  %7418 = vmatpush1.bf16.msra.mxu1 %v13691_v59 }
 0x80f   :  { %7419 = vmatprep.subr.bf16.mxu1 %v13696_v49  ;;  %v13702_v49 = vld [vmem:[%s18444_s4 + $0x25c] ss:$12 sps:$4 sm:$0xff]  }
 0x810   :  { %v17079_v11 = vpop.f32.mrb[4].mxu0 }
 0x811   :  { %18890 = vst [vmem:[#allocation10_spill] sm:$0xff] %v17079_v11  ;;  %v7206_v47 = vpop.f32.mrb[5].mxu0  ;;  %v13705_v11 = vld [vmem:[%s18444_s4 + $0x270] ss:$12 sps:$4 sm:$0x1f]  }
 0x812   :  { %v17081_v40 = vpop.f32.mrb[6].mxu0  ;;  %7420 = vmatpush1.bf16.msra.mxu1 %v13694_v51  ;;  %v13700_v51 = vld [vmem:[%s18444_s4 + $0x258] ss:$12 sps:$4 sm:$0xff]  }
 0x813   :  { %18891 = vst [vmem:[#allocation22_spill] sm:$0xff] %v17081_v40  ;;  %v7209_v59 = vpop.f32.mrb[7].mxu0  ;;  %7421 = vmatprep.subr.bf16.mxu1 %v13699_v21  ;;  %v13703_v21 = vld [vmem:[%s18444_s4 + $0x274] ss:$12 sps:$4 sm:$0x1f]  }
 0x815   :  { %6842 = vmatmul.mubr.bf16.gmra.mrb[196].mxu1 %v16538_v62 }
 0x816   :  { %10889 = vmatprep.mubr.msk.bf16.mxu1 %vm6114_vm5, %v16566_v23  ;;  %7422 = vmatpush1.bf16.msra.mxu1 %v13697_v45  ;;  %v7401_v45 = vsel %vm6178_vm4, %v13705_v11, 0 }
 0x817   :  { %7423 = vmatprep.subr.bf16.mxu1 %v13702_v49 }
 0x818   :  { %v7212_v47 = vpop.f32.mrb[8].mxu0 }
 0x819   :  { %v7213_v40 = vpop.f32.mrb[9].mxu0 }
 0x81a   :  { %v7214_v59 = vpop.f32.mrb[10].mxu0  ;;  %7424 = vmatpush1.bf16.msra.mxu1 %v13700_v51 }
 0x81b   :  { %v7215_v57 = vpop.f32.mrb[11].mxu0  ;;  %10990 = vmatprep.subr.msk.bf16.mxu1 %vm6178_vm4, %v13703_v21 }
 0x81d   :  { %6852 = vmatmul.mubr.bf16.gmra.mrb[200].mxu1 %v16564_v30 }
 0x81e   :  { %10890 = vmatprep.mubr.msk.bf16.mxu1 %vm6114_vm5, %v16595_v56  ;;  %7426 = vmatpush1.bf16.msra.mxu1 %v7401_v45 }
 0x820   :  { %v6422_v40 = vpop.f32.mrb[8].mxu1  ;;  %v7682_v49 = vpop.f32.mrb[12].mxu0 }
 0x821   :  { %v6423_v47 = vpop.f32.mrb[9].mxu1  ;;  %v7684_v59 = vpop.f32.mrb[13].mxu0 }
 0x822   :  { %v6424_v51 = vpop.f32.mrb[10].mxu1  ;;  %v7685_v28 = vpop.f32.mrb[14].mxu0 }
 0x823   :  { %v6425_v23 = vpop.f32.mrb[11].mxu1  ;;  %v7687_v62 = vpop.f32.mrb[15].mxu0 }
 0x824   :  { %v17114_v62 = vld [vmem:[%s18445_s5] sm:$0x7] }
 0x825   :  { %6862 = vmatmul.mubr.bf16.gmra.mrb[204].mxu1 %v16593_v7  ;;  %18892 = vst [vmem:[#allocation12_spill] sm:$0xff] %v17114_v62 }
 0x826   :  { %10891 = vmatprep.mubr.msk.bf16.mxu1 %vm6114_vm5, %v16612_v27 }
 0x828   :  { %v6461_v57 = vpop.f32.mrb[12].mxu1  ;;  %v7690_v11 = vpop.f32.mrb[16].mxu0 }
 0x829   :  { %v7053_v21 = vadd.f32 %v16864_v18, %v6461_v57  ;;  %v6463_v30 = vpop.f32.mrb[13].mxu1  ;;  %v7692_v56 = vpop.f32.mrb[17].mxu0 }
 0x82a   :  { %v6464_v45 = vpop.f32.mrb[14].mxu1  ;;  %v7693_v40 = vpop.f32.mrb[18].mxu0  ;;  %v18893_v30 = vld [vmem:[#allocation18_spill] sm:$0xff] }
 0x82b   :  { %v7849_v42 = vadd.f32 %v7682_v49, %v7053_v21  ;;  %v7056_v47 = vadd.f32 %v16866_v33, %v6464_v45  ;;  %v6466_v59 = vpop.f32.mrb[15].mxu1  ;;  %v7695_v51 = vpop.f32.mrb[19].mxu0  ;;  %v18894_v56 = vsub.s32 2, %v18893_v30 }
 0x82d   :  { %v7852_v23 = vadd.f32 %v7685_v28, %v7056_v47  ;;  %6872 = vmatmul.mubr.bf16.gmra.mrb[208].mxu1 %v16610_v20  ;;  %v17122_v18 = vrot.slane %v17114_v62, %v18894_v56 }
 0x82e   :  { %10892 = vmatprep.mubr.msk.bf16.mxu1 %vm6114_vm5, %v16625_v53 }
 0x82f   :  { %v7986_v28 = vadd.f32 %v17122_v18, %v7849_v42  ;;  %v7989_v30 = vadd.f32 %v17122_v18, %v7852_v23 }
 0x830   :  { %v6469_v49 = vpop.f32.mrb[16].mxu1  ;;  %v7698_v33 = vpop.f32.mrb[20].mxu0 }
 0x831   :  { %v7061_v57 = vadd.f32 %v16877_v25, %v6469_v49  ;;  %v6471_v21 = vpop.f32.mrb[17].mxu1  ;;  %v7700_v45 = vpop.f32.mrb[21].mxu0  ;;  %v8106_v25 = vmax.f32 %v7986_v28, 0.0 }
 0x832   :  { %v6472_v59 = vpop.f32.mrb[18].mxu1  ;;  %v7701_v51 = vpop.f32.mrb[22].mxu0 }
 0x833   :  { %v7855_v47 = vadd.f32 %v7690_v11, %v7061_v57  ;;  %v7064_v20 = vadd.f32 %v16879_v14, %v6472_v59  ;;  %v6474_v27 = vpop.f32.mrb[19].mxu1  ;;  %v7703_v53 = vpop.f32.mrb[23].mxu0  ;;  %v8109_v57 = vmax.f32 %v7989_v30, 0.0 }
 0x835   :  { %v7992_v56 = vadd.f32 %v17122_v18, %v7855_v47  ;;  %v7858_v62 = vadd.f32 %v7693_v40, %v7064_v20  ;;  %6882 = vmatmul.mubr.bf16.gmra.mrb[212].mxu1 %v16623_v58 }
 0x836   :  { %10893 = vmatprep.mubr.msk.bf16.mxu1 %vm6114_vm5, %v16635_v34 }
 0x837   :  { %v8112_v49 = vmax.f32 %v7992_v56, 0.0  ;;  %v7995_v21 = vadd.f32 %v17122_v18, %v7858_v62 }
 0x838   :  { %v6477_v42 = vpop.f32.mrb[20].mxu1  ;;  %v7706_v11 = vpop.f32.mrb[24].mxu0 }
 0x839   :  { %v8115_v14 = vmax.f32 %v7995_v21, 0.0  ;;  %v7069_v27 = vadd.f32 %v16887_v12, %v6477_v42  ;;  %v6479_v53 = vpop.f32.mrb[21].mxu1  ;;  %v7708_v23 = vpop.f32.mrb[25].mxu0  ;;  %v17134_v45 = vmax.f32 %v8106_v25, %v8112_v49 }
 0x83a   :  { %v6480_v20 = vpop.f32.mrb[22].mxu1  ;;  %v7709_v40 = vpop.f32.mrb[26].mxu0 }
 0x83b   :  { %18895 = vst [vmem:[#allocation21_spill] sm:$0xff] %v17134_v45  ;;  %v7861_v59 = vadd.f32 %v7698_v33, %v7069_v27  ;;  %v7072_v47 = vadd.f32 %v16889_v46, %v6480_v20  ;;  %v6482_v34 = vpop.f32.mrb[23].mxu1  ;;  %v7711_v28 = vpop.f32.mrb[27].mxu0  ;;  %v17137_v56 = vmax.f32 %v8109_v57, %v8115_v14 }
 0x83d   :  { %18896 = vst [vmem:[#allocation20_spill] sm:$0xff] %v17137_v56  ;;  %v7864_v62 = vadd.f32 %v7701_v51, %v7072_v47  ;;  %6892 = vmatmul.mubr.bf16.gmra.mrb[216].mxu1 %v16633_v9  ;;  %v7998_v46 = vadd.f32 %v17122_v18, %v7861_v59 }
 0x83e   :  { %10894 = vmatprep.mubr.msk.bf16.mxu1 %vm6114_vm5, %v16645_v13 }
 0x83f   :  { %v8001_v27 = vadd.f32 %v17122_v18, %v7864_v62 }
 0x840   :  { %v6485_v12 = vpop.f32.mrb[24].mxu1  ;;  %v7714_v30 = vpop.f32.mrb[28].mxu0 }
 0x841   :  { %v7077_v25 = vadd.f32 %v16897_v10, %v6485_v12  ;;  %v6487_v49 = vpop.f32.mrb[25].mxu1  ;;  %v7716_v21 = vpop.f32.mrb[29].mxu0  ;;  %v8118_v10 = vmax.f32 %v7998_v46, 0.0  ;;  %v8121_v28 = vmax.f32 %v8001_v27, 0.0 }
 0x842   :  { %v6488_v42 = vpop.f32.mrb[26].mxu1  ;;  %v7717_v33 = vpop.f32.mrb[30].mxu0 }
 0x843   :  { %v7867_v34 = vadd.f32 %v7706_v11, %v7077_v25  ;;  %v7080_v57 = vadd.f32 %v16899_v61, %v6488_v42  ;;  %v6490_v14 = vpop.f32.mrb[27].mxu1  ;;  %v7719_v51 = vpop.f32.mrb[31].mxu0 }
 0x845   :  { %v8004_v53 = vadd.f32 %v17122_v18, %v7867_v34  ;;  %v7870_v23 = vadd.f32 %v7709_v40, %v7080_v57  ;;  %6902 = vmatmul.mubr.bf16.gmra.mrb[220].mxu1 %v16643_v1 }
 0x846   :  { %10895 = vmatprep.mubr.msk.bf16.mxu1 %vm6114_vm5, %v16655_v38 }
 0x847   :  { %v8124_v20 = vmax.f32 %v8004_v53, 0.0  ;;  %v8007_v47 = vadd.f32 %v17122_v18, %v7870_v23 }
 0x848   :  { %v6493_v59 = vpop.f32.mrb[28].mxu1  ;;  %v7722_v11 = vpop.f32.mrb[32].mxu0 }
 0x849   :  { %v8127_v61 = vmax.f32 %v8007_v47, 0.0  ;;  %v7085_v12 = vadd.f32 %v16907_v2, %v6493_v59  ;;  %v6495_v25 = vpop.f32.mrb[29].mxu1  ;;  %v7724_v62 = vpop.f32.mrb[33].mxu0  ;;  %v17152_v49 = vmax.f32 %v8118_v10, %v8124_v20 }
 0x84a   :  { %v6496_v40 = vpop.f32.mrb[30].mxu1  ;;  %v7725_v21 = vpop.f32.mrb[34].mxu0  ;;  %v18897_v62 = vld [vmem:[#allocation56_spill] sm:$0xff] }
 0x84b   :  { %v7873_v42 = vadd.f32 %v7714_v30, %v7085_v12  ;;  %v7088_v34 = vadd.f32 %v16909_v19, %v6496_v40  ;;  %v6498_v57 = vpop.f32.mrb[31].mxu1  ;;  %v7727_v46 = vpop.f32.mrb[35].mxu0  ;;  %v17155_v14 = vmax.f32 %v8121_v28, %v8127_v61 }
 0x84c   :  { %v18898_v46 = vld [vmem:[#allocation25_spill] sm:$0xff] }
 0x84d   :  { %v7876_v51 = vadd.f32 %v7717_v33, %v7088_v34  ;;  %6912 = vmatmul.mubr.bf16.gmra.mrb[224].mxu1 %v16653_v29  ;;  %v8010_v19 = vadd.f32 %v17122_v18, %v7873_v42 }
 0x84e   :  { %10896 = vmatprep.mubr.msk.bf16.mxu1 %vm6114_vm5, %v16665_v36 }
 0x84f   :  { %v8013_v61 = vadd.f32 %v17122_v18, %v7876_v51 }
 0x850   :  { %v6501_v2 = vpop.f32.mrb[32].mxu1  ;;  %v7730_v27 = vpop.f32.mrb[36].mxu0 }
 0x851   :  { %v7093_v53 = vadd.f32 %v16917_v16, %v6501_v2  ;;  %v6503_v23 = vpop.f32.mrb[33].mxu1  ;;  %v7732_v10 = vpop.f32.mrb[37].mxu0  ;;  %v8130_v16 = vmax.f32 %v8010_v19, 0.0  ;;  %v8133_v57 = vmax.f32 %v8013_v61, 0.0  ;;  %v18899_v61 = vld [vmem:[#allocation28_spill] sm:$0xff] }
 0x852   :  { %v6504_v20 = vpop.f32.mrb[34].mxu1  ;;  %v7733_v30 = vpop.f32.mrb[38].mxu0 }
 0x853   :  { %v7879_v47 = vadd.f32 %v7722_v11, %v7093_v53  ;;  %v7096_v59 = vadd.f32 %v16919_v39, %v6504_v20  ;;  %v6506_v28 = vpop.f32.mrb[35].mxu1  ;;  %v7735_v33 = vpop.f32.mrb[39].mxu0 }
 0x855   :  { %v8016_v12 = vadd.f32 %v17122_v18, %v7879_v47  ;;  %v7882_v25 = vadd.f32 %v7725_v21, %v7096_v59  ;;  %6922 = vmatmul.mubr.bf16.gmra.mrb[228].mxu1 %v16663_v44 }
 0x856   :  { %10897 = vmatprep.mubr.msk.bf16.mxu1 %vm6114_vm5, %v18897_v62 }
 0x857   :  { %v8136_v40 = vmax.f32 %v8016_v12, 0.0  ;;  %v8019_v34 = vadd.f32 %v17122_v18, %v7882_v25 }
 0x858   :  { %v6509_v42 = vpop.f32.mrb[36].mxu1  ;;  %v7738_v11 = vpop.f32.mrb[40].mxu0 }
 0x859   :  { %v8139_v39 = vmax.f32 %v8019_v34, 0.0  ;;  %v7101_v2 = vadd.f32 %v18898_v46, %v6509_v42  ;;  %v6511_v53 = vpop.f32.mrb[37].mxu1  ;;  %v7740_v51 = vpop.f32.mrb[41].mxu0  ;;  %v17170_v23 = vmax.f32 %v8130_v16, %v8136_v40  ;;  %v18900_v34 = vld [vmem:[#allocation15_spill] sm:$0xff] }
 0x85a   :  { %v6512_v21 = vpop.f32.mrb[38].mxu1  ;;  %v7741_v10 = vpop.f32.mrb[42].mxu0 }
 0x85b   :  { %v7885_v20 = vadd.f32 %v7730_v27, %v7101_v2  ;;  %v7104_v47 = vadd.f32 %v16929_v52, %v6512_v21  ;;  %v6514_v59 = vpop.f32.mrb[39].mxu1  ;;  %v7743_v19 = vpop.f32.mrb[43].mxu0  ;;  %v17173_v28 = vmax.f32 %v8133_v57, %v8139_v39 }
 0x85d   :  { %v7888_v33 = vadd.f32 %v7733_v30, %v7104_v47  ;;  %6932 = vmatmul.mubr.bf16.gmra.mrb[232].mxu1 %v16673_v15  ;;  %v8022_v52 = vadd.f32 %v17122_v18, %v7885_v20  ;;  %v18901_v47 = vld [vmem:[#allocation41_spill] sm:$0xff] }
 0x85e   :  { %10898 = vmatprep.mubr.msk.bf16.mxu1 %vm6114_vm5, %v18899_v61 }
 0x85f   :  { %v8025_v53 = vadd.f32 %v17122_v18, %v7888_v33  ;;  %v8142_v59 = vmax.f32 %v8022_v52, 0.0 }
 0x860   :  { %v6517_v12 = vpop.f32.mrb[40].mxu1  ;;  %v7746_v25 = vpop.f32.mrb[44].mxu0 }
 0x861   :  { %v7109_v16 = vadd.f32 %v18900_v34, %v6517_v12  ;;  %v6519_v40 = vpop.f32.mrb[41].mxu1  ;;  %v7748_v42 = vpop.f32.mrb[45].mxu0  ;;  %v8145_v34 = vmax.f32 %v8025_v53, 0.0  ;;  %v18903_v53 = vld [vmem:[#allocation42_spill] sm:$0xff] }
 0x862   :  { %v6520_v46 = vpop.f32.mrb[42].mxu1  ;;  %v7749_v27 = vpop.f32.mrb[46].mxu0 }
 0x863   :  { %v7891_v2 = vadd.f32 %v7738_v11, %v7109_v16  ;;  %v7112_v57 = vadd.f32 %v16939_v50, %v6520_v46  ;;  %v6522_v39 = vpop.f32.mrb[43].mxu1  ;;  %v7751_v30 = vpop.f32.mrb[47].mxu0  ;;  %v18902_v16 = vld [vmem:[#allocation29_spill] sm:$0xff] }
 0x865   :  { %v8028_v51 = vadd.f32 %v17122_v18, %v7891_v2  ;;  %v7894_v21 = vadd.f32 %v7741_v10, %v7112_v57  ;;  %6942 = vmatmul.mubr.bf16.gmra.mrb[236].mxu1 %v16683_v31 }
 0x866   :  { %10899 = vmatprep.mubr.msk.bf16.mxu1 %vm6114_vm5, %v18901_v47 }
 0x867   :  { %v8148_v19 = vmax.f32 %v8028_v51, 0.0  ;;  %v8031_v12 = vadd.f32 %v17122_v18, %v7894_v21 }
 0x868   :  { %v6525_v20 = vpop.f32.mrb[44].mxu1  ;;  %v7754_v11 = vpop.f32.mrb[48].mxu0 }
 0x869   :  { %v8151_v50 = vmax.f32 %v8031_v12, 0.0  ;;  %v7117_v40 = vadd.f32 %v18902_v16, %v6525_v20  ;;  %v6527_v42 = vpop.f32.mrb[45].mxu1  ;;  %v7756_v33 = vpop.f32.mrb[49].mxu0  ;;  %v17188_v46 = vmax.f32 %v8142_v59, %v8148_v19  ;;  %v18904_v16 = vld [vmem:[#allocation16_spill] sm:$0xff] }
 0x86a   :  { %v6528_v10 = vpop.f32.mrb[46].mxu1  ;;  %v7757_v2 = vpop.f32.mrb[50].mxu0 }
 0x86b   :  { %v7897_v57 = vadd.f32 %v7746_v25, %v7117_v40  ;;  %v7120_v39 = vadd.f32 %v16949_v35, %v6528_v10  ;;  %v6530_v30 = vpop.f32.mrb[47].mxu1  ;;  %v7759_v52 = vpop.f32.mrb[51].mxu0  ;;  %v17191_v51 = vmax.f32 %v8145_v34, %v8151_v50 }
 0x86c   :  { %v18905_v52 = vld [vmem:[#allocation47_spill] sm:$0xff] }
 0x86d   :  { %v7900_v21 = vadd.f32 %v7749_v27, %v7120_v39  ;;  %6952 = vmatmul.mubr.bf16.gmra.mrb[240].mxu1 %v16693_v54  ;;  %v8034_v35 = vadd.f32 %v17122_v18, %v7897_v57 }
 0x86e   :  { %10900 = vmatprep.mubr.msk.bf16.mxu1 %vm6114_vm5, %v18903_v53 }
 0x86f   :  { %v8037_v10 = vadd.f32 %v17122_v18, %v7900_v21 }
 0x870   :  { %v6533_v12 = vpop.f32.mrb[48].mxu1  ;;  %v7762_v20 = vpop.f32.mrb[52].mxu0 }
 0x871   :  { %v7125_v59 = vadd.f32 %v18904_v16, %v6533_v12  ;;  %v6535_v19 = vpop.f32.mrb[49].mxu1  ;;  %v7764_v42 = vpop.f32.mrb[53].mxu0  ;;  %v8154_v12 = vmax.f32 %v8034_v35, 0.0 }
 0x872   :  { %v6536_v33 = vpop.f32.mrb[50].mxu1  ;;  %v7765_v25 = vpop.f32.mrb[54].mxu0  ;;  %v18906_v42 = vld [vmem:[#allocation17_spill] sm:$0xff] }
 0x873   :  { %v7903_v40 = vadd.f32 %v7754_v11, %v7125_v59  ;;  %v7128_v34 = vadd.f32 %v16959_v4, %v6536_v33  ;;  %v6538_v50 = vpop.f32.mrb[51].mxu1  ;;  %v7767_v27 = vpop.f32.mrb[55].mxu0  ;;  %v8157_v59 = vmax.f32 %v8037_v10, 0.0  ;;  %v18909_v10 = vld [vmem:[#allocation48_spill] sm:$0xff] }
 0x875   :  { %v8040_v39 = vadd.f32 %v17122_v18, %v7903_v40  ;;  %v7906_v30 = vadd.f32 %v7757_v2, %v7128_v34  ;;  %6962 = vmatmul.mubr.bf16.gmra.mrb[244].mxu1 %v16703_v8 }
 0x876   :  { %10901 = vmatprep.mubr.msk.bf16.mxu1 %vm6114_vm5, %v18905_v52 }
 0x877   :  { %v8160_v16 = vmax.f32 %v8040_v39, 0.0  ;;  %v8043_v19 = vadd.f32 %v17122_v18, %v7906_v30 }
 0x878   :  { %v6541_v57 = vpop.f32.mrb[52].mxu1  ;;  %v7770_v11 = vpop.f32.mrb[56].mxu0 }
 0x879   :  { %v8163_v4 = vmax.f32 %v8043_v19, 0.0  ;;  %v7133_v33 = vadd.f32 %v18906_v42, %v6541_v57  ;;  %v6543_v50 = vpop.f32.mrb[53].mxu1  ;;  %v7772_v21 = vpop.f32.mrb[57].mxu0  ;;  %v17206_v27 = vmax.f32 %v8154_v12, %v8160_v16  ;;  %v18910_v42 = vld [vmem:[#allocation30_spill] sm:$0xff] }
 0x87a   :  { %v6544_v2 = vpop.f32.mrb[54].mxu1  ;;  %v7773_v40 = vpop.f32.mrb[58].mxu0 }
 0x87b   :  { %18907 = vst [vmem:[#allocation14_spill] sm:$0xff] %v17206_v27  ;;  %v7909_v34 = vadd.f32 %v7762_v20, %v7133_v33  ;;  %v7136_v56 = vadd.f32 %v16969_v41, %v6544_v2  ;;  %v6546_v45 = vpop.f32.mrb[55].mxu1  ;;  %v7775_v35 = vpop.f32.mrb[59].mxu0  ;;  %v17209_v39 = vmax.f32 %v8157_v59, %v8163_v4 }
 0x87c   :  { %v18911_v35 = vld [vmem:[#allocation53_spill] sm:$0xff] }
 0x87d   :  { %18908 = vst [vmem:[#allocation24_spill] sm:$0xff] %v17209_v39  ;;  %v7912_v30 = vadd.f32 %v7765_v25, %v7136_v56  ;;  %6972 = vmatmul.mubr.bf16.gmra.mrb[248].mxu1 %v16713_v63  ;;  %v8046_v41 = vadd.f32 %v17122_v18, %v7909_v34 }
 0x87e   :  { %10902 = vmatprep.mubr.msk.bf16.mxu1 %vm6114_vm5, %v18909_v10 }
 0x87f   :  { %v8049_v25 = vadd.f32 %v17122_v18, %v7912_v30 }
 0x880   :  { %v6549_v19 = vpop.f32.mrb[56].mxu1  ;;  %v7778_v57 = vpop.f32.mrb[60].mxu0 }
 0x881   :  { %v7141_v12 = vadd.f32 %v18910_v42, %v6549_v19  ;;  %v6551_v16 = vpop.f32.mrb[57].mxu1  ;;  %v7780_v50 = vpop.f32.mrb[61].mxu0  ;;  %v8166_v19 = vmax.f32 %v8046_v41, 0.0 }
 0x882   :  { %v6552_v21 = vpop.f32.mrb[58].mxu1  ;;  %v7781_v20 = vpop.f32.mrb[62].mxu0  ;;  %v18912_v50 = vld [vmem:[#allocation32_spill] sm:$0xff] }
 0x883   :  { %v7915_v45 = vadd.f32 %v7770_v11, %v7141_v12  ;;  %v7144_v59 = vadd.f32 %v16979_v60, %v6552_v21  ;;  %v6554_v4 = vpop.f32.mrb[59].mxu1  ;;  %v7783_v56 = vpop.f32.mrb[63].mxu0  ;;  %v8169_v12 = vmax.f32 %v8049_v25, 0.0  ;;  %v18915_v25 = vld [vmem:[#allocation51_spill] sm:$0xff] }
 0x885   :  { %v8052_v33 = vadd.f32 %v17122_v18, %v7915_v45  ;;  %v7918_v2 = vadd.f32 %v7773_v40, %v7144_v59  ;;  %6982 = vmatmul.mubr.bf16.gmra.mrb[252].mxu1 %v16723_v32 }
 0x886   :  { %10903 = vmatprep.mubr.msk.bf16.mxu1 %vm6114_vm5, %v18911_v35 }
 0x887   :  { %v8172_v42 = vmax.f32 %v8052_v33, 0.0  ;;  %v8055_v16 = vadd.f32 %v17122_v18, %v7918_v2 }
 0x888   :  { %v6557_v34 = vpop.f32.mrb[60].mxu1  ;;  %v7786_v11 = vpop.f32.mrb[64].mxu0 }
 0x889   :  { %v8175_v60 = vmax.f32 %v8055_v16, 0.0  ;;  %v7149_v21 = vadd.f32 %v18912_v50, %v6557_v34  ;;  %v6559_v4 = vpop.f32.mrb[61].mxu1  ;;  %v7788_v30 = vpop.f32.mrb[65].mxu0  ;;  %v17224_v56 = vmax.f32 %v8166_v19, %v8172_v42  ;;  %v18916_v50 = vld [vmem:[#allocation31_spill] sm:$0xff] }
 0x88a   :  { %v6560_v40 = vpop.f32.mrb[62].mxu1  ;;  %v7789_v45 = vpop.f32.mrb[66].mxu0 }
 0x88b   :  { %18913 = vst [vmem:[#allocation44_spill] sm:$0xff] %v17224_v56  ;;  %v7921_v59 = vadd.f32 %v7778_v57, %v7149_v21  ;;  %v7152_v39 = vadd.f32 %v16989_v3, %v6560_v40  ;;  %v6562_v27 = vpop.f32.mrb[63].mxu1  ;;  %v7791_v41 = vpop.f32.mrb[67].mxu0  ;;  %v17227_v33 = vmax.f32 %v8169_v12, %v8175_v60 }
 0x88c   :  { %v18917_v41 = vld [vmem:[#allocation54_spill] sm:$0xff] }
 0x88d   :  { %18914 = vst [vmem:[#allocation43_spill] sm:$0xff] %v17227_v33  ;;  %v7924_v2 = vadd.f32 %v7781_v20, %v7152_v39  ;;  %6992 = vmatmul.mubr.bf16.gmra.mrb[0].mxu1 %v16733_v0  ;;  %v8058_v3 = vadd.f32 %v17122_v18, %v7921_v59  ;;  %v18918_v33 = vld [vmem:[#allocation35_spill] sm:$0xff] }
 0x88e   :  { %10904 = vmatprep.mubr.msk.bf16.mxu1 %vm6114_vm5, %v18915_v25 }
 0x88f   :  { %v8061_v20 = vadd.f32 %v17122_v18, %v7924_v2 }
 0x890   :  { %v6565_v16 = vpop.f32.mrb[64].mxu1  ;;  %v7794_v34 = vpop.f32.mrb[68].mxu0 }
 0x891   :  { %v7157_v19 = vadd.f32 %v18916_v50, %v6565_v16  ;;  %v6567_v42 = vpop.f32.mrb[65].mxu1  ;;  %v7796_v4 = vpop.f32.mrb[69].mxu0  ;;  %v8178_v16 = vmax.f32 %v8058_v3, 0.0 }
 0x892   :  { %v6568_v30 = vpop.f32.mrb[66].mxu1  ;;  %v7797_v57 = vpop.f32.mrb[70].mxu0 }
 0x893   :  { %v7927_v27 = vadd.f32 %v7786_v11, %v7157_v19  ;;  %v7160_v12 = vadd.f32 %v16999_v17, %v6568_v30  ;;  %v6570_v60 = vpop.f32.mrb[67].mxu1  ;;  %v7799_v39 = vpop.f32.mrb[71].mxu0  ;;  %v8181_v19 = vmax.f32 %v8061_v20, 0.0 }
 0x895   :  { %v8064_v21 = vadd.f32 %v17122_v18, %v7927_v27  ;;  %v7930_v40 = vadd.f32 %v7789_v45, %v7160_v12  ;;  %7002 = vmatmul.mubr.bf16.gmra.mrb[4].mxu1 %v18917_v41 }
 0x896   :  { %10905 = vmatprep.mubr.msk.bf16.mxu1 %vm6114_vm5, %v18918_v33 }
 0x897   :  { %v8184_v50 = vmax.f32 %v8064_v21, 0.0  ;;  %v8067_v42 = vadd.f32 %v17122_v18, %v7930_v40 }
 0x898   :  { %v6573_v59 = vpop.f32.mrb[68].mxu1  ;;  %v7802_v11 = vpop.f32.mrb[72].mxu0 }
 0x899   :  { %v8187_v17 = vmax.f32 %v8067_v42, 0.0  ;;  %v7165_v4 = vadd.f32 %v17007_v37, %v6573_v59  ;;  %v6575_v30 = vpop.f32.mrb[69].mxu1  ;;  %v7804_v2 = vpop.f32.mrb[73].mxu0  ;;  %v17242_v60 = vmax.f32 %v8178_v16, %v8184_v50 }
 0x89a   :  { %v6576_v45 = vpop.f32.mrb[70].mxu1  ;;  %v7805_v27 = vpop.f32.mrb[74].mxu0 }
 0x89b   :  { %18919 = vst [vmem:[#allocation46_spill] sm:$0xff] %v17242_v60  ;;  %v7933_v12 = vadd.f32 %v7794_v34, %v7165_v4  ;;  %v7168_v39 = vadd.f32 %v17009_v24, %v6576_v45  ;;  %v6578_v56 = vpop.f32.mrb[71].mxu1  ;;  %v7807_v3 = vpop.f32.mrb[75].mxu0  ;;  %v17245_v21 = vmax.f32 %v8181_v19, %v8187_v17 }
 0x89d   :  { %18920 = vst [vmem:[#allocation45_spill] sm:$0xff] %v17245_v21  ;;  %v7936_v40 = vadd.f32 %v7797_v57, %v7168_v39  ;;  %7012 = vmatmul.mubr.bf16.gmra.mrb[96].mxu1 %v16753_v26  ;;  %v8070_v24 = vadd.f32 %v17122_v18, %v7933_v12 }
 0x89e   :  { %10991 = vmatprep.mubr.msk.bf16.mxu1 %vm6114_vm5, %v16514_v48 }
 0x89f   :  { %v8073_v4 = vadd.f32 %v17122_v18, %v7936_v40 }
 0x8a0   :  { %v6581_v37 = vpop.f32.mrb[72].mxu1  ;;  %v7810_v20 = vpop.f32.mrb[76].mxu0 }
 0x8a1   :  { %v7173_v16 = vadd.f32 %v17015_v43, %v6581_v37  ;;  %v6583_v50 = vpop.f32.mrb[73].mxu1  ;;  %v7812_v42 = vpop.f32.mrb[77].mxu0  ;;  %v8190_v43 = vmax.f32 %v8070_v24, 0.0  ;;  %v8193_v39 = vmax.f32 %v8073_v4, 0.0 }
 0x8a2   :  { %v6584_v59 = vpop.f32.mrb[74].mxu1  ;;  %v7813_v34 = vpop.f32.mrb[78].mxu0  ;;  %v18922_v42 = vld [vmem:[#allocation34_spill] sm:$0xff] }
 0x8a3   :  { %v7939_v56 = vadd.f32 %v7802_v11, %v7173_v16  ;;  %v7176_v19 = vadd.f32 %v17017_v5, %v6584_v59  ;;  %v6586_v17 = vpop.f32.mrb[75].mxu1  ;;  %v7815_v57 = vpop.f32.mrb[79].mxu0 }
 0x8a4   :  { %v18924_v17 = vld [vmem:[#allocation36_spill] sm:$0xff] }
 0x8a5   :  { %v8076_v30 = vadd.f32 %v17122_v18, %v7939_v56  ;;  %v7942_v48 = vadd.f32 %v7805_v27, %v7176_v19  ;;  %7442 = vmatmul.mubr.bf16.vlgmr.msra.gmra.mrb[184].mxu1 %v16512_v6  ;;  %v18925_v57 = vld [vmem:[#allocation40_spill] sm:$0xff] }
 0x8a6   :  { %10992 = vmatprep.mubr.msk.bf16.mxu1 %vm6114_vm5, %v16540_v22 }
 0x8a7   :  { %v8196_v2 = vmax.f32 %v8076_v30, 0.0  ;;  %v8079_v45 = vadd.f32 %v17122_v18, %v7942_v48  ;;  %v18926_v30 = vld [vmem:[#allocation33_spill] sm:$0xff] }
 0x8a8   :  { %v6589_v12 = vpop.f32.mrb[76].mxu1  ;;  %v7818_v11 = vpop.f32.mrb[80].mxu0 }
 0x8a9   :  { %v8199_v5 = vmax.f32 %v8079_v45, 0.0  ;;  %v7181_v3 = vadd.f32 %v17022_v55, %v6589_v12  ;;  %v6591_v37 = vpop.f32.mrb[77].mxu1  ;;  %v7820_v40 = vpop.f32.mrb[81].mxu0  ;;  %v17260_v16 = vmax.f32 %v8190_v43, %v8196_v2 }
 0x8aa   :  { %v6592_v27 = vpop.f32.mrb[78].mxu1  ;;  %v7821_v50 = vpop.f32.mrb[82].mxu0  ;;  %v18927_v37 = vld [vmem:[#allocation38_spill] sm:$0xff] }
 0x8ab   :  { %18921 = vst [vmem:[#allocation50_spill] sm:$0xff] %v17260_v16  ;;  %v7945_v6 = vadd.f32 %v7810_v20, %v7181_v3  ;;  %v7184_v59 = vadd.f32 %v18922_v42, %v6592_v27  ;;  %v6594_v22 = vpop.f32.mrb[79].mxu1  ;;  %v7823_v24 = vpop.f32.mrb[83].mxu0  ;;  %v17263_v56 = vmax.f32 %v8193_v39, %v8199_v5 }
 0x8ac   :  { %v18929_v22 = vld [vmem:[#allocation26_spill] sm:$0xff] }
 0x8ad   :  { %18923 = vst [vmem:[#allocation49_spill] sm:$0xff] %v17263_v56  ;;  %v7948_v19 = vadd.f32 %v7813_v34, %v7184_v59  ;;  %7452 = vmatmul.mubr.bf16.gmra.mrb[188].mxu1 %v18924_v17  ;;  %v8082_v12 = vadd.f32 %v17122_v18, %v7945_v6  ;;  %v18928_v59 = vld [vmem:[#allocation39_spill] sm:$0xff] }
 0x8ae   :  { %10993 = vmatprep.mubr.msk.bf16.mxu1 %vm6114_vm5, %v18925_v57 }
 0x8af   :  { %v8085_v40 = vadd.f32 %v17122_v18, %v7948_v19  ;;  %v8202_v24 = vmax.f32 %v8082_v12, 0.0 }
 0x8b0   :  { %v6597_v55 = vpop.f32.mrb[80].mxu1  ;;  %v7826_v4 = vpop.f32.mrb[84].mxu0 }
 0x8b1   :  { %v7189_v48 = vadd.f32 %v18926_v30, %v6597_v55  ;;  %v6599_v43 = vpop.f32.mrb[81].mxu1  ;;  %v7828_v2 = vpop.f32.mrb[85].mxu0  ;;  %v8205_v55 = vmax.f32 %v8085_v40, 0.0  ;;  %v18934_v40 = vld [vmem:[#allocation19_spill] sm:$0xff] }
 0x8b2   :  { %v6600_v45 = vpop.f32.mrb[82].mxu1  ;;  %v7829_v20 = vpop.f32.mrb[86].mxu0 }
 0x8b3   :  { %v7951_v3 = vadd.f32 %v7818_v11, %v7189_v48  ;;  %v7192_v39 = vadd.f32 %v18927_v37, %v6600_v45  ;;  %v6602_v5 = vpop.f32.mrb[83].mxu1  ;;  %v7831_v34 = vpop.f32.mrb[87].mxu0  ;;  %v18930_v48 = vld [vmem:[#allocation37_spill] sm:$0xff] }
 0x8b5   :  { %v8088_v27 = vadd.f32 %v17122_v18, %v7951_v3  ;;  %v7954_v42 = vadd.f32 %v7821_v50, %v7192_v39  ;;  %7462 = vmatmul.mubr.bf16.gmra.mrb[192].mxu1 %v18928_v59  ;;  %v18932_v39 = vld [vmem:[#allocation27_spill] sm:$0xff] }
 0x8b6   :  { %10994 = vmatprep.mubr.msk.bf16.mxu1 %vm6114_vm5, %v18929_v22 }
 0x8b7   :  { %v8208_v17 = vmax.f32 %v8088_v27, 0.0  ;;  %v8091_v57 = vadd.f32 %v17122_v18, %v7954_v42 }
 0x8b8   :  { %v6605_v6 = vpop.f32.mrb[84].mxu1  ;;  %v7834_v11 = vpop.f32.mrb[88].mxu0 }
 0x8b9   :  { %v8211_v30 = vmax.f32 %v8091_v57, 0.0  ;;  %v7197_v43 = vadd.f32 %v18930_v48, %v6605_v6  ;;  %v6607_v2 = vpop.f32.mrb[85].mxu1  ;;  %v7836_v19 = vpop.f32.mrb[89].mxu0  ;;  %v17278_v45 = vmax.f32 %v8202_v24, %v8208_v17  ;;  %v18935_v57 = vld [vmem:[#allocation10_spill] sm:$0xff] }
 0x8ba   :  { %v6608_v50 = vpop.f32.mrb[86].mxu1  ;;  %v7837_v3 = vpop.f32.mrb[90].mxu0  ;;  %v18936_v19 = vld [vmem:[#allocation22_spill] sm:$0xff] }
 0x8bb   :  { %18931 = vst [vmem:[#allocation56_spill] sm:$0xff] %v17278_v45  ;;  %v7957_v37 = vadd.f32 %v7826_v4, %v7197_v43  ;;  %v7200_v5 = vadd.f32 %v18932_v39, %v6608_v50  ;;  %v6610_v34 = vpop.f32.mrb[87].mxu1  ;;  %v7839_v12 = vpop.f32.mrb[91].mxu0  ;;  %v17281_v27 = vmax.f32 %v8205_v55, %v8211_v30 }
 0x8bc   :  { %v18938_v34 = vld [vmem:[#allocation11_spill] sm:$0xff] }
 0x8bd   :  { %18933 = vst [vmem:[#allocation25_spill] sm:$0xff] %v17281_v27  ;;  %v7960_v42 = vadd.f32 %v7829_v20, %v7200_v5  ;;  %7472 = vmatmul.mubr.bf16.gmra.mrb[196].mxu1 %v16593_v7  ;;  %v8094_v43 = vadd.f32 %v17122_v18, %v7957_v37  ;;  %v18937_v5 = vld [vmem:[#allocation9_spill] sm:$0xff] }
 0x8be   :  { %10995 = vmatprep.mubr.msk.bf16.mxu1 %vm6114_vm5, %v18934_v40 }
 0x8bf   :  { %v8097_v7 = vadd.f32 %v17122_v18, %v7960_v42  ;;  %v8214_v12 = vmax.f32 %v8094_v43, 0.0 }
 0x8c0   :  { %v6613_v59 = vpop.f32.mrb[88].mxu1  ;;  %v7842_v22 = vpop.f32.mrb[92].mxu0 }
 0x8c1   :  { %v7205_v24 = vadd.f32 %v18935_v57, %v6613_v59  ;;  %v6615_v17 = vpop.f32.mrb[89].mxu1  ;;  %v7843_v6 = vpop.f32.mrb[93].mxu0 }
 0x8c2   :  { %v6616_v48 = vpop.f32.mrb[90].mxu1  ;;  %v7844_v4 = vpop.f32.mrb[94].mxu0 }
 0x8c3   :  { %v7963_v2 = vadd.f32 %v7834_v11, %v7205_v24  ;;  %v7208_v55 = vadd.f32 %v18936_v19, %v6616_v48  ;;  %v6618_v30 = vpop.f32.mrb[91].mxu1  ;;  %v7845_v20 = vpop.f32.mrb[95].mxu0  ;;  %v8217_v11 = vmax.f32 %v8097_v7, 0.0  ;;  %v13715_v48 = vld [vmem:[%s18446_s6 + $0xc0] sm:$0xff]  }
 0x8c5   :  { %v8100_v50 = vadd.f32 %v17122_v18, %v7963_v2  ;;  %v7966_v39 = vadd.f32 %v7837_v3, %v7208_v55  ;;  %7482 = vmatmul.mubr.bf16.gmra.mrb[200].mxu1 %v18937_v5  ;;  %v18939_v3 = vld [vmem:[#allocation55_spill] sm:$0xff] }
 0x8c6   :  { %10996 = vmatprep.mubr.msk.bf16.mxu1 %vm6114_vm5, %v18938_v34 }
 0x8c7   :  { %v8220_v40 = vmax.f32 %v8100_v50, 0.0  ;;  %v8103_v59 = vadd.f32 %v17122_v18, %v7966_v39 }
 0x8c8   :  { %v6621_v37 = vpop.f32.mrb[92].mxu1 }
 0x8c9   :  { %v8223_v22 = vmax.f32 %v8103_v59, 0.0  ;;  %v6622_v57 = vpop.f32.mrb[93].mxu1  ;;  %v17295_v24 = vmax.f32 %v8214_v12, %v8220_v40 }
 0x8ca   :  { %v6623_v17 = vpop.f32.mrb[94].mxu1 }
 0x8cb   :  { %v6624_v42 = vpop.f32.mrb[95].mxu1  ;;  %v17297_v6 = vmax.f32 %v8217_v11, %v8223_v22 }
 0x8cd   :  { %7492 = vmatmul.mubr.bf16.gmra.mrb[204].mxu1 %v16623_v58  ;;  %v13706_v58 = vld [vmem:[%s18446_s6 + $0xe0] sm:$0xff]  }
 0x8ce   :  { %10997 = vmatprep.mubr.msk.bf16.mxu1 %vm6114_vm5, %v18939_v3  ;;  %11394 = vmatprep.subr.bf16.mxu0 %v13706_v58 }
 0x8d5   :  { %7502 = vmatmul.mubr.bf16.gmra.mrb[208].mxu1 %v16633_v9  ;;  %v13707_v9 = vld [vmem:[%s18446_s6 + $0xa0] sm:$0xff]  }
 0x8d6   :  { %10998 = vmatprep.mubr.msk.bf16.mxu1 %vm6114_vm5, %v16645_v13  ;;  %11395 = vmatpush3.bf16.msra.mxu0 %v13707_v9  ;;  %v18941_v13 = vld [vmem:[#allocation52_spill] sm:$0xff] }
 0x8dd   :  { %7512 = vmatmul.mubr.bf16.gmra.mrb[212].mxu1 %v16643_v1  ;;  %v18940_v1 = vld [vmem:[#allocation8_spill] sm:$0xff] }
 0x8de   :  { %10999 = vmatprep.mubr.msk.bf16.mxu1 %vm6114_vm5, %v16655_v38  ;;  %v13708_v38 = vld [vmem:[%s18446_s6 + $0xe8] sm:$0xff]  }
 0x8df   :  { %11396 = vmatprep.subr.bf16.mxu0 %v13708_v38 }
 0x8e5   :  { %7522 = vmatmul.mubr.bf16.gmra.mrb[216].mxu1 %v16653_v29  ;;  %v18942_v29 = vld [vmem:[#allocation13_spill] sm:$0xff] }
 0x8e6   :  { %11000 = vmatprep.mubr.msk.bf16.mxu1 %vm6114_vm5, %v16665_v36  ;;  %v18943_v36 = vld [vmem:[#allocation23_spill] sm:$0xff] }
 0x8ed   :  { %7532 = vmatmul.mubr.bf16.gmra.mrb[220].mxu1 %v16663_v44  ;;  %v13709_v44 = vld [vmem:[%s18446_s6 + $0xa8] sm:$0xff]  }
 0x8ee   :  { %11001 = vmatprep.mubr.msk.bf16.mxu1 %vm6114_vm5, %v18897_v62  ;;  %11397 = vmatpush3.bf16.msra.mxu0 %v13709_v44  ;;  %v13717_v44 = vld [vmem:[%s18446_s6 + $0x140] sm:$0xff]  }
 0x8f5   :  { %7542 = vmatmul.mubr.bf16.gmra.mrb[224].mxu1 %v16673_v15  ;;  %v13710_v15 = vld [vmem:[%s18446_s6 + $0xf0] sm:$0xff]  }
 0x8f6   :  { %11002 = vmatprep.mubr.msk.bf16.mxu1 %vm6114_vm5, %v18899_v61  ;;  %11398 = vmatprep.subr.bf16.mxu0 %v13710_v15  ;;  %v13718_v15 = vld [vmem:[%s18446_s6 + $0x108] sm:$0xff]  }
 0x8fd   :  { %7552 = vmatmul.mubr.bf16.gmra.mrb[228].mxu1 %v16683_v31  ;;  %v13711_v31 = vld [vmem:[%s18446_s6 + $0xb0] sm:$0xff]  }
 0x8fe   :  { %11003 = vmatprep.mubr.msk.bf16.mxu1 %vm6114_vm5, %v18901_v47  ;;  %11399 = vmatpush3.bf16.msra.mxu0 %v13711_v31  ;;  %v18944_v47 = vld [vmem:[#allocation18_spill] sm:$0xff]  ;;  %v13719_v31 = vld [vmem:[%s18446_s6 + $0x188] sm:$0xff]  }
 0x905   :  { %7562 = vmatmul.mubr.bf16.gmra.mrb[232].mxu1 %v16693_v54  ;;  %v13712_v54 = vld [vmem:[%s18446_s6 + $0xf8] sm:$0xff]  }
 0x906   :  { %11004 = vmatprep.mubr.msk.bf16.mxu1 %vm6114_vm5, %v18903_v53  ;;  %11400 = vmatprep.subr.bf16.mxu0 %v13712_v54  ;;  %v18945_v53 = vsub.s32 0, %v18944_v47  ;;  %v13720_v54 = vld [vmem:[%s18446_s6 + $0xc8] sm:$0xff]  }
 0x90d   :  { %7572 = vmatmul.mubr.bf16.gmra.mrb[236].mxu1 %v16703_v8  ;;  %v13713_v8 = vld [vmem:[%s18446_s6 + $0xb8] sm:$0xff]  }
 0x90e   :  { %11005 = vmatprep.mubr.msk.bf16.mxu1 %vm6114_vm5, %v18905_v52  ;;  %11401 = vmatpush3.bf16.msra.mxu0 %v13713_v8  ;;  %v18946_v52 = vld [vmem:[#allocation12_spill] sm:$0xff] }
 0x90f   :  { %v13721_v8 = vld [vmem:[%s18446_s6 + $0x148] sm:$0xff]  }
 0x915   :  { %7582 = vmatmul.mubr.bf16.gmra.mrb[240].mxu1 %v16713_v63 }
 0x916   :  { %11006 = vmatprep.mubr.msk.bf16.mxu1 %vm6114_vm5, %v18909_v10  ;;  %v17372_v10 = vrot.slane %v18946_v52, %v18945_v53 }
 0x91d   :  { %7592 = vmatmul.mubr.bf16.gmra.mrb[244].mxu1 %v16723_v32 }
 0x91e   :  { %11007 = vmatprep.mubr.msk.bf16.mxu1 %vm6114_vm5, %v18911_v35 }
 0x925   :  { %7602 = vmatmul.mubr.bf16.gmra.mrb[248].mxu1 %v16733_v0 }
 0x926   :  { %11008 = vmatprep.mubr.msk.bf16.mxu1 %vm6114_vm5, %v18915_v25 }
 0x92d   :  { %7612 = vmatmul.mubr.bf16.gmra.mrb[252].mxu1 %v18917_v41  ;;  %v13714_v41 = vld [vmem:[%s18446_s6 + $0x100] sm:$0xff]  }
 0x92e   :  { %11009 = vmatprep.mubr.msk.bf16.mxu1 %vm6114_vm5, %v18918_v33  ;;  %v18947_v33 = vsub.s32 1, %v18944_v47  ;;  %11402 = vmatprep.subr.bf16.mxu0 %v13714_v41  ;;  %v13723_v47 = vld [vmem:[%s18446_s6 + $0x190] sm:$0xff]  }
 0x92f   :  { %11403 = vmatpush3.bf16.msra.mxu0 %v13715_v48  ;;  %v13725_v41 = vld [vmem:[%s18446_s6 + $0x150] sm:$0xff]  }
 0x930   :  { %v17377_v25 = vrot.slane %v18946_v52, %v18947_v33  ;;  %11404 = vmatprep.subr.bf16.mxu0 %v13718_v15  ;;  %v13724_v33 = vld [vmem:[%s18446_s6 + $0xd0] sm:$0xff]   ;;  %v13732_v15 = vld [vmem:[%s18446_s6 + $0x1a8] sm:$0xff]  }
 0x933   :  { %11405 = vmatpush3.bf16.msra.mxu0 %v13720_v54  ;;  %v13733_v54 = vld [vmem:[%s18446_s6 + $0x168] sm:$0xff]  }
 0x935   :  { %7622 = vmatmul.mubr.bf16.gmra.mrb[0].mxu1 %v16753_v26 }
 0x936   :  { %11010 = vmatprep.mubr.msk.bf16.mxu1 %vm6114_vm5, %v18940_v1 }
 0x93d   :  { %7632 = vmatmul.mubr.bf16.gmra.mrb[4].mxu1 %v18941_v13 }
 0x93e   :  { %11011 = vmatprep.mubr.msk.bf16.mxu1 %vm6114_vm5, %v18942_v29  ;;  %v13716_v29 = vld [vmem:[%s18446_s6 + $0x180] sm:$0xff]  }
 0x93f   :  { %11546 = vmatprep.subr.bf16.mxu1 %v13716_v29  ;;  %v13731_v29 = vld [vmem:[%s18446_s6 + $0x160] sm:$0xff]  }
 0x940   :  { %11547 = vmatpush3.bf16.msra.mxu1 %v13717_v44 }
 0x941   :  { %11548 = vmatprep.subr.bf16.mxu1 %v13719_v31 }
 0x944   :  { %11549 = vmatpush3.bf16.msra.mxu1 %v13721_v8 }
 0x945   :  { %7642 = vmatmul.mubr.bf16.gmra.mrb[100].mxu1 %v18943_v36  ;;  %11550 = vmatprep.subr.bf16.mxu1 %v13723_v47 }
 0x948   :  { %11551 = vmatpush3.bf16.msra.mxu1 %v13725_v41 }
 0x970   :  { %v7013_v63 = vpop.f32.mrb[96].mxu1 }
 0x971   :  { %v7014_v32 = vpop.f32.mrb[97].mxu1 }
 0x972   :  { %v7015_v0 = vpop.f32.mrb[98].mxu1 }
 0x973   :  { %v7016_v26 = vpop.f32.mrb[99].mxu1 }
 0x978   :  { %v7443_v18 = vpop.f32.mrb[184].mxu1 }
 0x979   :  { %v7445_v62 = vpop.f32.mrb[185].mxu1  ;;  %v7984_v4 = vadd.f32 %v17372_v10, %v7443_v18 }
 0x97a   :  { %v7447_v61 = vpop.f32.mrb[186].mxu1  ;;  %v7985_v43 = vadd.f32 %v17377_v25, %v7445_v62 }
 0x97b   :  { %v7449_v35 = vpop.f32.mrb[187].mxu1  ;;  %v7987_v19 = vadd.f32 %v17372_v10, %v7447_v61  ;;  %v8104_v39 = vmax.f32 %v7984_v4, 0.0  ;;  %v13722_v61 = vld [vmem:[%s18446_s6 + $0x110] sm:$0xff]  }
 0x97c   :  { %v7988_v20 = vadd.f32 %v17377_v25, %v7449_v35  ;;  %v8105_v40 = vmax.f32 %v7985_v43, 0.0  ;;  %11406 = vmatprep.subr.bf16.mxu0 %v13722_v61 }
 0x97d   :  { %v8107_v11 = vmax.f32 %v7987_v19, 0.0  ;;  %11407 = vmatpush3.bf16.msra.mxu0 %v13724_v33 }
 0x97e   :  { %v8108_v17 = vmax.f32 %v7988_v20, 0.0 }
 0x980   :  { %v7453_v2 = vpop.f32.mrb[188].mxu1 }
 0x981   :  { %v7990_v55 = vadd.f32 %v17372_v10, %v7453_v2  ;;  %v7455_v30 = vpop.f32.mrb[189].mxu1 }
 0x982   :  { %v7991_v7 = vadd.f32 %v17377_v25, %v7455_v30  ;;  %v7457_v50 = vpop.f32.mrb[190].mxu1 }
 0x983   :  { %v8110_v5 = vmax.f32 %v7990_v55, 0.0  ;;  %v7993_v34 = vadd.f32 %v17372_v10, %v7457_v50  ;;  %v7459_v12 = vpop.f32.mrb[191].mxu1 }
 0x984   :  { %v8111_v59 = vmax.f32 %v7991_v7, 0.0  ;;  %v7994_v37 = vadd.f32 %v17377_v25, %v7459_v12 }
 0x985   :  { %v17393_v22 = vmax.f32 %v8104_v39, %v8110_v5  ;;  %v8113_v57 = vmax.f32 %v7993_v34, 0.0  ;;  %v13726_v39 = vld [vmem:[%s18446_s6 + $0x118] sm:$0xff]  }
 0x986   :  { %v17395_v42 = vmax.f32 %v8105_v40, %v8111_v59  ;;  %v8114_v3 = vmax.f32 %v7994_v37, 0.0  ;;  %v13727_v5 = vld [vmem:[%s18446_s6 + $0x198] sm:$0xff]   ;;  %11408 = vmatprep.subr.bf16.mxu0 %v13726_v39 }
 0x987   :  { %18948 = vst [vmem:[#allocation28_spill] sm:$0xff] %v17393_v22  ;;  %v17397_v58 = vmax.f32 %v8107_v11, %v8113_v57  ;;  %v13728_v59 = vld [vmem:[%s18446_s6 + $0xd8] sm:$0xff]   ;;  %11552 = vmatprep.subr.bf16.mxu1 %v13727_v5 }
 0x988   :  { %18949 = vst [vmem:[#allocation15_spill] sm:$0xff] %v17395_v42  ;;  %v17399_v9 = vmax.f32 %v8108_v17, %v8114_v3  ;;  %v7463_v1 = vpop.f32.mrb[192].mxu1  ;;  %v13729_v37 = vld [vmem:[%s18446_s6 + $0x158] sm:$0xff]   ;;  %11409 = vmatpush3.bf16.msra.mxu0 %v13728_v59 }
 0x989   :  { %18950 = vst [vmem:[#allocation41_spill] sm:$0xff] %v17397_v58  ;;  %v7465_v13 = vpop.f32.mrb[193].mxu1  ;;  %v7996_v63 = vadd.f32 %v17372_v10, %v7463_v1  ;;  %11553 = vmatpush3.bf16.msra.mxu1 %v13729_v37 }
 0x98a   :  { %18951 = vst [vmem:[#allocation29_spill] sm:$0xff] %v17399_v9  ;;  %v7467_v38 = vpop.f32.mrb[194].mxu1  ;;  %v7997_v32 = vadd.f32 %v17377_v25, %v7465_v13  ;;  %v13730_v13 = vld [vmem:[%s18446_s6 + $0x1a0] sm:$0xff]  }
 0x98b   :  { %v7469_v36 = vpop.f32.mrb[195].mxu1  ;;  %v7999_v26 = vadd.f32 %v17372_v10, %v7467_v38  ;;  %v8116_v48 = vmax.f32 %v7996_v63, 0.0  ;;  %11554 = vmatprep.subr.bf16.mxu1 %v13730_v13 }
 0x98c   :  { %v8000_v53 = vadd.f32 %v17377_v25, %v7469_v36  ;;  %v8117_v19 = vmax.f32 %v7997_v32, 0.0 }
 0x98d   :  { %v8119_v20 = vmax.f32 %v7999_v26, 0.0  ;;  %11555 = vmatpush3.bf16.msra.mxu1 %v13731_v29 }
 0x98e   :  { %v8120_v34 = vmax.f32 %v8000_v53, 0.0  ;;  %11556 = vmatprep.subr.bf16.mxu1 %v13732_v15 }
 0x990   :  { %v7473_v0 = vpop.f32.mrb[196].mxu1 }
 0x991   :  { %v8002_v18 = vadd.f32 %v17372_v10, %v7473_v0  ;;  %v7475_v62 = vpop.f32.mrb[197].mxu1  ;;  %11557 = vmatpush3.bf16.msra.mxu1 %v13733_v54 }
 0x992   :  { %v8003_v52 = vadd.f32 %v17377_v25, %v7475_v62  ;;  %v7477_v35 = vpop.f32.mrb[198].mxu1  ;;  %v13734_v62 = vld [vmem:[%s18446_s6 + $0x1b0] sm:$0xff]  }
 0x993   :  { %v8122_v4 = vmax.f32 %v8002_v18, 0.0  ;;  %v8005_v43 = vadd.f32 %v17372_v10, %v7477_v35  ;;  %v7479_v2 = vpop.f32.mrb[199].mxu1  ;;  %11558 = vmatprep.subr.bf16.mxu1 %v13734_v62 }
 0x994   :  { %v8123_v55 = vmax.f32 %v8003_v52, 0.0  ;;  %v8006_v30 = vadd.f32 %v17377_v25, %v7479_v2  ;;  %v13735_v52 = vld [vmem:[%s18446_s6 + $0x170] sm:$0xff]  }
 0x995   :  { %v17439_v7 = vmax.f32 %v8116_v48, %v8122_v4  ;;  %v8125_v50 = vmax.f32 %v8005_v43, 0.0  ;;  %11559 = vmatpush3.bf16.msra.mxu1 %v13735_v52 }
 0x996   :  { %v17447_v12 = vmax.f32 %v8117_v19, %v8123_v55  ;;  %v8126_v40 = vmax.f32 %v8006_v30, 0.0 }
 0x997   :  { %v17455_v11 = vmax.f32 %v8119_v20, %v8125_v50  ;;  %v13736_v20 = vld [vmem:[%s18446_s6 + $0x1b8] sm:$0xff]  }
 0x998   :  { %v17457_v57 = vmax.f32 %v8120_v34, %v8126_v40  ;;  %v7483_v17 = vpop.f32.mrb[200].mxu1  ;;  %v13341_v3 = vpack.i.bf16 %v17152_v49, %v17447_v12  ;;  %v13737_v34 = vld [vmem:[%s18446_s6 + $0x178] sm:$0xff]   ;;  %11560 = vmatprep.subr.bf16.mxu1 %v13736_v20 }
 0x999   :  { %v7485_v1 = vpop.f32.mrb[201].mxu1  ;;  %v13351_v31 = vpack.i.bf16 %v17455_v11, %v17439_v7  ;;  %v8008_v8 = vadd.f32 %v17372_v10, %v7483_v17  ;;  %11561 = vmatpush3.bf16.msra.mxu1 %v13737_v34 }
 0x99a   :  { %13342 = vrot.lane.b32.xlu1 %v13341_v3, %s13850_s27  ;;  %v7487_v38 = vpop.f32.mrb[202].mxu1  ;;  %v13346_v44 = vpack.i.bf16 %v17155_v14, %v17457_v57  ;;  %v8009_v63 = vadd.f32 %v17377_v25, %v7485_v1 }
 0x99b   :  { %v7489_v36 = vpop.f32.mrb[203].mxu1  ;;  %v8011_v0 = vadd.f32 %v17372_v10, %v7487_v38  ;;  %v8128_v35 = vmax.f32 %v8008_v8, 0.0 }
 0x99c   :  { %13347 = vrot.lane.b32.xlu0 %v13346_v44, %s13850_s27  ;;  %v8012_v61 = vadd.f32 %v17377_v25, %v7489_v36  ;;  %v8129_v4 = vmax.f32 %v8009_v63, 0.0 }
 0x99d   :  { %v8131_v19 = vmax.f32 %v8011_v0, 0.0 }
 0x99e   :  { %13352 = vrot.lane.b32.xlu1 %v13351_v31, %s13850_s27  ;;  %v8132_v50 = vmax.f32 %v8012_v61, 0.0 }
 0x9a0   :  { %v7493_v32 = vpop.f32.mrb[204].mxu1 }
 0x9a1   :  { %v8014_v26 = vadd.f32 %v17372_v10, %v7493_v32  ;;  %v7495_v18 = vpop.f32.mrb[205].mxu1 }
 0x9a2   :  { %v8015_v47 = vadd.f32 %v17377_v25, %v7495_v18  ;;  %v7497_v53 = vpop.f32.mrb[206].mxu1 }
 0x9a3   :  { %v8134_v33 = vmax.f32 %v8014_v26, 0.0  ;;  %v8017_v41 = vadd.f32 %v17372_v10, %v7497_v53  ;;  %v7499_v48 = vpop.f32.mrb[207].mxu1 }
 0x9a4   :  { %v8135_v43 = vmax.f32 %v8015_v47, 0.0  ;;  %v8018_v2 = vadd.f32 %v17377_v25, %v7499_v48 }
 0x9a5   :  { %v17494_v55 = vmax.f32 %v8128_v35, %v8134_v33  ;;  %v8137_v30 = vmax.f32 %v8017_v41, 0.0 }
 0x9a6   :  { %v17499_v39 = vmax.f32 %v8129_v4, %v8135_v43  ;;  %v8138_v5 = vmax.f32 %v8018_v2, 0.0 }
 0x9a7   :  { %v17504_v40 = vmax.f32 %v8131_v19, %v8137_v30 }
 0x9a8   :  { %v17506_v59 = vmax.f32 %v8132_v50, %v8138_v5  ;;  %v7503_v37 = vpop.f32.mrb[208].mxu1  ;;  %v13356_v17 = vpack.i.bf16 %v17170_v23, %v17499_v39 }
 0x9a9   :  { %v7505_v3 = vpop.f32.mrb[209].mxu1  ;;  %v13366_v38 = vpack.i.bf16 %v17504_v40, %v17494_v55  ;;  %v8020_v44 = vadd.f32 %v17372_v10, %v7503_v37 }
 0x9aa   :  { %13357 = vrot.lane.b32.xlu0 %v13356_v17, %s13850_s27  ;;  %v7507_v1 = vpop.f32.mrb[210].mxu1  ;;  %v13361_v13 = vpack.i.bf16 %v17173_v28, %v17506_v59  ;;  %v8021_v36 = vadd.f32 %v17377_v25, %v7505_v3 }
 0x9ab   :  { %v7509_v29 = vpop.f32.mrb[211].mxu1  ;;  %v8023_v31 = vadd.f32 %v17372_v10, %v7507_v1  ;;  %v8140_v26 = vmax.f32 %v8020_v44, 0.0 }
 0x9ac   :  { %13362 = vrot.lane.b32.xlu1 %v13361_v13, %s13850_s27  ;;  %v8024_v63 = vadd.f32 %v17377_v25, %v7509_v29  ;;  %v8141_v47 = vmax.f32 %v8021_v36, 0.0 }
 0x9ad   :  { %v8143_v35 = vmax.f32 %v8023_v31, 0.0 }
 0x9ae   :  { %13367 = vrot.lane.b32.xlu0 %v13366_v38, %s13850_s27  ;;  %v8144_v48 = vmax.f32 %v8024_v63, 0.0 }
 0x9b0   :  { %v7513_v15 = vpop.f32.mrb[212].mxu1 }
 0x9b1   :  { %v8026_v54 = vadd.f32 %v17372_v10, %v7513_v15  ;;  %v7515_v8 = vpop.f32.mrb[213].mxu1 }
 0x9b2   :  { %v8027_v32 = vadd.f32 %v17377_v25, %v7515_v8  ;;  %v7517_v0 = vpop.f32.mrb[214].mxu1 }
 0x9b3   :  { %v8146_v18 = vmax.f32 %v8026_v54, 0.0  ;;  %v8029_v62 = vadd.f32 %v17372_v10, %v7517_v0  ;;  %v7519_v61 = vpop.f32.mrb[215].mxu1 }
 0x9b4   :  { %v8147_v53 = vmax.f32 %v8027_v32, 0.0  ;;  %v8030_v52 = vadd.f32 %v17377_v25, %v7519_v61 }
 0x9b5   :  { %v17525_v33 = vmax.f32 %v8140_v26, %v8146_v18  ;;  %v8149_v41 = vmax.f32 %v8029_v62, 0.0 }
 0x9b6   :  { %v17527_v4 = vmax.f32 %v8141_v47, %v8147_v53  ;;  %v8150_v43 = vmax.f32 %v8030_v52, 0.0 }
 0x9b7   :  { %v17529_v2 = vmax.f32 %v8143_v35, %v8149_v41 }
 0x9b8   :  { %v17531_v19 = vmax.f32 %v8144_v48, %v8150_v43  ;;  %v7523_v30 = vpop.f32.mrb[216].mxu1  ;;  %v13371_v20 = vpack.i.bf16 %v17188_v46, %v17527_v4 }
 0x9b9   :  { %v7525_v50 = vpop.f32.mrb[217].mxu1  ;;  %v13381_v17 = vpack.i.bf16 %v17529_v2, %v17525_v33  ;;  %v8032_v3 = vadd.f32 %v17372_v10, %v7523_v30  ;;  %v18952_v30 = vld [vmem:[#allocation14_spill] sm:$0xff] }
 0x9ba   :  { %13372 = vrot.lane.b32.xlu1 %v13371_v20, %s13850_s27  ;;  %v7527_v5 = vpop.f32.mrb[218].mxu1  ;;  %v13376_v34 = vpack.i.bf16 %v17191_v51, %v17531_v19  ;;  %v8033_v1 = vadd.f32 %v17377_v25, %v7525_v50 }
 0x9bb   :  { %v7529_v37 = vpop.f32.mrb[219].mxu1  ;;  %v8035_v29 = vadd.f32 %v17372_v10, %v7527_v5  ;;  %v8152_v54 = vmax.f32 %v8032_v3, 0.0 }
 0x9bc   :  { %13377 = vrot.lane.b32.xlu0 %v13376_v34, %s13850_s27  ;;  %v8036_v36 = vadd.f32 %v17377_v25, %v7529_v37  ;;  %v8153_v0 = vmax.f32 %v8033_v1, 0.0  ;;  %v18953_v34 = vld [vmem:[#allocation24_spill] sm:$0xff] }
 0x9bd   :  { %v8155_v62 = vmax.f32 %v8035_v29, 0.0 }
 0x9be   :  { %13382 = vrot.lane.b32.xlu1 %v13381_v17, %s13850_s27  ;;  %v8156_v53 = vmax.f32 %v8036_v36, 0.0 }
 0x9c0   :  { %v7533_v13 = vpop.f32.mrb[220].mxu1 }
 0x9c1   :  { %v8038_v38 = vadd.f32 %v17372_v10, %v7533_v13  ;;  %v7535_v44 = vpop.f32.mrb[221].mxu1 }
 0x9c2   :  { %v8039_v15 = vadd.f32 %v17377_v25, %v7535_v44  ;;  %v7537_v31 = vpop.f32.mrb[222].mxu1 }
 0x9c3   :  { %v8158_v8 = vmax.f32 %v8038_v38, 0.0  ;;  %v8041_v63 = vadd.f32 %v17372_v10, %v7537_v31  ;;  %v7539_v32 = vpop.f32.mrb[223].mxu1 }
 0x9c4   :  { %v8159_v26 = vmax.f32 %v8039_v15, 0.0  ;;  %v8042_v18 = vadd.f32 %v17377_v25, %v7539_v32 }
 0x9c5   :  { %v17550_v61 = vmax.f32 %v8152_v54, %v8158_v8  ;;  %v8161_v47 = vmax.f32 %v8041_v63, 0.0 }
 0x9c6   :  { %v17552_v52 = vmax.f32 %v8153_v0, %v8159_v26  ;;  %v8162_v35 = vmax.f32 %v8042_v18, 0.0  ;;  %v17577_v26 = vld [vmem:[%s18446_s6 + $0x120] sm:$0xff]  }
 0x9c7   :  { %v17554_v41 = vmax.f32 %v8155_v62, %v8161_v47  ;;  %11945 = vmatprep.subr.bf16.mxu0 %v17577_v26 }
 0x9c8   :  { %v17556_v48 = vmax.f32 %v8156_v53, %v8162_v35  ;;  %v7543_v43 = vpop.f32.mrb[224].mxu1  ;;  %v13386_v20 = vpack.i.bf16 %v18952_v30, %v17552_v52 }
 0x9c9   :  { %v7545_v50 = vpop.f32.mrb[225].mxu1  ;;  %v13396_v3 = vpack.i.bf16 %v17554_v41, %v17550_v61  ;;  %v8044_v1 = vadd.f32 %v17372_v10, %v7543_v43 }
 0x9ca   :  { %13387 = vrot.lane.b32.xlu0 %v13386_v20, %s13850_s27  ;;  %v7547_v5 = vpop.f32.mrb[226].mxu1  ;;  %v13391_v37 = vpack.i.bf16 %v18953_v34, %v17556_v48  ;;  %v8045_v13 = vadd.f32 %v17377_v25, %v7545_v50 }
 0x9cb   :  { %v7549_v17 = vpop.f32.mrb[227].mxu1  ;;  %v8047_v38 = vadd.f32 %v17372_v10, %v7547_v5  ;;  %v8164_v8 = vmax.f32 %v8044_v1, 0.0  ;;  %v18957_v1 = vld [vmem:[#allocation44_spill] sm:$0xff] }
 0x9cc   :  { %13392 = vrot.lane.b32.xlu1 %v13391_v37, %s13850_s27  ;;  %v8048_v15 = vadd.f32 %v17377_v25, %v7549_v17  ;;  %v8165_v18 = vmax.f32 %v8045_v13, 0.0 }
 0x9cd   :  { %v8167_v53 = vmax.f32 %v8047_v38, 0.0 }
 0x9ce   :  { %13397 = vrot.lane.b32.xlu0 %v13396_v3, %s13850_s27  ;;  %v8168_v20 = vmax.f32 %v8048_v15, 0.0 }
 0x9d0   :  { %v7553_v29 = vpop.f32.mrb[228].mxu1 }
 0x9d1   :  { %v8050_v44 = vadd.f32 %v17372_v10, %v7553_v29  ;;  %v7555_v36 = vpop.f32.mrb[229].mxu1 }
 0x9d2   :  { %v8051_v31 = vadd.f32 %v17377_v25, %v7555_v36  ;;  %v7557_v54 = vpop.f32.mrb[230].mxu1 }
 0x9d3   :  { %v8170_v63 = vmax.f32 %v8050_v44, 0.0  ;;  %v8053_v32 = vadd.f32 %v17372_v10, %v7557_v54  ;;  %v7559_v0 = vpop.f32.mrb[231].mxu1  ;;  %v18958_v44 = vld [vmem:[#allocation43_spill] sm:$0xff] }
 0x9d4   :  { %v8171_v62 = vmax.f32 %v8051_v31, 0.0  ;;  %v8054_v47 = vadd.f32 %v17377_v25, %v7559_v0 }
 0x9d5   :  { %v17580_v35 = vmax.f32 %v8164_v8, %v8170_v63  ;;  %v8173_v43 = vmax.f32 %v8053_v32, 0.0 }
 0x9d6   :  { %v17583_v50 = vmax.f32 %v8165_v18, %v8171_v62  ;;  %v8174_v5 = vmax.f32 %v8054_v47, 0.0 }
 0x9d7   :  { %18954 = vst [vmem:[#allocation42_spill] sm:$0xff] %v17580_v35  ;;  %v17585_v37 = vmax.f32 %v8167_v53, %v8173_v43 }
 0x9d8   :  { %v17587_v17 = vmax.f32 %v8168_v20, %v8174_v5  ;;  %v7563_v3 = vpop.f32.mrb[232].mxu1  ;;  %v13401_v13 = vpack.i.bf16 %v18957_v1, %v17583_v50 }
 0x9d9   :  { %18955 = vst [vmem:[#allocation16_spill] sm:$0xff] %v17585_v37  ;;  %v7565_v29 = vpop.f32.mrb[233].mxu1  ;;  %v13411_v15 = vpack.i.bf16 %v17585_v37, %v17580_v35  ;;  %v8056_v54 = vadd.f32 %v17372_v10, %v7563_v3 }
 0x9da   :  { %18956 = vst [vmem:[#allocation47_spill] sm:$0xff] %v17587_v17  ;;  %13402 = vrot.lane.b32.xlu1 %v13401_v13, %s13850_s27  ;;  %v7567_v38 = vpop.f32.mrb[234].mxu1  ;;  %v13406_v36 = vpack.i.bf16 %v18958_v44, %v17587_v17  ;;  %v8057_v8 = vadd.f32 %v17377_v25, %v7565_v29 }
 0x9db   :  { %v7569_v31 = vpop.f32.mrb[235].mxu1  ;;  %v8059_v32 = vadd.f32 %v17372_v10, %v7567_v38  ;;  %v8176_v43 = vmax.f32 %v8056_v54, 0.0 }
 0x9dc   :  { %13407 = vrot.lane.b32.xlu0 %v13406_v36, %s13850_s27  ;;  %v8060_v62 = vadd.f32 %v17377_v25, %v7569_v31  ;;  %v8177_v36 = vmax.f32 %v8057_v8, 0.0 }
 0x9de   :  { %13412 = vrot.lane.b32.xlu1 %v13411_v15, %s13850_s27  ;;  %v8179_v15 = vmax.f32 %v8059_v32, 0.0 }
 0x9e0   :  { %v7573_v63 = vpop.f32.mrb[236].mxu1 }
 0x9e1   :  { %v8062_v0 = vadd.f32 %v17372_v10, %v7573_v63  ;;  %v7575_v18 = vpop.f32.mrb[237].mxu1  ;;  %v8180_v63 = vmax.f32 %v8060_v62, 0.0 }
 0x9e2   :  { %v8063_v47 = vadd.f32 %v17377_v25, %v7575_v18  ;;  %v7577_v53 = vpop.f32.mrb[238].mxu1 }
 0x9e3   :  { %v8182_v20 = vmax.f32 %v8062_v0, 0.0  ;;  %v8065_v5 = vadd.f32 %v17372_v10, %v7577_v53  ;;  %v7579_v13 = vpop.f32.mrb[239].mxu1 }
 0x9e4   :  { %v8183_v3 = vmax.f32 %v8063_v47, 0.0  ;;  %v8066_v29 = vadd.f32 %v17377_v25, %v7579_v13 }
 0x9e5   :  { %v17606_v37 = vmax.f32 %v8176_v43, %v8182_v20  ;;  %v8185_v38 = vmax.f32 %v8065_v5, 0.0 }
 0x9e6   :  { %v17608_v35 = vmax.f32 %v8177_v36, %v8183_v3  ;;  %v8186_v31 = vmax.f32 %v8066_v29, 0.0 }
 0x9e7   :  { %18959 = vst [vmem:[#allocation17_spill] sm:$0xff] %v17606_v37  ;;  %v17610_v17 = vmax.f32 %v8179_v15, %v8185_v38 }
 0x9e8   :  { %v17612_v18 = vmax.f32 %v8180_v63, %v8186_v31  ;;  %v7583_v54 = vpop.f32.mrb[240].mxu1  ;;  %v13416_v0 = vpack.i.bf16 %v17242_v60, %v17608_v35 }
 0x9e9   :  { %18960 = vst [vmem:[#allocation48_spill] sm:$0xff] %v17610_v17  ;;  %v7585_v8 = vpop.f32.mrb[241].mxu1  ;;  %v13426_v62 = vpack.i.bf16 %v17610_v17, %v17606_v37  ;;  %v8068_v43 = vadd.f32 %v17372_v10, %v7583_v54 }
 0x9ea   :  { %13417 = vrot.lane.b32.xlu0 %v13416_v0, %s13850_s27  ;;  %v7587_v47 = vpop.f32.mrb[242].mxu1  ;;  %v13421_v32 = vpack.i.bf16 %v17245_v21, %v17612_v18  ;;  %v8069_v20 = vadd.f32 %v17377_v25, %v7585_v8 }
 0x9eb   :  { %v7589_v53 = vpop.f32.mrb[243].mxu1  ;;  %v8071_v13 = vadd.f32 %v17372_v10, %v7587_v47  ;;  %v8188_v63 = vmax.f32 %v8068_v43, 0.0 }
 0x9ec   :  { %13422 = vrot.lane.b32.xlu1 %v13421_v32, %s13850_s27  ;;  %v8072_v29 = vadd.f32 %v17377_v25, %v7589_v53 }
 0x9ed   :  { %v8191_v60 = vmax.f32 %v8071_v13, 0.0 }
 0x9ee   :  { %13427 = vrot.lane.b32.xlu0 %v13426_v62, %s13850_s27  ;;  %v8189_v62 = vmax.f32 %v8069_v20, 0.0 }
 0x9f0   :  { %v7593_v5 = vpop.f32.mrb[244].mxu1 }
 0x9f1   :  { %v8074_v36 = vadd.f32 %v17372_v10, %v7593_v5  ;;  %v7595_v3 = vpop.f32.mrb[245].mxu1  ;;  %v8192_v5 = vmax.f32 %v8072_v29, 0.0 }
 0x9f2   :  { %v8075_v15 = vadd.f32 %v17377_v25, %v7595_v3  ;;  %v7597_v38 = vpop.f32.mrb[246].mxu1 }
 0x9f3   :  { %v8194_v31 = vmax.f32 %v8074_v36, 0.0  ;;  %v8077_v0 = vadd.f32 %v17372_v10, %v7597_v38  ;;  %v7599_v32 = vpop.f32.mrb[247].mxu1 }
 0x9f4   :  { %v8195_v54 = vmax.f32 %v8075_v15, 0.0  ;;  %v8078_v8 = vadd.f32 %v17377_v25, %v7599_v32 }
 0x9f5   :  { %v17631_v21 = vmax.f32 %v8188_v63, %v8194_v31  ;;  %v8197_v47 = vmax.f32 %v8077_v0, 0.0 }
 0x9f6   :  { %v17633_v17 = vmax.f32 %v8189_v62, %v8195_v54  ;;  %v8198_v53 = vmax.f32 %v8078_v8, 0.0 }
 0x9f7   :  { %18961 = vst [vmem:[#allocation30_spill] sm:$0xff] %v17631_v21  ;;  %v17635_v37 = vmax.f32 %v8191_v60, %v8197_v47 }
 0x9f8   :  { %v17637_v3 = vmax.f32 %v8192_v5, %v8198_v53  ;;  %v7603_v43 = vpop.f32.mrb[248].mxu1  ;;  %v13431_v36 = vpack.i.bf16 %v17260_v16, %v17633_v17 }
 0x9f9   :  { %18962 = vst [vmem:[#allocation53_spill] sm:$0xff] %v17635_v37  ;;  %v7605_v20 = vpop.f32.mrb[249].mxu1  ;;  %v13441_v60 = vpack.i.bf16 %v17635_v37, %v17631_v21  ;;  %v8080_v29 = vadd.f32 %v17372_v10, %v7603_v43 }
 0x9fa   :  { %13432 = vrot.lane.b32.xlu1 %v13431_v36, %s13850_s27  ;;  %v7607_v15 = vpop.f32.mrb[250].mxu1  ;;  %v13436_v13 = vpack.i.bf16 %v17263_v56, %v17637_v3  ;;  %v8081_v63 = vadd.f32 %v17377_v25, %v7605_v20 }
 0x9fb   :  { %v7609_v38 = vpop.f32.mrb[251].mxu1  ;;  %v8083_v0 = vadd.f32 %v17372_v10, %v7607_v15  ;;  %v8200_v5 = vmax.f32 %v8080_v29, 0.0 }
 0x9fc   :  { %13437 = vrot.lane.b32.xlu0 %v13436_v13, %s13850_s27  ;;  %v8084_v54 = vadd.f32 %v17377_v25, %v7609_v38 }
 0x9fd   :  { %v8203_v16 = vmax.f32 %v8083_v0, 0.0 }
 0x9fe   :  { %13442 = vrot.lane.b32.xlu1 %v13441_v60, %s13850_s27  ;;  %v8201_v60 = vmax.f32 %v8081_v63, 0.0 }
 0xa00   :  { %v7613_v31 = vpop.f32.mrb[252].mxu1 }
 0xa01   :  { %v8086_v32 = vadd.f32 %v17372_v10, %v7613_v31  ;;  %v7615_v62 = vpop.f32.mrb[253].mxu1  ;;  %v8204_v31 = vmax.f32 %v8084_v54, 0.0 }
 0xa02   :  { %v8087_v8 = vadd.f32 %v17377_v25, %v7615_v62  ;;  %v7617_v47 = vpop.f32.mrb[254].mxu1 }
 0xa03   :  { %v8206_v53 = vmax.f32 %v8086_v32, 0.0  ;;  %v8089_v36 = vadd.f32 %v17372_v10, %v7617_v47  ;;  %v7619_v13 = vpop.f32.mrb[255].mxu1 }
 0xa04   :  { %v8207_v43 = vmax.f32 %v8087_v8, 0.0  ;;  %v8090_v20 = vadd.f32 %v17377_v25, %v7619_v13 }
 0xa05   :  { %v17656_v56 = vmax.f32 %v8200_v5, %v8206_v53  ;;  %v8209_v15 = vmax.f32 %v8089_v36, 0.0 }
 0xa06   :  { %v17658_v37 = vmax.f32 %v8201_v60, %v8207_v43  ;;  %v8210_v38 = vmax.f32 %v8090_v20, 0.0  ;;  %v18964_v43 = vld [vmem:[#allocation21_spill] sm:$0xff] }
 0xa07   :  { %v17660_v21 = vmax.f32 %v8203_v16, %v8209_v15  ;;  %v13461_v20 = vpack.i.bf16 %v18964_v43, %v17395_v42  ;;  %v18965_v15 = vld [vmem:[#allocation20_spill] sm:$0xff] }
 0xa08   :  { %v17662_v62 = vmax.f32 %v8204_v31, %v8210_v38  ;;  %v7623_v29 = vpop.f32.mrb[0].mxu1  ;;  %v13446_v32 = vpack.i.bf16 %v17278_v45, %v17658_v37  ;;  %v13466_v31 = vpack.i.bf16 %v18965_v15, %v17399_v9  ;;  %v13471_v38 = vpack.i.bf16 %v17397_v58, %v17393_v22 }
 0xa09   :  { %18963 = vst [vmem:[#allocation32_spill] sm:$0xff] %v17660_v21  ;;  %v7625_v63 = vpop.f32.mrb[1].mxu1  ;;  %v8092_v54 = vadd.f32 %v17372_v10, %v7623_v29  ;;  %v13456_v53 = vpack.i.bf16 %v17660_v21, %v17656_v56 }
 0xa0a   :  { %13447 = vrot.lane.b32.xlu0 %v13446_v32, %s13850_s27  ;;  %v7627_v8 = vpop.f32.mrb[2].mxu1  ;;  %v13451_v0 = vpack.i.bf16 %v17281_v27, %v17662_v62  ;;  %v8093_v5 = vadd.f32 %v17377_v25, %v7625_v63 }
 0xa0b   :  { %v7629_v47 = vpop.f32.mrb[3].mxu1  ;;  %v8212_v29 = vmax.f32 %v8092_v54, 0.0 }
 0xa0c   :  { %v13343_v16 = vpop.permute.xlu1 %13342  ;;  %13452 = vrot.lane.b32.xlu1 %v13451_v0, %s13850_s27  ;;  %v8213_v45 = vmax.f32 %v8093_v5, 0.0  ;;  %v8096_v27 = vadd.f32 %v17377_v25, %v7629_v47 }
 0xa0d   :  { %v13345_v36 = vunpack.i.h.bf16 %v13343_v16  ;;  %v13344_v13 = vunpack.i.l.bf16 %v13343_v16  ;;  %v8095_v16 = vadd.f32 %v17372_v10, %v7627_v8 }
 0xa0e   :  { %v13348_v60 = vpop.permute.xlu0 %13347  ;;  %13457 = vrot.lane.b32.xlu0 %v13456_v53, %s13850_s27 }
 0xa0f   :  { %v8470_v32 = vsel %vm8464_vm6, %v13344_v13, %v13345_v36  ;;  %v13350_v63 = vunpack.i.h.bf16 %v13348_v60  ;;  %v13349_v0 = vunpack.i.l.bf16 %v13348_v60  ;;  %v8573_v53 = vmax.f32 %v17152_v49, %v13345_v36 }
 0xa10   :  { %v13353_v21 = vpop.permute.xlu1 %13352  ;;  %13462 = vrot.lane.b32.xlu1 %v13461_v20, %s13850_s27  ;;  %v7633_v42 = vpop.f32.mrb[4].mxu1  ;;  %v8572_v49 = vmax.f32 %v17447_v12, %v8470_v32  ;;  %v8215_v12 = vmax.f32 %v8095_v16, 0.0 }
 0xa11   :  { %v8576_v9 = vmax.f32 %v17155_v14, %v13350_v63  ;;  %v8472_v22 = vsel %vm8464_vm6, %v13349_v0, %v13350_v63  ;;  %v13355_v54 = vunpack.i.h.bf16 %v13353_v21  ;;  %v13354_v58 = vunpack.i.l.bf16 %v13353_v21  ;;  %v7635_v15 = vpop.f32.mrb[5].mxu1 }
 0xa12   :  { %v8098_v60 = vadd.f32 %v17372_v10, %v7633_v42  ;;  %v8099_v5 = vadd.f32 %v17377_v25, %v7635_v15  ;;  %13467 = vrot.lane.b32.xlu0 %v13466_v31, %s13850_s27  ;;  %v7637_v8 = vpop.f32.mrb[6].mxu1  ;;  %v8575_v47 = vmax.f32 %v17457_v57, %v8472_v22 }
 0xa13   :  { %v17693_v36 = vpack.c.bf16 %v8576_v9, %v8573_v53  ;;  %v8469_v14 = vsel %vm8464_vm6, %v13354_v58, %v13344_v13  ;;  %v8471_v20 = vsel %vm8464_vm6, %v13355_v54, %v13349_v0  ;;  %v8101_v21 = vadd.f32 %v17372_v10, %v7637_v8  ;;  %v7639_v63 = vpop.f32.mrb[7].mxu1 }
 0xa14   :  { %v8571_v42 = vmax.f32 %v17439_v7, %v8469_v14  ;;  %v8574_v15 = vmax.f32 %v17455_v11, %v8471_v20  ;;  %v8218_v43 = vmax.f32 %v8098_v60, 0.0  ;;  %v8219_v31 = vmax.f32 %v8099_v5, 0.0  ;;  %13472 = vrot.lane.b32.xlu1 %v13471_v38, %s13850_s27  ;;  %v13739_v7 = vld [vmem:[%s18446_s6 + $0x128] sm:$0xff]  }
 0xa15   :  { %v8221_v32 = vmax.f32 %v8101_v21, 0.0  ;;  %v8102_v22 = vadd.f32 %v17377_v25, %v7639_v63  ;;  %v17702_v9 = vpack.c.bf16 %v8575_v47, %v8572_v49  ;;  %v8216_v11 = vmax.f32 %v8096_v27, 0.0  ;;  %v13740_v27 = vld [vmem:[%s18446_s6 + $0x130] sm:$0xff]   ;;  %v13741_v49 = vld [vmem:[%s18446_s6 + $0x138] sm:$0xff]  }
 0xa16   :  { %v17704_v58 = vpack.c.bf16 %v8574_v15, %v8571_v42  ;;  %v17706_v57 = vmax.f32 %v8212_v29, %v8218_v43  ;;  %v17708_v10 = vmax.f32 %v8213_v45, %v8219_v31 }
 0xa17   :  { %v17713_v13 = vmax.f32 %v8215_v12, %v8221_v32  ;;  %v8222_v38 = vmax.f32 %v8102_v22, 0.0  ;;  %8910 = vmatprep.mubr.bf16.mxu0 %v17702_v9 }
 0xa18   :  { %v7643_v0 = vpop.f32.mrb[100].mxu1  ;;  %8911 = vmatmul.mubr.bf16.vlgmr.msra.gmra.mrb[96].mxu0 %v17704_v58  ;;  %v13476_v25 = vpack.i.bf16 %v17295_v24, %v17708_v10 }
 0xa19   :  { %v17719_v43 = vmax.f32 %v8216_v11, %v8222_v38  ;;  %v7644_v45 = vpop.f32.mrb[101].mxu1  ;;  %11946 = vmatpush3.bf16.msra.mxu0 %v17577_v26  ;;  %v13486_v54 = vpack.i.bf16 %v17713_v13, %v17706_v57 }
 0xa1a   :  { %13477 = vrot.lane.b32.xlu0 %v13476_v25, %s13850_s27  ;;  %v7645_v29 = vpop.f32.mrb[102].mxu1  ;;  %11947 = vmatprep.subr.bf16.mxu0 %v13739_v7 }
 0xa1b   :  { %v7646_v16 = vpop.f32.mrb[103].mxu1  ;;  %v13481_v53 = vpack.i.bf16 %v17297_v6, %v17719_v43 }
 0xa1c   :  { %v13358_v60 = vpop.permute.xlu0 %13357 }
 0xa1d   :  { %v13360_v5 = vunpack.i.h.bf16 %v13358_v60  ;;  %v13359_v8 = vunpack.i.l.bf16 %v13358_v60  ;;  %13482 = vrot.lane.b32.xlu1 %v13481_v53, %s13850_s27  ;;  %11948 = vmatpush3.bf16.msra.mxu0 %v13739_v7 }
 0xa1e   :  { %v13363_v26 = vpop.permute.xlu1 %13362  ;;  %13487 = vrot.lane.b32.xlu0 %v13486_v54, %s13850_s27  ;;  %11949 = vmatprep.subr.bf16.mxu0 %v13740_v27 }
 0xa1f   :  { %v8474_v47 = vsel %vm8464_vm6, %v13359_v8, %v13360_v5  ;;  %v13365_v14 = vunpack.i.h.bf16 %v13363_v26  ;;  %v13364_v20 = vunpack.i.l.bf16 %v13363_v26  ;;  %v8579_v21 = vmax.f32 %v17170_v23, %v13360_v5  ;;  %v13742_v23 = vld [vmem:[%s18446_s6 + $0x40] sm:$0xff]  }
 0xa20   :  { %v13368_v63 = vpop.permute.xlu0 %13367  ;;  %v8578_v32 = vmax.f32 %v17499_v39, %v8474_v47 }
 0xa21   :  { %v8582_v42 = vmax.f32 %v17173_v28, %v13365_v14  ;;  %v8476_v15 = vsel %vm8464_vm6, %v13364_v20, %v13365_v14  ;;  %v13370_v31 = vunpack.i.h.bf16 %v13368_v63  ;;  %v13369_v12 = vunpack.i.l.bf16 %v13368_v63  ;;  %11950 = vmatpush3.bf16.msra.mxu0 %v13740_v27 }
 0xa22   :  { %v8581_v22 = vmax.f32 %v17506_v59, %v8476_v15  ;;  %11951 = vmatprep.subr.bf16.mxu0 %v13741_v49 }
 0xa23   :  { %v17741_v7 = vpack.c.bf16 %v8582_v42, %v8579_v21  ;;  %v8473_v11 = vsel %vm8464_vm6, %v13369_v12, %v13359_v8  ;;  %v8475_v38 = vsel %vm8464_vm6, %v13370_v31, %v13364_v20 }
 0xa24   :  { %v8577_v28 = vmax.f32 %v17494_v55, %v8473_v11  ;;  %v8580_v0 = vmax.f32 %v17504_v40, %v8475_v38  ;;  %v17750_v25 = vpack.c.bf16 %v8581_v22, %v8578_v32 }
 0xa25   :  { %11952 = vmatpush3.bf16.msra.mxu0 %v13741_v49 }
 0xa26   :  { %v17752_v39 = vpack.c.bf16 %v8580_v0, %v8577_v28  ;;  %8918 = vmatprep.mubr.bf16.mxu0 %v17750_v25  ;;  %9588 = vmatprep.mubr.bf16.mxu1 %v17750_v25 }
 0xa27   :  { %11470 = vmatprep.subr.bf16.mxu0 %v13742_v23 }
 0xa28   :  { %8919 = vmatmul.mubr.bf16.gmra.mrb[100].mxu0 %v17752_v39  ;;  %9589 = vmatmul.mubr.bf16.vlgmr.msra.gmra.mrb[104].mxu1 %v17752_v39 }
 0xa2c   :  { %v13373_v59 = vpop.permute.xlu1 %13372 }
 0xa2d   :  { %v13375_v45 = vunpack.i.h.bf16 %v13373_v59  ;;  %v13374_v29 = vunpack.i.l.bf16 %v13373_v59 }
 0xa2e   :  { %v13378_v55 = vpop.permute.xlu0 %13377 }
 0xa2f   :  { %v8478_v40 = vsel %vm8464_vm6, %v13374_v29, %v13375_v45  ;;  %v13380_v27 = vunpack.i.h.bf16 %v13378_v55  ;;  %v13379_v16 = vunpack.i.l.bf16 %v13378_v55  ;;  %v8585_v53 = vmax.f32 %v17188_v46, %v13375_v45 }
 0xa30   :  { %v13383_v54 = vpop.permute.xlu1 %13382  ;;  %v8584_v49 = vmax.f32 %v17527_v4, %v8478_v40 }
 0xa31   :  { %v8588_v60 = vmax.f32 %v17191_v51, %v13380_v27  ;;  %v8480_v5 = vsel %vm8464_vm6, %v13379_v16, %v13380_v27  ;;  %v13385_v8 = vunpack.i.h.bf16 %v13383_v54  ;;  %v13384_v26 = vunpack.i.l.bf16 %v13383_v54 }
 0xa32   :  { %v8587_v47 = vmax.f32 %v17531_v19, %v8480_v5 }
 0xa33   :  { %v17764_v14 = vpack.c.bf16 %v8588_v60, %v8585_v53  ;;  %v8477_v20 = vsel %vm8464_vm6, %v13384_v26, %v13374_v29  ;;  %v8479_v21 = vsel %vm8464_vm6, %v13385_v8, %v13379_v16 }
 0xa34   :  { %v8583_v63 = vmax.f32 %v17525_v33, %v8477_v20  ;;  %v8586_v46 = vmax.f32 %v17529_v2, %v8479_v21  ;;  %v17770_v42 = vpack.c.bf16 %v8587_v47, %v8584_v49  ;;  %v18966_v21 = vld [vmem:[#allocation47_spill] sm:$0xff] }
 0xa36   :  { %v17772_v51 = vpack.c.bf16 %v8586_v46, %v8583_v63  ;;  %8926 = vmatprep.mubr.bf16.mxu0 %v17770_v42  ;;  %9596 = vmatprep.mubr.bf16.mxu1 %v17770_v42 }
 0xa38   :  { %8927 = vmatmul.mubr.bf16.gmra.mrb[104].mxu0 %v17772_v51  ;;  %9597 = vmatmul.mubr.bf16.gmra.mrb[108].mxu1 %v17772_v51 }
 0xa3c   :  { %v13388_v4 = vpop.permute.xlu0 %13387 }
 0xa3d   :  { %v13390_v19 = vunpack.i.h.bf16 %v13388_v4  ;;  %v13389_v15 = vunpack.i.l.bf16 %v13388_v4 }
 0xa3e   :  { %v13393_v31 = vpop.permute.xlu1 %13392 }
 0xa3f   :  { %v8482_v33 = vsel %vm8464_vm6, %v13389_v15, %v13390_v19  ;;  %v13395_v12 = vunpack.i.h.bf16 %v13393_v31  ;;  %v13394_v2 = vunpack.i.l.bf16 %v13393_v31  ;;  %v8591_v32 = vmax.f32 %v18952_v30, %v13390_v19 }
 0xa40   :  { %v13398_v22 = vpop.permute.xlu0 %13397  ;;  %v8590_v0 = vmax.f32 %v17552_v52, %v8482_v33 }
 0xa41   :  { %v8594_v11 = vmax.f32 %v18953_v34, %v13395_v12  ;;  %v8484_v38 = vsel %vm8464_vm6, %v13394_v2, %v13395_v12  ;;  %v13400_v23 = vunpack.i.h.bf16 %v13398_v22  ;;  %v13399_v28 = vunpack.i.l.bf16 %v13398_v22 }
 0xa42   :  { %v8593_v59 = vmax.f32 %v17556_v48, %v8484_v38 }
 0xa43   :  { %v17784_v45 = vpack.c.bf16 %v8594_v11, %v8591_v32  ;;  %v8481_v29 = vsel %vm8464_vm6, %v13399_v28, %v13389_v15  ;;  %v8483_v55 = vsel %vm8464_vm6, %v13400_v23, %v13394_v2  ;;  %v18967_v15 = vld [vmem:[#allocation42_spill] sm:$0xff] }
 0xa44   :  { %v8589_v40 = vmax.f32 %v17550_v61, %v8481_v29  ;;  %v8592_v30 = vmax.f32 %v17554_v41, %v8483_v55  ;;  %v17790_v27 = vpack.c.bf16 %v8593_v59, %v8590_v0 }
 0xa46   :  { %v17792_v34 = vpack.c.bf16 %v8592_v30, %v8589_v40  ;;  %8934 = vmatprep.mubr.bf16.mxu0 %v17790_v27  ;;  %9604 = vmatprep.mubr.bf16.mxu1 %v17790_v27 }
 0xa48   :  { %8935 = vmatmul.mubr.bf16.gmra.mrb[108].mxu0 %v17792_v34  ;;  %9605 = vmatmul.mubr.bf16.gmra.mrb[112].mxu1 %v17792_v34 }
 0xa4c   :  { %v13403_v52 = vpop.permute.xlu1 %13402 }
 0xa4d   :  { %v13405_v48 = vunpack.i.h.bf16 %v13403_v52  ;;  %v13404_v16 = vunpack.i.l.bf16 %v13403_v52 }
 0xa4e   :  { %v13408_v53 = vpop.permute.xlu0 %13407 }
 0xa4f   :  { %v8486_v61 = vsel %vm8464_vm6, %v13404_v16, %v13405_v48  ;;  %v13410_v54 = vunpack.i.h.bf16 %v13408_v53  ;;  %v13409_v41 = vunpack.i.l.bf16 %v13408_v53  ;;  %v8597_v60 = vmax.f32 %v18957_v1, %v13405_v48  ;;  %v18968_v1 = vld [vmem:[#allocation16_spill] sm:$0xff]  ;;  %v18969_v48 = vld [vmem:[#allocation17_spill] sm:$0xff] }
 0xa50   :  { %v13413_v5 = vpop.permute.xlu1 %13412  ;;  %v8596_v20 = vmax.f32 %v17583_v50, %v8486_v61  ;;  %v18970_v53 = vld [vmem:[#allocation48_spill] sm:$0xff] }
 0xa51   :  { %v8600_v8 = vmax.f32 %v18958_v44, %v13410_v54  ;;  %v8488_v26 = vsel %vm8464_vm6, %v13409_v41, %v13410_v54  ;;  %v13415_v49 = vunpack.i.h.bf16 %v13413_v5  ;;  %v13414_v47 = vunpack.i.l.bf16 %v13413_v5 }
 0xa52   :  { %v8599_v63 = vmax.f32 %v18966_v21, %v8488_v26 }
 0xa53   :  { %v17804_v46 = vpack.c.bf16 %v8600_v8, %v8597_v60  ;;  %v8485_v4 = vsel %vm8464_vm6, %v13414_v47, %v13404_v16  ;;  %v8487_v19 = vsel %vm8464_vm6, %v13415_v49, %v13409_v41 }
 0xa54   :  { %v8595_v31 = vmax.f32 %v18967_v15, %v8485_v4  ;;  %v8598_v33 = vmax.f32 %v18968_v1, %v8487_v19  ;;  %v17810_v12 = vpack.c.bf16 %v8599_v63, %v8596_v20  ;;  %v18971_v1 = vld [vmem:[#allocation30_spill] sm:$0xff] }
 0xa56   :  { %v17812_v44 = vpack.c.bf16 %v8598_v33, %v8595_v31  ;;  %8942 = vmatprep.mubr.bf16.mxu0 %v17810_v12  ;;  %9612 = vmatprep.mubr.bf16.mxu1 %v17810_v12 }
 0xa58   :  { %8943 = vmatmul.mubr.bf16.gmra.mrb[112].mxu0 %v17812_v44  ;;  %9613 = vmatmul.mubr.bf16.gmra.mrb[116].mxu1 %v17812_v44 }
 0xa5c   :  { %v17818_v50 = vpop.permute.xlu0 %13417 }
 0xa5d   :  { %v13420_v2 = vunpack.i.h.bf16 %v17818_v50  ;;  %v13419_v32 = vunpack.i.l.bf16 %v17818_v50  ;;  %v13752_v50 = vld [vmem:[%s18446_s6 + $0x68] sm:$0xff]  }
 0xa5e   :  { %v17822_v22 = vpop.permute.xlu1 %13422 }
 0xa5f   :  { %v8490_v11 = vsel %vm8464_vm6, %v13419_v32, %v13420_v2  ;;  %v13425_v38 = vunpack.i.h.bf16 %v17822_v22  ;;  %v13424_v23 = vunpack.i.l.bf16 %v17822_v22  ;;  %v18979_v22 = vld [vmem:[#allocation50_spill] sm:$0xff] }
 0xa60   :  { %v13428_v28 = vpop.permute.xlu0 %13427  ;;  %v8602_v55 = vmax.f32 %v17608_v35, %v8490_v11 }
 0xa61   :  { %v8492_v0 = vsel %vm8464_vm6, %v13424_v23, %v13425_v38  ;;  %v13430_v59 = vunpack.i.h.bf16 %v13428_v28  ;;  %v13429_v29 = vunpack.i.l.bf16 %v13428_v28 }
 0xa62   :  { %v8605_v40 = vmax.f32 %v17612_v18, %v8492_v0 }
 0xa63   :  { %v8489_v30 = vsel %vm8464_vm6, %v13429_v29, %v13419_v32  ;;  %v8491_v52 = vsel %vm8464_vm6, %v13430_v59, %v13424_v23  ;;  %v18972_v32 = vld [vmem:[#allocation53_spill] sm:$0xff] }
 0xa64   :  { %v8601_v16 = vmax.f32 %v18969_v48, %v8489_v30  ;;  %v8604_v61 = vmax.f32 %v18970_v53, %v8491_v52  ;;  %v17838_v54 = vpack.c.bf16 %v8605_v40, %v8602_v55 }
 0xa66   :  { %v17840_v41 = vpack.c.bf16 %v8604_v61, %v8601_v16  ;;  %8950 = vmatprep.mubr.bf16.mxu0 %v17838_v54  ;;  %9620 = vmatprep.mubr.bf16.mxu1 %v17838_v54 }
 0xa68   :  { %8951 = vmatmul.mubr.bf16.gmra.mrb[116].mxu0 %v17840_v41  ;;  %9621 = vmatmul.mubr.bf16.gmra.mrb[120].mxu1 %v17840_v41 }
 0xa6c   :  { %v17846_v35 = vpop.permute.xlu1 %13432 }
 0xa6d   :  { %v13435_v18 = vunpack.i.h.bf16 %v17846_v35  ;;  %v13434_v60 = vunpack.i.l.bf16 %v17846_v35 }
 0xa6e   :  { %v17850_v5 = vpop.permute.xlu0 %13437 }
 0xa6f   :  { %v8494_v8 = vsel %vm8464_vm6, %v13434_v60, %v13435_v18  ;;  %v13440_v26 = vunpack.i.h.bf16 %v17850_v5  ;;  %v13439_v49 = vunpack.i.l.bf16 %v17850_v5 }
 0xa70   :  { %v13443_v47 = vpop.permute.xlu1 %13442  ;;  %v8608_v4 = vmax.f32 %v17633_v17, %v8494_v8 }
 0xa71   :  { %v8496_v20 = vsel %vm8464_vm6, %v13439_v49, %v13440_v26  ;;  %v13445_v21 = vunpack.i.h.bf16 %v13443_v47  ;;  %v13444_v63 = vunpack.i.l.bf16 %v13443_v47 }
 0xa72   :  { %v8611_v19 = vmax.f32 %v17637_v3, %v8496_v20 }
 0xa73   :  { %v8493_v15 = vsel %vm8464_vm6, %v13444_v63, %v13434_v60  ;;  %v8495_v31 = vsel %vm8464_vm6, %v13445_v21, %v13439_v49  ;;  %v18973_v21 = vld [vmem:[#allocation32_spill] sm:$0xff] }
 0xa74   :  { %v8607_v33 = vmax.f32 %v18971_v1, %v8493_v15  ;;  %v8610_v11 = vmax.f32 %v18972_v32, %v8495_v31  ;;  %v17866_v23 = vpack.c.bf16 %v8611_v19, %v8608_v4  ;;  %v18975_v1 = vld [vmem:[#allocation20_spill] sm:$0xff] }
 0xa76   :  { %v17868_v28 = vpack.c.bf16 %v8610_v11, %v8607_v33  ;;  %8958 = vmatprep.mubr.bf16.mxu0 %v17866_v23  ;;  %9628 = vmatprep.mubr.bf16.mxu1 %v17866_v23 }
 0xa78   :  { %8959 = vmatmul.mubr.bf16.gmra.mrb[120].mxu0 %v17868_v28  ;;  %9629 = vmatmul.mubr.bf16.gmra.mrb[124].mxu1 %v17868_v28 }
 0xa7c   :  { %v17874_v17 = vpop.permute.xlu0 %13447 }
 0xa7d   :  { %v13450_v3 = vunpack.i.h.bf16 %v17874_v17  ;;  %v13449_v0 = vunpack.i.l.bf16 %v17874_v17 }
 0xa7e   :  { %v17878_v59 = vpop.permute.xlu1 %13452 }
 0xa7f   :  { %v8498_v29 = vsel %vm8464_vm6, %v13449_v0, %v13450_v3  ;;  %v13455_v55 = vunpack.i.h.bf16 %v17878_v59  ;;  %v13454_v40 = vunpack.i.l.bf16 %v17878_v59  ;;  %v18982_v59 = vld [vmem:[#allocation56_spill] sm:$0xff] }
 0xa80   :  { %v13458_v30 = vpop.permute.xlu0 %13457  ;;  %v8614_v61 = vmax.f32 %v17658_v37, %v8498_v29  ;;  %v18974_v37 = vld [vmem:[#allocation21_spill] sm:$0xff] }
 0xa81   :  { %v8500_v52 = vsel %vm8464_vm6, %v13454_v40, %v13455_v55  ;;  %v13460_v48 = vunpack.i.h.bf16 %v13458_v30  ;;  %v13459_v16 = vunpack.i.l.bf16 %v13458_v30  ;;  %v13744_v30 = vld [vmem:[%s18446_s6 + $0x48] sm:$0xff]  }
 0xa82   :  { %v17888_v53 = vpop.permute.xlu1 %13462  ;;  %v8617_v60 = vmax.f32 %v17662_v62, %v8500_v52 }
 0xa83   :  { %v8497_v8 = vsel %vm8464_vm6, %v13459_v16, %v13449_v0  ;;  %v8499_v49 = vsel %vm8464_vm6, %v13460_v48, %v13454_v40  ;;  %v13465_v47 = vunpack.i.h.bf16 %v17888_v53  ;;  %v13743_v40 = vld [vmem:[%s18446_s6] sm:$0xff]   ;;  %v13464_v5 = vunpack.i.l.bf16 %v17888_v53 }
 0xa84   :  { %v8613_v20 = vmax.f32 %v17656_v56, %v8497_v8  ;;  %v8616_v63 = vmax.f32 %v18973_v21, %v8499_v49  ;;  %v17897_v4 = vpop.permute.xlu0 %13467  ;;  %v8731_v19 = vpack.c.bf16 %v8617_v60, %v8614_v61  ;;  %v18983_v53 = vld [vmem:[#allocation15_spill] sm:$0xff] }
 0xa85   :  { %v13470_v15 = vunpack.i.h.bf16 %v17897_v4  ;;  %v17903_v62 = vmax.f32 %v18974_v37, %v13465_v47 }
 0xa86   :  { %v8730_v31 = vpack.c.bf16 %v8616_v63, %v8613_v20  ;;  %8966 = vmatprep.mubr.bf16.mxu0 %v8731_v19  ;;  %9636 = vmatprep.mubr.bf16.mxu1 %v8731_v19  ;;  %v17914_v32 = vpop.permute.xlu1 %13472  ;;  %v13745_v20 = vld [vmem:[%s18446_s6 + $0x8] sm:$0xff]  }
 0xa87   :  { %v17908_v56 = vmax.f32 %v18975_v1, %v13470_v15 }
 0xa88   :  { %8967 = vmatmul.mubr.bf16.gmra.mrb[124].mxu0 %v8730_v31  ;;  %9637 = vmatmul.mubr.bf16.gmra.mrb[128].mxu1 %v8730_v31  ;;  %v13746_v31 = vld [vmem:[%s18446_s6 + $0x50] sm:$0xff]  }
 0xa89   :  { %v8667_v33 = vpack.c.bf16 %v17908_v56, %v17903_v62  ;;  %11953 = vmatprep.mubr.msk.bf16.mxu0 %vm8853_vm7, %v17693_v36 }
 0xa8c   :  { %v13478_v11 = vpop.permute.xlu0 %13477 }
 0xa8d   :  { %v13480_v0 = vunpack.i.h.bf16 %v13478_v11  ;;  %v13479_v29 = vunpack.i.l.bf16 %v13478_v11 }
 0xa8f   :  { %v13483_v52 = vpop.permute.xlu1 %13482  ;;  %v8502_v48 = vsel %vm8464_vm6, %v13479_v29, %v13480_v0  ;;  %v17931_v21 = vmax.f32 %v17295_v24, %v13480_v0 }
 0xa90   :  { %v13485_v16 = vunpack.i.h.bf16 %v13483_v52  ;;  %v13484_v61 = vunpack.i.l.bf16 %v13483_v52  ;;  %11954 = vmatmul.mubr.msk.bf16.vlgmr.msra.gmra.mrb[128].mxu0 %vm8853_vm7, %v17741_v7  ;;  %v13488_v60 = vpop.permute.xlu0 %13487  ;;  %v8620_v11 = vmax.f32 %v17708_v10, %v8502_v48  ;;  %v13747_v52 = vld [vmem:[%s18446_s6 + $0x10] sm:$0xff]   ;;  %v13748_v10 = vld [vmem:[%s18446_s6 + $0x58] sm:$0xff]   ;;  %v13750_v48 = vld [vmem:[%s18446_s6 + $0x60] sm:$0xff]  }
 0xa91   :  { %v13490_v8 = vunpack.i.h.bf16 %v13488_v60  ;;  %v13489_v49 = vunpack.i.l.bf16 %v13488_v60  ;;  %11957 = vmatprep.mubr.msk.bf16.mxu0 %vm8853_vm7, %v17764_v14  ;;  %11471 = vmatpush3.bf16.msra.mxu0 %v13743_v40  ;;  %v18978_v60 = vld [vmem:[#allocation46_spill] sm:$0xff] }
 0xa92   :  { %v17934_v63 = vmax.f32 %v17297_v6, %v13485_v16  ;;  %v8504_v19 = vsel %vm8464_vm6, %v13484_v61, %v13485_v16  ;;  %11472 = vmatprep.subr.bf16.mxu0 %v13744_v30  ;;  %v18977_v16 = vld [vmem:[#allocation49_spill] sm:$0xff] }
 0xa93   :  { %v8501_v37 = vsel %vm8464_vm6, %v13489_v49, %v13479_v29  ;;  %v8503_v1 = vsel %vm8464_vm6, %v13490_v8, %v13484_v61  ;;  %v8623_v40 = vmax.f32 %v17719_v43, %v8504_v19  ;;  %v8612_v61 = vmax.f32 %v18977_v16, %v13440_v26  ;;  %v18980_v26 = vld [vmem:[#allocation25_spill] sm:$0xff]  ;;  %v13759_v16 = vld [vmem:[%s18446_s6 + $0x88] sm:$0xff]  }
 0xa94   :  { %v9432_v24 = vpack.c.bf16 %v17934_v63, %v17931_v21  ;;  %v8619_v6 = vmax.f32 %v17706_v57, %v8501_v37  ;;  %v8622_v0 = vmax.f32 %v17713_v13, %v8503_v1  ;;  %v13749_v57 = vld [vmem:[%s18446_s6 + $0x18] sm:$0xff]   ;;  %v18976_v13 = vld [vmem:[#allocation45_spill] sm:$0xff]  ;;  %v8603_v8 = vmax.f32 %v18978_v60, %v13420_v2 }
 0xa95   :  { %11473 = vmatpush3.bf16.msra.mxu0 %v13745_v20  ;;  %v9431_v30 = vpack.c.bf16 %v8623_v40, %v8620_v11  ;;  %v8606_v43 = vmax.f32 %v18976_v13, %v13425_v38  ;;  %v13469_v49 = vunpack.i.l.bf16 %v17897_v4  ;;  %v8609_v20 = vmax.f32 %v18979_v22, %v13435_v18  ;;  %v13751_v38 = vld [vmem:[%s18446_s6 + $0x20] sm:$0xff]   ;;  %v13753_v18 = vld [vmem:[%s18446_s6 + $0x28] sm:$0xff]   ;;  %v18981_v11 = vld [vmem:[#allocation29_spill] sm:$0xff] }
 0xa96   :  { %v9430_v29 = vpack.c.bf16 %v8622_v0, %v8619_v6  ;;  %11474 = vmatprep.subr.bf16.mxu0 %v13746_v31  ;;  %v8618_v31 = vmax.f32 %v18980_v26, %v13455_v55  ;;  %v8466_v4 = vsel %vm8464_vm6, %v13464_v5, %v13465_v47  ;;  %v13475_v37 = vunpack.i.h.bf16 %v17914_v32  ;;  %v13755_v55 = vld [vmem:[%s18446_s6 + $0x30] sm:$0xff]   ;;  %v13761_v60 = vld [vmem:[%s18446_s6 + $0x98] sm:$0xff]  }
 0xa97   :  { %9644 = vmatprep.mubr.bf16.mxu1 %v9431_v30  ;;  %v17980_v19 = vpack.c.bf16 %v8606_v43, %v8603_v8  ;;  %v17986_v2 = vpack.c.bf16 %v8612_v61, %v8609_v20  ;;  %v8468_v35 = vsel %vm8464_vm6, %v13469_v49, %v13470_v15  ;;  %v13754_v15 = vld [vmem:[%s18446_s6 + $0x70] sm:$0xff]   ;;  %v13474_v1 = vunpack.i.l.bf16 %v17914_v32  ;;  %v13756_v32 = vld [vmem:[%s18446_s6 + $0x78] sm:$0xff]   ;;  %v13758_v43 = vld [vmem:[%s18446_s6 + $0x80] sm:$0xff]  }
 0xa98   :  { %11958 = vmatmul.mubr.msk.bf16.gmra.mrb[132].mxu0 %vm8853_vm7, %v17784_v45  ;;  %9645 = vmatmul.mubr.bf16.gmra.mrb[132].mxu1 %v9430_v29  ;;  %v8569_v40 = vmax.f32 %v18981_v11, %v8468_v35  ;;  %v8615_v6 = vmax.f32 %v18982_v59, %v13450_v3  ;;  %v8566_v47 = vmax.f32 %v18983_v53, %v8466_v4  ;;  %v13757_v3 = vld [vmem:[%s18446_s6 + $0x38] sm:$0xff]   ;;  %v18984_v29 = vld [vmem:[#allocation41_spill] sm:$0xff] }
 0xa99   :  { %11961 = vmatprep.mubr.msk.bf16.mxu0 %vm8853_vm7, %v17804_v46  ;;  %11475 = vmatpush3.bf16.msra.mxu0 %v13747_v52  ;;  %v8467_v30 = vsel %vm8464_vm6, %v13475_v37, %v13469_v49  ;;  %v8465_v17 = vsel %vm8464_vm6, %v13474_v1, %v13464_v5  ;;  %v13760_v61 = vld [vmem:[%s18446_s6 + $0x90] sm:$0xff]  }
 0xa9a   :  { %11476 = vmatprep.subr.bf16.mxu0 %v13748_v10  ;;  %v18017_v0 = vpack.c.bf16 %v8618_v31, %v8615_v6  ;;  %v8666_v52 = vpack.c.bf16 %v8569_v40, %v8566_v47  ;;  %v8568_v10 = vmax.f32 %v18984_v29, %v8467_v30 }
 0xa9d   :  { %11477 = vmatpush3.bf16.msra.mxu0 %v13749_v57  ;;  %v18985_v57 = vld [vmem:[#allocation28_spill] sm:$0xff] }
 0xa9e   :  { %11478 = vmatprep.subr.bf16.mxu0 %v13750_v48  ;;  %v8565_v13 = vmax.f32 %v18985_v57, %v8465_v17 }
 0xaa0   :  { %11962 = vmatmul.mubr.msk.bf16.gmra.mrb[136].mxu0 %vm8853_vm7, %v17980_v19  ;;  %v8665_v48 = vpack.c.bf16 %v8568_v10, %v8565_v13 }
 0xaa1   :  { %11965 = vmatprep.mubr.msk.bf16.mxu0 %vm8853_vm7, %v17986_v2  ;;  %11479 = vmatpush3.bf16.msra.mxu0 %v13751_v38 }
 0xaa2   :  { %11480 = vmatprep.subr.bf16.mxu0 %v13752_v50 }
 0xaa5   :  { %11481 = vmatpush3.bf16.msra.mxu0 %v13753_v18 }
 0xaa6   :  { %11482 = vmatprep.subr.bf16.mxu0 %v13754_v15 }
 0xaa8   :  { %11966 = vmatmul.mubr.msk.bf16.gmra.mrb[140].mxu0 %vm8853_vm7, %v18017_v0 }
 0xaa9   :  { %11483 = vmatpush3.bf16.msra.mxu0 %v13755_v55  ;;  %9227 = vmatprep.mubr.bf16.mxu0 %v8666_v52 }
 0xaaa   :  { %11484 = vmatprep.subr.bf16.mxu0 %v13756_v32 }
 0xaad   :  { %11485 = vmatpush3.bf16.msra.mxu0 %v13757_v3 }
 0xaae   :  { %11969 = vmatprep.subr.bf16.mxu0 %v13758_v43 }
 0xab0   :  { %9228 = vmatmul.mubr.bf16.vlgmr.msra.gmra.mrb[144].mxu0 %v8665_v48 }
 0xab1   :  { %9235 = vmatprep.mubr.bf16.mxu0 %v17702_v9  ;;  %11970 = vmatpush3.bf16.msra.mxu0 %v13758_v43  ;;  %v13762_v9 = vld [vmem:[%s18446_s6 + $0x1c0] sm:$0xff]  }
 0xab2   :  { %11971 = vmatprep.subr.bf16.mxu0 %v13759_v16 }
 0xab5   :  { %11972 = vmatpush3.bf16.msra.mxu0 %v13759_v16 }
 0xab6   :  { %11973 = vmatprep.subr.bf16.mxu0 %v13760_v61 }
 0xab8   :  { %9236 = vmatmul.mubr.bf16.gmra.mrb[148].mxu0 %v17704_v58 }
 0xab9   :  { %9243 = vmatprep.mubr.bf16.mxu0 %v17750_v25  ;;  %11974 = vmatpush3.bf16.msra.mxu0 %v13760_v61 }
 0xaba   :  { %11975 = vmatprep.subr.bf16.mxu0 %v13761_v60 }
 0xabd   :  { %11976 = vmatpush3.bf16.msra.mxu0 %v13761_v60 }
 0xabe   :  { %11993 = vmatprep.subr.bf16.mxu0 %v13762_v9 }
 0xac0   :  { %9244 = vmatmul.mubr.bf16.gmra.mrb[152].mxu0 %v17752_v39 }
 0xac1   :  { %9251 = vmatprep.mubr.bf16.mxu0 %v17770_v42 }
 0xac8   :  { %9252 = vmatmul.mubr.bf16.gmra.mrb[156].mxu0 %v17772_v51 }
 0xac9   :  { %9259 = vmatprep.mubr.bf16.mxu0 %v17790_v27  ;;  %v13763_v27 = vld [vmem:[%s18446_s6 + $0x1c8] sm:$0xff]  }
 0xad0   :  { %9260 = vmatmul.mubr.bf16.gmra.mrb[160].mxu0 %v17792_v34 }
 0xad1   :  { %9267 = vmatprep.mubr.bf16.mxu0 %v17810_v12  ;;  %v13764_v12 = vld [vmem:[%s18446_s6 + $0x1d0] sm:$0xff]  }
 0xad8   :  { %9268 = vmatmul.mubr.bf16.gmra.mrb[164].mxu0 %v17812_v44  ;;  %v13765_v44 = vld [vmem:[%s18446_s6 + $0x1d8] sm:$0xff]  }
 0xad9   :  { %9275 = vmatprep.mubr.bf16.mxu0 %v17838_v54 }
 0xae0   :  { %9276 = vmatmul.mubr.bf16.gmra.mrb[168].mxu0 %v17840_v41 }
 0xae1   :  { %9283 = vmatprep.mubr.bf16.mxu0 %v17866_v23 }
 0xae8   :  { %9284 = vmatmul.mubr.bf16.gmra.mrb[172].mxu0 %v17868_v28 }
 0xae9   :  { %11977 = vmatprep.mubr.msk.bf16.mxu0 %vm8853_vm7, %v8667_v33 }
 0xaeb   :  { %v11410_v58 = vpop.f32.mrb[96].mxu0 }
 0xaec   :  { %v11411_v25 = vpop.f32.mrb[97].mxu0 }
 0xaed   :  { %v18064_v39 = vadd.f32 %v11411_v25, %v11410_v58  ;;  %v11413_v42 = vpop.f32.mrb[98].mxu0 }
 0xaee   :  { %v11414_v51 = vpop.f32.mrb[99].mxu0 }
 0xaef   :  { %v18069_v34 = vadd.f32 %v11414_v51, %v11413_v42 }
 0xaf0   :  { %11978 = vmatmul.mubr.msk.bf16.vlgmr.msra.gmra.mrb[128].mxu0 %vm8853_vm7, %v17693_v36 }
 0xaf1   :  { %11981 = vmatprep.mubr.msk.bf16.mxu0 %vm8853_vm7, %v17741_v7  ;;  %11994 = vmatpush3.bf16.msra.mxu0 %v13762_v9 }
 0xaf2   :  { %11995 = vmatprep.subr.bf16.mxu0 %v13763_v27 }
 0xaf5   :  { %11996 = vmatpush3.bf16.msra.mxu0 %v13763_v27 }
 0xaf6   :  { %11997 = vmatprep.subr.bf16.mxu0 %v13764_v12 }
 0xaf8   :  { %11982 = vmatmul.mubr.msk.bf16.gmra.mrb[132].mxu0 %vm8853_vm7, %v17764_v14 }
 0xaf9   :  { %11985 = vmatprep.mubr.msk.bf16.mxu0 %vm8853_vm7, %v17784_v45  ;;  %11998 = vmatpush3.bf16.msra.mxu0 %v13764_v12 }
 0xafa   :  { %11999 = vmatprep.subr.bf16.mxu0 %v13765_v44 }
 0xafb   :  { %v11416_v36 = vpop.f32.mrb[100].mxu0  ;;  %v11562_v54 = vpop.f32.mrb[104].mxu1 }
 0xafc   :  { %v11417_v41 = vpop.f32.mrb[101].mxu0  ;;  %v11563_v23 = vpop.f32.mrb[105].mxu1 }
 0xafd   :  { %v18085_v28 = vadd.f32 %v11417_v41, %v11416_v36  ;;  %v18087_v62 = vadd.f32 %v11563_v23, %v11562_v54  ;;  %v11419_v56 = vpop.f32.mrb[102].mxu0  ;;  %v11565_v33 = vpop.f32.mrb[106].mxu1  ;;  %12000 = vmatpush3.bf16.msra.mxu0 %v13765_v44 }
 0xafe   :  { %v11420_v8 = vpop.f32.mrb[103].mxu0  ;;  %v11566_v49 = vpop.f32.mrb[107].mxu1 }
 0xaff   :  { %v18089_v22 = vadd.f32 %v11420_v8, %v11419_v56  ;;  %v18091_v20 = vadd.f32 %v11566_v49, %v11565_v33 }
 0xb00   :  { %11986 = vmatmul.mubr.msk.bf16.gmra.mrb[136].mxu0 %vm8853_vm7, %v17804_v46 }
 0xb01   :  { %11989 = vmatprep.mubr.msk.bf16.mxu0 %vm8853_vm7, %v17980_v19 }
 0xb08   :  { %11990 = vmatmul.mubr.msk.bf16.gmra.mrb[140].mxu0 %vm8853_vm7, %v17986_v2 }
 0xb09   :  { %12001 = vmatprep.mubr.msk.bf16.mxu0 %vm8853_vm7, %v17741_v7 }
 0xb0b   :  { %v11422_v38 = vpop.f32.mrb[104].mxu0  ;;  %v11568_v5 = vpop.f32.mrb[108].mxu1 }
 0xb0c   :  { %v11423_v50 = vpop.f32.mrb[105].mxu0  ;;  %v11569_v35 = vpop.f32.mrb[109].mxu1 }
 0xb0d   :  { %v18101_v18 = vadd.f32 %v11423_v50, %v11422_v38  ;;  %v18103_v26 = vadd.f32 %v11569_v35, %v11568_v5  ;;  %v11425_v31 = vpop.f32.mrb[106].mxu0  ;;  %v11571_v4 = vpop.f32.mrb[110].mxu1 }
 0xb0e   :  { %v11426_v15 = vpop.f32.mrb[107].mxu0  ;;  %v11572_v37 = vpop.f32.mrb[111].mxu1 }
 0xb0f   :  { %v18105_v1 = vadd.f32 %v11426_v15, %v11425_v31  ;;  %v18107_v11 = vadd.f32 %v11572_v37, %v11571_v4 }
 0xb10   :  { %12002 = vmatmul.mubr.msk.bf16.vlgmr.msra.gmra.mrb[128].mxu0 %vm8853_vm7, %v17764_v14 }
 0xb11   :  { %12005 = vmatprep.mubr.msk.bf16.mxu0 %vm8853_vm7, %v17784_v45 }
 0xb18   :  { %12006 = vmatmul.mubr.msk.bf16.gmra.mrb[132].mxu0 %vm8853_vm7, %v17804_v46 }
 0xb19   :  { %12009 = vmatprep.mubr.msk.bf16.mxu0 %vm8853_vm7, %v17980_v19 }
 0xb1b   :  { %v11428_v7 = vpop.f32.mrb[108].mxu0  ;;  %v11574_v40 = vpop.f32.mrb[112].mxu1 }
 0xb1c   :  { %v11429_v59 = vpop.f32.mrb[109].mxu0  ;;  %v11575_v6 = vpop.f32.mrb[113].mxu1 }
 0xb1d   :  { %v18117_v55 = vadd.f32 %v11429_v59, %v11428_v7  ;;  %v18119_v53 = vadd.f32 %v11575_v6, %v11574_v40  ;;  %v11431_v47 = vpop.f32.mrb[110].mxu0  ;;  %v11577_v32 = vpop.f32.mrb[114].mxu1 }
 0xb1e   :  { %v11432_v14 = vpop.f32.mrb[111].mxu0  ;;  %v11578_v30 = vpop.f32.mrb[115].mxu1 }
 0xb1f   :  { %v18121_v17 = vadd.f32 %v11432_v14, %v11431_v47  ;;  %v18123_v45 = vadd.f32 %v11578_v30, %v11577_v32 }
 0xb20   :  { %12010 = vmatmul.mubr.msk.bf16.gmra.mrb[136].mxu0 %vm8853_vm7, %v17986_v2 }
 0xb21   :  { %12013 = vmatprep.mubr.msk.bf16.mxu0 %vm8853_vm7, %v18017_v0 }
 0xb28   :  { %12014 = vmatmul.mubr.msk.bf16.gmra.mrb[140].mxu0 %vm8853_vm7, %v9432_v24 }
 0xb2b   :  { %v11434_v46 = vpop.f32.mrb[112].mxu0  ;;  %v11580_v19 = vpop.f32.mrb[116].mxu1 }
 0xb2c   :  { %v11435_v52 = vpop.f32.mrb[113].mxu0  ;;  %v11581_v3 = vpop.f32.mrb[117].mxu1 }
 0xb2d   :  { %v18133_v29 = vadd.f32 %v11435_v52, %v11434_v46  ;;  %v18135_v10 = vadd.f32 %v11581_v3, %v11580_v19  ;;  %v11437_v57 = vpop.f32.mrb[114].mxu0  ;;  %v11583_v13 = vpop.f32.mrb[118].mxu1 }
 0xb2e   :  { %v11438_v43 = vpop.f32.mrb[115].mxu0  ;;  %v11584_v2 = vpop.f32.mrb[119].mxu1 }
 0xb2f   :  { %v18137_v48 = vadd.f32 %v11438_v43, %v11437_v57  ;;  %v18139_v0 = vadd.f32 %v11584_v2, %v11583_v13 }
 0xb3b   :  { %v11440_v16 = vpop.f32.mrb[116].mxu0  ;;  %v11586_v21 = vpop.f32.mrb[120].mxu1 }
 0xb3c   :  { %v11441_v63 = vpop.f32.mrb[117].mxu0  ;;  %v11587_v24 = vpop.f32.mrb[121].mxu1 }
 0xb3d   :  { %v18141_v61 = vadd.f32 %v11441_v63, %v11440_v16  ;;  %v18143_v60 = vadd.f32 %v11587_v24, %v11586_v21  ;;  %v11443_v9 = vpop.f32.mrb[118].mxu0  ;;  %v11589_v58 = vpop.f32.mrb[122].mxu1 }
 0xb3e   :  { %v11444_v25 = vpop.f32.mrb[119].mxu0  ;;  %v11590_v42 = vpop.f32.mrb[123].mxu1 }
 0xb3f   :  { %v18145_v51 = vadd.f32 %v11444_v25, %v11443_v9  ;;  %v18147_v27 = vadd.f32 %v11590_v42, %v11589_v58  ;;  %v13766_v58 = vld [vmem:[%s18448_s8] sm:$0xff]   ;;  %v13851_v25 = vmov 0.0  }
 0xb40   :  { %12017 = vmatprep.subr.bf16.mxu1 %v13851_v25  ;;  %12057 = vmatprep.subr.bf16.mxu0 %v13851_v25 }
 0xb41   :  { %12018 = vmatpush3.bf16.msra.mxu1 %v13766_v58  ;;  %12023 = vmatprep.mubr.msk.bf16.mxu1 %vm13852_vm8, %v13851_v25 }
 0xb42   :  { %12019 = vmatprep.subr.bf16.mxu1 %v13851_v25  ;;  %12073 = vmatprep.mubr.msk.bf16.mxu0 %vm13852_vm8, %v13851_v25 }
 0xb4b   :  { %v11446_v12 = vpop.f32.mrb[120].mxu0  ;;  %v11592_v44 = vpop.f32.mrb[124].mxu1 }
 0xb4c   :  { %v11447_v36 = vpop.f32.mrb[121].mxu0  ;;  %v11593_v54 = vpop.f32.mrb[125].mxu1 }
 0xb4d   :  { %v18149_v41 = vadd.f32 %v11447_v36, %v11446_v12  ;;  %v18151_v23 = vadd.f32 %v11593_v54, %v11592_v44  ;;  %v11449_v56 = vpop.f32.mrb[122].mxu0  ;;  %v11595_v33 = vpop.f32.mrb[126].mxu1 }
 0xb4e   :  { %v11450_v8 = vpop.f32.mrb[123].mxu0  ;;  %v11596_v49 = vpop.f32.mrb[127].mxu1 }
 0xb4f   :  { %v18153_v38 = vadd.f32 %v11450_v8, %v11449_v56  ;;  %v18155_v5 = vadd.f32 %v11596_v49, %v11595_v33 }
 0xb5b   :  { %v11452_v50 = vpop.f32.mrb[124].mxu0  ;;  %v11598_v35 = vpop.f32.mrb[128].mxu1 }
 0xb5c   :  { %v11453_v31 = vpop.f32.mrb[125].mxu0  ;;  %v11599_v4 = vpop.f32.mrb[129].mxu1 }
 0xb5d   :  { %v18157_v15 = vadd.f32 %v11453_v31, %v11452_v50  ;;  %v18159_v37 = vadd.f32 %v11599_v4, %v11598_v35  ;;  %v11455_v7 = vpop.f32.mrb[126].mxu0  ;;  %v11601_v40 = vpop.f32.mrb[130].mxu1 }
 0xb5e   :  { %v11456_v59 = vpop.f32.mrb[127].mxu0  ;;  %v11602_v6 = vpop.f32.mrb[131].mxu1 }
 0xb5f   :  { %v18161_v47 = vadd.f32 %v11456_v59, %v11455_v7  ;;  %v18163_v32 = vadd.f32 %v11602_v6, %v11601_v40 }
 0xb6b   :  { %v11604_v14 = vpop.f32.mrb[132].mxu1 }
 0xb6c   :  { %v11605_v30 = vpop.f32.mrb[133].mxu1 }
 0xb6d   :  { %v18165_v46 = vadd.f32 %v11605_v30, %v11604_v14  ;;  %v11607_v19 = vpop.f32.mrb[134].mxu1 }
 0xb6e   :  { %v11608_v52 = vpop.f32.mrb[135].mxu1 }
 0xb6f   :  { %v18167_v3 = vadd.f32 %v11608_v52, %v11607_v19 }
 0xb83   :  { %v11486_v57 = vpop.f32.mrb[144].mxu0 }
 0xb84   :  { %v11487_v13 = vpop.f32.mrb[145].mxu0 }
 0xb85   :  { %v11488_v43 = vadd.f32 %v11487_v13, %v11486_v57  ;;  %v11489_v2 = vpop.f32.mrb[146].mxu0 }
 0xb86   :  { %v11490_v16 = vpop.f32.mrb[147].mxu0 }
 0xb87   :  { %v12090_v21 = vadd.f32 %v11488_v43, %v18064_v39  ;;  %v11491_v63 = vadd.f32 %v11490_v16, %v11489_v2  ;;  %v13767_v39 = vld [vmem:[%s18448_s8 + $0x8] sm:$0xff]  }
 0xb88   :  { %12020 = vmatpush3.bf16.msra.mxu1 %v13767_v39 }
 0xb89   :  { %v12096_v24 = vadd.f32 %v11491_v63, %v18069_v34  ;;  %v18172_v9 = vadd.f32 %v12090_v21, %v18087_v62  ;;  %v13768_v62 = vld [vmem:[%s18448_s8 + $0x10] sm:$0x1f]   ;;  %12021 = vmatprep.subr.bf16.mxu1 %v13851_v25 }
 0xb8b   :  { %v11492_v42 = vpop.f32.mrb[148].mxu0  ;;  %v18180_v12 = vadd.f32 %v12096_v24, %v18091_v20  ;;  %v9883_v20 = vsel %vm6178_vm4, %v13768_v62, 0 }
 0xb8c   :  { %v11493_v34 = vpop.f32.mrb[149].mxu0  ;;  %12022 = vmatpush3.bf16.msra.mxu1 %v9883_v20 }
 0xb8d   :  { %v11494_v44 = vadd.f32 %v11493_v34, %v11492_v42  ;;  %v11495_v36 = vpop.f32.mrb[150].mxu0  ;;  %12027 = vmatprep.subr.bf16.mxu1 %v13851_v25 }
 0xb8e   :  { %v11496_v54 = vpop.f32.mrb[151].mxu0 }
 0xb8f   :  { %v12087_v56 = vadd.f32 %v11494_v44, %v18085_v28  ;;  %v11497_v33 = vadd.f32 %v11496_v54, %v11495_v36 }
 0xb91   :  { %v12093_v8 = vadd.f32 %v11497_v33, %v18089_v22  ;;  %v18194_v49 = vadd.f32 %v12087_v56, %v18103_v26 }
 0xb93   :  { %v11498_v50 = vpop.f32.mrb[152].mxu0  ;;  %v18197_v35 = vadd.f32 %v12093_v8, %v18107_v11 }
 0xb94   :  { %v11499_v31 = vpop.f32.mrb[153].mxu0 }
 0xb95   :  { %v11500_v28 = vadd.f32 %v11499_v31, %v11498_v50  ;;  %v11501_v4 = vpop.f32.mrb[154].mxu0 }
 0xb96   :  { %v11502_v7 = vpop.f32.mrb[155].mxu0 }
 0xb97   :  { %v12102_v40 = vadd.f32 %v11500_v28, %v18101_v18  ;;  %v11503_v59 = vadd.f32 %v11502_v7, %v11501_v4 }
 0xb99   :  { %v12108_v6 = vadd.f32 %v11503_v59, %v18105_v1  ;;  %v18203_v22 = vadd.f32 %v12102_v40, %v18119_v53 }
 0xb9b   :  { %v11504_v26 = vpop.f32.mrb[156].mxu0  ;;  %v18206_v14 = vadd.f32 %v12108_v6, %v18123_v45 }
 0xb9c   :  { %v11505_v11 = vpop.f32.mrb[157].mxu0 }
 0xb9d   :  { %v11506_v30 = vadd.f32 %v11505_v11, %v11504_v26  ;;  %v11507_v19 = vpop.f32.mrb[158].mxu0 }
 0xb9e   :  { %v11508_v52 = vpop.f32.mrb[159].mxu0 }
 0xb9f   :  { %v12099_v57 = vadd.f32 %v11506_v30, %v18117_v55  ;;  %v11509_v13 = vadd.f32 %v11508_v52, %v11507_v19 }
 0xba1   :  { %v12105_v43 = vadd.f32 %v11509_v13, %v18121_v17  ;;  %v18211_v18 = vadd.f32 %v12099_v57, %v18135_v10 }
 0xba3   :  { %v11510_v1 = vpop.f32.mrb[160].mxu0  ;;  %v18214_v53 = vadd.f32 %v12105_v43, %v18139_v0 }
 0xba4   :  { %v11511_v2 = vpop.f32.mrb[161].mxu0 }
 0xba5   :  { %v11512_v16 = vadd.f32 %v11511_v2, %v11510_v1  ;;  %v11513_v45 = vpop.f32.mrb[162].mxu0 }
 0xba6   :  { %v11514_v21 = vpop.f32.mrb[163].mxu0 }
 0xba7   :  { %v12114_v63 = vadd.f32 %v11512_v16, %v18133_v29  ;;  %v11515_v24 = vadd.f32 %v11514_v21, %v11513_v45 }
 0xba9   :  { %v12120_v58 = vadd.f32 %v11515_v24, %v18137_v48  ;;  %v18219_v55 = vadd.f32 %v12114_v63, %v18143_v60 }
 0xbab   :  { %v11516_v17 = vpop.f32.mrb[164].mxu0  ;;  %v18222_v10 = vadd.f32 %v12120_v58, %v18147_v27 }
 0xbac   :  { %v11517_v42 = vpop.f32.mrb[165].mxu0 }
 0xbad   :  { %v11518_v39 = vadd.f32 %v11517_v42, %v11516_v17  ;;  %v11519_v0 = vpop.f32.mrb[166].mxu0 }
 0xbae   :  { %v11520_v34 = vpop.f32.mrb[167].mxu0 }
 0xbaf   :  { %v12111_v62 = vadd.f32 %v11518_v39, %v18141_v61  ;;  %v11521_v44 = vadd.f32 %v11520_v34, %v11519_v0 }
 0xbb1   :  { %v12117_v36 = vadd.f32 %v11521_v44, %v18145_v51  ;;  %v18227_v29 = vadd.f32 %v12111_v62, %v18151_v23 }
 0xbb3   :  { %v11522_v48 = vpop.f32.mrb[168].mxu0  ;;  %v18230_v60 = vadd.f32 %v12117_v36, %v18155_v5 }
 0xbb4   :  { %v11523_v54 = vpop.f32.mrb[169].mxu0 }
 0xbb5   :  { %v11524_v56 = vadd.f32 %v11523_v54, %v11522_v48  ;;  %v11525_v27 = vpop.f32.mrb[170].mxu0 }
 0xbb6   :  { %v11526_v33 = vpop.f32.mrb[171].mxu0 }
 0xbb7   :  { %v12126_v20 = vadd.f32 %v11524_v56, %v18149_v41  ;;  %v11527_v8 = vadd.f32 %v11526_v33, %v11525_v27 }
 0xbb9   :  { %v12132_v50 = vadd.f32 %v11527_v8, %v18153_v38  ;;  %v18235_v61 = vadd.f32 %v12126_v20, %v18159_v37 }
 0xbbb   :  { %v11528_v51 = vpop.f32.mrb[172].mxu0  ;;  %v18238_v23 = vadd.f32 %v12132_v50, %v18163_v32  ;;  %v18251_v32 = vld [vmem:[%s18447_s7] ss:$0 sm:$0xff] }
 0xbbc   :  { %v11529_v31 = vpop.f32.mrb[173].mxu0 }
 0xbbd   :  { %v11530_v28 = vadd.f32 %v11529_v31, %v11528_v51  ;;  %v11531_v5 = vpop.f32.mrb[174].mxu0 }
 0xbbe   :  { %v11532_v4 = vpop.f32.mrb[175].mxu0 }
 0xbbf   :  { %v12123_v7 = vadd.f32 %v11530_v28, %v18157_v15  ;;  %v11533_v40 = vadd.f32 %v11532_v4, %v11531_v5 }
 0xbc1   :  { %v12129_v59 = vadd.f32 %v11533_v40, %v18161_v47  ;;  %v18243_v41 = vadd.f32 %v12123_v7, %v18165_v46 }
 0xbc3   :  { %v18246_v38 = vadd.f32 %v12129_v59, %v18167_v3 }
 0xbe3   :  { %v12003_v37 = vpop.f32.mrb[128].mxu0 }
 0xbe4   :  { %v12089_v6 = vadd.f32 %v18194_v49, %v12003_v37  ;;  %v9687_v26 = vpop.f32.mrb[129].mxu0 }
 0xbe5   :  { %v12092_v15 = vadd.f32 %v18172_v9, %v9687_v26  ;;  %v12004_v11 = vpop.f32.mrb[130].mxu0 }
 0xbe6   :  { %v9775_v47 = vadd.f32 %v12089_v6, %v18251_v32  ;;  %v12095_v46 = vadd.f32 %v18197_v35, %v12004_v11  ;;  %v9690_v30 = vpop.f32.mrb[131].mxu0 }
 0xbe7   :  { %v9773_v3 = vadd.f32 %v12092_v15, %v18251_v32  ;;  %v12098_v19 = vadd.f32 %v18180_v12, %v9690_v30 }
 0xbe8   :  { %v9791_v52 = vmax.f32 %v9775_v47, 0.0  ;;  %v9776_v57 = vadd.f32 %v12095_v46, %v18251_v32 }
 0xbe9   :  { %v9789_v13 = vmax.f32 %v9773_v3, 0.0  ;;  %v9774_v43 = vadd.f32 %v12098_v19, %v18251_v32 }
 0xbea   :  { %v9792_v9 = vmax.f32 %v9776_v57, 0.0 }
 0xbeb   :  { %v18265_v49 = vmax.f32 %v9789_v13, %v9791_v52  ;;  %v9790_v35 = vmax.f32 %v9774_v43, 0.0  ;;  %v12007_v1 = vpop.f32.mrb[132].mxu0 }
 0xbec   :  { %v12101_v12 = vadd.f32 %v18211_v18, %v12007_v1  ;;  %v9703_v2 = vpop.f32.mrb[133].mxu0  ;;  %v13781_v1 = vld [vmem:[%s18450_s10 + $0x18] sm:$0xff]  }
 0xbed   :  { %v18268_v16 = vmax.f32 %v9790_v35, %v9792_v9  ;;  %v12104_v45 = vadd.f32 %v18203_v22, %v9703_v2  ;;  %v12008_v21 = vpop.f32.mrb[134].mxu0  ;;  %v13780_v35 = vld [vmem:[%s18450_s10 + $0x10] sm:$0xff]   ;;  %v13783_v2 = vld [vmem:[%s18450_s10 + $0x28] sm:$0xff]  }
 0xbee   :  { %v9779_v63 = vadd.f32 %v12101_v12, %v18251_v32  ;;  %v12107_v24 = vadd.f32 %v18214_v53, %v12008_v21  ;;  %v9706_v58 = vpop.f32.mrb[135].mxu0  ;;  %v13782_v12 = vld [vmem:[%s18450_s10 + $0x20] sm:$0xff]  }
 0xbef   :  { %v13491_v17 = vpack.i.bf16 %v18268_v16, %v18265_v49  ;;  %v9777_v42 = vadd.f32 %v12104_v45, %v18251_v32  ;;  %v12110_v39 = vadd.f32 %v18206_v14, %v9706_v58 }
 0xbf0   :  { %v9795_v0 = vmax.f32 %v9779_v63, 0.0  ;;  %v9780_v18 = vadd.f32 %v12107_v24, %v18251_v32 }
 0xbf1   :  { %v9793_v34 = vmax.f32 %v9777_v42, 0.0  ;;  %v9778_v62 = vadd.f32 %v12110_v39, %v18251_v32  ;;  %13492 = vrot.lane.b32.xlu1 %v13491_v17, %s13849_s22  ;;  %v13769_v17 = vld [vmem:[%s18448_s8 + $0x18] sm:$0xff]  }
 0xbf2   :  { %v9796_v22 = vmax.f32 %v9780_v18, 0.0 }
 0xbf3   :  { %v18280_v44 = vmax.f32 %v9793_v34, %v9795_v0  ;;  %v9794_v53 = vmax.f32 %v9778_v62, 0.0  ;;  %v12011_v36 = vpop.f32.mrb[136].mxu0  ;;  %v13770_v0 = vld [vmem:[%s18448_s8 + $0x20] sm:$0xff]  }
 0xbf4   :  { %v12113_v48 = vadd.f32 %v18227_v29, %v12011_v36  ;;  %v9719_v54 = vpop.f32.mrb[137].mxu0 }
 0xbf5   :  { %v18283_v56 = vmax.f32 %v9794_v53, %v9796_v22  ;;  %v12116_v14 = vadd.f32 %v18219_v55, %v9719_v54  ;;  %v12012_v27 = vpop.f32.mrb[138].mxu0  ;;  %v13772_v53 = vld [vmem:[%s18448_s8 + $0x30] sm:$0xff]  }
 0xbf6   :  { %v9783_v33 = vadd.f32 %v12113_v48, %v18251_v32  ;;  %v12119_v20 = vadd.f32 %v18230_v60, %v12012_v27  ;;  %v9722_v8 = vpop.f32.mrb[139].mxu0 }
 0xbf7   :  { %v13496_v50 = vpack.i.bf16 %v18283_v56, %v18280_v44  ;;  %v9781_v51 = vadd.f32 %v12116_v14, %v18251_v32  ;;  %v12122_v31 = vadd.f32 %v18222_v10, %v9722_v8  ;;  %v13774_v14 = vld [vmem:[%s18448_s8 + $0x40] sm:$0x1f]   ;;  %v13775_v8 = vld [vmem:[%s18448_s8 + $0x48] sm:$0xff]  }
 0xbf8   :  { %v9799_v28 = vmax.f32 %v9783_v33, 0.0  ;;  %v9784_v29 = vadd.f32 %v12119_v20, %v18251_v32  ;;  %v10037_v20 = vsel %vm6178_vm4, %v13774_v14, 0 }
 0xbf9   :  { %v9797_v5 = vmax.f32 %v9781_v51, 0.0  ;;  %v9782_v4 = vadd.f32 %v12122_v31, %v18251_v32  ;;  %13497 = vrot.lane.b32.xlu0 %v13496_v50, %s13849_s22  ;;  %v13776_v31 = vld [vmem:[%s18448_s8 + $0x50] sm:$0xff]  }
 0xbfa   :  { %v9800_v55 = vmax.f32 %v9784_v29, 0.0 }
 0xbfb   :  { %v18295_v7 = vmax.f32 %v9797_v5, %v9799_v28  ;;  %v9798_v60 = vmax.f32 %v9782_v4, 0.0  ;;  %v12015_v40 = vpop.f32.mrb[140].mxu0  ;;  %v13777_v5 = vld [vmem:[%s18448_s8 + $0x58] sm:$0x1f]  }
 0xbfc   :  { %v12125_v59 = vadd.f32 %v18243_v41, %v12015_v40  ;;  %v9735_v37 = vpop.f32.mrb[141].mxu0  ;;  %v13784_v40 = vld [vmem:[%s18450_s10 + $0x30] sm:$0xff]  }
 0xbfd   :  { %v18298_v6 = vmax.f32 %v9798_v60, %v9800_v55  ;;  %v12128_v10 = vadd.f32 %v18235_v61, %v9735_v37  ;;  %v12016_v26 = vpop.f32.mrb[142].mxu0  ;;  %v11202_v37 = vld [vmem:[%s18449_s9] ss:$0 sm:$0xff] }
 0xbfe   :  { %v9787_v15 = vadd.f32 %v12125_v59, %v18251_v32  ;;  %v12131_v11 = vadd.f32 %v18246_v38, %v12016_v26  ;;  %v9738_v47 = vpop.f32.mrb[143].mxu0  ;;  %v13785_v59 = vld [vmem:[%s18450_s10 + $0x38] sm:$0xff]  }
 0xbff   :  { %v13501_v46 = vpack.i.bf16 %v18298_v6, %v18295_v7  ;;  %v9785_v30 = vadd.f32 %v12128_v10, %v18251_v32  ;;  %v12134_v3 = vadd.f32 %v18238_v23, %v9738_v47  ;;  %v13778_v23 = vld [vmem:[%s18450_s10] sm:$0xff]  }
 0xc00   :  { %v9803_v19 = vmax.f32 %v9787_v15, 0.0  ;;  %v9788_v41 = vadd.f32 %v12131_v11, %v18251_v32  ;;  %12058 = vmatpush3.bf16.msra.mxu0 %v13778_v23 }
 0xc01   :  { %v9801_v52 = vmax.f32 %v9785_v30, 0.0  ;;  %v9786_v57 = vadd.f32 %v12134_v3, %v18251_v32  ;;  %13502 = vrot.lane.b32.xlu1 %v13501_v46, %s13849_s22  ;;  %v13779_v32 = vld [vmem:[%s18450_s10 + $0x8] sm:$0xff]   ;;  %12059 = vmatprep.subr.bf16.mxu0 %v13851_v25  ;;  %v13786_v3 = vld [vmem:[%s18452_s12] sm:$0xff]  }
 0xc02   :  { %v9804_v61 = vmax.f32 %v9788_v41, 0.0  ;;  %v13787_v41 = vld [vmem:[%s18452_s12 + $0x8] sm:$0xff]  }
 0xc03   :  { %v18310_v13 = vmax.f32 %v9801_v52, %v9803_v19  ;;  %v9802_v38 = vmax.f32 %v9786_v57, 0.0  ;;  %v13788_v52 = vld [vmem:[%s18452_s12 + $0x10] sm:$0xff]   ;;  %v11233_v57 = vld [vmem:[%s18451_s11] ss:$0 sm:$0xff]  ;;  %s13853_s11 = smov [#allocation5]  }
 0xc04   :  { %12060 = vmatpush3.bf16.msra.mxu0 %v13779_v32  ;;  %s10378_s12 = sshll.u32 %s13853_s11, 4  ;;  %s10379_s12 = int_to_ptr.vmem [resolvable:$true] %s10378_s12 }
 0xc05   :  { %v18312_v43 = vmax.f32 %v9802_v38, %v9804_v61  ;;  %12061 = vmatprep.subr.bf16.mxu0 %v13851_v25  ;;  %p13824_p9 = scmp.lt.s32.totalorder %s10379_s12, %s10379_s12 }
 0xc07   :  { %v13506_v9 = vpack.i.bf16 %v18312_v43, %v18310_v13 }
 0xc08   :  { %12062 = vmatpush3.bf16.msra.mxu0 %v13780_v35 }
 0xc09   :  { %13507 = vrot.lane.b32.xlu0 %v13506_v9, %s13849_s22  ;;  %12063 = vmatprep.subr.bf16.mxu0 %v13851_v25 }
 0xc0c   :  { %12064 = vmatpush3.bf16.msra.mxu0 %v13781_v1 }
 0xc0d   :  { %12065 = vmatprep.subr.bf16.mxu0 %v13851_v25 }
 0xc10   :  { %12066 = vmatpush3.bf16.msra.mxu0 %v13782_v12 }
 0xc11   :  { %12067 = vmatprep.subr.bf16.mxu0 %v13851_v25 }
 0xc14   :  { %12068 = vmatpush3.bf16.msra.mxu0 %v13783_v2 }
 0xc15   :  { %12069 = vmatprep.subr.bf16.mxu0 %v13851_v25 }
 0xc18   :  { %12070 = vmatpush3.bf16.msra.mxu0 %v13784_v40 }
 0xc19   :  { %12071 = vmatprep.subr.bf16.mxu0 %v13851_v25 }
 0xc1c   :  { %12072 = vmatpush3.bf16.msra.mxu0 %v13785_v59 }
 0xc1d   :  { %12077 = vmatprep.subr.bf16.mxu0 %v13851_v25 }
 0xc63   :  { %v13493_v45 = vpop.permute.xlu1 %13492 }
 0xc64   :  { %v13495_v21 = vunpack.i.h.bf16 %v13493_v45  ;;  %v13494_v63 = vunpack.i.l.bf16 %v13493_v45 }
 0xc66   :  { %v9846_v24 = vmax.f32 %v18268_v16, %v13495_v21  ;;  %v9845_v58 = vmax.f32 %v18265_v49, %v13494_v63  ;;  %v13771_v49 = vld [vmem:[%s18448_s8 + $0x28] sm:$0x1f]  }
 0xc67   :  { %v9963_v22 = vsel %vm6178_vm4, %v13771_v49, 0 }
 0xc68   :  { %v9860_v42 = vpack.c.bf16 %v9846_v24, %v9845_v58 }
 0xc6a   :  { %12024 = vmatmul.mubr.msk.bf16.vlgmr.msra.gmra.mrb[136].mxu1 %vm9878_vm9, %v9860_v42 }
 0xc6b   :  { %v13498_v39 = vpop.permute.xlu0 %13497  ;;  %12028 = vmatpush3.bf16.msra.mxu1 %v13769_v17  ;;  %12033 = vmatprep.mubr.msk.bf16.mxu1 %vm13852_vm8, %v13851_v25 }
 0xc6c   :  { %v13500_v16 = vunpack.i.h.bf16 %v13498_v39  ;;  %v13499_v18 = vunpack.i.l.bf16 %v13498_v39  ;;  %12029 = vmatprep.subr.bf16.mxu1 %v13851_v25 }
 0xc6e   :  { %v9848_v34 = vmax.f32 %v18283_v56, %v13500_v16  ;;  %v9847_v62 = vmax.f32 %v18280_v44, %v13499_v18  ;;  %v13773_v44 = vld [vmem:[%s18448_s8 + $0x38] sm:$0xff]  }
 0xc6f   :  { %12030 = vmatpush3.bf16.msra.mxu1 %v13770_v0 }
 0xc70   :  { %12031 = vmatprep.subr.bf16.mxu1 %v13851_v25  ;;  %v9941_v36 = vpack.c.bf16 %v9848_v34, %v9847_v62 }
 0xc73   :  { %12032 = vmatpush3.bf16.msra.mxu1 %v9963_v22  ;;  %v13503_v48 = vpop.permute.xlu1 %13502 }
 0xc74   :  { %12037 = vmatprep.subr.bf16.mxu1 %v13851_v25  ;;  %v13505_v54 = vunpack.i.h.bf16 %v13503_v48  ;;  %v13504_v56 = vunpack.i.l.bf16 %v13503_v48 }
 0xc76   :  { %12034 = vmatmul.mubr.msk.bf16.vlgmr.msra.gmra.mrb[136].mxu1 %vm9878_vm9, %v9941_v36  ;;  %v9850_v27 = vmax.f32 %v18298_v6, %v13505_v54  ;;  %v9849_v33 = vmax.f32 %v18295_v7, %v13504_v56  ;;  %v10111_v7 = vsel %vm6178_vm4, %v13777_v5, 0 }
 0xc77   :  { %12038 = vmatpush3.bf16.msra.mxu1 %v13772_v53  ;;  %12043 = vmatprep.mubr.msk.bf16.mxu1 %vm13852_vm8, %v13851_v25 }
 0xc78   :  { %12039 = vmatprep.subr.bf16.mxu1 %v13851_v25  ;;  %v10015_v50 = vpack.c.bf16 %v9850_v27, %v9849_v33 }
 0xc7b   :  { %12040 = vmatpush3.bf16.msra.mxu1 %v13773_v44  ;;  %v13508_v51 = vpop.permute.xlu0 %13507 }
 0xc7c   :  { %12041 = vmatprep.subr.bf16.mxu1 %v13851_v25  ;;  %v13510_v28 = vunpack.i.h.bf16 %v13508_v51  ;;  %v13509_v29 = vunpack.i.l.bf16 %v13508_v51 }
 0xc7e   :  { %v9852_v4 = vmax.f32 %v18312_v43, %v13510_v28  ;;  %v9851_v55 = vmax.f32 %v18310_v13, %v13509_v29 }
 0xc7f   :  { %12042 = vmatpush3.bf16.msra.mxu1 %v10037_v20 }
 0xc80   :  { %12047 = vmatprep.subr.bf16.mxu1 %v13851_v25  ;;  %v10089_v60 = vpack.c.bf16 %v9852_v4, %v9851_v55 }
 0xc82   :  { %12044 = vmatmul.mubr.msk.bf16.vlgmr.msra.gmra.mrb[136].mxu1 %vm9878_vm9, %v10015_v50 }
 0xc83   :  { %12048 = vmatpush3.bf16.msra.mxu1 %v13775_v8  ;;  %12053 = vmatprep.mubr.msk.bf16.mxu1 %vm13852_vm8, %v13851_v25 }
 0xc84   :  { %12049 = vmatprep.subr.bf16.mxu1 %v13851_v25 }
 0xc87   :  { %12050 = vmatpush3.bf16.msra.mxu1 %v13776_v31 }
 0xc88   :  { %12051 = vmatprep.subr.bf16.mxu1 %v13851_v25 }
 0xc8b   :  { %12052 = vmatpush3.bf16.msra.mxu1 %v10111_v7 }
 0xc8e   :  { %12054 = vmatmul.mubr.msk.bf16.vlgmr.msra.gmra.mrb[136].mxu1 %vm9878_vm9, %v10089_v60 }
 0xd61   :  { %v10147_v6 = vpop.f32.mrb[136].mxu1 }
 0xd62   :  { %v12135_v10 = vadd.f32 %v11202_v37, %v10147_v6  ;;  %v12055_v26 = vpop.f32.mrb[137].mxu1 }
 0xd63   :  { %v10150_v15 = vpop.f32.mrb[138].mxu1 }
 0xd64   :  { %v12136_v11 = vadd.f32 %v11202_v37, %v10150_v15  ;;  %v12056_v47 = vpop.f32.mrb[139].mxu1  ;;  %v10156_v46 = vmax.f32 %v12135_v10, 0.0 }
 0xd66   :  { %v10157_v30 = vmax.f32 %v12136_v11, 0.0 }
 0xd68   :  { %v10174_v19 = vpack.c.bf16 %v10157_v30, %v10156_v46 }
 0xd6a   :  { %12074 = vmatmul.mubr.bf16.vlgmr.msra.gmra.mrb[176].mxu0 %v10174_v19 }
 0xd6b   :  { %12078 = vmatpush3.bf16.msra.mxu0 %v13786_v3  ;;  %12083 = vmatprep.mubr.msk.bf16.mxu0 %vm13852_vm8, %v13851_v25 }
 0xd6c   :  { %12079 = vmatprep.subr.bf16.mxu0 %v13851_v25 }
 0xd6f   :  { %12080 = vmatpush3.bf16.msra.mxu0 %v13787_v41 }
 0xd70   :  { %12081 = vmatprep.subr.bf16.mxu0 %v13851_v25  ;;  %v11242_v25 = vld [vmem:[%s18453_s13] ss:$0 sm:$0xff]  ;;  %s13819_s13 = scalar_lea.vmem %s10379_s12, 256 }
 0xd71   :  { %p13820_p8 = scmp.ne.s32.totalorder %s10379_s12, %s13819_s13  ;;  %p13825_p10 = scmp.lt.s32.totalorder %s13819_s13, %s13819_s13 }
 0xd73   :  { %12082 = vmatpush3.bf16.msra.mxu0 %v13788_v52  ;;  %p13826_p11 = por %p13825_p10, %p13824_p9 }
 0xd75   :  { %p13827_p12 = pnand %p13826_p11, %p13820_p8 }
 0xe3d   :  { %v10264_v61 = vpop.f32.mrb[176].mxu0 }
 0xe3e   :  { %v10265_v13 = vadd.f32 %v11233_v57, %v10264_v61  ;;  %v12075_v38 = vpop.f32.mrb[177].mxu0 }
 0xe3f   :  { %v10267_v43 = vpop.f32.mrb[178].mxu0 }
 0xe40   :  { %v10268_v9 = vadd.f32 %v11233_v57, %v10267_v43  ;;  %v12076_v23 = vpop.f32.mrb[179].mxu0  ;;  %v10271_v32 = vmax.f32 %v10265_v13, 0.0 }
 0xe42   :  { %v10272_v35 = vmax.f32 %v10268_v9, 0.0 }
 0xe44   :  { %v10279_v1 = vpack.c.bf16 %v10272_v35, %v10271_v32 }
 0xe46   :  { %12084 = vmatmul.mubr.msk.bf16.vlgmr.msra.gmra.mrb[180].mxu0 %vm279_vm0, %v10279_v1 }
 0xf19   :  { %v10342_v12 = vpop.f32.mrb[180].mxu0 }
 0xf1a   :  { %v10343_v2 = vadd.f32 %v11242_v25, %v10342_v12  ;;  %v12085_v45 = vpop.f32.mrb[181].mxu0 }
 0xf1b   :  { %v10345_v21 = vpop.f32.mrb[182].mxu0 }
 0xf1c   :  { %v10346_v63 = vadd.f32 %v11242_v25, %v10345_v21  ;;  %10349 = vmax.xlane.f32.xlu1 %v10343_v2  ;;  %v12086_v24 = vpop.f32.mrb[183].mxu0 }
 0xf1e   :  { %10351 = vmax.xlane.f32.xlu0 %v10346_v63 }
 0xfa9   :  { %v10350_v58 = vpop.xlane.xlu1 %10349 }
 0xfaa   :  { %v10353_v17 = vsub.f32 %v10343_v2, %v10350_v58 }
 0xfab   :  { %v10352_v42 = vpop.xlane.xlu0 %10351 }
 0xfac   :  { %v10355_v39 = vmul.f32 1.442695, %v10353_v17  ;;  %v10354_v0 = vsub.f32 %v10346_v63, %v10352_v42 }
 0xfae   :  { %13789 = vpow2.f32 %v10355_v39  ;;  %v10357_v16 = vmul.f32 1.442695, %v10354_v0 }
 0xfb0   :  { %13791 = vpow2.f32 %v10357_v16 }
 0xfb8   :  { %v13790_v18 = vpop.eup %13789 }
 0xfb9   :  { %10359 = vadd.xlane.f32.xlu0 %v13790_v18 }
 0xfba   :  { %v13792_v49 = vpop.eup %13791 }
 0xfbb   :  { %10361 = vadd.xlane.f32.xlu1 %v13792_v49 }
0x1046   :  { %v10360_v34 = vpop.xlane.xlu0 %10359 }
0x1047   :  { %13793 = vlog2.f32 %v10360_v34 }
0x1048   :  { %v10362_v62 = vpop.xlane.xlu1 %10361 }
0x1049   :  { %13795 = vlog2.f32 %v10362_v62 }
0x1051   :  { %v13794_v22 = vpop.eup %13793 }
0x1052   :  { %v10364_v53 = vmul.f32 0.6931472, %v13794_v22 }
0x1053   :  { %v13796_v36 = vpop.eup %13795 }
0x1054   :  { %v10367_v48 = vadd.f32 %v10364_v53, %v10350_v58  ;;  %v10366_v44 = vmul.f32 0.6931472, %v13796_v36 }
0x1056   :  { %v10369_v54 = vsub.f32 %v10343_v2, %v10367_v48  ;;  %v10368_v56 = vadd.f32 %v10366_v44, %v10352_v42 }
0x1058   :  { %10371 = vst [vmem:[#allocation5] sm:$0xff] %v10369_v54  ;;  %v10370_v14 = vsub.f32 %v10346_v63, %v10368_v56 }
0x105a   :  { %10372 = vst [vmem:[#allocation5 + $0x8] sm:$0xff] %v10370_v14 }
0x105b   :  { %13830 = shalt.err (!%p13827_p12)
}
0x105c   :  { %s13831_s17 = scalar_lea.hbm %s18454_s14, 256 }
0x105d   :  { %p13832_p13 = scmp.ne.s32.totalorder %s18454_s14, %s13831_s17  ;;  %p13835_p0 = scmp.lt.u32.totalorder %s13831_s17, %s18454_s14 }
0x105f   :  { %p13837_p1 = pnand %p13835_p0, %p13832_p13 }
0x1061   :  { %13840 = shalt.err (!%p13837_p1)
}
0x1062   :  { %s13854_s20 = smov 128   ;;  %s13855_s21 = smov 8  }
0x1063   :  { %10384 = dma.vmem_to_hbm [thread:$0]  %s10379_s12, 256, %s18454_s14, [#allocation4], %s13854_s20, %s13854_s20, %s13855_s21  }
0x1064   :  { %13843 = dma.done.wait [#allocation4], 256  }
0x1065   :  { %13844 = vsyncadd [#allocation4], 4294967040 }
0x1066   :  { %10388 = vsyncpa [#allocation3], 1 }
0x1067   :  { %10389 = vsyncpa [#allocation4], 1 }

</bundles_post_ra>
